<compile_context>
chip_gen: v7x
topology: tpu7x:2x2x1
jax: 0.10.0
libtpu: 0.0.40
codegen_flags: <defaults>
</compile_context>

<pallas_src>
import functools

import jax
import jax.numpy as jnp
from jax.experimental import pallas as pl
from jax.experimental.pallas import tpu as pltpu


def _round_up(x, m):
    return (x + m - 1) // m * m


_VMEM_LIMIT = 32 * 1024 * 1024


# ---------------------------------------------------------------------------
# Kernel 1: fused-im2col conv (reflect-padded, phase-split NHWC input)
# ---------------------------------------------------------------------------
def _conv_tap_kernel(x_ref, w_ref, b_ref, o_ref, acc_ref, *,
                     k, stride, wout, nblk, negative_slope):
    """One grid step = (cout tile j, output row i, vertical tap t).

    x_ref : (N, 1, S, Wq, Cin) bf16 — padded input row stride*i + t for all
                                samples, split into S = stride column phases.
    w_ref : (k*k, Cin, TN)     bf16 — whole weight panel, VMEM-resident.
    b_ref : (1, TN)            f32
    o_ref : (N, 1, Wout, TN)
    acc   : (N, Wout, TN)      f32 scratch, accumulated over the k taps.
    """
    t = pl.program_id(2)

    @pl.when(t == 0)
    def _():
        acc_ref[...] = jnp.zeros_like(acc_ref)

    for n in range(nblk):
        for tj in range(k):
            ph = tj % stride
            off = tj // stride
            xt = x_ref[n, 0, ph, off:off + wout, :]            # (Wout, Cin) bf16
            wt = w_ref[t * k + tj]                             # (Cin, TN)  bf16
            acc_ref[n] += jnp.dot(xt, wt, preferred_element_type=jnp.float32)

    @pl.when(t == k - 1)
    def _():
        res = acc_ref[...] + b_ref[...].reshape(1, 1, -1)
        if negative_slope is not None:
            res = jnp.where(res >= 0, res, jnp.float32(negative_slope) * res)
        o_ref[:, 0, :, :] = res.astype(o_ref.dtype)


def _phase_split(xp, stride):
    """(N, Hp, Wp, C) -> (N, Hp, S, Wq, C) with x_ph[..., s, w, :] = xp[..., w*S+s, :]."""
    N, Hp, Wp, C = xp.shape
    if stride == 1:
        return xp.reshape(N, Hp, 1, Wp, C)
    assert Wp % stride == 0
    return xp.reshape(N, Hp, Wp // stride, stride, C).transpose(0, 1, 3, 2, 4)


def fused_conv(x, w_r, bias, *, stride, negative_slope=None,
               out_dtype=jnp.bfloat16):
    """Conv2d(k=4, pad=1 reflect) on NHWC bf16 activations, im2col fused.

    x    : (N, H, W, Cin)          bf16
    w_r  : (k*k, Cin, CoutP)       bf16, (ti*k+tj, ci, co) ordering
    bias : (CoutP,)                f32 (zeros for bias-free layers)
    """
    x = x.astype(jnp.bfloat16)
    N, H, W, Cin = x.shape
    KK, wci, CoutP = w_r.shape
    assert wci == Cin
    k = 4
    assert KK == k * k

    xp = jnp.pad(x, ((0, 0), (1, 1), (1, 1), (0, 0)), mode="reflect")
    Hp, Wp = H + 2, W + 2
    Hout = (Hp - k) // stride + 1
    Wout = (Wp - k) // stride + 1
    x_ph = _phase_split(xp, stride)                  # (N, Hp, S, Wq, Cin)
    S, Wq = x_ph.shape[2], x_ph.shape[3]

    TN = min(CoutP, 512)
    bias2 = bias.astype(jnp.float32).reshape(1, CoutP)

    kern = functools.partial(_conv_tap_kernel, k=k, stride=stride, wout=Wout,
                             nblk=N, negative_slope=negative_slope)
    return pl.pallas_call(
        kern,
        out_shape=jax.ShapeDtypeStruct((N, Hout, Wout, CoutP), out_dtype),
        grid_spec=pltpu.PrefetchScalarGridSpec(
            num_scalar_prefetch=0,
            grid=(CoutP // TN, Hout, k),             # Cout outermost: weights resident
            in_specs=[
                pl.BlockSpec((N, 1, S, Wq, Cin),
                             lambda j, i, t: (0, stride * i + t, 0, 0, 0)),
                pl.BlockSpec((KK, Cin, TN), lambda j, i, t: (0, 0, j)),
                pl.BlockSpec((1, TN), lambda j, i, t: (0, j)),
            ],
            out_specs=pl.BlockSpec((N, 1, Wout, TN), lambda j, i, t: (0, i, 0, j)),
            scratch_shapes=[pltpu.VMEM((N, Wout, TN), jnp.float32)],
        ),
        compiler_params=pltpu.CompilerParams(
            dimension_semantics=("parallel", "parallel", "arbitrary"),
            vmem_limit_bytes=_VMEM_LIMIT),
    )(x_ph, w_r, bias2)


# ---------------------------------------------------------------------------
# Kernel 2: final Cout=1 conv — VPU multiply + lane reduce (no padded MXU work)
# ---------------------------------------------------------------------------
def _conv_cout1_kernel(x_ref, w_ref, b_ref, o_ref, acc_ref, *, k, wout, nblk):
    """x_ref: (N, 1, Wp, Cin) bf16; w_ref: (k*k, Cin) f32; b_ref: (1,) SMEM f32."""
    t = pl.program_id(1)

    @pl.when(t == 0)
    def _():
        acc_ref[...] = jnp.zeros_like(acc_ref)

    for n in range(nblk):
        for tj in range(k):
            xt = x_ref[n, 0, tj:tj + wout, :].astype(jnp.float32)   # (Wout, Cin)
            wt = w_ref[pl.ds(t * k + tj, 1), :]                     # (1, Cin)
            acc_ref[n] += jnp.sum(xt * wt, axis=-1, keepdims=True)  # (Wout, 1)

    @pl.when(t == k - 1)
    def _():
        o_ref[:, 0, :, :] = (acc_ref[...] + b_ref[0]).astype(o_ref.dtype)


def final_conv_cout1(x, w, b):
    """Conv2d(Cin->1, k=4, s=1, pad=1 reflect) via lane-reduction kernel."""
    x = x.astype(jnp.bfloat16)
    N, H, W, Cin = x.shape
    _, wci, k, _ = w.shape
    assert wci == Cin
    xp = jnp.pad(x, ((0, 0), (1, 1), (1, 1), (0, 0)), mode="reflect")
    Hp, Wp = H + 2, W + 2
    Hout, Wout = Hp - k + 1, Wp - k + 1

    w_r = jnp.transpose(w, (2, 3, 1, 0)).reshape(k * k, Cin).astype(jnp.float32)
    bias = b.astype(jnp.float32).reshape(1)

    return pl.pallas_call(
        functools.partial(_conv_cout1_kernel, k=k, wout=Wout, nblk=N),
        out_shape=jax.ShapeDtypeStruct((N, Hout, Wout, 1), jnp.float32),
        grid_spec=pltpu.PrefetchScalarGridSpec(
            num_scalar_prefetch=0,
            grid=(Hout, k),
            in_specs=[
                pl.BlockSpec((N, 1, Wp, Cin), lambda i, t: (0, i + t, 0, 0)),
                pl.BlockSpec((k * k, Cin), lambda i, t: (0, 0)),
                pl.BlockSpec(memory_space=pltpu.MemorySpace.SMEM),
            ],
            out_specs=pl.BlockSpec((N, 1, Wout, 1), lambda i, t: (0, i, 0, 0)),
            scratch_shapes=[pltpu.VMEM((N, Wout, 1), jnp.float32)],
        ),
        compiler_params=pltpu.CompilerParams(
            dimension_semantics=("parallel", "arbitrary"),
            vmem_limit_bytes=_VMEM_LIMIT),
    )(xp, w_r, bias)


# ---------------------------------------------------------------------------
# Kernels 3+4: InstanceNorm2d(affine) + LeakyReLU(0.2), two-pass, HW-tiled
# ---------------------------------------------------------------------------
def _inorm_stats_kernel(x_ref, g_ref, b_ref, scale_ref, shift_ref, *, hw, eps):
    """Pass 1: accumulate sum / sum-of-squares over the HW grid axis, then
    finalize into per-(n,c) scale = gamma*rstd and shift = beta - mean*scale."""
    h = pl.program_id(2)

    @pl.when(h == 0)
    def _():
        scale_ref[...] = jnp.zeros_like(scale_ref)   # running sum(x)
        shift_ref[...] = jnp.zeros_like(shift_ref)   # running sum(x*x)

    x = x_ref[...].astype(jnp.float32)               # (1, THW, TC)
    scale_ref[...] += jnp.sum(x, axis=1, keepdims=True)
    shift_ref[...] += jnp.sum(x * x, axis=1, keepdims=True)

    @pl.when(h == pl.num_programs(2) - 1)
    def _():
        inv_hw = jnp.float32(1.0 / hw)
        mean = scale_ref[...] * inv_hw
        var = shift_ref[...] * inv_hw - mean * mean          # biased (PyTorch)
        rstd = jax.lax.rsqrt(var + jnp.float32(eps))
        g = g_ref[...].reshape(1, 1, -1)
        b = b_ref[...].reshape(1, 1, -1)
        scale = g * rstd
        scale_ref[...] = scale
        shift_ref[...] = b - mean * scale


def _inorm_apply_kernel(x_ref, scale_ref, shift_ref, o_ref, *, negative_slope):
    """Pass 2: y = lrelu(x * scale + shift), bf16 in/out, f32 math."""
    x = x_ref[...].astype(jnp.float32)
    y = x * scale_ref[...] + shift_ref[...]
    y = jnp.where(y >= 0, y, jnp.float32(negative_slope) * y)
    o_ref[...] = y.astype(o_ref.dtype)


def _pick_hw_tile(hw, max_elems=4096):
    """Largest HW tile that divides hw, is a multiple of 8, and <= max_elems."""
    if hw <= max_elems:
        return hw, 1
    for cand in range(max_elems, 7, -1):
        if hw % cand == 0 and cand % 8 == 0:
            return cand, hw // cand
    return hw, 1      # fallback: single block


def instance_norm_lrelu(x, gamma, beta, *, eps=1e-5, negative_slope=0.2):
    """InstanceNorm2d(affine=True, biased var) + LeakyReLU on NHWC bf16 x."""
    N, H, W, C = x.shape
    HW = H * W
    x2 = x.reshape(N, HW, C)
    TC = 128 if C % 128 == 0 else C
    THW, n_hw = _pick_hw_tile(HW)
    g2 = gamma.astype(jnp.float32).reshape(1, C)
    b2 = beta.astype(jnp.float32).reshape(1, C)

    scale, shift = pl.pallas_call(
        functools.partial(_inorm_stats_kernel, hw=float(HW), eps=eps),
        out_shape=(jax.ShapeDtypeStruct((N, 1, C), jnp.float32),
                   jax.ShapeDtypeStruct((N, 1, C), jnp.float32)),
        grid_spec=pltpu.PrefetchScalarGridSpec(
            num_scalar_prefetch=0,
            grid=(N, C // TC, n_hw),
            in_specs=[
                pl.BlockSpec((1, THW, TC), lambda n, c, h: (n, h, c)),
                pl.BlockSpec((1, TC), lambda n, c, h: (0, c)),
                pl.BlockSpec((1, TC), lambda n, c, h: (0, c)),
            ],
            out_specs=(pl.BlockSpec((1, 1, TC), lambda n, c, h: (n, 0, c)),
                       pl.BlockSpec((1, 1, TC), lambda n, c, h: (n, 0, c))),
        ),
        compiler_params=pltpu.CompilerParams(
            dimension_semantics=("parallel", "parallel", "arbitrary"),
            vmem_limit_bytes=_VMEM_LIMIT),
    )(x2, g2, b2)

    y = pl.pallas_call(
        functools.partial(_inorm_apply_kernel, negative_slope=negative_slope),
        out_shape=jax.ShapeDtypeStruct((N, HW, C), x.dtype),
        grid_spec=pltpu.PrefetchScalarGridSpec(
            num_scalar_prefetch=0,
            grid=(N, C // TC, n_hw),
            in_specs=[
                pl.BlockSpec((1, THW, TC), lambda n, c, h: (n, h, c)),
                pl.BlockSpec((1, 1, TC), lambda n, c, h: (n, 0, c)),
                pl.BlockSpec((1, 1, TC), lambda n, c, h: (n, 0, c)),
            ],
            out_specs=pl.BlockSpec((1, THW, TC), lambda n, c, h: (n, h, c)),
        ),
        compiler_params=pltpu.CompilerParams(
            dimension_semantics=("parallel", "parallel", "parallel"),
            vmem_limit_bytes=_VMEM_LIMIT),
    )(x2, scale, shift)

    return y.reshape(N, H, W, C)


# ---------------------------------------------------------------------------
# PatchGAN model
# ---------------------------------------------------------------------------
def _prep_conv_weight(w, *, cin_pad=None, cout_pad=None):
    """PyTorch (Cout, Cin, k, k) -> (k*k, Cin_pad, Cout_pad) bf16, zero-padded."""
    Cout, Cin, k, _ = w.shape
    w_r = jnp.transpose(w, (2, 3, 1, 0)).reshape(k * k, Cin, Cout)
    if cin_pad is not None and cin_pad > Cin:
        w_r = jnp.pad(w_r, ((0, 0), (0, cin_pad - Cin), (0, 0)))
    if cout_pad is not None and cout_pad > Cout:
        w_r = jnp.pad(w_r, ((0, 0), (0, 0), (0, cout_pad - Cout)))
    return w_r.astype(jnp.bfloat16)


def init_params(key, in_channels):
    ks = jax.random.split(key, 16)

    def conv_w(k, cout, cin):
        return jax.random.normal(k, (cout, cin, 4, 4), jnp.float32) * 0.05

    def vec(k, n, offset=0.0):
        return offset + jax.random.normal(k, (n,), jnp.float32) * 0.05

    return {
        # block 1: Conv(2*C -> 64, s=2, bias) + LeakyReLU
        "w1": conv_w(ks[0], 64, in_channels * 2), "b1": vec(ks[1], 64),
        # block 2: Conv(64 -> 128, s=2, no bias) + InstanceNorm(affine) + LeakyReLU
        "w2": conv_w(ks[2], 128, 64), "g2": vec(ks[3], 128, 1.0), "be2": vec(ks[4], 128),
        # block 3: Conv(128 -> 256, s=2)
        "w3": conv_w(ks[5], 256, 128), "g3": vec(ks[6], 256, 1.0), "be3": vec(ks[7], 256),
        # block 4: Conv(256 -> 512, s=1)
        "w4": conv_w(ks[8], 512, 256), "g4": vec(ks[9], 512, 1.0), "be4": vec(ks[10], 512),
        # final: Conv(512 -> 1, s=1, bias)
        "w5": conv_w(ks[11], 1, 512), "b5": vec(ks[12], 1),
    }


def patchgan_forward(params, x, y):
    """PatchGAN forward.  x, y: (N, C, H, W) f32 (PyTorch NCHW convention)."""
    in_ch2 = x.shape[1] + y.shape[1]
    h = jnp.concatenate([x, y], axis=1).transpose(0, 2, 3, 1)       # NHWC (N,H,W,2C)

    # Pad input channels once to a tile-friendly width; weights padded to match.
    cin0 = _round_up(in_ch2, 8)
    h = jnp.pad(h, ((0, 0), (0, 0), (0, 0), (0, cin0 - in_ch2))).astype(jnp.bfloat16)

    # block 1: Conv(s=2, bias) + LeakyReLU.  Cout 64 padded to 128 (lane-dense);
    # the padded channels are exact zeros and are consumed by the zero-padded
    # Cin of block 2's weights (no slicing round trip).
    w1 = _prep_conv_weight(params["w1"], cin_pad=cin0, cout_pad=128)
    b1 = jnp.pad(params["b1"], (0, 128 - 64))
    h = fused_conv(h, w1, b1, stride=2, negative_slope=0.2)         # (N,H/2,W/2,128)

    # block 2: Conv(s=2, no bias) + IN + LReLU
    w2 = _prep_conv_weight(params["w2"], cin_pad=128)
    h = fused_conv(h, w2, jnp.zeros((128,), jnp.float32), stride=2)
    h = instance_norm_lrelu(h, params["g2"], params["be2"])         # (N,H/4,W/4,128)

    # block 3
    w3 = _prep_conv_weight(params["w3"])
    h = fused_conv(h, w3, jnp.zeros((256,), jnp.float32), stride=2)
    h = instance_norm_lrelu(h, params["g3"], params["be3"])         # (N,H/8,W/8,256)

    # block 4 (stride 1)
    w4 = _prep_conv_weight(params["w4"])
    h = fused_conv(h, w4, jnp.zeros((512,), jnp.float32), stride=1)
    h = instance_norm_lrelu(h, params["g4"], params["be4"])         # (N,H/8-1,...,512)

    # final: Conv(512 -> 1, s=1, bias) via lane-reduce kernel
    out = final_conv_cout1(h, params["w5"], params["b5"])           # (N,Ho,Wo,1) f32
    return out.transpose(0, 3, 1, 2)                                # back to NCHW


# ---------------------------------------------------------------------------
if __name__ == "__main__":
    key = jax.random.PRNGKey(0)
    k_params, k_x, k_y = jax.random.split(key, 3)

    in_channels = 3
    N, H, W = 2, 32, 32   # small, but supports 3 stride-2 convs + two k=4 convs

    params = init_params(k_params, in_channels)
    x = jax.random.normal(k_x, (N, in_channels, H, W), jnp.float32)
    y = jax.random.normal(k_y, (N, in_channels, H, W), jnp.float32)

    fwd = jax.jit(patchgan_forward)
    out = jax.block_until_ready(fwd(params, x, y))

    assert out.shape == (N, 1, 2, 2), out.shape
    assert bool(jnp.all(jnp.isfinite(out)))
    print("KERNEL_OK")
</pallas_src>

<mosaic_0001>
module attributes {stable_mosaic.version = 11 : i64} {
  func.func @_conv_tap_kernel(%arg0: i32, %arg1: i32, %arg2: i32, %arg3: memref<2x1x2x17x8xbf16, #tpu.memory_space<vmem>>, %arg4: memref<16x8x128xbf16, #tpu.memory_space<vmem>>, %arg5: memref<1x128xf32, #tpu.memory_space<vmem>>, %arg6: memref<2x1x16x128xbf16, #tpu.memory_space<vmem>>, %arg7: memref<2x16x128xf32, #tpu.memory_space<vmem>>) attributes {dimension_semantics = [#tpu.dimension_semantics<parallel>, #tpu.dimension_semantics<parallel>, #tpu.dimension_semantics<arbitrary>], iteration_bounds = array<i64: 1, 16, 4>, scalar_prefetch = 0 : i64, scratch_operands = 1 : i64, tpu.core_type = #tpu.core_type<tc>, window_params = [{transform_indices = @transform_0, window_bounds = array<i64: 2, 1, 2, 17, 8>}, {transform_indices = @transform_1, window_bounds = array<i64: 16, 8, 128>}, {transform_indices = @transform_2, window_bounds = array<i64: 1, 128>}, {transform_indices = @transform_3, window_bounds = array<i64: 2, 1, 16, 128>}]} {
    %c0_i32 = arith.constant 0 : i32
    %0 = arith.cmpi eq, %arg2, %c0_i32 : i32
    %1 = arith.extui %0 : i1 to i32
    %c0_i32_0 = arith.constant 0 : i32
    %2 = arith.cmpi ne, %1, %c0_i32_0 : i32
    scf.if %2 {
      %cst_124 = arith.constant 0.000000e+00 : f32
      %118 = vector.broadcast %cst_124 : f32 to vector<2x16x128xf32>
      %c0_125 = arith.constant 0 : index
      %c0_126 = arith.constant 0 : index
      %c0_127 = arith.constant 0 : index
      %119 = vector.load %arg7[%c0_125, %c0_126, %c0_127] : memref<2x16x128xf32, #tpu.memory_space<vmem>>, vector<2x16x128xf32>
      tpu.vector_store %arg7[%c0_125, %c0_126, %c0_127], %118 {strides = array<i32>} : memref<2x16x128xf32, #tpu.memory_space<vmem>>, vector<2x16x128xf32>,
    } else {
    }
    %c0 = arith.constant 0 : index
    %c0_1 = arith.constant 0 : index
    %c0_2 = arith.constant 0 : index
    %c0_3 = arith.constant 0 : index
    %c0_4 = arith.constant 0 : index
    %3 = vector.load %arg3[%c0, %c0_1, %c0_2, %c0_3, %c0_4] : memref<2x1x2x17x8xbf16, #tpu.memory_space<vmem>>, vector<1x1x1x16x8xbf16>
    %4 = vector.shape_cast %3 : vector<1x1x1x16x8xbf16> to vector<16x8xbf16>
    %c4_i32 = arith.constant 4 : i32
    %5 = arith.muli %arg2, %c4_i32 : i32
    %c0_i32_5 = arith.constant 0 : i32
    %6 = arith.addi %5, %c0_i32_5 : i32
    %7 = arith.index_cast %6 : i32 to index
    %c0_6 = arith.constant 0 : index
    %c0_7 = arith.constant 0 : index
    %8 = vector.load %arg4[%7, %c0_6, %c0_7] : memref<16x8x128xbf16, #tpu.memory_space<vmem>>, vector<1x8x128xbf16>
    %9 = vector.shape_cast %8 : vector<1x8x128xbf16> to vector<8x128xbf16>
    %c0_8 = arith.constant 0 : index
    %c0_9 = arith.constant 0 : index
    %c0_10 = arith.constant 0 : index
    %10 = vector.load %arg7[%c0_8, %c0_9, %c0_10] : memref<2x16x128xf32, #tpu.memory_space<vmem>>, vector<1x16x128xf32>
    %11 = vector.shape_cast %10 : vector<1x16x128xf32> to vector<16x128xf32>
    %cst = arith.constant dense<0.000000e+00> : vector<16x128xf32>
    %12 = tpu.matmul %4, %9, %cst {dimension_numbers = #tpu.dot_dimension_numbers<[1], [0], [0], [1], [0, 0, 1, 1], [], []>} : vector<16x8xbf16>, vector<8x128xbf16>, vector<16x128xf32> -> vector<16x128xf32>
    %13 = arith.addf %11, %12 : vector<16x128xf32>
    %c0_11 = arith.constant 0 : index
    %c0_12 = arith.constant 0 : index
    %c0_13 = arith.constant 0 : index
    %14 = vector.load %arg7[%c0_11, %c0_12, %c0_13] : memref<2x16x128xf32, #tpu.memory_space<vmem>>, vector<1x16x128xf32>
    %15 = vector.shape_cast %14 : vector<1x16x128xf32> to vector<16x128xf32>
    %16 = vector.shape_cast %13 : vector<16x128xf32> to vector<1x16x128xf32>
    tpu.vector_store %arg7[%c0_11, %c0_12, %c0_13], %16 {strides = array<i32>} : memref<2x16x128xf32, #tpu.memory_space<vmem>>, vector<1x16x128xf32>,
    %c0_14 = arith.constant 0 : index
    %c0_15 = arith.constant 0 : index
    %c1 = arith.constant 1 : index
    %c0_16 = arith.constant 0 : index
    %c0_17 = arith.constant 0 : index
    %17 = vector.load %arg3[%c0_14, %c0_15, %c1, %c0_16, %c0_17] : memref<2x1x2x17x8xbf16, #tpu.memory_space<vmem>>, vector<1x1x1x16x8xbf16>
    %18 = vector.shape_cast %17 : vector<1x1x1x16x8xbf16> to vector<16x8xbf16>
    %c4_i32_18 = arith.constant 4 : i32
    %19 = arith.muli %arg2, %c4_i32_18 : i32
    %c1_i32 = arith.constant 1 : i32
    %20 = arith.addi %19, %c1_i32 : i32
    %21 = arith.index_cast %20 : i32 to index
    %c0_19 = arith.constant 0 : index
    %c0_20 = arith.constant 0 : index
    %22 = vector.load %arg4[%21, %c0_19, %c0_20] : memref<16x8x128xbf16, #tpu.memory_space<vmem>>, vector<1x8x128xbf16>
    %23 = vector.shape_cast %22 : vector<1x8x128xbf16> to vector<8x128xbf16>
    %c0_21 = arith.constant 0 : index
    %c0_22 = arith.constant 0 : index
    %c0_23 = arith.constant 0 : index
    %24 = vector.load %arg7[%c0_21, %c0_22, %c0_23] : memref<2x16x128xf32, #tpu.memory_space<vmem>>, vector<1x16x128xf32>
    %25 = vector.shape_cast %24 : vector<1x16x128xf32> to vector<16x128xf32>
    %cst_24 = arith.constant dense<0.000000e+00> : vector<16x128xf32>
    %26 = tpu.matmul %18, %23, %cst_24 {dimension_numbers = #tpu.dot_dimension_numbers<[1], [0], [0], [1], [0, 0, 1, 1], [], []>} : vector<16x8xbf16>, vector<8x128xbf16>, vector<16x128xf32> -> vector<16x128xf32>
    %27 = arith.addf %25, %26 : vector<16x128xf32>
    %c0_25 = arith.constant 0 : index
    %c0_26 = arith.constant 0 : index
    %c0_27 = arith.constant 0 : index
    %28 = vector.load %arg7[%c0_25, %c0_26, %c0_27] : memref<2x16x128xf32, #tpu.memory_space<vmem>>, vector<1x16x128xf32>
    %29 = vector.shape_cast %28 : vector<1x16x128xf32> to vector<16x128xf32>
    %30 = vector.shape_cast %27 : vector<16x128xf32> to vector<1x16x128xf32>
    tpu.vector_store %arg7[%c0_25, %c0_26, %c0_27], %30 {strides = array<i32>} : memref<2x16x128xf32, #tpu.memory_space<vmem>>, vector<1x16x128xf32>,
    %c0_28 = arith.constant 0 : index
    %c0_29 = arith.constant 0 : index
    %c0_30 = arith.constant 0 : index
    %c1_31 = arith.constant 1 : index
    %c0_32 = arith.constant 0 : index
    %31 = vector.load %arg3[%c0_28, %c0_29, %c0_30, %c1_31, %c0_32] : memref<2x1x2x17x8xbf16, #tpu.memory_space<vmem>>, vector<1x1x1x16x8xbf16>
    %32 = vector.shape_cast %31 : vector<1x1x1x16x8xbf16> to vector<16x8xbf16>
    %c4_i32_33 = arith.constant 4 : i32
    %33 = arith.muli %arg2, %c4_i32_33 : i32
    %c2_i32 = arith.constant 2 : i32
    %34 = arith.addi %33, %c2_i32 : i32
    %35 = arith.index_cast %34 : i32 to index
    %c0_34 = arith.constant 0 : index
    %c0_35 = arith.constant 0 : index
    %36 = vector.load %arg4[%35, %c0_34, %c0_35] : memref<16x8x128xbf16, #tpu.memory_space<vmem>>, vector<1x8x128xbf16>
    %37 = vector.shape_cast %36 : vector<1x8x128xbf16> to vector<8x128xbf16>
    %c0_36 = arith.constant 0 : index
    %c0_37 = arith.constant 0 : index
    %c0_38 = arith.constant 0 : index
    %38 = vector.load %arg7[%c0_36, %c0_37, %c0_38] : memref<2x16x128xf32, #tpu.memory_space<vmem>>, vector<1x16x128xf32>
    %39 = vector.shape_cast %38 : vector<1x16x128xf32> to vector<16x128xf32>
    %cst_39 = arith.constant dense<0.000000e+00> : vector<16x128xf32>
    %40 = tpu.matmul %32, %37, %cst_39 {dimension_numbers = #tpu.dot_dimension_numbers<[1], [0], [0], [1], [0, 0, 1, 1], [], []>} : vector<16x8xbf16>, vector<8x128xbf16>, vector<16x128xf32> -> vector<16x128xf32>
    %41 = arith.addf %39, %40 : vector<16x128xf32>
    %c0_40 = arith.constant 0 : index
    %c0_41 = arith.constant 0 : index
    %c0_42 = arith.constant 0 : index
    %42 = vector.load %arg7[%c0_40, %c0_41, %c0_42] : memref<2x16x128xf32, #tpu.memory_space<vmem>>, vector<1x16x128xf32>
    %43 = vector.shape_cast %42 : vector<1x16x128xf32> to vector<16x128xf32>
    %44 = vector.shape_cast %41 : vector<16x128xf32> to vector<1x16x128xf32>
    tpu.vector_store %arg7[%c0_40, %c0_41, %c0_42], %44 {strides = array<i32>} : memref<2x16x128xf32, #tpu.memory_space<vmem>>, vector<1x16x128xf32>,
    %c0_43 = arith.constant 0 : index
    %c0_44 = arith.constant 0 : index
    %c1_45 = arith.constant 1 : index
    %c1_46 = arith.constant 1 : index
    %c0_47 = arith.constant 0 : index
    %45 = vector.load %arg3[%c0_43, %c0_44, %c1_45, %c1_46, %c0_47] : memref<2x1x2x17x8xbf16, #tpu.memory_space<vmem>>, vector<1x1x1x16x8xbf16>
    %46 = vector.shape_cast %45 : vector<1x1x1x16x8xbf16> to vector<16x8xbf16>
    %c4_i32_48 = arith.constant 4 : i32
    %47 = arith.muli %arg2, %c4_i32_48 : i32
    %c3_i32 = arith.constant 3 : i32
    %48 = arith.addi %47, %c3_i32 : i32
    %49 = arith.index_cast %48 : i32 to index
    %c0_49 = arith.constant 0 : index
    %c0_50 = arith.constant 0 : index
    %50 = vector.load %arg4[%49, %c0_49, %c0_50] : memref<16x8x128xbf16, #tpu.memory_space<vmem>>, vector<1x8x128xbf16>
    %51 = vector.shape_cast %50 : vector<1x8x128xbf16> to vector<8x128xbf16>
    %c0_51 = arith.constant 0 : index
    %c0_52 = arith.constant 0 : index
    %c0_53 = arith.constant 0 : index
    %52 = vector.load %arg7[%c0_51, %c0_52, %c0_53] : memref<2x16x128xf32, #tpu.memory_space<vmem>>, vector<1x16x128xf32>
    %53 = vector.shape_cast %52 : vector<1x16x128xf32> to vector<16x128xf32>
    %cst_54 = arith.constant dense<0.000000e+00> : vector<16x128xf32>
    %54 = tpu.matmul %46, %51, %cst_54 {dimension_numbers = #tpu.dot_dimension_numbers<[1], [0], [0], [1], [0, 0, 1, 1], [], []>} : vector<16x8xbf16>, vector<8x128xbf16>, vector<16x128xf32> -> vector<16x128xf32>
    %55 = arith.addf %53, %54 : vector<16x128xf32>
    %c0_55 = arith.constant 0 : index
    %c0_56 = arith.constant 0 : index
    %c0_57 = arith.constant 0 : index
    %56 = vector.load %arg7[%c0_55, %c0_56, %c0_57] : memref<2x16x128xf32, #tpu.memory_space<vmem>>, vector<1x16x128xf32>
    %57 = vector.shape_cast %56 : vector<1x16x128xf32> to vector<16x128xf32>
    %58 = vector.shape_cast %55 : vector<16x128xf32> to vector<1x16x128xf32>
    tpu.vector_store %arg7[%c0_55, %c0_56, %c0_57], %58 {strides = array<i32>} : memref<2x16x128xf32, #tpu.memory_space<vmem>>, vector<1x16x128xf32>,
    %c1_58 = arith.constant 1 : index
    %c0_59 = arith.constant 0 : index
    %c0_60 = arith.constant 0 : index
    %c0_61 = arith.constant 0 : index
    %c0_62 = arith.constant 0 : index
    %59 = vector.load %arg3[%c1_58, %c0_59, %c0_60, %c0_61, %c0_62] : memref<2x1x2x17x8xbf16, #tpu.memory_space<vmem>>, vector<1x1x1x16x8xbf16>
    %60 = vector.shape_cast %59 : vector<1x1x1x16x8xbf16> to vector<16x8xbf16>
    %c4_i32_63 = arith.constant 4 : i32
    %61 = arith.muli %arg2, %c4_i32_63 : i32
    %c0_i32_64 = arith.constant 0 : i32
    %62 = arith.addi %61, %c0_i32_64 : i32
    %63 = arith.index_cast %62 : i32 to index
    %c0_65 = arith.constant 0 : index
    %c0_66 = arith.constant 0 : index
    %64 = vector.load %arg4[%63, %c0_65, %c0_66] : memref<16x8x128xbf16, #tpu.memory_space<vmem>>, vector<1x8x128xbf16>
    %65 = vector.shape_cast %64 : vector<1x8x128xbf16> to vector<8x128xbf16>
    %c1_67 = arith.constant 1 : index
    %c0_68 = arith.constant 0 : index
    %c0_69 = arith.constant 0 : index
    %66 = vector.load %arg7[%c1_67, %c0_68, %c0_69] : memref<2x16x128xf32, #tpu.memory_space<vmem>>, vector<1x16x128xf32>
    %67 = vector.shape_cast %66 : vector<1x16x128xf32> to vector<16x128xf32>
    %cst_70 = arith.constant dense<0.000000e+00> : vector<16x128xf32>
    %68 = tpu.matmul %60, %65, %cst_70 {dimension_numbers = #tpu.dot_dimension_numbers<[1], [0], [0], [1], [0, 0, 1, 1], [], []>} : vector<16x8xbf16>, vector<8x128xbf16>, vector<16x128xf32> -> vector<16x128xf32>
    %69 = arith.addf %67, %68 : vector<16x128xf32>
    %c1_71 = arith.constant 1 : index
    %c0_72 = arith.constant 0 : index
    %c0_73 = arith.constant 0 : index
    %70 = vector.load %arg7[%c1_71, %c0_72, %c0_73] : memref<2x16x128xf32, #tpu.memory_space<vmem>>, vector<1x16x128xf32>
    %71 = vector.shape_cast %70 : vector<1x16x128xf32> to vector<16x128xf32>
    %72 = vector.shape_cast %69 : vector<16x128xf32> to vector<1x16x128xf32>
    tpu.vector_store %arg7[%c1_71, %c0_72, %c0_73], %72 {strides = array<i32>} : memref<2x16x128xf32, #tpu.memory_space<vmem>>, vector<1x16x128xf32>,
    %c1_74 = arith.constant 1 : index
    %c0_75 = arith.constant 0 : index
    %c1_76 = arith.constant 1 : index
    %c0_77 = arith.constant 0 : index
    %c0_78 = arith.constant 0 : index
    %73 = vector.load %arg3[%c1_74, %c0_75, %c1_76, %c0_77, %c0_78] : memref<2x1x2x17x8xbf16, #tpu.memory_space<vmem>>, vector<1x1x1x16x8xbf16>
    %74 = vector.shape_cast %73 : vector<1x1x1x16x8xbf16> to vector<16x8xbf16>
    %c4_i32_79 = arith.constant 4 : i32
    %75 = arith.muli %arg2, %c4_i32_79 : i32
    %c1_i32_80 = arith.constant 1 : i32
    %76 = arith.addi %75, %c1_i32_80 : i32
    %77 = arith.index_cast %76 : i32 to index
    %c0_81 = arith.constant 0 : index
    %c0_82 = arith.constant 0 : index
    %78 = vector.load %arg4[%77, %c0_81, %c0_82] : memref<16x8x128xbf16, #tpu.memory_space<vmem>>, vector<1x8x128xbf16>
    %79 = vector.shape_cast %78 : vector<1x8x128xbf16> to vector<8x128xbf16>
    %c1_83 = arith.constant 1 : index
    %c0_84 = arith.constant 0 : index
    %c0_85 = arith.constant 0 : index
    %80 = vector.load %arg7[%c1_83, %c0_84, %c0_85] : memref<2x16x128xf32, #tpu.memory_space<vmem>>, vector<1x16x128xf32>
    %81 = vector.shape_cast %80 : vector<1x16x128xf32> to vector<16x128xf32>
    %cst_86 = arith.constant dense<0.000000e+00> : vector<16x128xf32>
    %82 = tpu.matmul %74, %79, %cst_86 {dimension_numbers = #tpu.dot_dimension_numbers<[1], [0], [0], [1], [0, 0, 1, 1], [], []>} : vector<16x8xbf16>, vector<8x128xbf16>, vector<16x128xf32> -> vector<16x128xf32>
    %83 = arith.addf %81, %82 : vector<16x128xf32>
    %c1_87 = arith.constant 1 : index
    %c0_88 = arith.constant 0 : index
    %c0_89 = arith.constant 0 : index
    %84 = vector.load %arg7[%c1_87, %c0_88, %c0_89] : memref<2x16x128xf32, #tpu.memory_space<vmem>>, vector<1x16x128xf32>
    %85 = vector.shape_cast %84 : vector<1x16x128xf32> to vector<16x128xf32>
    %86 = vector.shape_cast %83 : vector<16x128xf32> to vector<1x16x128xf32>
    tpu.vector_store %arg7[%c1_87, %c0_88, %c0_89], %86 {strides = array<i32>} : memref<2x16x128xf32, #tpu.memory_space<vmem>>, vector<1x16x128xf32>,
    %c1_90 = arith.constant 1 : index
    %c0_91 = arith.constant 0 : index
    %c0_92 = arith.constant 0 : index
    %c1_93 = arith.constant 1 : index
    %c0_94 = arith.constant 0 : index
    %87 = vector.load %arg3[%c1_90, %c0_91, %c0_92, %c1_93, %c0_94] : memref<2x1x2x17x8xbf16, #tpu.memory_space<vmem>>, vector<1x1x1x16x8xbf16>
    %88 = vector.shape_cast %87 : vector<1x1x1x16x8xbf16> to vector<16x8xbf16>
    %c4_i32_95 = arith.constant 4 : i32
    %89 = arith.muli %arg2, %c4_i32_95 : i32
    %c2_i32_96 = arith.constant 2 : i32
    %90 = arith.addi %89, %c2_i32_96 : i32
    %91 = arith.index_cast %90 : i32 to index
    %c0_97 = arith.constant 0 : index
    %c0_98 = arith.constant 0 : index
    %92 = vector.load %arg4[%91, %c0_97, %c0_98] : memref<16x8x128xbf16, #tpu.memory_space<vmem>>, vector<1x8x128xbf16>
    %93 = vector.shape_cast %92 : vector<1x8x128xbf16> to vector<8x128xbf16>
    %c1_99 = arith.constant 1 : index
    %c0_100 = arith.constant 0 : index
    %c0_101 = arith.constant 0 : index
    %94 = vector.load %arg7[%c1_99, %c0_100, %c0_101] : memref<2x16x128xf32, #tpu.memory_space<vmem>>, vector<1x16x128xf32>
    %95 = vector.shape_cast %94 : vector<1x16x128xf32> to vector<16x128xf32>
    %cst_102 = arith.constant dense<0.000000e+00> : vector<16x128xf32>
    %96 = tpu.matmul %88, %93, %cst_102 {dimension_numbers = #tpu.dot_dimension_numbers<[1], [0], [0], [1], [0, 0, 1, 1], [], []>} : vector<16x8xbf16>, vector<8x128xbf16>, vector<16x128xf32> -> vector<16x128xf32>
    %97 = arith.addf %95, %96 : vector<16x128xf32>
    %c1_103 = arith.constant 1 : index
    %c0_104 = arith.constant 0 : index
    %c0_105 = arith.constant 0 : index
    %98 = vector.load %arg7[%c1_103, %c0_104, %c0_105] : memref<2x16x128xf32, #tpu.memory_space<vmem>>, vector<1x16x128xf32>
    %99 = vector.shape_cast %98 : vector<1x16x128xf32> to vector<16x128xf32>
    %100 = vector.shape_cast %97 : vector<16x128xf32> to vector<1x16x128xf32>
    tpu.vector_store %arg7[%c1_103, %c0_104, %c0_105], %100 {strides = array<i32>} : memref<2x16x128xf32, #tpu.memory_space<vmem>>, vector<1x16x128xf32>,
    %c1_106 = arith.constant 1 : index
    %c0_107 = arith.constant 0 : index
    %c1_108 = arith.constant 1 : index
    %c1_109 = arith.constant 1 : index
    %c0_110 = arith.constant 0 : index
    %101 = vector.load %arg3[%c1_106, %c0_107, %c1_108, %c1_109, %c0_110] : memref<2x1x2x17x8xbf16, #tpu.memory_space<vmem>>, vector<1x1x1x16x8xbf16>
    %102 = vector.shape_cast %101 : vector<1x1x1x16x8xbf16> to vector<16x8xbf16>
    %c4_i32_111 = arith.constant 4 : i32
    %103 = arith.muli %arg2, %c4_i32_111 : i32
    %c3_i32_112 = arith.constant 3 : i32
    %104 = arith.addi %103, %c3_i32_112 : i32
    %105 = arith.index_cast %104 : i32 to index
    %c0_113 = arith.constant 0 : index
    %c0_114 = arith.constant 0 : index
    %106 = vector.load %arg4[%105, %c0_113, %c0_114] : memref<16x8x128xbf16, #tpu.memory_space<vmem>>, vector<1x8x128xbf16>
    %107 = vector.shape_cast %106 : vector<1x8x128xbf16> to vector<8x128xbf16>
    %c1_115 = arith.constant 1 : index
    %c0_116 = arith.constant 0 : index
    %c0_117 = arith.constant 0 : index
    %108 = vector.load %arg7[%c1_115, %c0_116, %c0_117] : memref<2x16x128xf32, #tpu.memory_space<vmem>>, vector<1x16x128xf32>
    %109 = vector.shape_cast %108 : vector<1x16x128xf32> to vector<16x128xf32>
    %cst_118 = arith.constant dense<0.000000e+00> : vector<16x128xf32>
    %110 = tpu.matmul %102, %107, %cst_118 {dimension_numbers = #tpu.dot_dimension_numbers<[1], [0], [0], [1], [0, 0, 1, 1], [], []>} : vector<16x8xbf16>, vector<8x128xbf16>, vector<16x128xf32> -> vector<16x128xf32>
    %111 = arith.addf %109, %110 : vector<16x128xf32>
    %c1_119 = arith.constant 1 : index
    %c0_120 = arith.constant 0 : index
    %c0_121 = arith.constant 0 : index
    %112 = vector.load %arg7[%c1_119, %c0_120, %c0_121] : memref<2x16x128xf32, #tpu.memory_space<vmem>>, vector<1x16x128xf32>
    %113 = vector.shape_cast %112 : vector<1x16x128xf32> to vector<16x128xf32>
    %114 = vector.shape_cast %111 : vector<16x128xf32> to vector<1x16x128xf32>
    tpu.vector_store %arg7[%c1_119, %c0_120, %c0_121], %114 {strides = array<i32>} : memref<2x16x128xf32, #tpu.memory_space<vmem>>, vector<1x16x128xf32>,
    %c3_i32_122 = arith.constant 3 : i32
    %115 = arith.cmpi eq, %arg2, %c3_i32_122 : i32
    %116 = arith.extui %115 : i1 to i32
    %c0_i32_123 = arith.constant 0 : i32
    %117 = arith.cmpi ne, %116, %c0_i32_123 : i32
    scf.if %117 {
      %c0_124 = arith.constant 0 : index
      %c0_125 = arith.constant 0 : index
      %c0_126 = arith.constant 0 : index
      %118 = vector.load %arg7[%c0_124, %c0_125, %c0_126] : memref<2x16x128xf32, #tpu.memory_space<vmem>>, vector<2x16x128xf32>
      %c0_127 = arith.constant 0 : index
      %c0_128 = arith.constant 0 : index
      %119 = vector.load %arg5[%c0_127, %c0_128] : memref<1x128xf32, #tpu.memory_space<vmem>>, vector<1x128xf32>
      %120 = vector.shape_cast %119 : vector<1x128xf32> to vector<1x1x128xf32>
      %121 = vector.broadcast %120 : vector<1x1x128xf32> to vector<2x16x128xf32>
      %122 = arith.addf %118, %121 : vector<2x16x128xf32>
      %cst_129 = arith.constant 0.000000e+00 : f32
      %123 = vector.broadcast %cst_129 : f32 to vector<2x16x128xf32>
      %124 = arith.cmpf oge, %122, %123 : vector<2x16x128xf32>
      %cst_130 = arith.constant 2.000000e-01 : f32
      %125 = vector.broadcast %cst_130 : f32 to vector<2x16x128xf32>
      %126 = arith.mulf %125, %122 : vector<2x16x128xf32>
      %127 = arith.select %124, %122, %126 : vector<2x16x128xi1>, vector<2x16x128xf32>
      %128 = arith.truncf %127 : vector<2x16x128xf32> to vector<2x16x128xbf16>
      %c0_131 = arith.constant 0 : index
      %c0_132 = arith.constant 0 : index
      %c0_133 = arith.constant 0 : index
      %c0_134 = arith.constant 0 : index
      %129 = vector.load %arg6[%c0_131, %c0_132, %c0_133, %c0_134] : memref<2x1x16x128xbf16, #tpu.memory_space<vmem>>, vector<2x1x16x128xbf16>
      %130 = vector.shape_cast %129 : vector<2x1x16x128xbf16> to vector<2x16x128xbf16>
      %131 = vector.shape_cast %128 : vector<2x16x128xbf16> to vector<2x1x16x128xbf16>
      tpu.vector_store %arg6[%c0_131, %c0_132, %c0_133, %c0_134], %131 {strides = array<i32>} : memref<2x1x16x128xbf16, #tpu.memory_space<vmem>>, vector<2x1x16x128xbf16>,
    } else {
    }
    return
  }
  func.func @transform_0(%arg0: i32, %arg1: i32, %arg2: i32) -> (i32, i32, i32, i32, i32) {
    %c2_i32 = arith.constant 2 : i32
    %0 = arith.muli %c2_i32, %arg1 : i32
    %1 = arith.addi %0, %arg2 : i32
    %c0_i32 = arith.constant 0 : i32
    %c0_i32_0 = arith.constant 0 : i32
    %c0_i32_1 = arith.constant 0 : i32
    %c0_i32_2 = arith.constant 0 : i32
    %c0_i32_3 = arith.constant 0 : i32
    return %c0_i32, %1, %c0_i32_0, %c0_i32_1, %c0_i32_2 : i32, i32, i32, i32, i32
  }
  func.func @transform_1(%arg0: i32, %arg1: i32, %arg2: i32) -> (i32, i32, i32) {
    %c0_i32 = arith.constant 0 : i32
    %c0_i32_0 = arith.constant 0 : i32
    %c0_i32_1 = arith.constant 0 : i32
    return %c0_i32, %c0_i32_0, %arg0 : i32, i32, i32
  }
  func.func @transform_2(%arg0: i32, %arg1: i32, %arg2: i32) -> (i32, i32) {
    %c0_i32 = arith.constant 0 : i32
    %c0_i32_0 = arith.constant 0 : i32
    return %c0_i32, %arg0 : i32, i32
  }
  func.func @transform_3(%arg0: i32, %arg1: i32, %arg2: i32) -> (i32, i32, i32, i32) {
    %c0_i32 = arith.constant 0 : i32
    %c0_i32_0 = arith.constant 0 : i32
    %c0_i32_1 = arith.constant 0 : i32
    return %c0_i32, %arg1, %c0_i32_0, %arg0 : i32, i32, i32, i32
  }
}

module attributes {stable_mosaic.version = 11 : i64} {
  func.func @_conv_tap_kernel(%arg0: i32, %arg1: i32, %arg2: i32, %arg3: memref<2x1x2x9x128xbf16, #tpu.memory_space<vmem>>, %arg4: memref<16x128x128xbf16, #tpu.memory_space<vmem>>, %arg5: memref<1x128xf32, #tpu.memory_space<vmem>>, %arg6: memref<2x1x8x128xbf16, #tpu.memory_space<vmem>>, %arg7: memref<2x8x128xf32, #tpu.memory_space<vmem>>) attributes {dimension_semantics = [#tpu.dimension_semantics<parallel>, #tpu.dimension_semantics<parallel>, #tpu.dimension_semantics<arbitrary>], iteration_bounds = array<i64: 1, 8, 4>, scalar_prefetch = 0 : i64, scratch_operands = 1 : i64, tpu.core_type = #tpu.core_type<tc>, window_params = [{transform_indices = @transform_0, window_bounds = array<i64: 2, 1, 2, 9, 128>}, {transform_indices = @transform_1, window_bounds = array<i64: 16, 128, 128>}, {transform_indices = @transform_2, window_bounds = array<i64: 1, 128>}, {transform_indices = @transform_3, window_bounds = array<i64: 2, 1, 8, 128>}]} {
    %c0_i32 = arith.constant 0 : i32
    %0 = arith.cmpi eq, %arg2, %c0_i32 : i32
    %1 = arith.extui %0 : i1 to i32
    %c0_i32_0 = arith.constant 0 : i32
    %2 = arith.cmpi ne, %1, %c0_i32_0 : i32
    scf.if %2 {
      %cst_124 = arith.constant 0.000000e+00 : f32
      %118 = vector.broadcast %cst_124 : f32 to vector<2x8x128xf32>
      %c0_125 = arith.constant 0 : index
      %c0_126 = arith.constant 0 : index
      %c0_127 = arith.constant 0 : index
      %119 = vector.load %arg7[%c0_125, %c0_126, %c0_127] : memref<2x8x128xf32, #tpu.memory_space<vmem>>, vector<2x8x128xf32>
      tpu.vector_store %arg7[%c0_125, %c0_126, %c0_127], %118 {strides = array<i32>} : memref<2x8x128xf32, #tpu.memory_space<vmem>>, vector<2x8x128xf32>,
    } else {
    }
    %c0 = arith.constant 0 : index
    %c0_1 = arith.constant 0 : index
    %c0_2 = arith.constant 0 : index
    %c0_3 = arith.constant 0 : index
    %c0_4 = arith.constant 0 : index
    %3 = vector.load %arg3[%c0, %c0_1, %c0_2, %c0_3, %c0_4] : memref<2x1x2x9x128xbf16, #tpu.memory_space<vmem>>, vector<1x1x1x8x128xbf16>
    %4 = vector.shape_cast %3 : vector<1x1x1x8x128xbf16> to vector<8x128xbf16>
    %c4_i32 = arith.constant 4 : i32
    %5 = arith.muli %arg2, %c4_i32 : i32
    %c0_i32_5 = arith.constant 0 : i32
    %6 = arith.addi %5, %c0_i32_5 : i32
    %7 = arith.index_cast %6 : i32 to index
    %c0_6 = arith.constant 0 : index
    %c0_7 = arith.constant 0 : index
    %8 = vector.load %arg4[%7, %c0_6, %c0_7] : memref<16x128x128xbf16, #tpu.memory_space<vmem>>, vector<1x128x128xbf16>
    %9 = vector.shape_cast %8 : vector<1x128x128xbf16> to vector<128x128xbf16>
    %c0_8 = arith.constant 0 : index
    %c0_9 = arith.constant 0 : index
    %c0_10 = arith.constant 0 : index
    %10 = vector.load %arg7[%c0_8, %c0_9, %c0_10] : memref<2x8x128xf32, #tpu.memory_space<vmem>>, vector<1x8x128xf32>
    %11 = vector.shape_cast %10 : vector<1x8x128xf32> to vector<8x128xf32>
    %cst = arith.constant dense<0.000000e+00> : vector<8x128xf32>
    %12 = tpu.matmul %4, %9, %cst {dimension_numbers = #tpu.dot_dimension_numbers<[1], [0], [0], [1], [0, 0, 1, 1], [], []>} : vector<8x128xbf16>, vector<128x128xbf16>, vector<8x128xf32> -> vector<8x128xf32>
    %13 = arith.addf %11, %12 : vector<8x128xf32>
    %c0_11 = arith.constant 0 : index
    %c0_12 = arith.constant 0 : index
    %c0_13 = arith.constant 0 : index
    %14 = vector.load %arg7[%c0_11, %c0_12, %c0_13] : memref<2x8x128xf32, #tpu.memory_space<vmem>>, vector<1x8x128xf32>
    %15 = vector.shape_cast %14 : vector<1x8x128xf32> to vector<8x128xf32>
    %16 = vector.shape_cast %13 : vector<8x128xf32> to vector<1x8x128xf32>
    tpu.vector_store %arg7[%c0_11, %c0_12, %c0_13], %16 {strides = array<i32>} : memref<2x8x128xf32, #tpu.memory_space<vmem>>, vector<1x8x128xf32>,
    %c0_14 = arith.constant 0 : index
    %c0_15 = arith.constant 0 : index
    %c1 = arith.constant 1 : index
    %c0_16 = arith.constant 0 : index
    %c0_17 = arith.constant 0 : index
    %17 = vector.load %arg3[%c0_14, %c0_15, %c1, %c0_16, %c0_17] : memref<2x1x2x9x128xbf16, #tpu.memory_space<vmem>>, vector<1x1x1x8x128xbf16>
    %18 = vector.shape_cast %17 : vector<1x1x1x8x128xbf16> to vector<8x128xbf16>
    %c4_i32_18 = arith.constant 4 : i32
    %19 = arith.muli %arg2, %c4_i32_18 : i32
    %c1_i32 = arith.constant 1 : i32
    %20 = arith.addi %19, %c1_i32 : i32
    %21 = arith.index_cast %20 : i32 to index
    %c0_19 = arith.constant 0 : index
    %c0_20 = arith.constant 0 : index
    %22 = vector.load %arg4[%21, %c0_19, %c0_20] : memref<16x128x128xbf16, #tpu.memory_space<vmem>>, vector<1x128x128xbf16>
    %23 = vector.shape_cast %22 : vector<1x128x128xbf16> to vector<128x128xbf16>
    %c0_21 = arith.constant 0 : index
    %c0_22 = arith.constant 0 : index
    %c0_23 = arith.constant 0 : index
    %24 = vector.load %arg7[%c0_21, %c0_22, %c0_23] : memref<2x8x128xf32, #tpu.memory_space<vmem>>, vector<1x8x128xf32>
    %25 = vector.shape_cast %24 : vector<1x8x128xf32> to vector<8x128xf32>
    %cst_24 = arith.constant dense<0.000000e+00> : vector<8x128xf32>
    %26 = tpu.matmul %18, %23, %cst_24 {dimension_numbers = #tpu.dot_dimension_numbers<[1], [0], [0], [1], [0, 0, 1, 1], [], []>} : vector<8x128xbf16>, vector<128x128xbf16>, vector<8x128xf32> -> vector<8x128xf32>
    %27 = arith.addf %25, %26 : vector<8x128xf32>
    %c0_25 = arith.constant 0 : index
    %c0_26 = arith.constant 0 : index
    %c0_27 = arith.constant 0 : index
    %28 = vector.load %arg7[%c0_25, %c0_26, %c0_27] : memref<2x8x128xf32, #tpu.memory_space<vmem>>, vector<1x8x128xf32>
    %29 = vector.shape_cast %28 : vector<1x8x128xf32> to vector<8x128xf32>
    %30 = vector.shape_cast %27 : vector<8x128xf32> to vector<1x8x128xf32>
    tpu.vector_store %arg7[%c0_25, %c0_26, %c0_27], %30 {strides = array<i32>} : memref<2x8x128xf32, #tpu.memory_space<vmem>>, vector<1x8x128xf32>,
    %c0_28 = arith.constant 0 : index
    %c0_29 = arith.constant 0 : index
    %c0_30 = arith.constant 0 : index
    %c1_31 = arith.constant 1 : index
    %c0_32 = arith.constant 0 : index
    %31 = vector.load %arg3[%c0_28, %c0_29, %c0_30, %c1_31, %c0_32] : memref<2x1x2x9x128xbf16, #tpu.memory_space<vmem>>, vector<1x1x1x8x128xbf16>
    %32 = vector.shape_cast %31 : vector<1x1x1x8x128xbf16> to vector<8x128xbf16>
    %c4_i32_33 = arith.constant 4 : i32
    %33 = arith.muli %arg2, %c4_i32_33 : i32
    %c2_i32 = arith.constant 2 : i32
    %34 = arith.addi %33, %c2_i32 : i32
    %35 = arith.index_cast %34 : i32 to index
    %c0_34 = arith.constant 0 : index
    %c0_35 = arith.constant 0 : index
    %36 = vector.load %arg4[%35, %c0_34, %c0_35] : memref<16x128x128xbf16, #tpu.memory_space<vmem>>, vector<1x128x128xbf16>
    %37 = vector.shape_cast %36 : vector<1x128x128xbf16> to vector<128x128xbf16>
    %c0_36 = arith.constant 0 : index
    %c0_37 = arith.constant 0 : index
    %c0_38 = arith.constant 0 : index
    %38 = vector.load %arg7[%c0_36, %c0_37, %c0_38] : memref<2x8x128xf32, #tpu.memory_space<vmem>>, vector<1x8x128xf32>
    %39 = vector.shape_cast %38 : vector<1x8x128xf32> to vector<8x128xf32>
    %cst_39 = arith.constant dense<0.000000e+00> : vector<8x128xf32>
    %40 = tpu.matmul %32, %37, %cst_39 {dimension_numbers = #tpu.dot_dimension_numbers<[1], [0], [0], [1], [0, 0, 1, 1], [], []>} : vector<8x128xbf16>, vector<128x128xbf16>, vector<8x128xf32> -> vector<8x128xf32>
    %41 = arith.addf %39, %40 : vector<8x128xf32>
    %c0_40 = arith.constant 0 : index
    %c0_41 = arith.constant 0 : index
    %c0_42 = arith.constant 0 : index
    %42 = vector.load %arg7[%c0_40, %c0_41, %c0_42] : memref<2x8x128xf32, #tpu.memory_space<vmem>>, vector<1x8x128xf32>
    %43 = vector.shape_cast %42 : vector<1x8x128xf32> to vector<8x128xf32>
    %44 = vector.shape_cast %41 : vector<8x128xf32> to vector<1x8x128xf32>
    tpu.vector_store %arg7[%c0_40, %c0_41, %c0_42], %44 {strides = array<i32>} : memref<2x8x128xf32, #tpu.memory_space<vmem>>, vector<1x8x128xf32>,
    %c0_43 = arith.constant 0 : index
    %c0_44 = arith.constant 0 : index
    %c1_45 = arith.constant 1 : index
    %c1_46 = arith.constant 1 : index
    %c0_47 = arith.constant 0 : index
    %45 = vector.load %arg3[%c0_43, %c0_44, %c1_45, %c1_46, %c0_47] : memref<2x1x2x9x128xbf16, #tpu.memory_space<vmem>>, vector<1x1x1x8x128xbf16>
    %46 = vector.shape_cast %45 : vector<1x1x1x8x128xbf16> to vector<8x128xbf16>
    %c4_i32_48 = arith.constant 4 : i32
    %47 = arith.muli %arg2, %c4_i32_48 : i32
    %c3_i32 = arith.constant 3 : i32
    %48 = arith.addi %47, %c3_i32 : i32
    %49 = arith.index_cast %48 : i32 to index
    %c0_49 = arith.constant 0 : index
    %c0_50 = arith.constant 0 : index
    %50 = vector.load %arg4[%49, %c0_49, %c0_50] : memref<16x128x128xbf16, #tpu.memory_space<vmem>>, vector<1x128x128xbf16>
    %51 = vector.shape_cast %50 : vector<1x128x128xbf16> to vector<128x128xbf16>
    %c0_51 = arith.constant 0 : index
    %c0_52 = arith.constant 0 : index
    %c0_53 = arith.constant 0 : index
    %52 = vector.load %arg7[%c0_51, %c0_52, %c0_53] : memref<2x8x128xf32, #tpu.memory_space<vmem>>, vector<1x8x128xf32>
    %53 = vector.shape_cast %52 : vector<1x8x128xf32> to vector<8x128xf32>
    %cst_54 = arith.constant dense<0.000000e+00> : vector<8x128xf32>
    %54 = tpu.matmul %46, %51, %cst_54 {dimension_numbers = #tpu.dot_dimension_numbers<[1], [0], [0], [1], [0, 0, 1, 1], [], []>} : vector<8x128xbf16>, vector<128x128xbf16>, vector<8x128xf32> -> vector<8x128xf32>
    %55 = arith.addf %53, %54 : vector<8x128xf32>
    %c0_55 = arith.constant 0 : index
    %c0_56 = arith.constant 0 : index
    %c0_57 = arith.constant 0 : index
    %56 = vector.load %arg7[%c0_55, %c0_56, %c0_57] : memref<2x8x128xf32, #tpu.memory_space<vmem>>, vector<1x8x128xf32>
    %57 = vector.shape_cast %56 : vector<1x8x128xf32> to vector<8x128xf32>
    %58 = vector.shape_cast %55 : vector<8x128xf32> to vector<1x8x128xf32>
    tpu.vector_store %arg7[%c0_55, %c0_56, %c0_57], %58 {strides = array<i32>} : memref<2x8x128xf32, #tpu.memory_space<vmem>>, vector<1x8x128xf32>,
    %c1_58 = arith.constant 1 : index
    %c0_59 = arith.constant 0 : index
    %c0_60 = arith.constant 0 : index
    %c0_61 = arith.constant 0 : index
    %c0_62 = arith.constant 0 : index
    %59 = vector.load %arg3[%c1_58, %c0_59, %c0_60, %c0_61, %c0_62] : memref<2x1x2x9x128xbf16, #tpu.memory_space<vmem>>, vector<1x1x1x8x128xbf16>
    %60 = vector.shape_cast %59 : vector<1x1x1x8x128xbf16> to vector<8x128xbf16>
    %c4_i32_63 = arith.constant 4 : i32
    %61 = arith.muli %arg2, %c4_i32_63 : i32
    %c0_i32_64 = arith.constant 0 : i32
    %62 = arith.addi %61, %c0_i32_64 : i32
    %63 = arith.index_cast %62 : i32 to index
    %c0_65 = arith.constant 0 : index
    %c0_66 = arith.constant 0 : index
    %64 = vector.load %arg4[%63, %c0_65, %c0_66] : memref<16x128x128xbf16, #tpu.memory_space<vmem>>, vector<1x128x128xbf16>
    %65 = vector.shape_cast %64 : vector<1x128x128xbf16> to vector<128x128xbf16>
    %c1_67 = arith.constant 1 : index
    %c0_68 = arith.constant 0 : index
    %c0_69 = arith.constant 0 : index
    %66 = vector.load %arg7[%c1_67, %c0_68, %c0_69] : memref<2x8x128xf32, #tpu.memory_space<vmem>>, vector<1x8x128xf32>
    %67 = vector.shape_cast %66 : vector<1x8x128xf32> to vector<8x128xf32>
    %cst_70 = arith.constant dense<0.000000e+00> : vector<8x128xf32>
    %68 = tpu.matmul %60, %65, %cst_70 {dimension_numbers = #tpu.dot_dimension_numbers<[1], [0], [0], [1], [0, 0, 1, 1], [], []>} : vector<8x128xbf16>, vector<128x128xbf16>, vector<8x128xf32> -> vector<8x128xf32>
    %69 = arith.addf %67, %68 : vector<8x128xf32>
    %c1_71 = arith.constant 1 : index
    %c0_72 = arith.constant 0 : index
    %c0_73 = arith.constant 0 : index
    %70 = vector.load %arg7[%c1_71, %c0_72, %c0_73] : memref<2x8x128xf32, #tpu.memory_space<vmem>>, vector<1x8x128xf32>
    %71 = vector.shape_cast %70 : vector<1x8x128xf32> to vector<8x128xf32>
    %72 = vector.shape_cast %69 : vector<8x128xf32> to vector<1x8x128xf32>
    tpu.vector_store %arg7[%c1_71, %c0_72, %c0_73], %72 {strides = array<i32>} : memref<2x8x128xf32, #tpu.memory_space<vmem>>, vector<1x8x128xf32>,
    %c1_74 = arith.constant 1 : index
    %c0_75 = arith.constant 0 : index
    %c1_76 = arith.constant 1 : index
    %c0_77 = arith.constant 0 : index
    %c0_78 = arith.constant 0 : index
    %73 = vector.load %arg3[%c1_74, %c0_75, %c1_76, %c0_77, %c0_78] : memref<2x1x2x9x128xbf16, #tpu.memory_space<vmem>>, vector<1x1x1x8x128xbf16>
    %74 = vector.shape_cast %73 : vector<1x1x1x8x128xbf16> to vector<8x128xbf16>
    %c4_i32_79 = arith.constant 4 : i32
    %75 = arith.muli %arg2, %c4_i32_79 : i32
    %c1_i32_80 = arith.constant 1 : i32
    %76 = arith.addi %75, %c1_i32_80 : i32
    %77 = arith.index_cast %76 : i32 to index
    %c0_81 = arith.constant 0 : index
    %c0_82 = arith.constant 0 : index
    %78 = vector.load %arg4[%77, %c0_81, %c0_82] : memref<16x128x128xbf16, #tpu.memory_space<vmem>>, vector<1x128x128xbf16>
    %79 = vector.shape_cast %78 : vector<1x128x128xbf16> to vector<128x128xbf16>
    %c1_83 = arith.constant 1 : index
    %c0_84 = arith.constant 0 : index
    %c0_85 = arith.constant 0 : index
    %80 = vector.load %arg7[%c1_83, %c0_84, %c0_85] : memref<2x8x128xf32, #tpu.memory_space<vmem>>, vector<1x8x128xf32>
    %81 = vector.shape_cast %80 : vector<1x8x128xf32> to vector<8x128xf32>
    %cst_86 = arith.constant dense<0.000000e+00> : vector<8x128xf32>
    %82 = tpu.matmul %74, %79, %cst_86 {dimension_numbers = #tpu.dot_dimension_numbers<[1], [0], [0], [1], [0, 0, 1, 1], [], []>} : vector<8x128xbf16>, vector<128x128xbf16>, vector<8x128xf32> -> vector<8x128xf32>
    %83 = arith.addf %81, %82 : vector<8x128xf32>
    %c1_87 = arith.constant 1 : index
    %c0_88 = arith.constant 0 : index
    %c0_89 = arith.constant 0 : index
    %84 = vector.load %arg7[%c1_87, %c0_88, %c0_89] : memref<2x8x128xf32, #tpu.memory_space<vmem>>, vector<1x8x128xf32>
    %85 = vector.shape_cast %84 : vector<1x8x128xf32> to vector<8x128xf32>
    %86 = vector.shape_cast %83 : vector<8x128xf32> to vector<1x8x128xf32>
    tpu.vector_store %arg7[%c1_87, %c0_88, %c0_89], %86 {strides = array<i32>} : memref<2x8x128xf32, #tpu.memory_space<vmem>>, vector<1x8x128xf32>,
    %c1_90 = arith.constant 1 : index
    %c0_91 = arith.constant 0 : index
    %c0_92 = arith.constant 0 : index
    %c1_93 = arith.constant 1 : index
    %c0_94 = arith.constant 0 : index
    %87 = vector.load %arg3[%c1_90, %c0_91, %c0_92, %c1_93, %c0_94] : memref<2x1x2x9x128xbf16, #tpu.memory_space<vmem>>, vector<1x1x1x8x128xbf16>
    %88 = vector.shape_cast %87 : vector<1x1x1x8x128xbf16> to vector<8x128xbf16>
    %c4_i32_95 = arith.constant 4 : i32
    %89 = arith.muli %arg2, %c4_i32_95 : i32
    %c2_i32_96 = arith.constant 2 : i32
    %90 = arith.addi %89, %c2_i32_96 : i32
    %91 = arith.index_cast %90 : i32 to index
    %c0_97 = arith.constant 0 : index
    %c0_98 = arith.constant 0 : index
    %92 = vector.load %arg4[%91, %c0_97, %c0_98] : memref<16x128x128xbf16, #tpu.memory_space<vmem>>, vector<1x128x128xbf16>
    %93 = vector.shape_cast %92 : vector<1x128x128xbf16> to vector<128x128xbf16>
    %c1_99 = arith.constant 1 : index
    %c0_100 = arith.constant 0 : index
    %c0_101 = arith.constant 0 : index
    %94 = vector.load %arg7[%c1_99, %c0_100, %c0_101] : memref<2x8x128xf32, #tpu.memory_space<vmem>>, vector<1x8x128xf32>
    %95 = vector.shape_cast %94 : vector<1x8x128xf32> to vector<8x128xf32>
    %cst_102 = arith.constant dense<0.000000e+00> : vector<8x128xf32>
    %96 = tpu.matmul %88, %93, %cst_102 {dimension_numbers = #tpu.dot_dimension_numbers<[1], [0], [0], [1], [0, 0, 1, 1], [], []>} : vector<8x128xbf16>, vector<128x128xbf16>, vector<8x128xf32> -> vector<8x128xf32>
    %97 = arith.addf %95, %96 : vector<8x128xf32>
    %c1_103 = arith.constant 1 : index
    %c0_104 = arith.constant 0 : index
    %c0_105 = arith.constant 0 : index
    %98 = vector.load %arg7[%c1_103, %c0_104, %c0_105] : memref<2x8x128xf32, #tpu.memory_space<vmem>>, vector<1x8x128xf32>
    %99 = vector.shape_cast %98 : vector<1x8x128xf32> to vector<8x128xf32>
    %100 = vector.shape_cast %97 : vector<8x128xf32> to vector<1x8x128xf32>
    tpu.vector_store %arg7[%c1_103, %c0_104, %c0_105], %100 {strides = array<i32>} : memref<2x8x128xf32, #tpu.memory_space<vmem>>, vector<1x8x128xf32>,
    %c1_106 = arith.constant 1 : index
    %c0_107 = arith.constant 0 : index
    %c1_108 = arith.constant 1 : index
    %c1_109 = arith.constant 1 : index
    %c0_110 = arith.constant 0 : index
    %101 = vector.load %arg3[%c1_106, %c0_107, %c1_108, %c1_109, %c0_110] : memref<2x1x2x9x128xbf16, #tpu.memory_space<vmem>>, vector<1x1x1x8x128xbf16>
    %102 = vector.shape_cast %101 : vector<1x1x1x8x128xbf16> to vector<8x128xbf16>
    %c4_i32_111 = arith.constant 4 : i32
    %103 = arith.muli %arg2, %c4_i32_111 : i32
    %c3_i32_112 = arith.constant 3 : i32
    %104 = arith.addi %103, %c3_i32_112 : i32
    %105 = arith.index_cast %104 : i32 to index
    %c0_113 = arith.constant 0 : index
    %c0_114 = arith.constant 0 : index
    %106 = vector.load %arg4[%105, %c0_113, %c0_114] : memref<16x128x128xbf16, #tpu.memory_space<vmem>>, vector<1x128x128xbf16>
    %107 = vector.shape_cast %106 : vector<1x128x128xbf16> to vector<128x128xbf16>
    %c1_115 = arith.constant 1 : index
    %c0_116 = arith.constant 0 : index
    %c0_117 = arith.constant 0 : index
    %108 = vector.load %arg7[%c1_115, %c0_116, %c0_117] : memref<2x8x128xf32, #tpu.memory_space<vmem>>, vector<1x8x128xf32>
    %109 = vector.shape_cast %108 : vector<1x8x128xf32> to vector<8x128xf32>
    %cst_118 = arith.constant dense<0.000000e+00> : vector<8x128xf32>
    %110 = tpu.matmul %102, %107, %cst_118 {dimension_numbers = #tpu.dot_dimension_numbers<[1], [0], [0], [1], [0, 0, 1, 1], [], []>} : vector<8x128xbf16>, vector<128x128xbf16>, vector<8x128xf32> -> vector<8x128xf32>
    %111 = arith.addf %109, %110 : vector<8x128xf32>
    %c1_119 = arith.constant 1 : index
    %c0_120 = arith.constant 0 : index
    %c0_121 = arith.constant 0 : index
    %112 = vector.load %arg7[%c1_119, %c0_120, %c0_121] : memref<2x8x128xf32, #tpu.memory_space<vmem>>, vector<1x8x128xf32>
    %113 = vector.shape_cast %112 : vector<1x8x128xf32> to vector<8x128xf32>
    %114 = vector.shape_cast %111 : vector<8x128xf32> to vector<1x8x128xf32>
    tpu.vector_store %arg7[%c1_119, %c0_120, %c0_121], %114 {strides = array<i32>} : memref<2x8x128xf32, #tpu.memory_space<vmem>>, vector<1x8x128xf32>,
    %c3_i32_122 = arith.constant 3 : i32
    %115 = arith.cmpi eq, %arg2, %c3_i32_122 : i32
    %116 = arith.extui %115 : i1 to i32
    %c0_i32_123 = arith.constant 0 : i32
    %117 = arith.cmpi ne, %116, %c0_i32_123 : i32
    scf.if %117 {
      %c0_124 = arith.constant 0 : index
      %c0_125 = arith.constant 0 : index
      %c0_126 = arith.constant 0 : index
      %118 = vector.load %arg7[%c0_124, %c0_125, %c0_126] : memref<2x8x128xf32, #tpu.memory_space<vmem>>, vector<2x8x128xf32>
      %c0_127 = arith.constant 0 : index
      %c0_128 = arith.constant 0 : index
      %119 = vector.load %arg5[%c0_127, %c0_128] : memref<1x128xf32, #tpu.memory_space<vmem>>, vector<1x128xf32>
      %120 = vector.shape_cast %119 : vector<1x128xf32> to vector<1x1x128xf32>
      %121 = vector.broadcast %120 : vector<1x1x128xf32> to vector<2x8x128xf32>
      %122 = arith.addf %118, %121 : vector<2x8x128xf32>
      %123 = arith.truncf %122 : vector<2x8x128xf32> to vector<2x8x128xbf16>
      %c0_129 = arith.constant 0 : index
      %c0_130 = arith.constant 0 : index
      %c0_131 = arith.constant 0 : index
      %c0_132 = arith.constant 0 : index
      %124 = vector.load %arg6[%c0_129, %c0_130, %c0_131, %c0_132] : memref<2x1x8x128xbf16, #tpu.memory_space<vmem>>, vector<2x1x8x128xbf16>
      %125 = vector.shape_cast %124 : vector<2x1x8x128xbf16> to vector<2x8x128xbf16>
      %126 = vector.shape_cast %123 : vector<2x8x128xbf16> to vector<2x1x8x128xbf16>
      tpu.vector_store %arg6[%c0_129, %c0_130, %c0_131, %c0_132], %126 {strides = array<i32>} : memref<2x1x8x128xbf16, #tpu.memory_space<vmem>>, vector<2x1x8x128xbf16>,
    } else {
    }
    return
  }
  func.func @transform_0(%arg0: i32, %arg1: i32, %arg2: i32) -> (i32, i32, i32, i32, i32) {
    %c2_i32 = arith.constant 2 : i32
    %0 = arith.muli %c2_i32, %arg1 : i32
    %1 = arith.addi %0, %arg2 : i32
    %c0_i32 = arith.constant 0 : i32
    %c0_i32_0 = arith.constant 0 : i32
    %c0_i32_1 = arith.constant 0 : i32
    %c0_i32_2 = arith.constant 0 : i32
    %c0_i32_3 = arith.constant 0 : i32
    return %c0_i32, %1, %c0_i32_0, %c0_i32_1, %c0_i32_2 : i32, i32, i32, i32, i32
  }
  func.func @transform_1(%arg0: i32, %arg1: i32, %arg2: i32) -> (i32, i32, i32) {
    %c0_i32 = arith.constant 0 : i32
    %c0_i32_0 = arith.constant 0 : i32
    %c0_i32_1 = arith.constant 0 : i32
    return %c0_i32, %c0_i32_0, %arg0 : i32, i32, i32
  }
  func.func @transform_2(%arg0: i32, %arg1: i32, %arg2: i32) -> (i32, i32) {
    %c0_i32 = arith.constant 0 : i32
    %c0_i32_0 = arith.constant 0 : i32
    return %c0_i32, %arg0 : i32, i32
  }
  func.func @transform_3(%arg0: i32, %arg1: i32, %arg2: i32) -> (i32, i32, i32, i32) {
    %c0_i32 = arith.constant 0 : i32
    %c0_i32_0 = arith.constant 0 : i32
    %c0_i32_1 = arith.constant 0 : i32
    return %c0_i32, %arg1, %c0_i32_0, %arg0 : i32, i32, i32, i32
  }
}

module attributes {stable_mosaic.version = 11 : i64} {
  func.func @_inorm_apply_kernel(%arg0: i32, %arg1: i32, %arg2: i32, %arg3: memref<1x64x128xbf16, #tpu.memory_space<vmem>>, %arg4: memref<1x1x128xf32, #tpu.memory_space<vmem>>, %arg5: memref<1x1x128xf32, #tpu.memory_space<vmem>>, %arg6: memref<1x64x128xbf16, #tpu.memory_space<vmem>>) attributes {dimension_semantics = [#tpu.dimension_semantics<parallel>, #tpu.dimension_semantics<parallel>, #tpu.dimension_semantics<parallel>], iteration_bounds = array<i64: 2, 1, 1>, scalar_prefetch = 0 : i64, scratch_operands = 0 : i64, tpu.core_type = #tpu.core_type<tc>, window_params = [{transform_indices = @transform_0, window_bounds = array<i64: 1, 64, 128>}, {transform_indices = @transform_1, window_bounds = array<i64: 1, 1, 128>}, {transform_indices = @transform_2, window_bounds = array<i64: 1, 1, 128>}, {transform_indices = @transform_3, window_bounds = array<i64: 1, 64, 128>}]} {
    %c0 = arith.constant 0 : index
    %c0_0 = arith.constant 0 : index
    %c0_1 = arith.constant 0 : index
    %0 = vector.load %arg3[%c0, %c0_0, %c0_1] : memref<1x64x128xbf16, #tpu.memory_space<vmem>>, vector<1x64x128xbf16>
    %1 = arith.extf %0 : vector<1x64x128xbf16> to vector<1x64x128xf32>
    %c0_2 = arith.constant 0 : index
    %c0_3 = arith.constant 0 : index
    %c0_4 = arith.constant 0 : index
    %2 = vector.load %arg4[%c0_2, %c0_3, %c0_4] : memref<1x1x128xf32, #tpu.memory_space<vmem>>, vector<1x1x128xf32>
    %3 = vector.broadcast %2 : vector<1x1x128xf32> to vector<1x64x128xf32>
    %4 = arith.mulf %1, %3 : vector<1x64x128xf32>
    %c0_5 = arith.constant 0 : index
    %c0_6 = arith.constant 0 : index
    %c0_7 = arith.constant 0 : index
    %5 = vector.load %arg5[%c0_5, %c0_6, %c0_7] : memref<1x1x128xf32, #tpu.memory_space<vmem>>, vector<1x1x128xf32>
    %6 = vector.broadcast %5 : vector<1x1x128xf32> to vector<1x64x128xf32>
    %7 = arith.addf %4, %6 : vector<1x64x128xf32>
    %cst = arith.constant 0.000000e+00 : f32
    %8 = vector.broadcast %cst : f32 to vector<1x64x128xf32>
    %9 = arith.cmpf oge, %7, %8 : vector<1x64x128xf32>
    %cst_8 = arith.constant 2.000000e-01 : f32
    %10 = vector.broadcast %cst_8 : f32 to vector<1x64x128xf32>
    %11 = arith.mulf %10, %7 : vector<1x64x128xf32>
    %12 = arith.select %9, %7, %11 : vector<1x64x128xi1>, vector<1x64x128xf32>
    %13 = arith.truncf %12 : vector<1x64x128xf32> to vector<1x64x128xbf16>
    %c0_9 = arith.constant 0 : index
    %c0_10 = arith.constant 0 : index
    %c0_11 = arith.constant 0 : index
    %14 = vector.load %arg6[%c0_9, %c0_10, %c0_11] : memref<1x64x128xbf16, #tpu.memory_space<vmem>>, vector<1x64x128xbf16>
    tpu.vector_store %arg6[%c0_9, %c0_10, %c0_11], %13 {strides = array<i32>} : memref<1x64x128xbf16, #tpu.memory_space<vmem>>, vector<1x64x128xbf16>,
    return
  }
  func.func @transform_0(%arg0: i32, %arg1: i32, %arg2: i32) -> (i32, i32, i32) {
    %c0_i32 = arith.constant 0 : i32
    return %arg0, %arg2, %arg1 : i32, i32, i32
  }
  func.func @transform_1(%arg0: i32, %arg1: i32, %arg2: i32) -> (i32, i32, i32) {
    %c0_i32 = arith.constant 0 : i32
    %c0_i32_0 = arith.constant 0 : i32
    return %arg0, %c0_i32, %arg1 : i32, i32, i32
  }
  func.func @transform_2(%arg0: i32, %arg1: i32, %arg2: i32) -> (i32, i32, i32) {
    %c0_i32 = arith.constant 0 : i32
    %c0_i32_0 = arith.constant 0 : i32
    return %arg0, %c0_i32, %arg1 : i32, i32, i32
  }
  func.func @transform_3(%arg0: i32, %arg1: i32, %arg2: i32) -> (i32, i32, i32) {
    %c0_i32 = arith.constant 0 : i32
    return %arg0, %arg2, %arg1 : i32, i32, i32
  }
}

module attributes {stable_mosaic.version = 11 : i64} {
  func.func @_inorm_stats_kernel(%arg0: i32, %arg1: i32, %arg2: i32, %arg3: memref<1x64x128xbf16, #tpu.memory_space<vmem>>, %arg4: memref<1x128xf32, #tpu.memory_space<vmem>>, %arg5: memref<1x128xf32, #tpu.memory_space<vmem>>, %arg6: memref<1x1x128xf32, #tpu.memory_space<vmem>>, %arg7: memref<1x1x128xf32, #tpu.memory_space<vmem>>) attributes {dimension_semantics = [#tpu.dimension_semantics<parallel>, #tpu.dimension_semantics<parallel>, #tpu.dimension_semantics<arbitrary>], iteration_bounds = array<i64: 2, 1, 1>, scalar_prefetch = 0 : i64, scratch_operands = 0 : i64, tpu.core_type = #tpu.core_type<tc>, window_params = [{transform_indices = @transform_0, window_bounds = array<i64: 1, 64, 128>}, {transform_indices = @transform_1, window_bounds = array<i64: 1, 128>}, {transform_indices = @transform_2, window_bounds = array<i64: 1, 128>}, {transform_indices = @transform_3, window_bounds = array<i64: 1, 1, 128>}, {transform_indices = @transform_4, window_bounds = array<i64: 1, 1, 128>}]} {
    %c0_i32 = arith.constant 0 : i32
    %0 = arith.cmpi eq, %arg2, %c0_i32 : i32
    %1 = arith.extui %0 : i1 to i32
    %c0_i32_0 = arith.constant 0 : i32
    %2 = arith.cmpi ne, %1, %c0_i32_0 : i32
    scf.if %2 {
      %cst_18 = arith.constant 0.000000e+00 : f32
      %19 = vector.broadcast %cst_18 : f32 to vector<1x1x128xf32>
      %c0_19 = arith.constant 0 : index
      %c0_20 = arith.constant 0 : index
      %c0_21 = arith.constant 0 : index
      %20 = vector.load %arg6[%c0_19, %c0_20, %c0_21] : memref<1x1x128xf32, #tpu.memory_space<vmem>>, vector<1x1x128xf32>
      tpu.vector_store %arg6[%c0_19, %c0_20, %c0_21], %19 {strides = array<i32>} : memref<1x1x128xf32, #tpu.memory_space<vmem>>, vector<1x1x128xf32>,
      %cst_22 = arith.constant 0.000000e+00 : f32
      %21 = vector.broadcast %cst_22 : f32 to vector<1x1x128xf32>
      %c0_23 = arith.constant 0 : index
      %c0_24 = arith.constant 0 : index
      %c0_25 = arith.constant 0 : index
      %22 = vector.load %arg7[%c0_23, %c0_24, %c0_25] : memref<1x1x128xf32, #tpu.memory_space<vmem>>, vector<1x1x128xf32>
      tpu.vector_store %arg7[%c0_23, %c0_24, %c0_25], %21 {strides = array<i32>} : memref<1x1x128xf32, #tpu.memory_space<vmem>>, vector<1x1x128xf32>,
    } else {
    }
    %c0 = arith.constant 0 : index
    %c0_1 = arith.constant 0 : index
    %c0_2 = arith.constant 0 : index
    %3 = vector.load %arg3[%c0, %c0_1, %c0_2] : memref<1x64x128xbf16, #tpu.memory_space<vmem>>, vector<1x64x128xbf16>
    %4 = arith.extf %3 : vector<1x64x128xbf16> to vector<1x64x128xf32>
    %c0_3 = arith.constant 0 : index
    %c0_4 = arith.constant 0 : index
    %c0_5 = arith.constant 0 : index
    %5 = vector.load %arg6[%c0_3, %c0_4, %c0_5] : memref<1x1x128xf32, #tpu.memory_space<vmem>>, vector<1x1x128xf32>
    %cst = arith.constant dense<0.000000e+00> : vector<1x128xf32>
    %6 = vector.multi_reduction <add>, %4, %cst [1] : vector<1x64x128xf32> to vector<1x128xf32>
    %7 = vector.shape_cast %6 : vector<1x128xf32> to vector<1x1x128xf32>
    %8 = arith.addf %5, %7 : vector<1x1x128xf32>
    %c0_6 = arith.constant 0 : index
    %c0_7 = arith.constant 0 : index
    %c0_8 = arith.constant 0 : index
    %9 = vector.load %arg6[%c0_6, %c0_7, %c0_8] : memref<1x1x128xf32, #tpu.memory_space<vmem>>, vector<1x1x128xf32>
    tpu.vector_store %arg6[%c0_6, %c0_7, %c0_8], %8 {strides = array<i32>} : memref<1x1x128xf32, #tpu.memory_space<vmem>>, vector<1x1x128xf32>,
    %c0_9 = arith.constant 0 : index
    %c0_10 = arith.constant 0 : index
    %c0_11 = arith.constant 0 : index
    %10 = vector.load %arg7[%c0_9, %c0_10, %c0_11] : memref<1x1x128xf32, #tpu.memory_space<vmem>>, vector<1x1x128xf32>
    %11 = arith.mulf %4, %4 : vector<1x64x128xf32>
    %cst_12 = arith.constant dense<0.000000e+00> : vector<1x128xf32>
    %12 = vector.multi_reduction <add>, %11, %cst_12 [1] : vector<1x64x128xf32> to vector<1x128xf32>
    %13 = vector.shape_cast %12 : vector<1x128xf32> to vector<1x1x128xf32>
    %14 = arith.addf %10, %13 : vector<1x1x128xf32>
    %c0_13 = arith.constant 0 : index
    %c0_14 = arith.constant 0 : index
    %c0_15 = arith.constant 0 : index
    %15 = vector.load %arg7[%c0_13, %c0_14, %c0_15] : memref<1x1x128xf32, #tpu.memory_space<vmem>>, vector<1x1x128xf32>
    tpu.vector_store %arg7[%c0_13, %c0_14, %c0_15], %14 {strides = array<i32>} : memref<1x1x128xf32, #tpu.memory_space<vmem>>, vector<1x1x128xf32>,
    %c0_i32_16 = arith.constant 0 : i32
    %16 = arith.cmpi eq, %arg2, %c0_i32_16 : i32
    %17 = arith.extui %16 : i1 to i32
    %c0_i32_17 = arith.constant 0 : i32
    %18 = arith.cmpi ne, %17, %c0_i32_17 : i32
    scf.if %18 {
      %c0_18 = arith.constant 0 : index
      %c0_19 = arith.constant 0 : index
      %c0_20 = arith.constant 0 : index
      %19 = vector.load %arg6[%c0_18, %c0_19, %c0_20] : memref<1x1x128xf32, #tpu.memory_space<vmem>>, vector<1x1x128xf32>
      %cst_21 = arith.constant 1.562500e-02 : f32
      %20 = vector.broadcast %cst_21 : f32 to vector<1x1x128xf32>
      %21 = arith.mulf %19, %20 : vector<1x1x128xf32>
      %c0_22 = arith.constant 0 : index
      %c0_23 = arith.constant 0 : index
      %c0_24 = arith.constant 0 : index
      %22 = vector.load %arg7[%c0_22, %c0_23, %c0_24] : memref<1x1x128xf32, #tpu.memory_space<vmem>>, vector<1x1x128xf32>
      %cst_25 = arith.constant 1.562500e-02 : f32
      %23 = vector.broadcast %cst_25 : f32 to vector<1x1x128xf32>
      %24 = arith.mulf %22, %23 : vector<1x1x128xf32>
      %25 = arith.mulf %21, %21 : vector<1x1x128xf32>
      %26 = arith.subf %24, %25 : vector<1x1x128xf32>
      %cst_26 = arith.constant 9.99999974E-6 : f32
      %27 = vector.broadcast %cst_26 : f32 to vector<1x1x128xf32>
      %28 = arith.addf %26, %27 : vector<1x1x128xf32>
      %29 = math.rsqrt %28 : vector<1x1x128xf32>
      %c0_27 = arith.constant 0 : index
      %c0_28 = arith.constant 0 : index
      %30 = vector.load %arg4[%c0_27, %c0_28] : memref<1x128xf32, #tpu.memory_space<vmem>>, vector<1x128xf32>
      %31 = vector.shape_cast %30 : vector<1x128xf32> to vector<1x1x128xf32>
      %c0_29 = arith.constant 0 : index
      %c0_30 = arith.constant 0 : index
      %32 = vector.load %arg5[%c0_29, %c0_30] : memref<1x128xf32, #tpu.memory_space<vmem>>, vector<1x128xf32>
      %33 = vector.shape_cast %32 : vector<1x128xf32> to vector<1x1x128xf32>
      %34 = arith.mulf %31, %29 : vector<1x1x128xf32>
      %c0_31 = arith.constant 0 : index
      %c0_32 = arith.constant 0 : index
      %c0_33 = arith.constant 0 : index
      %35 = vector.load %arg6[%c0_31, %c0_32, %c0_33] : memref<1x1x128xf32, #tpu.memory_space<vmem>>, vector<1x1x128xf32>
      tpu.vector_store %arg6[%c0_31, %c0_32, %c0_33], %34 {strides = array<i32>} : memref<1x1x128xf32, #tpu.memory_space<vmem>>, vector<1x1x128xf32>,
      %36 = arith.mulf %21, %34 : vector<1x1x128xf32>
      %37 = arith.subf %33, %36 : vector<1x1x128xf32>
      %c0_34 = arith.constant 0 : index
      %c0_35 = arith.constant 0 : index
      %c0_36 = arith.constant 0 : index
      %38 = vector.load %arg7[%c0_34, %c0_35, %c0_36] : memref<1x1x128xf32, #tpu.memory_space<vmem>>, vector<1x1x128xf32>
      tpu.vector_store %arg7[%c0_34, %c0_35, %c0_36], %37 {strides = array<i32>} : memref<1x1x128xf32, #tpu.memory_space<vmem>>, vector<1x1x128xf32>,
    } else {
    }
    return
  }
  func.func @transform_0(%arg0: i32, %arg1: i32, %arg2: i32) -> (i32, i32, i32) {
    %c0_i32 = arith.constant 0 : i32
    return %arg0, %arg2, %arg1 : i32, i32, i32
  }
  func.func @transform_1(%arg0: i32, %arg1: i32, %arg2: i32) -> (i32, i32) {
    %c0_i32 = arith.constant 0 : i32
    %c0_i32_0 = arith.constant 0 : i32
    return %c0_i32, %arg1 : i32, i32
  }
  func.func @transform_2(%arg0: i32, %arg1: i32, %arg2: i32) -> (i32, i32) {
    %c0_i32 = arith.constant 0 : i32
    %c0_i32_0 = arith.constant 0 : i32
    return %c0_i32, %arg1 : i32, i32
  }
  func.func @transform_3(%arg0: i32, %arg1: i32, %arg2: i32) -> (i32, i32, i32) {
    %c0_i32 = arith.constant 0 : i32
    %c0_i32_0 = arith.constant 0 : i32
    return %arg0, %c0_i32, %arg1 : i32, i32, i32
  }
  func.func @transform_4(%arg0: i32, %arg1: i32, %arg2: i32) -> (i32, i32, i32) {
    %c0_i32 = arith.constant 0 : i32
    %c0_i32_0 = arith.constant 0 : i32
    return %arg0, %c0_i32, %arg1 : i32, i32, i32
  }
}

module attributes {stable_mosaic.version = 11 : i64} {
  func.func @_conv_tap_kernel(%arg0: i32, %arg1: i32, %arg2: i32, %arg3: memref<2x1x2x5x128xbf16, #tpu.memory_space<vmem>>, %arg4: memref<16x128x256xbf16, #tpu.memory_space<vmem>>, %arg5: memref<1x256xf32, #tpu.memory_space<vmem>>, %arg6: memref<2x1x4x256xbf16, #tpu.memory_space<vmem>>, %arg7: memref<2x4x256xf32, #tpu.memory_space<vmem>>) attributes {dimension_semantics = [#tpu.dimension_semantics<parallel>, #tpu.dimension_semantics<parallel>, #tpu.dimension_semantics<arbitrary>], iteration_bounds = array<i64: 1, 4, 4>, scalar_prefetch = 0 : i64, scratch_operands = 1 : i64, tpu.core_type = #tpu.core_type<tc>, window_params = [{transform_indices = @transform_0, window_bounds = array<i64: 2, 1, 2, 5, 128>}, {transform_indices = @transform_1, window_bounds = array<i64: 16, 128, 256>}, {transform_indices = @transform_2, window_bounds = array<i64: 1, 256>}, {transform_indices = @transform_3, window_bounds = array<i64: 2, 1, 4, 256>}]} {
    %c0_i32 = arith.constant 0 : i32
    %0 = arith.cmpi eq, %arg2, %c0_i32 : i32
    %1 = arith.extui %0 : i1 to i32
    %c0_i32_0 = arith.constant 0 : i32
    %2 = arith.cmpi ne, %1, %c0_i32_0 : i32
    scf.if %2 {
      %cst_124 = arith.constant 0.000000e+00 : f32
      %118 = vector.broadcast %cst_124 : f32 to vector<2x4x256xf32>
      %c0_125 = arith.constant 0 : index
      %c0_126 = arith.constant 0 : index
      %c0_127 = arith.constant 0 : index
      %119 = vector.load %arg7[%c0_125, %c0_126, %c0_127] : memref<2x4x256xf32, #tpu.memory_space<vmem>>, vector<2x4x256xf32>
      tpu.vector_store %arg7[%c0_125, %c0_126, %c0_127], %118 {strides = array<i32>} : memref<2x4x256xf32, #tpu.memory_space<vmem>>, vector<2x4x256xf32>,
    } else {
    }
    %c0 = arith.constant 0 : index
    %c0_1 = arith.constant 0 : index
    %c0_2 = arith.constant 0 : index
    %c0_3 = arith.constant 0 : index
    %c0_4 = arith.constant 0 : index
    %3 = vector.load %arg3[%c0, %c0_1, %c0_2, %c0_3, %c0_4] : memref<2x1x2x5x128xbf16, #tpu.memory_space<vmem>>, vector<1x1x1x4x128xbf16>
    %4 = vector.shape_cast %3 : vector<1x1x1x4x128xbf16> to vector<4x128xbf16>
    %c4_i32 = arith.constant 4 : i32
    %5 = arith.muli %arg2, %c4_i32 : i32
    %c0_i32_5 = arith.constant 0 : i32
    %6 = arith.addi %5, %c0_i32_5 : i32
    %7 = arith.index_cast %6 : i32 to index
    %c0_6 = arith.constant 0 : index
    %c0_7 = arith.constant 0 : index
    %8 = vector.load %arg4[%7, %c0_6, %c0_7] : memref<16x128x256xbf16, #tpu.memory_space<vmem>>, vector<1x128x256xbf16>
    %9 = vector.shape_cast %8 : vector<1x128x256xbf16> to vector<128x256xbf16>
    %c0_8 = arith.constant 0 : index
    %c0_9 = arith.constant 0 : index
    %c0_10 = arith.constant 0 : index
    %10 = vector.load %arg7[%c0_8, %c0_9, %c0_10] : memref<2x4x256xf32, #tpu.memory_space<vmem>>, vector<1x4x256xf32>
    %11 = vector.shape_cast %10 : vector<1x4x256xf32> to vector<4x256xf32>
    %cst = arith.constant dense<0.000000e+00> : vector<4x256xf32>
    %12 = tpu.matmul %4, %9, %cst {dimension_numbers = #tpu.dot_dimension_numbers<[1], [0], [0], [1], [0, 0, 1, 1], [], []>} : vector<4x128xbf16>, vector<128x256xbf16>, vector<4x256xf32> -> vector<4x256xf32>
    %13 = arith.addf %11, %12 : vector<4x256xf32>
    %c0_11 = arith.constant 0 : index
    %c0_12 = arith.constant 0 : index
    %c0_13 = arith.constant 0 : index
    %14 = vector.load %arg7[%c0_11, %c0_12, %c0_13] : memref<2x4x256xf32, #tpu.memory_space<vmem>>, vector<1x4x256xf32>
    %15 = vector.shape_cast %14 : vector<1x4x256xf32> to vector<4x256xf32>
    %16 = vector.shape_cast %13 : vector<4x256xf32> to vector<1x4x256xf32>
    tpu.vector_store %arg7[%c0_11, %c0_12, %c0_13], %16 {strides = array<i32>} : memref<2x4x256xf32, #tpu.memory_space<vmem>>, vector<1x4x256xf32>,
    %c0_14 = arith.constant 0 : index
    %c0_15 = arith.constant 0 : index
    %c1 = arith.constant 1 : index
    %c0_16 = arith.constant 0 : index
    %c0_17 = arith.constant 0 : index
    %17 = vector.load %arg3[%c0_14, %c0_15, %c1, %c0_16, %c0_17] : memref<2x1x2x5x128xbf16, #tpu.memory_space<vmem>>, vector<1x1x1x4x128xbf16>
    %18 = vector.shape_cast %17 : vector<1x1x1x4x128xbf16> to vector<4x128xbf16>
    %c4_i32_18 = arith.constant 4 : i32
    %19 = arith.muli %arg2, %c4_i32_18 : i32
    %c1_i32 = arith.constant 1 : i32
    %20 = arith.addi %19, %c1_i32 : i32
    %21 = arith.index_cast %20 : i32 to index
    %c0_19 = arith.constant 0 : index
    %c0_20 = arith.constant 0 : index
    %22 = vector.load %arg4[%21, %c0_19, %c0_20] : memref<16x128x256xbf16, #tpu.memory_space<vmem>>, vector<1x128x256xbf16>
    %23 = vector.shape_cast %22 : vector<1x128x256xbf16> to vector<128x256xbf16>
    %c0_21 = arith.constant 0 : index
    %c0_22 = arith.constant 0 : index
    %c0_23 = arith.constant 0 : index
    %24 = vector.load %arg7[%c0_21, %c0_22, %c0_23] : memref<2x4x256xf32, #tpu.memory_space<vmem>>, vector<1x4x256xf32>
    %25 = vector.shape_cast %24 : vector<1x4x256xf32> to vector<4x256xf32>
    %cst_24 = arith.constant dense<0.000000e+00> : vector<4x256xf32>
    %26 = tpu.matmul %18, %23, %cst_24 {dimension_numbers = #tpu.dot_dimension_numbers<[1], [0], [0], [1], [0, 0, 1, 1], [], []>} : vector<4x128xbf16>, vector<128x256xbf16>, vector<4x256xf32> -> vector<4x256xf32>
    %27 = arith.addf %25, %26 : vector<4x256xf32>
    %c0_25 = arith.constant 0 : index
    %c0_26 = arith.constant 0 : index
    %c0_27 = arith.constant 0 : index
    %28 = vector.load %arg7[%c0_25, %c0_26, %c0_27] : memref<2x4x256xf32, #tpu.memory_space<vmem>>, vector<1x4x256xf32>
    %29 = vector.shape_cast %28 : vector<1x4x256xf32> to vector<4x256xf32>
    %30 = vector.shape_cast %27 : vector<4x256xf32> to vector<1x4x256xf32>
    tpu.vector_store %arg7[%c0_25, %c0_26, %c0_27], %30 {strides = array<i32>} : memref<2x4x256xf32, #tpu.memory_space<vmem>>, vector<1x4x256xf32>,
    %c0_28 = arith.constant 0 : index
    %c0_29 = arith.constant 0 : index
    %c0_30 = arith.constant 0 : index
    %c1_31 = arith.constant 1 : index
    %c0_32 = arith.constant 0 : index
    %31 = vector.load %arg3[%c0_28, %c0_29, %c0_30, %c1_31, %c0_32] : memref<2x1x2x5x128xbf16, #tpu.memory_space<vmem>>, vector<1x1x1x4x128xbf16>
    %32 = vector.shape_cast %31 : vector<1x1x1x4x128xbf16> to vector<4x128xbf16>
    %c4_i32_33 = arith.constant 4 : i32
    %33 = arith.muli %arg2, %c4_i32_33 : i32
    %c2_i32 = arith.constant 2 : i32
    %34 = arith.addi %33, %c2_i32 : i32
    %35 = arith.index_cast %34 : i32 to index
    %c0_34 = arith.constant 0 : index
    %c0_35 = arith.constant 0 : index
    %36 = vector.load %arg4[%35, %c0_34, %c0_35] : memref<16x128x256xbf16, #tpu.memory_space<vmem>>, vector<1x128x256xbf16>
    %37 = vector.shape_cast %36 : vector<1x128x256xbf16> to vector<128x256xbf16>
    %c0_36 = arith.constant 0 : index
    %c0_37 = arith.constant 0 : index
    %c0_38 = arith.constant 0 : index
    %38 = vector.load %arg7[%c0_36, %c0_37, %c0_38] : memref<2x4x256xf32, #tpu.memory_space<vmem>>, vector<1x4x256xf32>
    %39 = vector.shape_cast %38 : vector<1x4x256xf32> to vector<4x256xf32>
    %cst_39 = arith.constant dense<0.000000e+00> : vector<4x256xf32>
    %40 = tpu.matmul %32, %37, %cst_39 {dimension_numbers = #tpu.dot_dimension_numbers<[1], [0], [0], [1], [0, 0, 1, 1], [], []>} : vector<4x128xbf16>, vector<128x256xbf16>, vector<4x256xf32> -> vector<4x256xf32>
    %41 = arith.addf %39, %40 : vector<4x256xf32>
    %c0_40 = arith.constant 0 : index
    %c0_41 = arith.constant 0 : index
    %c0_42 = arith.constant 0 : index
    %42 = vector.load %arg7[%c0_40, %c0_41, %c0_42] : memref<2x4x256xf32, #tpu.memory_space<vmem>>, vector<1x4x256xf32>
    %43 = vector.shape_cast %42 : vector<1x4x256xf32> to vector<4x256xf32>
    %44 = vector.shape_cast %41 : vector<4x256xf32> to vector<1x4x256xf32>
    tpu.vector_store %arg7[%c0_40, %c0_41, %c0_42], %44 {strides = array<i32>} : memref<2x4x256xf32, #tpu.memory_space<vmem>>, vector<1x4x256xf32>,
    %c0_43 = arith.constant 0 : index
    %c0_44 = arith.constant 0 : index
    %c1_45 = arith.constant 1 : index
    %c1_46 = arith.constant 1 : index
    %c0_47 = arith.constant 0 : index
    %45 = vector.load %arg3[%c0_43, %c0_44, %c1_45, %c1_46, %c0_47] : memref<2x1x2x5x128xbf16, #tpu.memory_space<vmem>>, vector<1x1x1x4x128xbf16>
    %46 = vector.shape_cast %45 : vector<1x1x1x4x128xbf16> to vector<4x128xbf16>
    %c4_i32_48 = arith.constant 4 : i32
    %47 = arith.muli %arg2, %c4_i32_48 : i32
    %c3_i32 = arith.constant 3 : i32
    %48 = arith.addi %47, %c3_i32 : i32
    %49 = arith.index_cast %48 : i32 to index
    %c0_49 = arith.constant 0 : index
    %c0_50 = arith.constant 0 : index
    %50 = vector.load %arg4[%49, %c0_49, %c0_50] : memref<16x128x256xbf16, #tpu.memory_space<vmem>>, vector<1x128x256xbf16>
    %51 = vector.shape_cast %50 : vector<1x128x256xbf16> to vector<128x256xbf16>
    %c0_51 = arith.constant 0 : index
    %c0_52 = arith.constant 0 : index
    %c0_53 = arith.constant 0 : index
    %52 = vector.load %arg7[%c0_51, %c0_52, %c0_53] : memref<2x4x256xf32, #tpu.memory_space<vmem>>, vector<1x4x256xf32>
    %53 = vector.shape_cast %52 : vector<1x4x256xf32> to vector<4x256xf32>
    %cst_54 = arith.constant dense<0.000000e+00> : vector<4x256xf32>
    %54 = tpu.matmul %46, %51, %cst_54 {dimension_numbers = #tpu.dot_dimension_numbers<[1], [0], [0], [1], [0, 0, 1, 1], [], []>} : vector<4x128xbf16>, vector<128x256xbf16>, vector<4x256xf32> -> vector<4x256xf32>
    %55 = arith.addf %53, %54 : vector<4x256xf32>
    %c0_55 = arith.constant 0 : index
    %c0_56 = arith.constant 0 : index
    %c0_57 = arith.constant 0 : index
    %56 = vector.load %arg7[%c0_55, %c0_56, %c0_57] : memref<2x4x256xf32, #tpu.memory_space<vmem>>, vector<1x4x256xf32>
    %57 = vector.shape_cast %56 : vector<1x4x256xf32> to vector<4x256xf32>
    %58 = vector.shape_cast %55 : vector<4x256xf32> to vector<1x4x256xf32>
    tpu.vector_store %arg7[%c0_55, %c0_56, %c0_57], %58 {strides = array<i32>} : memref<2x4x256xf32, #tpu.memory_space<vmem>>, vector<1x4x256xf32>,
    %c1_58 = arith.constant 1 : index
    %c0_59 = arith.constant 0 : index
    %c0_60 = arith.constant 0 : index
    %c0_61 = arith.constant 0 : index
    %c0_62 = arith.constant 0 : index
    %59 = vector.load %arg3[%c1_58, %c0_59, %c0_60, %c0_61, %c0_62] : memref<2x1x2x5x128xbf16, #tpu.memory_space<vmem>>, vector<1x1x1x4x128xbf16>
    %60 = vector.shape_cast %59 : vector<1x1x1x4x128xbf16> to vector<4x128xbf16>
    %c4_i32_63 = arith.constant 4 : i32
    %61 = arith.muli %arg2, %c4_i32_63 : i32
    %c0_i32_64 = arith.constant 0 : i32
    %62 = arith.addi %61, %c0_i32_64 : i32
    %63 = arith.index_cast %62 : i32 to index
    %c0_65 = arith.constant 0 : index
    %c0_66 = arith.constant 0 : index
    %64 = vector.load %arg4[%63, %c0_65, %c0_66] : memref<16x128x256xbf16, #tpu.memory_space<vmem>>, vector<1x128x256xbf16>
    %65 = vector.shape_cast %64 : vector<1x128x256xbf16> to vector<128x256xbf16>
    %c1_67 = arith.constant 1 : index
    %c0_68 = arith.constant 0 : index
    %c0_69 = arith.constant 0 : index
    %66 = vector.load %arg7[%c1_67, %c0_68, %c0_69] : memref<2x4x256xf32, #tpu.memory_space<vmem>>, vector<1x4x256xf32>
    %67 = vector.shape_cast %66 : vector<1x4x256xf32> to vector<4x256xf32>
    %cst_70 = arith.constant dense<0.000000e+00> : vector<4x256xf32>
    %68 = tpu.matmul %60, %65, %cst_70 {dimension_numbers = #tpu.dot_dimension_numbers<[1], [0], [0], [1], [0, 0, 1, 1], [], []>} : vector<4x128xbf16>, vector<128x256xbf16>, vector<4x256xf32> -> vector<4x256xf32>
    %69 = arith.addf %67, %68 : vector<4x256xf32>
    %c1_71 = arith.constant 1 : index
    %c0_72 = arith.constant 0 : index
    %c0_73 = arith.constant 0 : index
    %70 = vector.load %arg7[%c1_71, %c0_72, %c0_73] : memref<2x4x256xf32, #tpu.memory_space<vmem>>, vector<1x4x256xf32>
    %71 = vector.shape_cast %70 : vector<1x4x256xf32> to vector<4x256xf32>
    %72 = vector.shape_cast %69 : vector<4x256xf32> to vector<1x4x256xf32>
    tpu.vector_store %arg7[%c1_71, %c0_72, %c0_73], %72 {strides = array<i32>} : memref<2x4x256xf32, #tpu.memory_space<vmem>>, vector<1x4x256xf32>,
    %c1_74 = arith.constant 1 : index
    %c0_75 = arith.constant 0 : index
    %c1_76 = arith.constant 1 : index
    %c0_77 = arith.constant 0 : index
    %c0_78 = arith.constant 0 : index
    %73 = vector.load %arg3[%c1_74, %c0_75, %c1_76, %c0_77, %c0_78] : memref<2x1x2x5x128xbf16, #tpu.memory_space<vmem>>, vector<1x1x1x4x128xbf16>
    %74 = vector.shape_cast %73 : vector<1x1x1x4x128xbf16> to vector<4x128xbf16>
    %c4_i32_79 = arith.constant 4 : i32
    %75 = arith.muli %arg2, %c4_i32_79 : i32
    %c1_i32_80 = arith.constant 1 : i32
    %76 = arith.addi %75, %c1_i32_80 : i32
    %77 = arith.index_cast %76 : i32 to index
    %c0_81 = arith.constant 0 : index
    %c0_82 = arith.constant 0 : index
    %78 = vector.load %arg4[%77, %c0_81, %c0_82] : memref<16x128x256xbf16, #tpu.memory_space<vmem>>, vector<1x128x256xbf16>
    %79 = vector.shape_cast %78 : vector<1x128x256xbf16> to vector<128x256xbf16>
    %c1_83 = arith.constant 1 : index
    %c0_84 = arith.constant 0 : index
    %c0_85 = arith.constant 0 : index
    %80 = vector.load %arg7[%c1_83, %c0_84, %c0_85] : memref<2x4x256xf32, #tpu.memory_space<vmem>>, vector<1x4x256xf32>
    %81 = vector.shape_cast %80 : vector<1x4x256xf32> to vector<4x256xf32>
    %cst_86 = arith.constant dense<0.000000e+00> : vector<4x256xf32>
    %82 = tpu.matmul %74, %79, %cst_86 {dimension_numbers = #tpu.dot_dimension_numbers<[1], [0], [0], [1], [0, 0, 1, 1], [], []>} : vector<4x128xbf16>, vector<128x256xbf16>, vector<4x256xf32> -> vector<4x256xf32>
    %83 = arith.addf %81, %82 : vector<4x256xf32>
    %c1_87 = arith.constant 1 : index
    %c0_88 = arith.constant 0 : index
    %c0_89 = arith.constant 0 : index
    %84 = vector.load %arg7[%c1_87, %c0_88, %c0_89] : memref<2x4x256xf32, #tpu.memory_space<vmem>>, vector<1x4x256xf32>
    %85 = vector.shape_cast %84 : vector<1x4x256xf32> to vector<4x256xf32>
    %86 = vector.shape_cast %83 : vector<4x256xf32> to vector<1x4x256xf32>
    tpu.vector_store %arg7[%c1_87, %c0_88, %c0_89], %86 {strides = array<i32>} : memref<2x4x256xf32, #tpu.memory_space<vmem>>, vector<1x4x256xf32>,
    %c1_90 = arith.constant 1 : index
    %c0_91 = arith.constant 0 : index
    %c0_92 = arith.constant 0 : index
    %c1_93 = arith.constant 1 : index
    %c0_94 = arith.constant 0 : index
    %87 = vector.load %arg3[%c1_90, %c0_91, %c0_92, %c1_93, %c0_94] : memref<2x1x2x5x128xbf16, #tpu.memory_space<vmem>>, vector<1x1x1x4x128xbf16>
    %88 = vector.shape_cast %87 : vector<1x1x1x4x128xbf16> to vector<4x128xbf16>
    %c4_i32_95 = arith.constant 4 : i32
    %89 = arith.muli %arg2, %c4_i32_95 : i32
    %c2_i32_96 = arith.constant 2 : i32
    %90 = arith.addi %89, %c2_i32_96 : i32
    %91 = arith.index_cast %90 : i32 to index
    %c0_97 = arith.constant 0 : index
    %c0_98 = arith.constant 0 : index
    %92 = vector.load %arg4[%91, %c0_97, %c0_98] : memref<16x128x256xbf16, #tpu.memory_space<vmem>>, vector<1x128x256xbf16>
    %93 = vector.shape_cast %92 : vector<1x128x256xbf16> to vector<128x256xbf16>
    %c1_99 = arith.constant 1 : index
    %c0_100 = arith.constant 0 : index
    %c0_101 = arith.constant 0 : index
    %94 = vector.load %arg7[%c1_99, %c0_100, %c0_101] : memref<2x4x256xf32, #tpu.memory_space<vmem>>, vector<1x4x256xf32>
    %95 = vector.shape_cast %94 : vector<1x4x256xf32> to vector<4x256xf32>
    %cst_102 = arith.constant dense<0.000000e+00> : vector<4x256xf32>
    %96 = tpu.matmul %88, %93, %cst_102 {dimension_numbers = #tpu.dot_dimension_numbers<[1], [0], [0], [1], [0, 0, 1, 1], [], []>} : vector<4x128xbf16>, vector<128x256xbf16>, vector<4x256xf32> -> vector<4x256xf32>
    %97 = arith.addf %95, %96 : vector<4x256xf32>
    %c1_103 = arith.constant 1 : index
    %c0_104 = arith.constant 0 : index
    %c0_105 = arith.constant 0 : index
    %98 = vector.load %arg7[%c1_103, %c0_104, %c0_105] : memref<2x4x256xf32, #tpu.memory_space<vmem>>, vector<1x4x256xf32>
    %99 = vector.shape_cast %98 : vector<1x4x256xf32> to vector<4x256xf32>
    %100 = vector.shape_cast %97 : vector<4x256xf32> to vector<1x4x256xf32>
    tpu.vector_store %arg7[%c1_103, %c0_104, %c0_105], %100 {strides = array<i32>} : memref<2x4x256xf32, #tpu.memory_space<vmem>>, vector<1x4x256xf32>,
    %c1_106 = arith.constant 1 : index
    %c0_107 = arith.constant 0 : index
    %c1_108 = arith.constant 1 : index
    %c1_109 = arith.constant 1 : index
    %c0_110 = arith.constant 0 : index
    %101 = vector.load %arg3[%c1_106, %c0_107, %c1_108, %c1_109, %c0_110] : memref<2x1x2x5x128xbf16, #tpu.memory_space<vmem>>, vector<1x1x1x4x128xbf16>
    %102 = vector.shape_cast %101 : vector<1x1x1x4x128xbf16> to vector<4x128xbf16>
    %c4_i32_111 = arith.constant 4 : i32
    %103 = arith.muli %arg2, %c4_i32_111 : i32
    %c3_i32_112 = arith.constant 3 : i32
    %104 = arith.addi %103, %c3_i32_112 : i32
    %105 = arith.index_cast %104 : i32 to index
    %c0_113 = arith.constant 0 : index
    %c0_114 = arith.constant 0 : index
    %106 = vector.load %arg4[%105, %c0_113, %c0_114] : memref<16x128x256xbf16, #tpu.memory_space<vmem>>, vector<1x128x256xbf16>
    %107 = vector.shape_cast %106 : vector<1x128x256xbf16> to vector<128x256xbf16>
    %c1_115 = arith.constant 1 : index
    %c0_116 = arith.constant 0 : index
    %c0_117 = arith.constant 0 : index
    %108 = vector.load %arg7[%c1_115, %c0_116, %c0_117] : memref<2x4x256xf32, #tpu.memory_space<vmem>>, vector<1x4x256xf32>
    %109 = vector.shape_cast %108 : vector<1x4x256xf32> to vector<4x256xf32>
    %cst_118 = arith.constant dense<0.000000e+00> : vector<4x256xf32>
    %110 = tpu.matmul %102, %107, %cst_118 {dimension_numbers = #tpu.dot_dimension_numbers<[1], [0], [0], [1], [0, 0, 1, 1], [], []>} : vector<4x128xbf16>, vector<128x256xbf16>, vector<4x256xf32> -> vector<4x256xf32>
    %111 = arith.addf %109, %110 : vector<4x256xf32>
    %c1_119 = arith.constant 1 : index
    %c0_120 = arith.constant 0 : index
    %c0_121 = arith.constant 0 : index
    %112 = vector.load %arg7[%c1_119, %c0_120, %c0_121] : memref<2x4x256xf32, #tpu.memory_space<vmem>>, vector<1x4x256xf32>
    %113 = vector.shape_cast %112 : vector<1x4x256xf32> to vector<4x256xf32>
    %114 = vector.shape_cast %111 : vector<4x256xf32> to vector<1x4x256xf32>
    tpu.vector_store %arg7[%c1_119, %c0_120, %c0_121], %114 {strides = array<i32>} : memref<2x4x256xf32, #tpu.memory_space<vmem>>, vector<1x4x256xf32>,
    %c3_i32_122 = arith.constant 3 : i32
    %115 = arith.cmpi eq, %arg2, %c3_i32_122 : i32
    %116 = arith.extui %115 : i1 to i32
    %c0_i32_123 = arith.constant 0 : i32
    %117 = arith.cmpi ne, %116, %c0_i32_123 : i32
    scf.if %117 {
      %c0_124 = arith.constant 0 : index
      %c0_125 = arith.constant 0 : index
      %c0_126 = arith.constant 0 : index
      %118 = vector.load %arg7[%c0_124, %c0_125, %c0_126] : memref<2x4x256xf32, #tpu.memory_space<vmem>>, vector<2x4x256xf32>
      %c0_127 = arith.constant 0 : index
      %c0_128 = arith.constant 0 : index
      %119 = vector.load %arg5[%c0_127, %c0_128] : memref<1x256xf32, #tpu.memory_space<vmem>>, vector<1x256xf32>
      %120 = vector.shape_cast %119 : vector<1x256xf32> to vector<1x1x256xf32>
      %121 = vector.broadcast %120 : vector<1x1x256xf32> to vector<2x4x256xf32>
      %122 = arith.addf %118, %121 : vector<2x4x256xf32>
      %123 = arith.truncf %122 : vector<2x4x256xf32> to vector<2x4x256xbf16>
      %c0_129 = arith.constant 0 : index
      %c0_130 = arith.constant 0 : index
      %c0_131 = arith.constant 0 : index
      %c0_132 = arith.constant 0 : index
      %124 = vector.load %arg6[%c0_129, %c0_130, %c0_131, %c0_132] : memref<2x1x4x256xbf16, #tpu.memory_space<vmem>>, vector<2x1x4x256xbf16>
      %125 = vector.shape_cast %124 : vector<2x1x4x256xbf16> to vector<2x4x256xbf16>
      %126 = vector.shape_cast %123 : vector<2x4x256xbf16> to vector<2x1x4x256xbf16>
      tpu.vector_store %arg6[%c0_129, %c0_130, %c0_131, %c0_132], %126 {strides = array<i32>} : memref<2x1x4x256xbf16, #tpu.memory_space<vmem>>, vector<2x1x4x256xbf16>,
    } else {
    }
    return
  }
  func.func @transform_0(%arg0: i32, %arg1: i32, %arg2: i32) -> (i32, i32, i32, i32, i32) {
    %c2_i32 = arith.constant 2 : i32
    %0 = arith.muli %c2_i32, %arg1 : i32
    %1 = arith.addi %0, %arg2 : i32
    %c0_i32 = arith.constant 0 : i32
    %c0_i32_0 = arith.constant 0 : i32
    %c0_i32_1 = arith.constant 0 : i32
    %c0_i32_2 = arith.constant 0 : i32
    %c0_i32_3 = arith.constant 0 : i32
    return %c0_i32, %1, %c0_i32_0, %c0_i32_1, %c0_i32_2 : i32, i32, i32, i32, i32
  }
  func.func @transform_1(%arg0: i32, %arg1: i32, %arg2: i32) -> (i32, i32, i32) {
    %c0_i32 = arith.constant 0 : i32
    %c0_i32_0 = arith.constant 0 : i32
    %c0_i32_1 = arith.constant 0 : i32
    return %c0_i32, %c0_i32_0, %arg0 : i32, i32, i32
  }
  func.func @transform_2(%arg0: i32, %arg1: i32, %arg2: i32) -> (i32, i32) {
    %c0_i32 = arith.constant 0 : i32
    %c0_i32_0 = arith.constant 0 : i32
    return %c0_i32, %arg0 : i32, i32
  }
  func.func @transform_3(%arg0: i32, %arg1: i32, %arg2: i32) -> (i32, i32, i32, i32) {
    %c0_i32 = arith.constant 0 : i32
    %c0_i32_0 = arith.constant 0 : i32
    %c0_i32_1 = arith.constant 0 : i32
    return %c0_i32, %arg1, %c0_i32_0, %arg0 : i32, i32, i32, i32
  }
}

module attributes {stable_mosaic.version = 11 : i64} {
  func.func @_inorm_stats_kernel(%arg0: i32, %arg1: i32, %arg2: i32, %arg3: memref<1x16x128xbf16, #tpu.memory_space<vmem>>, %arg4: memref<1x128xf32, #tpu.memory_space<vmem>>, %arg5: memref<1x128xf32, #tpu.memory_space<vmem>>, %arg6: memref<1x1x128xf32, #tpu.memory_space<vmem>>, %arg7: memref<1x1x128xf32, #tpu.memory_space<vmem>>) attributes {dimension_semantics = [#tpu.dimension_semantics<parallel>, #tpu.dimension_semantics<parallel>, #tpu.dimension_semantics<arbitrary>], iteration_bounds = array<i64: 2, 2, 1>, scalar_prefetch = 0 : i64, scratch_operands = 0 : i64, tpu.core_type = #tpu.core_type<tc>, window_params = [{transform_indices = @transform_0, window_bounds = array<i64: 1, 16, 128>}, {transform_indices = @transform_1, window_bounds = array<i64: 1, 128>}, {transform_indices = @transform_2, window_bounds = array<i64: 1, 128>}, {transform_indices = @transform_3, window_bounds = array<i64: 1, 1, 128>}, {transform_indices = @transform_4, window_bounds = array<i64: 1, 1, 128>}]} {
    %c0_i32 = arith.constant 0 : i32
    %0 = arith.cmpi eq, %arg2, %c0_i32 : i32
    %1 = arith.extui %0 : i1 to i32
    %c0_i32_0 = arith.constant 0 : i32
    %2 = arith.cmpi ne, %1, %c0_i32_0 : i32
    scf.if %2 {
      %cst_18 = arith.constant 0.000000e+00 : f32
      %19 = vector.broadcast %cst_18 : f32 to vector<1x1x128xf32>
      %c0_19 = arith.constant 0 : index
      %c0_20 = arith.constant 0 : index
      %c0_21 = arith.constant 0 : index
      %20 = vector.load %arg6[%c0_19, %c0_20, %c0_21] : memref<1x1x128xf32, #tpu.memory_space<vmem>>, vector<1x1x128xf32>
      tpu.vector_store %arg6[%c0_19, %c0_20, %c0_21], %19 {strides = array<i32>} : memref<1x1x128xf32, #tpu.memory_space<vmem>>, vector<1x1x128xf32>,
      %cst_22 = arith.constant 0.000000e+00 : f32
      %21 = vector.broadcast %cst_22 : f32 to vector<1x1x128xf32>
      %c0_23 = arith.constant 0 : index
      %c0_24 = arith.constant 0 : index
      %c0_25 = arith.constant 0 : index
      %22 = vector.load %arg7[%c0_23, %c0_24, %c0_25] : memref<1x1x128xf32, #tpu.memory_space<vmem>>, vector<1x1x128xf32>
      tpu.vector_store %arg7[%c0_23, %c0_24, %c0_25], %21 {strides = array<i32>} : memref<1x1x128xf32, #tpu.memory_space<vmem>>, vector<1x1x128xf32>,
    } else {
    }
    %c0 = arith.constant 0 : index
    %c0_1 = arith.constant 0 : index
    %c0_2 = arith.constant 0 : index
    %3 = vector.load %arg3[%c0, %c0_1, %c0_2] : memref<1x16x128xbf16, #tpu.memory_space<vmem>>, vector<1x16x128xbf16>
    %4 = arith.extf %3 : vector<1x16x128xbf16> to vector<1x16x128xf32>
    %c0_3 = arith.constant 0 : index
    %c0_4 = arith.constant 0 : index
    %c0_5 = arith.constant 0 : index
    %5 = vector.load %arg6[%c0_3, %c0_4, %c0_5] : memref<1x1x128xf32, #tpu.memory_space<vmem>>, vector<1x1x128xf32>
    %cst = arith.constant dense<0.000000e+00> : vector<1x128xf32>
    %6 = vector.multi_reduction <add>, %4, %cst [1] : vector<1x16x128xf32> to vector<1x128xf32>
    %7 = vector.shape_cast %6 : vector<1x128xf32> to vector<1x1x128xf32>
    %8 = arith.addf %5, %7 : vector<1x1x128xf32>
    %c0_6 = arith.constant 0 : index
    %c0_7 = arith.constant 0 : index
    %c0_8 = arith.constant 0 : index
    %9 = vector.load %arg6[%c0_6, %c0_7, %c0_8] : memref<1x1x128xf32, #tpu.memory_space<vmem>>, vector<1x1x128xf32>
    tpu.vector_store %arg6[%c0_6, %c0_7, %c0_8], %8 {strides = array<i32>} : memref<1x1x128xf32, #tpu.memory_space<vmem>>, vector<1x1x128xf32>,
    %c0_9 = arith.constant 0 : index
    %c0_10 = arith.constant 0 : index
    %c0_11 = arith.constant 0 : index
    %10 = vector.load %arg7[%c0_9, %c0_10, %c0_11] : memref<1x1x128xf32, #tpu.memory_space<vmem>>, vector<1x1x128xf32>
    %11 = arith.mulf %4, %4 : vector<1x16x128xf32>
    %cst_12 = arith.constant dense<0.000000e+00> : vector<1x128xf32>
    %12 = vector.multi_reduction <add>, %11, %cst_12 [1] : vector<1x16x128xf32> to vector<1x128xf32>
    %13 = vector.shape_cast %12 : vector<1x128xf32> to vector<1x1x128xf32>
    %14 = arith.addf %10, %13 : vector<1x1x128xf32>
    %c0_13 = arith.constant 0 : index
    %c0_14 = arith.constant 0 : index
    %c0_15 = arith.constant 0 : index
    %15 = vector.load %arg7[%c0_13, %c0_14, %c0_15] : memref<1x1x128xf32, #tpu.memory_space<vmem>>, vector<1x1x128xf32>
    tpu.vector_store %arg7[%c0_13, %c0_14, %c0_15], %14 {strides = array<i32>} : memref<1x1x128xf32, #tpu.memory_space<vmem>>, vector<1x1x128xf32>,
    %c0_i32_16 = arith.constant 0 : i32
    %16 = arith.cmpi eq, %arg2, %c0_i32_16 : i32
    %17 = arith.extui %16 : i1 to i32
    %c0_i32_17 = arith.constant 0 : i32
    %18 = arith.cmpi ne, %17, %c0_i32_17 : i32
    scf.if %18 {
      %c0_18 = arith.constant 0 : index
      %c0_19 = arith.constant 0 : index
      %c0_20 = arith.constant 0 : index
      %19 = vector.load %arg6[%c0_18, %c0_19, %c0_20] : memref<1x1x128xf32, #tpu.memory_space<vmem>>, vector<1x1x128xf32>
      %cst_21 = arith.constant 6.250000e-02 : f32
      %20 = vector.broadcast %cst_21 : f32 to vector<1x1x128xf32>
      %21 = arith.mulf %19, %20 : vector<1x1x128xf32>
      %c0_22 = arith.constant 0 : index
      %c0_23 = arith.constant 0 : index
      %c0_24 = arith.constant 0 : index
      %22 = vector.load %arg7[%c0_22, %c0_23, %c0_24] : memref<1x1x128xf32, #tpu.memory_space<vmem>>, vector<1x1x128xf32>
      %cst_25 = arith.constant 6.250000e-02 : f32
      %23 = vector.broadcast %cst_25 : f32 to vector<1x1x128xf32>
      %24 = arith.mulf %22, %23 : vector<1x1x128xf32>
      %25 = arith.mulf %21, %21 : vector<1x1x128xf32>
      %26 = arith.subf %24, %25 : vector<1x1x128xf32>
      %cst_26 = arith.constant 9.99999974E-6 : f32
      %27 = vector.broadcast %cst_26 : f32 to vector<1x1x128xf32>
      %28 = arith.addf %26, %27 : vector<1x1x128xf32>
      %29 = math.rsqrt %28 : vector<1x1x128xf32>
      %c0_27 = arith.constant 0 : index
      %c0_28 = arith.constant 0 : index
      %30 = vector.load %arg4[%c0_27, %c0_28] : memref<1x128xf32, #tpu.memory_space<vmem>>, vector<1x128xf32>
      %31 = vector.shape_cast %30 : vector<1x128xf32> to vector<1x1x128xf32>
      %c0_29 = arith.constant 0 : index
      %c0_30 = arith.constant 0 : index
      %32 = vector.load %arg5[%c0_29, %c0_30] : memref<1x128xf32, #tpu.memory_space<vmem>>, vector<1x128xf32>
      %33 = vector.shape_cast %32 : vector<1x128xf32> to vector<1x1x128xf32>
      %34 = arith.mulf %31, %29 : vector<1x1x128xf32>
      %c0_31 = arith.constant 0 : index
      %c0_32 = arith.constant 0 : index
      %c0_33 = arith.constant 0 : index
      %35 = vector.load %arg6[%c0_31, %c0_32, %c0_33] : memref<1x1x128xf32, #tpu.memory_space<vmem>>, vector<1x1x128xf32>
      tpu.vector_store %arg6[%c0_31, %c0_32, %c0_33], %34 {strides = array<i32>} : memref<1x1x128xf32, #tpu.memory_space<vmem>>, vector<1x1x128xf32>,
      %36 = arith.mulf %21, %34 : vector<1x1x128xf32>
      %37 = arith.subf %33, %36 : vector<1x1x128xf32>
      %c0_34 = arith.constant 0 : index
      %c0_35 = arith.constant 0 : index
      %c0_36 = arith.constant 0 : index
      %38 = vector.load %arg7[%c0_34, %c0_35, %c0_36] : memref<1x1x128xf32, #tpu.memory_space<vmem>>, vector<1x1x128xf32>
      tpu.vector_store %arg7[%c0_34, %c0_35, %c0_36], %37 {strides = array<i32>} : memref<1x1x128xf32, #tpu.memory_space<vmem>>, vector<1x1x128xf32>,
    } else {
    }
    return
  }
  func.func @transform_0(%arg0: i32, %arg1: i32, %arg2: i32) -> (i32, i32, i32) {
    %c0_i32 = arith.constant 0 : i32
    return %arg0, %arg2, %arg1 : i32, i32, i32
  }
  func.func @transform_1(%arg0: i32, %arg1: i32, %arg2: i32) -> (i32, i32) {
    %c0_i32 = arith.constant 0 : i32
    %c0_i32_0 = arith.constant 0 : i32
    return %c0_i32, %arg1 : i32, i32
  }
  func.func @transform_2(%arg0: i32, %arg1: i32, %arg2: i32) -> (i32, i32) {
    %c0_i32 = arith.constant 0 : i32
    %c0_i32_0 = arith.constant 0 : i32
    return %c0_i32, %arg1 : i32, i32
  }
  func.func @transform_3(%arg0: i32, %arg1: i32, %arg2: i32) -> (i32, i32, i32) {
    %c0_i32 = arith.constant 0 : i32
    %c0_i32_0 = arith.constant 0 : i32
    return %arg0, %c0_i32, %arg1 : i32, i32, i32
  }
  func.func @transform_4(%arg0: i32, %arg1: i32, %arg2: i32) -> (i32, i32, i32) {
    %c0_i32 = arith.constant 0 : i32
    %c0_i32_0 = arith.constant 0 : i32
    return %arg0, %c0_i32, %arg1 : i32, i32, i32
  }
}

module attributes {stable_mosaic.version = 11 : i64} {
  func.func @_inorm_apply_kernel(%arg0: i32, %arg1: i32, %arg2: i32, %arg3: memref<1x16x128xbf16, #tpu.memory_space<vmem>>, %arg4: memref<1x1x128xf32, #tpu.memory_space<vmem>>, %arg5: memref<1x1x128xf32, #tpu.memory_space<vmem>>, %arg6: memref<1x16x128xbf16, #tpu.memory_space<vmem>>) attributes {dimension_semantics = [#tpu.dimension_semantics<parallel>, #tpu.dimension_semantics<parallel>, #tpu.dimension_semantics<parallel>], iteration_bounds = array<i64: 2, 2, 1>, scalar_prefetch = 0 : i64, scratch_operands = 0 : i64, tpu.core_type = #tpu.core_type<tc>, window_params = [{transform_indices = @transform_0, window_bounds = array<i64: 1, 16, 128>}, {transform_indices = @transform_1, window_bounds = array<i64: 1, 1, 128>}, {transform_indices = @transform_2, window_bounds = array<i64: 1, 1, 128>}, {transform_indices = @transform_3, window_bounds = array<i64: 1, 16, 128>}]} {
    %c0 = arith.constant 0 : index
    %c0_0 = arith.constant 0 : index
    %c0_1 = arith.constant 0 : index
    %0 = vector.load %arg3[%c0, %c0_0, %c0_1] : memref<1x16x128xbf16, #tpu.memory_space<vmem>>, vector<1x16x128xbf16>
    %1 = arith.extf %0 : vector<1x16x128xbf16> to vector<1x16x128xf32>
    %c0_2 = arith.constant 0 : index
    %c0_3 = arith.constant 0 : index
    %c0_4 = arith.constant 0 : index
    %2 = vector.load %arg4[%c0_2, %c0_3, %c0_4] : memref<1x1x128xf32, #tpu.memory_space<vmem>>, vector<1x1x128xf32>
    %3 = vector.broadcast %2 : vector<1x1x128xf32> to vector<1x16x128xf32>
    %4 = arith.mulf %1, %3 : vector<1x16x128xf32>
    %c0_5 = arith.constant 0 : index
    %c0_6 = arith.constant 0 : index
    %c0_7 = arith.constant 0 : index
    %5 = vector.load %arg5[%c0_5, %c0_6, %c0_7] : memref<1x1x128xf32, #tpu.memory_space<vmem>>, vector<1x1x128xf32>
    %6 = vector.broadcast %5 : vector<1x1x128xf32> to vector<1x16x128xf32>
    %7 = arith.addf %4, %6 : vector<1x16x128xf32>
    %cst = arith.constant 0.000000e+00 : f32
    %8 = vector.broadcast %cst : f32 to vector<1x16x128xf32>
    %9 = arith.cmpf oge, %7, %8 : vector<1x16x128xf32>
    %cst_8 = arith.constant 2.000000e-01 : f32
    %10 = vector.broadcast %cst_8 : f32 to vector<1x16x128xf32>
    %11 = arith.mulf %10, %7 : vector<1x16x128xf32>
    %12 = arith.select %9, %7, %11 : vector<1x16x128xi1>, vector<1x16x128xf32>
    %13 = arith.truncf %12 : vector<1x16x128xf32> to vector<1x16x128xbf16>
    %c0_9 = arith.constant 0 : index
    %c0_10 = arith.constant 0 : index
    %c0_11 = arith.constant 0 : index
    %14 = vector.load %arg6[%c0_9, %c0_10, %c0_11] : memref<1x16x128xbf16, #tpu.memory_space<vmem>>, vector<1x16x128xbf16>
    tpu.vector_store %arg6[%c0_9, %c0_10, %c0_11], %13 {strides = array<i32>} : memref<1x16x128xbf16, #tpu.memory_space<vmem>>, vector<1x16x128xbf16>,
    return
  }
  func.func @transform_0(%arg0: i32, %arg1: i32, %arg2: i32) -> (i32, i32, i32) {
    %c0_i32 = arith.constant 0 : i32
    return %arg0, %arg2, %arg1 : i32, i32, i32
  }
  func.func @transform_1(%arg0: i32, %arg1: i32, %arg2: i32) -> (i32, i32, i32) {
    %c0_i32 = arith.constant 0 : i32
    %c0_i32_0 = arith.constant 0 : i32
    return %arg0, %c0_i32, %arg1 : i32, i32, i32
  }
  func.func @transform_2(%arg0: i32, %arg1: i32, %arg2: i32) -> (i32, i32, i32) {
    %c0_i32 = arith.constant 0 : i32
    %c0_i32_0 = arith.constant 0 : i32
    return %arg0, %c0_i32, %arg1 : i32, i32, i32
  }
  func.func @transform_3(%arg0: i32, %arg1: i32, %arg2: i32) -> (i32, i32, i32) {
    %c0_i32 = arith.constant 0 : i32
    return %arg0, %arg2, %arg1 : i32, i32, i32
  }
}

module attributes {stable_mosaic.version = 11 : i64} {
  func.func @_conv_tap_kernel(%arg0: i32, %arg1: i32, %arg2: i32, %arg3: memref<2x1x1x6x256xbf16, #tpu.memory_space<vmem>>, %arg4: memref<16x256x512xbf16, #tpu.memory_space<vmem>>, %arg5: memref<1x512xf32, #tpu.memory_space<vmem>>, %arg6: memref<2x1x3x512xbf16, #tpu.memory_space<vmem>>, %arg7: memref<2x3x512xf32, #tpu.memory_space<vmem>>) attributes {dimension_semantics = [#tpu.dimension_semantics<parallel>, #tpu.dimension_semantics<parallel>, #tpu.dimension_semantics<arbitrary>], iteration_bounds = array<i64: 1, 3, 4>, scalar_prefetch = 0 : i64, scratch_operands = 1 : i64, tpu.core_type = #tpu.core_type<tc>, window_params = [{transform_indices = @transform_0, window_bounds = array<i64: 2, 1, 1, 6, 256>}, {transform_indices = @transform_1, window_bounds = array<i64: 16, 256, 512>}, {transform_indices = @transform_2, window_bounds = array<i64: 1, 512>}, {transform_indices = @transform_3, window_bounds = array<i64: 2, 1, 3, 512>}]} {
    %c0_i32 = arith.constant 0 : i32
    %0 = arith.cmpi eq, %arg2, %c0_i32 : i32
    %1 = arith.extui %0 : i1 to i32
    %c0_i32_0 = arith.constant 0 : i32
    %2 = arith.cmpi ne, %1, %c0_i32_0 : i32
    scf.if %2 {
      %cst_122 = arith.constant 0.000000e+00 : f32
      %118 = vector.broadcast %cst_122 : f32 to vector<2x3x512xf32>
      %c0_123 = arith.constant 0 : index
      %c0_124 = arith.constant 0 : index
      %c0_125 = arith.constant 0 : index
      %119 = vector.load %arg7[%c0_123, %c0_124, %c0_125] : memref<2x3x512xf32, #tpu.memory_space<vmem>>, vector<2x3x512xf32>
      tpu.vector_store %arg7[%c0_123, %c0_124, %c0_125], %118 {strides = array<i32>} : memref<2x3x512xf32, #tpu.memory_space<vmem>>, vector<2x3x512xf32>,
    } else {
    }
    %c0 = arith.constant 0 : index
    %c0_1 = arith.constant 0 : index
    %c0_2 = arith.constant 0 : index
    %c0_3 = arith.constant 0 : index
    %c0_4 = arith.constant 0 : index
    %3 = vector.load %arg3[%c0, %c0_1, %c0_2, %c0_3, %c0_4] : memref<2x1x1x6x256xbf16, #tpu.memory_space<vmem>>, vector<1x1x1x3x256xbf16>
    %4 = vector.shape_cast %3 : vector<1x1x1x3x256xbf16> to vector<3x256xbf16>
    %c4_i32 = arith.constant 4 : i32
    %5 = arith.muli %arg2, %c4_i32 : i32
    %c0_i32_5 = arith.constant 0 : i32
    %6 = arith.addi %5, %c0_i32_5 : i32
    %7 = arith.index_cast %6 : i32 to index
    %c0_6 = arith.constant 0 : index
    %c0_7 = arith.constant 0 : index
    %8 = vector.load %arg4[%7, %c0_6, %c0_7] : memref<16x256x512xbf16, #tpu.memory_space<vmem>>, vector<1x256x512xbf16>
    %9 = vector.shape_cast %8 : vector<1x256x512xbf16> to vector<256x512xbf16>
    %c0_8 = arith.constant 0 : index
    %c0_9 = arith.constant 0 : index
    %c0_10 = arith.constant 0 : index
    %10 = vector.load %arg7[%c0_8, %c0_9, %c0_10] : memref<2x3x512xf32, #tpu.memory_space<vmem>>, vector<1x3x512xf32>
    %11 = vector.shape_cast %10 : vector<1x3x512xf32> to vector<3x512xf32>
    %cst = arith.constant dense<0.000000e+00> : vector<3x512xf32>
    %12 = tpu.matmul %4, %9, %cst {dimension_numbers = #tpu.dot_dimension_numbers<[1], [0], [0], [1], [0, 0, 1, 1], [], []>} : vector<3x256xbf16>, vector<256x512xbf16>, vector<3x512xf32> -> vector<3x512xf32>
    %13 = arith.addf %11, %12 : vector<3x512xf32>
    %c0_11 = arith.constant 0 : index
    %c0_12 = arith.constant 0 : index
    %c0_13 = arith.constant 0 : index
    %14 = vector.load %arg7[%c0_11, %c0_12, %c0_13] : memref<2x3x512xf32, #tpu.memory_space<vmem>>, vector<1x3x512xf32>
    %15 = vector.shape_cast %14 : vector<1x3x512xf32> to vector<3x512xf32>
    %16 = vector.shape_cast %13 : vector<3x512xf32> to vector<1x3x512xf32>
    tpu.vector_store %arg7[%c0_11, %c0_12, %c0_13], %16 {strides = array<i32>} : memref<2x3x512xf32, #tpu.memory_space<vmem>>, vector<1x3x512xf32>,
    %c0_14 = arith.constant 0 : index
    %c0_15 = arith.constant 0 : index
    %c0_16 = arith.constant 0 : index
    %c1 = arith.constant 1 : index
    %c0_17 = arith.constant 0 : index
    %17 = vector.load %arg3[%c0_14, %c0_15, %c0_16, %c1, %c0_17] : memref<2x1x1x6x256xbf16, #tpu.memory_space<vmem>>, vector<1x1x1x3x256xbf16>
    %18 = vector.shape_cast %17 : vector<1x1x1x3x256xbf16> to vector<3x256xbf16>
    %c4_i32_18 = arith.constant 4 : i32
    %19 = arith.muli %arg2, %c4_i32_18 : i32
    %c1_i32 = arith.constant 1 : i32
    %20 = arith.addi %19, %c1_i32 : i32
    %21 = arith.index_cast %20 : i32 to index
    %c0_19 = arith.constant 0 : index
    %c0_20 = arith.constant 0 : index
    %22 = vector.load %arg4[%21, %c0_19, %c0_20] : memref<16x256x512xbf16, #tpu.memory_space<vmem>>, vector<1x256x512xbf16>
    %23 = vector.shape_cast %22 : vector<1x256x512xbf16> to vector<256x512xbf16>
    %c0_21 = arith.constant 0 : index
    %c0_22 = arith.constant 0 : index
    %c0_23 = arith.constant 0 : index
    %24 = vector.load %arg7[%c0_21, %c0_22, %c0_23] : memref<2x3x512xf32, #tpu.memory_space<vmem>>, vector<1x3x512xf32>
    %25 = vector.shape_cast %24 : vector<1x3x512xf32> to vector<3x512xf32>
    %cst_24 = arith.constant dense<0.000000e+00> : vector<3x512xf32>
    %26 = tpu.matmul %18, %23, %cst_24 {dimension_numbers = #tpu.dot_dimension_numbers<[1], [0], [0], [1], [0, 0, 1, 1], [], []>} : vector<3x256xbf16>, vector<256x512xbf16>, vector<3x512xf32> -> vector<3x512xf32>
    %27 = arith.addf %25, %26 : vector<3x512xf32>
    %c0_25 = arith.constant 0 : index
    %c0_26 = arith.constant 0 : index
    %c0_27 = arith.constant 0 : index
    %28 = vector.load %arg7[%c0_25, %c0_26, %c0_27] : memref<2x3x512xf32, #tpu.memory_space<vmem>>, vector<1x3x512xf32>
    %29 = vector.shape_cast %28 : vector<1x3x512xf32> to vector<3x512xf32>
    %30 = vector.shape_cast %27 : vector<3x512xf32> to vector<1x3x512xf32>
    tpu.vector_store %arg7[%c0_25, %c0_26, %c0_27], %30 {strides = array<i32>} : memref<2x3x512xf32, #tpu.memory_space<vmem>>, vector<1x3x512xf32>,
    %c0_28 = arith.constant 0 : index
    %c0_29 = arith.constant 0 : index
    %c0_30 = arith.constant 0 : index
    %c2 = arith.constant 2 : index
    %c0_31 = arith.constant 0 : index
    %31 = vector.load %arg3[%c0_28, %c0_29, %c0_30, %c2, %c0_31] : memref<2x1x1x6x256xbf16, #tpu.memory_space<vmem>>, vector<1x1x1x3x256xbf16>
    %32 = vector.shape_cast %31 : vector<1x1x1x3x256xbf16> to vector<3x256xbf16>
    %c4_i32_32 = arith.constant 4 : i32
    %33 = arith.muli %arg2, %c4_i32_32 : i32
    %c2_i32 = arith.constant 2 : i32
    %34 = arith.addi %33, %c2_i32 : i32
    %35 = arith.index_cast %34 : i32 to index
    %c0_33 = arith.constant 0 : index
    %c0_34 = arith.constant 0 : index
    %36 = vector.load %arg4[%35, %c0_33, %c0_34] : memref<16x256x512xbf16, #tpu.memory_space<vmem>>, vector<1x256x512xbf16>
    %37 = vector.shape_cast %36 : vector<1x256x512xbf16> to vector<256x512xbf16>
    %c0_35 = arith.constant 0 : index
    %c0_36 = arith.constant 0 : index
    %c0_37 = arith.constant 0 : index
    %38 = vector.load %arg7[%c0_35, %c0_36, %c0_37] : memref<2x3x512xf32, #tpu.memory_space<vmem>>, vector<1x3x512xf32>
    %39 = vector.shape_cast %38 : vector<1x3x512xf32> to vector<3x512xf32>
    %cst_38 = arith.constant dense<0.000000e+00> : vector<3x512xf32>
    %40 = tpu.matmul %32, %37, %cst_38 {dimension_numbers = #tpu.dot_dimension_numbers<[1], [0], [0], [1], [0, 0, 1, 1], [], []>} : vector<3x256xbf16>, vector<256x512xbf16>, vector<3x512xf32> -> vector<3x512xf32>
    %41 = arith.addf %39, %40 : vector<3x512xf32>
    %c0_39 = arith.constant 0 : index
    %c0_40 = arith.constant 0 : index
    %c0_41 = arith.constant 0 : index
    %42 = vector.load %arg7[%c0_39, %c0_40, %c0_41] : memref<2x3x512xf32, #tpu.memory_space<vmem>>, vector<1x3x512xf32>
    %43 = vector.shape_cast %42 : vector<1x3x512xf32> to vector<3x512xf32>
    %44 = vector.shape_cast %41 : vector<3x512xf32> to vector<1x3x512xf32>
    tpu.vector_store %arg7[%c0_39, %c0_40, %c0_41], %44 {strides = array<i32>} : memref<2x3x512xf32, #tpu.memory_space<vmem>>, vector<1x3x512xf32>,
    %c0_42 = arith.constant 0 : index
    %c0_43 = arith.constant 0 : index
    %c0_44 = arith.constant 0 : index
    %c3 = arith.constant 3 : index
    %c0_45 = arith.constant 0 : index
    %45 = vector.load %arg3[%c0_42, %c0_43, %c0_44, %c3, %c0_45] : memref<2x1x1x6x256xbf16, #tpu.memory_space<vmem>>, vector<1x1x1x3x256xbf16>
    %46 = vector.shape_cast %45 : vector<1x1x1x3x256xbf16> to vector<3x256xbf16>
    %c4_i32_46 = arith.constant 4 : i32
    %47 = arith.muli %arg2, %c4_i32_46 : i32
    %c3_i32 = arith.constant 3 : i32
    %48 = arith.addi %47, %c3_i32 : i32
    %49 = arith.index_cast %48 : i32 to index
    %c0_47 = arith.constant 0 : index
    %c0_48 = arith.constant 0 : index
    %50 = vector.load %arg4[%49, %c0_47, %c0_48] : memref<16x256x512xbf16, #tpu.memory_space<vmem>>, vector<1x256x512xbf16>
    %51 = vector.shape_cast %50 : vector<1x256x512xbf16> to vector<256x512xbf16>
    %c0_49 = arith.constant 0 : index
    %c0_50 = arith.constant 0 : index
    %c0_51 = arith.constant 0 : index
    %52 = vector.load %arg7[%c0_49, %c0_50, %c0_51] : memref<2x3x512xf32, #tpu.memory_space<vmem>>, vector<1x3x512xf32>
    %53 = vector.shape_cast %52 : vector<1x3x512xf32> to vector<3x512xf32>
    %cst_52 = arith.constant dense<0.000000e+00> : vector<3x512xf32>
    %54 = tpu.matmul %46, %51, %cst_52 {dimension_numbers = #tpu.dot_dimension_numbers<[1], [0], [0], [1], [0, 0, 1, 1], [], []>} : vector<3x256xbf16>, vector<256x512xbf16>, vector<3x512xf32> -> vector<3x512xf32>
    %55 = arith.addf %53, %54 : vector<3x512xf32>
    %c0_53 = arith.constant 0 : index
    %c0_54 = arith.constant 0 : index
    %c0_55 = arith.constant 0 : index
    %56 = vector.load %arg7[%c0_53, %c0_54, %c0_55] : memref<2x3x512xf32, #tpu.memory_space<vmem>>, vector<1x3x512xf32>
    %57 = vector.shape_cast %56 : vector<1x3x512xf32> to vector<3x512xf32>
    %58 = vector.shape_cast %55 : vector<3x512xf32> to vector<1x3x512xf32>
    tpu.vector_store %arg7[%c0_53, %c0_54, %c0_55], %58 {strides = array<i32>} : memref<2x3x512xf32, #tpu.memory_space<vmem>>, vector<1x3x512xf32>,
    %c1_56 = arith.constant 1 : index
    %c0_57 = arith.constant 0 : index
    %c0_58 = arith.constant 0 : index
    %c0_59 = arith.constant 0 : index
    %c0_60 = arith.constant 0 : index
    %59 = vector.load %arg3[%c1_56, %c0_57, %c0_58, %c0_59, %c0_60] : memref<2x1x1x6x256xbf16, #tpu.memory_space<vmem>>, vector<1x1x1x3x256xbf16>
    %60 = vector.shape_cast %59 : vector<1x1x1x3x256xbf16> to vector<3x256xbf16>
    %c4_i32_61 = arith.constant 4 : i32
    %61 = arith.muli %arg2, %c4_i32_61 : i32
    %c0_i32_62 = arith.constant 0 : i32
    %62 = arith.addi %61, %c0_i32_62 : i32
    %63 = arith.index_cast %62 : i32 to index
    %c0_63 = arith.constant 0 : index
    %c0_64 = arith.constant 0 : index
    %64 = vector.load %arg4[%63, %c0_63, %c0_64] : memref<16x256x512xbf16, #tpu.memory_space<vmem>>, vector<1x256x512xbf16>
    %65 = vector.shape_cast %64 : vector<1x256x512xbf16> to vector<256x512xbf16>
    %c1_65 = arith.constant 1 : index
    %c0_66 = arith.constant 0 : index
    %c0_67 = arith.constant 0 : index
    %66 = vector.load %arg7[%c1_65, %c0_66, %c0_67] : memref<2x3x512xf32, #tpu.memory_space<vmem>>, vector<1x3x512xf32>
    %67 = vector.shape_cast %66 : vector<1x3x512xf32> to vector<3x512xf32>
    %cst_68 = arith.constant dense<0.000000e+00> : vector<3x512xf32>
    %68 = tpu.matmul %60, %65, %cst_68 {dimension_numbers = #tpu.dot_dimension_numbers<[1], [0], [0], [1], [0, 0, 1, 1], [], []>} : vector<3x256xbf16>, vector<256x512xbf16>, vector<3x512xf32> -> vector<3x512xf32>
    %69 = arith.addf %67, %68 : vector<3x512xf32>
    %c1_69 = arith.constant 1 : index
    %c0_70 = arith.constant 0 : index
    %c0_71 = arith.constant 0 : index
    %70 = vector.load %arg7[%c1_69, %c0_70, %c0_71] : memref<2x3x512xf32, #tpu.memory_space<vmem>>, vector<1x3x512xf32>
    %71 = vector.shape_cast %70 : vector<1x3x512xf32> to vector<3x512xf32>
    %72 = vector.shape_cast %69 : vector<3x512xf32> to vector<1x3x512xf32>
    tpu.vector_store %arg7[%c1_69, %c0_70, %c0_71], %72 {strides = array<i32>} : memref<2x3x512xf32, #tpu.memory_space<vmem>>, vector<1x3x512xf32>,
    %c1_72 = arith.constant 1 : index
    %c0_73 = arith.constant 0 : index
    %c0_74 = arith.constant 0 : index
    %c1_75 = arith.constant 1 : index
    %c0_76 = arith.constant 0 : index
    %73 = vector.load %arg3[%c1_72, %c0_73, %c0_74, %c1_75, %c0_76] : memref<2x1x1x6x256xbf16, #tpu.memory_space<vmem>>, vector<1x1x1x3x256xbf16>
    %74 = vector.shape_cast %73 : vector<1x1x1x3x256xbf16> to vector<3x256xbf16>
    %c4_i32_77 = arith.constant 4 : i32
    %75 = arith.muli %arg2, %c4_i32_77 : i32
    %c1_i32_78 = arith.constant 1 : i32
    %76 = arith.addi %75, %c1_i32_78 : i32
    %77 = arith.index_cast %76 : i32 to index
    %c0_79 = arith.constant 0 : index
    %c0_80 = arith.constant 0 : index
    %78 = vector.load %arg4[%77, %c0_79, %c0_80] : memref<16x256x512xbf16, #tpu.memory_space<vmem>>, vector<1x256x512xbf16>
    %79 = vector.shape_cast %78 : vector<1x256x512xbf16> to vector<256x512xbf16>
    %c1_81 = arith.constant 1 : index
    %c0_82 = arith.constant 0 : index
    %c0_83 = arith.constant 0 : index
    %80 = vector.load %arg7[%c1_81, %c0_82, %c0_83] : memref<2x3x512xf32, #tpu.memory_space<vmem>>, vector<1x3x512xf32>
    %81 = vector.shape_cast %80 : vector<1x3x512xf32> to vector<3x512xf32>
    %cst_84 = arith.constant dense<0.000000e+00> : vector<3x512xf32>
    %82 = tpu.matmul %74, %79, %cst_84 {dimension_numbers = #tpu.dot_dimension_numbers<[1], [0], [0], [1], [0, 0, 1, 1], [], []>} : vector<3x256xbf16>, vector<256x512xbf16>, vector<3x512xf32> -> vector<3x512xf32>
    %83 = arith.addf %81, %82 : vector<3x512xf32>
    %c1_85 = arith.constant 1 : index
    %c0_86 = arith.constant 0 : index
    %c0_87 = arith.constant 0 : index
    %84 = vector.load %arg7[%c1_85, %c0_86, %c0_87] : memref<2x3x512xf32, #tpu.memory_space<vmem>>, vector<1x3x512xf32>
    %85 = vector.shape_cast %84 : vector<1x3x512xf32> to vector<3x512xf32>
    %86 = vector.shape_cast %83 : vector<3x512xf32> to vector<1x3x512xf32>
    tpu.vector_store %arg7[%c1_85, %c0_86, %c0_87], %86 {strides = array<i32>} : memref<2x3x512xf32, #tpu.memory_space<vmem>>, vector<1x3x512xf32>,
    %c1_88 = arith.constant 1 : index
    %c0_89 = arith.constant 0 : index
    %c0_90 = arith.constant 0 : index
    %c2_91 = arith.constant 2 : index
    %c0_92 = arith.constant 0 : index
    %87 = vector.load %arg3[%c1_88, %c0_89, %c0_90, %c2_91, %c0_92] : memref<2x1x1x6x256xbf16, #tpu.memory_space<vmem>>, vector<1x1x1x3x256xbf16>
    %88 = vector.shape_cast %87 : vector<1x1x1x3x256xbf16> to vector<3x256xbf16>
    %c4_i32_93 = arith.constant 4 : i32
    %89 = arith.muli %arg2, %c4_i32_93 : i32
    %c2_i32_94 = arith.constant 2 : i32
    %90 = arith.addi %89, %c2_i32_94 : i32
    %91 = arith.index_cast %90 : i32 to index
    %c0_95 = arith.constant 0 : index
    %c0_96 = arith.constant 0 : index
    %92 = vector.load %arg4[%91, %c0_95, %c0_96] : memref<16x256x512xbf16, #tpu.memory_space<vmem>>, vector<1x256x512xbf16>
    %93 = vector.shape_cast %92 : vector<1x256x512xbf16> to vector<256x512xbf16>
    %c1_97 = arith.constant 1 : index
    %c0_98 = arith.constant 0 : index
    %c0_99 = arith.constant 0 : index
    %94 = vector.load %arg7[%c1_97, %c0_98, %c0_99] : memref<2x3x512xf32, #tpu.memory_space<vmem>>, vector<1x3x512xf32>
    %95 = vector.shape_cast %94 : vector<1x3x512xf32> to vector<3x512xf32>
    %cst_100 = arith.constant dense<0.000000e+00> : vector<3x512xf32>
    %96 = tpu.matmul %88, %93, %cst_100 {dimension_numbers = #tpu.dot_dimension_numbers<[1], [0], [0], [1], [0, 0, 1, 1], [], []>} : vector<3x256xbf16>, vector<256x512xbf16>, vector<3x512xf32> -> vector<3x512xf32>
    %97 = arith.addf %95, %96 : vector<3x512xf32>
    %c1_101 = arith.constant 1 : index
    %c0_102 = arith.constant 0 : index
    %c0_103 = arith.constant 0 : index
    %98 = vector.load %arg7[%c1_101, %c0_102, %c0_103] : memref<2x3x512xf32, #tpu.memory_space<vmem>>, vector<1x3x512xf32>
    %99 = vector.shape_cast %98 : vector<1x3x512xf32> to vector<3x512xf32>
    %100 = vector.shape_cast %97 : vector<3x512xf32> to vector<1x3x512xf32>
    tpu.vector_store %arg7[%c1_101, %c0_102, %c0_103], %100 {strides = array<i32>} : memref<2x3x512xf32, #tpu.memory_space<vmem>>, vector<1x3x512xf32>,
    %c1_104 = arith.constant 1 : index
    %c0_105 = arith.constant 0 : index
    %c0_106 = arith.constant 0 : index
    %c3_107 = arith.constant 3 : index
    %c0_108 = arith.constant 0 : index
    %101 = vector.load %arg3[%c1_104, %c0_105, %c0_106, %c3_107, %c0_108] : memref<2x1x1x6x256xbf16, #tpu.memory_space<vmem>>, vector<1x1x1x3x256xbf16>
    %102 = vector.shape_cast %101 : vector<1x1x1x3x256xbf16> to vector<3x256xbf16>
    %c4_i32_109 = arith.constant 4 : i32
    %103 = arith.muli %arg2, %c4_i32_109 : i32
    %c3_i32_110 = arith.constant 3 : i32
    %104 = arith.addi %103, %c3_i32_110 : i32
    %105 = arith.index_cast %104 : i32 to index
    %c0_111 = arith.constant 0 : index
    %c0_112 = arith.constant 0 : index
    %106 = vector.load %arg4[%105, %c0_111, %c0_112] : memref<16x256x512xbf16, #tpu.memory_space<vmem>>, vector<1x256x512xbf16>
    %107 = vector.shape_cast %106 : vector<1x256x512xbf16> to vector<256x512xbf16>
    %c1_113 = arith.constant 1 : index
    %c0_114 = arith.constant 0 : index
    %c0_115 = arith.constant 0 : index
    %108 = vector.load %arg7[%c1_113, %c0_114, %c0_115] : memref<2x3x512xf32, #tpu.memory_space<vmem>>, vector<1x3x512xf32>
    %109 = vector.shape_cast %108 : vector<1x3x512xf32> to vector<3x512xf32>
    %cst_116 = arith.constant dense<0.000000e+00> : vector<3x512xf32>
    %110 = tpu.matmul %102, %107, %cst_116 {dimension_numbers = #tpu.dot_dimension_numbers<[1], [0], [0], [1], [0, 0, 1, 1], [], []>} : vector<3x256xbf16>, vector<256x512xbf16>, vector<3x512xf32> -> vector<3x512xf32>
    %111 = arith.addf %109, %110 : vector<3x512xf32>
    %c1_117 = arith.constant 1 : index
    %c0_118 = arith.constant 0 : index
    %c0_119 = arith.constant 0 : index
    %112 = vector.load %arg7[%c1_117, %c0_118, %c0_119] : memref<2x3x512xf32, #tpu.memory_space<vmem>>, vector<1x3x512xf32>
    %113 = vector.shape_cast %112 : vector<1x3x512xf32> to vector<3x512xf32>
    %114 = vector.shape_cast %111 : vector<3x512xf32> to vector<1x3x512xf32>
    tpu.vector_store %arg7[%c1_117, %c0_118, %c0_119], %114 {strides = array<i32>} : memref<2x3x512xf32, #tpu.memory_space<vmem>>, vector<1x3x512xf32>,
    %c3_i32_120 = arith.constant 3 : i32
    %115 = arith.cmpi eq, %arg2, %c3_i32_120 : i32
    %116 = arith.extui %115 : i1 to i32
    %c0_i32_121 = arith.constant 0 : i32
    %117 = arith.cmpi ne, %116, %c0_i32_121 : i32
    scf.if %117 {
      %c0_122 = arith.constant 0 : index
      %c0_123 = arith.constant 0 : index
      %c0_124 = arith.constant 0 : index
      %118 = vector.load %arg7[%c0_122, %c0_123, %c0_124] : memref<2x3x512xf32, #tpu.memory_space<vmem>>, vector<2x3x512xf32>
      %c0_125 = arith.constant 0 : index
      %c0_126 = arith.constant 0 : index
      %119 = vector.load %arg5[%c0_125, %c0_126] : memref<1x512xf32, #tpu.memory_space<vmem>>, vector<1x512xf32>
      %120 = vector.shape_cast %119 : vector<1x512xf32> to vector<1x1x512xf32>
      %121 = vector.broadcast %120 : vector<1x1x512xf32> to vector<2x3x512xf32>
      %122 = arith.addf %118, %121 : vector<2x3x512xf32>
      %123 = arith.truncf %122 : vector<2x3x512xf32> to vector<2x3x512xbf16>
      %c0_127 = arith.constant 0 : index
      %c0_128 = arith.constant 0 : index
      %c0_129 = arith.constant 0 : index
      %c0_130 = arith.constant 0 : index
      %124 = vector.load %arg6[%c0_127, %c0_128, %c0_129, %c0_130] : memref<2x1x3x512xbf16, #tpu.memory_space<vmem>>, vector<2x1x3x512xbf16>
      %125 = vector.shape_cast %124 : vector<2x1x3x512xbf16> to vector<2x3x512xbf16>
      %126 = vector.shape_cast %123 : vector<2x3x512xbf16> to vector<2x1x3x512xbf16>
      tpu.vector_store %arg6[%c0_127, %c0_128, %c0_129, %c0_130], %126 {strides = array<i32>} : memref<2x1x3x512xbf16, #tpu.memory_space<vmem>>, vector<2x1x3x512xbf16>,
    } else {
    }
    return
  }
  func.func @transform_0(%arg0: i32, %arg1: i32, %arg2: i32) -> (i32, i32, i32, i32, i32) {
    %c1_i32 = arith.constant 1 : i32
    %0 = arith.muli %c1_i32, %arg1 : i32
    %1 = arith.addi %0, %arg2 : i32
    %c0_i32 = arith.constant 0 : i32
    %c0_i32_0 = arith.constant 0 : i32
    %c0_i32_1 = arith.constant 0 : i32
    %c0_i32_2 = arith.constant 0 : i32
    %c0_i32_3 = arith.constant 0 : i32
    return %c0_i32, %1, %c0_i32_0, %c0_i32_1, %c0_i32_2 : i32, i32, i32, i32, i32
  }
  func.func @transform_1(%arg0: i32, %arg1: i32, %arg2: i32) -> (i32, i32, i32) {
    %c0_i32 = arith.constant 0 : i32
    %c0_i32_0 = arith.constant 0 : i32
    %c0_i32_1 = arith.constant 0 : i32
    return %c0_i32, %c0_i32_0, %arg0 : i32, i32, i32
  }
  func.func @transform_2(%arg0: i32, %arg1: i32, %arg2: i32) -> (i32, i32) {
    %c0_i32 = arith.constant 0 : i32
    %c0_i32_0 = arith.constant 0 : i32
    return %c0_i32, %arg0 : i32, i32
  }
  func.func @transform_3(%arg0: i32, %arg1: i32, %arg2: i32) -> (i32, i32, i32, i32) {
    %c0_i32 = arith.constant 0 : i32
    %c0_i32_0 = arith.constant 0 : i32
    %c0_i32_1 = arith.constant 0 : i32
    return %c0_i32, %arg1, %c0_i32_0, %arg0 : i32, i32, i32, i32
  }
}

module attributes {stable_mosaic.version = 11 : i64} {
  func.func @_inorm_stats_kernel(%arg0: i32, %arg1: i32, %arg2: i32, %arg3: memref<1x9x128xbf16, #tpu.memory_space<vmem>>, %arg4: memref<1x128xf32, #tpu.memory_space<vmem>>, %arg5: memref<1x128xf32, #tpu.memory_space<vmem>>, %arg6: memref<1x1x128xf32, #tpu.memory_space<vmem>>, %arg7: memref<1x1x128xf32, #tpu.memory_space<vmem>>) attributes {dimension_semantics = [#tpu.dimension_semantics<parallel>, #tpu.dimension_semantics<parallel>, #tpu.dimension_semantics<arbitrary>], iteration_bounds = array<i64: 2, 4, 1>, scalar_prefetch = 0 : i64, scratch_operands = 0 : i64, tpu.core_type = #tpu.core_type<tc>, window_params = [{transform_indices = @transform_0, window_bounds = array<i64: 1, 9, 128>}, {transform_indices = @transform_1, window_bounds = array<i64: 1, 128>}, {transform_indices = @transform_2, window_bounds = array<i64: 1, 128>}, {transform_indices = @transform_3, window_bounds = array<i64: 1, 1, 128>}, {transform_indices = @transform_4, window_bounds = array<i64: 1, 1, 128>}]} {
    %c0_i32 = arith.constant 0 : i32
    %0 = arith.cmpi eq, %arg2, %c0_i32 : i32
    %1 = arith.extui %0 : i1 to i32
    %c0_i32_0 = arith.constant 0 : i32
    %2 = arith.cmpi ne, %1, %c0_i32_0 : i32
    scf.if %2 {
      %cst_18 = arith.constant 0.000000e+00 : f32
      %19 = vector.broadcast %cst_18 : f32 to vector<1x1x128xf32>
      %c0_19 = arith.constant 0 : index
      %c0_20 = arith.constant 0 : index
      %c0_21 = arith.constant 0 : index
      %20 = vector.load %arg6[%c0_19, %c0_20, %c0_21] : memref<1x1x128xf32, #tpu.memory_space<vmem>>, vector<1x1x128xf32>
      tpu.vector_store %arg6[%c0_19, %c0_20, %c0_21], %19 {strides = array<i32>} : memref<1x1x128xf32, #tpu.memory_space<vmem>>, vector<1x1x128xf32>,
      %cst_22 = arith.constant 0.000000e+00 : f32
      %21 = vector.broadcast %cst_22 : f32 to vector<1x1x128xf32>
      %c0_23 = arith.constant 0 : index
      %c0_24 = arith.constant 0 : index
      %c0_25 = arith.constant 0 : index
      %22 = vector.load %arg7[%c0_23, %c0_24, %c0_25] : memref<1x1x128xf32, #tpu.memory_space<vmem>>, vector<1x1x128xf32>
      tpu.vector_store %arg7[%c0_23, %c0_24, %c0_25], %21 {strides = array<i32>} : memref<1x1x128xf32, #tpu.memory_space<vmem>>, vector<1x1x128xf32>,
    } else {
    }
    %c0 = arith.constant 0 : index
    %c0_1 = arith.constant 0 : index
    %c0_2 = arith.constant 0 : index
    %3 = vector.load %arg3[%c0, %c0_1, %c0_2] : memref<1x9x128xbf16, #tpu.memory_space<vmem>>, vector<1x9x128xbf16>
    %4 = arith.extf %3 : vector<1x9x128xbf16> to vector<1x9x128xf32>
    %c0_3 = arith.constant 0 : index
    %c0_4 = arith.constant 0 : index
    %c0_5 = arith.constant 0 : index
    %5 = vector.load %arg6[%c0_3, %c0_4, %c0_5] : memref<1x1x128xf32, #tpu.memory_space<vmem>>, vector<1x1x128xf32>
    %cst = arith.constant dense<0.000000e+00> : vector<1x128xf32>
    %6 = vector.multi_reduction <add>, %4, %cst [1] : vector<1x9x128xf32> to vector<1x128xf32>
    %7 = vector.shape_cast %6 : vector<1x128xf32> to vector<1x1x128xf32>
    %8 = arith.addf %5, %7 : vector<1x1x128xf32>
    %c0_6 = arith.constant 0 : index
    %c0_7 = arith.constant 0 : index
    %c0_8 = arith.constant 0 : index
    %9 = vector.load %arg6[%c0_6, %c0_7, %c0_8] : memref<1x1x128xf32, #tpu.memory_space<vmem>>, vector<1x1x128xf32>
    tpu.vector_store %arg6[%c0_6, %c0_7, %c0_8], %8 {strides = array<i32>} : memref<1x1x128xf32, #tpu.memory_space<vmem>>, vector<1x1x128xf32>,
    %c0_9 = arith.constant 0 : index
    %c0_10 = arith.constant 0 : index
    %c0_11 = arith.constant 0 : index
    %10 = vector.load %arg7[%c0_9, %c0_10, %c0_11] : memref<1x1x128xf32, #tpu.memory_space<vmem>>, vector<1x1x128xf32>
    %11 = arith.mulf %4, %4 : vector<1x9x128xf32>
    %cst_12 = arith.constant dense<0.000000e+00> : vector<1x128xf32>
    %12 = vector.multi_reduction <add>, %11, %cst_12 [1] : vector<1x9x128xf32> to vector<1x128xf32>
    %13 = vector.shape_cast %12 : vector<1x128xf32> to vector<1x1x128xf32>
    %14 = arith.addf %10, %13 : vector<1x1x128xf32>
    %c0_13 = arith.constant 0 : index
    %c0_14 = arith.constant 0 : index
    %c0_15 = arith.constant 0 : index
    %15 = vector.load %arg7[%c0_13, %c0_14, %c0_15] : memref<1x1x128xf32, #tpu.memory_space<vmem>>, vector<1x1x128xf32>
    tpu.vector_store %arg7[%c0_13, %c0_14, %c0_15], %14 {strides = array<i32>} : memref<1x1x128xf32, #tpu.memory_space<vmem>>, vector<1x1x128xf32>,
    %c0_i32_16 = arith.constant 0 : i32
    %16 = arith.cmpi eq, %arg2, %c0_i32_16 : i32
    %17 = arith.extui %16 : i1 to i32
    %c0_i32_17 = arith.constant 0 : i32
    %18 = arith.cmpi ne, %17, %c0_i32_17 : i32
    scf.if %18 {
      %c0_18 = arith.constant 0 : index
      %c0_19 = arith.constant 0 : index
      %c0_20 = arith.constant 0 : index
      %19 = vector.load %arg6[%c0_18, %c0_19, %c0_20] : memref<1x1x128xf32, #tpu.memory_space<vmem>>, vector<1x1x128xf32>
      %cst_21 = arith.constant 0.111111112 : f32
      %20 = vector.broadcast %cst_21 : f32 to vector<1x1x128xf32>
      %21 = arith.mulf %19, %20 : vector<1x1x128xf32>
      %c0_22 = arith.constant 0 : index
      %c0_23 = arith.constant 0 : index
      %c0_24 = arith.constant 0 : index
      %22 = vector.load %arg7[%c0_22, %c0_23, %c0_24] : memref<1x1x128xf32, #tpu.memory_space<vmem>>, vector<1x1x128xf32>
      %cst_25 = arith.constant 0.111111112 : f32
      %23 = vector.broadcast %cst_25 : f32 to vector<1x1x128xf32>
      %24 = arith.mulf %22, %23 : vector<1x1x128xf32>
      %25 = arith.mulf %21, %21 : vector<1x1x128xf32>
      %26 = arith.subf %24, %25 : vector<1x1x128xf32>
      %cst_26 = arith.constant 9.99999974E-6 : f32
      %27 = vector.broadcast %cst_26 : f32 to vector<1x1x128xf32>
      %28 = arith.addf %26, %27 : vector<1x1x128xf32>
      %29 = math.rsqrt %28 : vector<1x1x128xf32>
      %c0_27 = arith.constant 0 : index
      %c0_28 = arith.constant 0 : index
      %30 = vector.load %arg4[%c0_27, %c0_28] : memref<1x128xf32, #tpu.memory_space<vmem>>, vector<1x128xf32>
      %31 = vector.shape_cast %30 : vector<1x128xf32> to vector<1x1x128xf32>
      %c0_29 = arith.constant 0 : index
      %c0_30 = arith.constant 0 : index
      %32 = vector.load %arg5[%c0_29, %c0_30] : memref<1x128xf32, #tpu.memory_space<vmem>>, vector<1x128xf32>
      %33 = vector.shape_cast %32 : vector<1x128xf32> to vector<1x1x128xf32>
      %34 = arith.mulf %31, %29 : vector<1x1x128xf32>
      %c0_31 = arith.constant 0 : index
      %c0_32 = arith.constant 0 : index
      %c0_33 = arith.constant 0 : index
      %35 = vector.load %arg6[%c0_31, %c0_32, %c0_33] : memref<1x1x128xf32, #tpu.memory_space<vmem>>, vector<1x1x128xf32>
      tpu.vector_store %arg6[%c0_31, %c0_32, %c0_33], %34 {strides = array<i32>} : memref<1x1x128xf32, #tpu.memory_space<vmem>>, vector<1x1x128xf32>,
      %36 = arith.mulf %21, %34 : vector<1x1x128xf32>
      %37 = arith.subf %33, %36 : vector<1x1x128xf32>
      %c0_34 = arith.constant 0 : index
      %c0_35 = arith.constant 0 : index
      %c0_36 = arith.constant 0 : index
      %38 = vector.load %arg7[%c0_34, %c0_35, %c0_36] : memref<1x1x128xf32, #tpu.memory_space<vmem>>, vector<1x1x128xf32>
      tpu.vector_store %arg7[%c0_34, %c0_35, %c0_36], %37 {strides = array<i32>} : memref<1x1x128xf32, #tpu.memory_space<vmem>>, vector<1x1x128xf32>,
    } else {
    }
    return
  }
  func.func @transform_0(%arg0: i32, %arg1: i32, %arg2: i32) -> (i32, i32, i32) {
    %c0_i32 = arith.constant 0 : i32
    return %arg0, %arg2, %arg1 : i32, i32, i32
  }
  func.func @transform_1(%arg0: i32, %arg1: i32, %arg2: i32) -> (i32, i32) {
    %c0_i32 = arith.constant 0 : i32
    %c0_i32_0 = arith.constant 0 : i32
    return %c0_i32, %arg1 : i32, i32
  }
  func.func @transform_2(%arg0: i32, %arg1: i32, %arg2: i32) -> (i32, i32) {
    %c0_i32 = arith.constant 0 : i32
    %c0_i32_0 = arith.constant 0 : i32
    return %c0_i32, %arg1 : i32, i32
  }
  func.func @transform_3(%arg0: i32, %arg1: i32, %arg2: i32) -> (i32, i32, i32) {
    %c0_i32 = arith.constant 0 : i32
    %c0_i32_0 = arith.constant 0 : i32
    return %arg0, %c0_i32, %arg1 : i32, i32, i32
  }
  func.func @transform_4(%arg0: i32, %arg1: i32, %arg2: i32) -> (i32, i32, i32) {
    %c0_i32 = arith.constant 0 : i32
    %c0_i32_0 = arith.constant 0 : i32
    return %arg0, %c0_i32, %arg1 : i32, i32, i32
  }
}

module attributes {stable_mosaic.version = 11 : i64} {
  func.func @_inorm_apply_kernel(%arg0: i32, %arg1: i32, %arg2: i32, %arg3: memref<1x9x128xbf16, #tpu.memory_space<vmem>>, %arg4: memref<1x1x128xf32, #tpu.memory_space<vmem>>, %arg5: memref<1x1x128xf32, #tpu.memory_space<vmem>>, %arg6: memref<1x9x128xbf16, #tpu.memory_space<vmem>>) attributes {dimension_semantics = [#tpu.dimension_semantics<parallel>, #tpu.dimension_semantics<parallel>, #tpu.dimension_semantics<parallel>], iteration_bounds = array<i64: 2, 4, 1>, scalar_prefetch = 0 : i64, scratch_operands = 0 : i64, tpu.core_type = #tpu.core_type<tc>, window_params = [{transform_indices = @transform_0, window_bounds = array<i64: 1, 9, 128>}, {transform_indices = @transform_1, window_bounds = array<i64: 1, 1, 128>}, {transform_indices = @transform_2, window_bounds = array<i64: 1, 1, 128>}, {transform_indices = @transform_3, window_bounds = array<i64: 1, 9, 128>}]} {
    %c0 = arith.constant 0 : index
    %c0_0 = arith.constant 0 : index
    %c0_1 = arith.constant 0 : index
    %0 = vector.load %arg3[%c0, %c0_0, %c0_1] : memref<1x9x128xbf16, #tpu.memory_space<vmem>>, vector<1x9x128xbf16>
    %1 = arith.extf %0 : vector<1x9x128xbf16> to vector<1x9x128xf32>
    %c0_2 = arith.constant 0 : index
    %c0_3 = arith.constant 0 : index
    %c0_4 = arith.constant 0 : index
    %2 = vector.load %arg4[%c0_2, %c0_3, %c0_4] : memref<1x1x128xf32, #tpu.memory_space<vmem>>, vector<1x1x128xf32>
    %3 = vector.broadcast %2 : vector<1x1x128xf32> to vector<1x9x128xf32>
    %4 = arith.mulf %1, %3 : vector<1x9x128xf32>
    %c0_5 = arith.constant 0 : index
    %c0_6 = arith.constant 0 : index
    %c0_7 = arith.constant 0 : index
    %5 = vector.load %arg5[%c0_5, %c0_6, %c0_7] : memref<1x1x128xf32, #tpu.memory_space<vmem>>, vector<1x1x128xf32>
    %6 = vector.broadcast %5 : vector<1x1x128xf32> to vector<1x9x128xf32>
    %7 = arith.addf %4, %6 : vector<1x9x128xf32>
    %cst = arith.constant 0.000000e+00 : f32
    %8 = vector.broadcast %cst : f32 to vector<1x9x128xf32>
    %9 = arith.cmpf oge, %7, %8 : vector<1x9x128xf32>
    %cst_8 = arith.constant 2.000000e-01 : f32
    %10 = vector.broadcast %cst_8 : f32 to vector<1x9x128xf32>
    %11 = arith.mulf %10, %7 : vector<1x9x128xf32>
    %12 = arith.select %9, %7, %11 : vector<1x9x128xi1>, vector<1x9x128xf32>
    %13 = arith.truncf %12 : vector<1x9x128xf32> to vector<1x9x128xbf16>
    %c0_9 = arith.constant 0 : index
    %c0_10 = arith.constant 0 : index
    %c0_11 = arith.constant 0 : index
    %14 = vector.load %arg6[%c0_9, %c0_10, %c0_11] : memref<1x9x128xbf16, #tpu.memory_space<vmem>>, vector<1x9x128xbf16>
    tpu.vector_store %arg6[%c0_9, %c0_10, %c0_11], %13 {strides = array<i32>} : memref<1x9x128xbf16, #tpu.memory_space<vmem>>, vector<1x9x128xbf16>,
    return
  }
  func.func @transform_0(%arg0: i32, %arg1: i32, %arg2: i32) -> (i32, i32, i32) {
    %c0_i32 = arith.constant 0 : i32
    return %arg0, %arg2, %arg1 : i32, i32, i32
  }
  func.func @transform_1(%arg0: i32, %arg1: i32, %arg2: i32) -> (i32, i32, i32) {
    %c0_i32 = arith.constant 0 : i32
    %c0_i32_0 = arith.constant 0 : i32
    return %arg0, %c0_i32, %arg1 : i32, i32, i32
  }
  func.func @transform_2(%arg0: i32, %arg1: i32, %arg2: i32) -> (i32, i32, i32) {
    %c0_i32 = arith.constant 0 : i32
    %c0_i32_0 = arith.constant 0 : i32
    return %arg0, %c0_i32, %arg1 : i32, i32, i32
  }
  func.func @transform_3(%arg0: i32, %arg1: i32, %arg2: i32) -> (i32, i32, i32) {
    %c0_i32 = arith.constant 0 : i32
    return %arg0, %arg2, %arg1 : i32, i32, i32
  }
}

module attributes {stable_mosaic.version = 11 : i64} {
  func.func @_conv_cout1_kernel(%arg0: i32, %arg1: i32, %arg2: memref<2x1x5x512xbf16, #tpu.memory_space<vmem>>, %arg3: memref<16x512xf32, #tpu.memory_space<vmem>>, %arg4: memref<1xf32, #tpu.memory_space<smem>>, %arg5: memref<2x1x2x1xf32, #tpu.memory_space<vmem>>, %arg6: memref<2x2x1xf32, #tpu.memory_space<vmem>>) attributes {dimension_semantics = [#tpu.dimension_semantics<parallel>, #tpu.dimension_semantics<arbitrary>], iteration_bounds = array<i64: 2, 4>, scalar_prefetch = 0 : i64, scratch_operands = 1 : i64, tpu.core_type = #tpu.core_type<tc>, window_params = [{transform_indices = @transform_0, window_bounds = array<i64: 2, 1, 5, 512>}, {pipeline_mode = #tpu.pipeline_mode<synchronous>, transform_indices = @transform_1, window_bounds = array<i64: 16, 512>}, {transform_indices = @transform_2, window_bounds = array<i64: 1>}, {transform_indices = @transform_3, window_bounds = array<i64: 2, 1, 2, 1>}]} {
    %c0_i32 = arith.constant 0 : i32
    %0 = arith.cmpi eq, %arg1, %c0_i32 : i32
    %1 = arith.extui %0 : i1 to i32
    %c0_i32_0 = arith.constant 0 : i32
    %2 = arith.cmpi ne, %1, %c0_i32_0 : i32
    scf.if %2 {
      %cst_106 = arith.constant 0.000000e+00 : f32
      %142 = vector.broadcast %cst_106 : f32 to vector<2x2x1xf32>
      %c0_107 = arith.constant 0 : index
      %c0_108 = arith.constant 0 : index
      %c0_109 = arith.constant 0 : index
      %143 = vector.load %arg6[%c0_107, %c0_108, %c0_109] : memref<2x2x1xf32, #tpu.memory_space<vmem>>, vector<2x2x1xf32>
      tpu.vector_store %arg6[%c0_107, %c0_108, %c0_109], %142 {strides = array<i32>} : memref<2x2x1xf32, #tpu.memory_space<vmem>>, vector<2x2x1xf32>,
    } else {
    }
    %c0 = arith.constant 0 : index
    %c0_1 = arith.constant 0 : index
    %c0_2 = arith.constant 0 : index
    %c0_3 = arith.constant 0 : index
    %3 = vector.load %arg2[%c0, %c0_1, %c0_2, %c0_3] : memref<2x1x5x512xbf16, #tpu.memory_space<vmem>>, vector<1x1x2x512xbf16>
    %4 = vector.shape_cast %3 : vector<1x1x2x512xbf16> to vector<2x512xbf16>
    %5 = arith.extf %4 : vector<2x512xbf16> to vector<2x512xf32>
    %c4_i32 = arith.constant 4 : i32
    %6 = arith.muli %arg1, %c4_i32 : i32
    %c0_i32_4 = arith.constant 0 : i32
    %7 = arith.addi %6, %c0_i32_4 : i32
    %8 = arith.index_cast %7 : i32 to index
    %c0_5 = arith.constant 0 : index
    %9 = vector.load %arg3[%8, %c0_5] : memref<16x512xf32, #tpu.memory_space<vmem>>, vector<1x512xf32>
    %c0_6 = arith.constant 0 : index
    %c0_7 = arith.constant 0 : index
    %c0_8 = arith.constant 0 : index
    %10 = vector.load %arg6[%c0_6, %c0_7, %c0_8] : memref<2x2x1xf32, #tpu.memory_space<vmem>>, vector<1x2x1xf32>
    %11 = vector.shape_cast %10 : vector<1x2x1xf32> to vector<2x1xf32>
    %12 = vector.broadcast %9 : vector<1x512xf32> to vector<2x512xf32>
    %13 = arith.mulf %5, %12 : vector<2x512xf32>
    %cst = arith.constant dense<0.000000e+00> : vector<2xf32>
    %14 = vector.multi_reduction <add>, %13, %cst [1] : vector<2x512xf32> to vector<2xf32>
    %15 = vector.shape_cast %14 : vector<2xf32> to vector<2x1xf32>
    %16 = arith.addf %11, %15 : vector<2x1xf32>
    %c0_9 = arith.constant 0 : index
    %c0_10 = arith.constant 0 : index
    %c0_11 = arith.constant 0 : index
    %17 = vector.load %arg6[%c0_9, %c0_10, %c0_11] : memref<2x2x1xf32, #tpu.memory_space<vmem>>, vector<1x2x1xf32>
    %18 = vector.shape_cast %17 : vector<1x2x1xf32> to vector<2x1xf32>
    %19 = vector.shape_cast %16 : vector<2x1xf32> to vector<1x2x1xf32>
    tpu.vector_store %arg6[%c0_9, %c0_10, %c0_11], %19 {strides = array<i32>} : memref<2x2x1xf32, #tpu.memory_space<vmem>>, vector<1x2x1xf32>,
    %c0_12 = arith.constant 0 : index
    %c0_13 = arith.constant 0 : index
    %c1 = arith.constant 1 : index
    %c0_14 = arith.constant 0 : index
    %20 = vector.load %arg2[%c0_12, %c0_13, %c1, %c0_14] : memref<2x1x5x512xbf16, #tpu.memory_space<vmem>>, vector<1x1x2x512xbf16>
    %21 = vector.shape_cast %20 : vector<1x1x2x512xbf16> to vector<2x512xbf16>
    %22 = arith.extf %21 : vector<2x512xbf16> to vector<2x512xf32>
    %c4_i32_15 = arith.constant 4 : i32
    %23 = arith.muli %arg1, %c4_i32_15 : i32
    %c1_i32 = arith.constant 1 : i32
    %24 = arith.addi %23, %c1_i32 : i32
    %25 = arith.index_cast %24 : i32 to index
    %c0_16 = arith.constant 0 : index
    %26 = vector.load %arg3[%25, %c0_16] : memref<16x512xf32, #tpu.memory_space<vmem>>, vector<1x512xf32>
    %c0_17 = arith.constant 0 : index
    %c0_18 = arith.constant 0 : index
    %c0_19 = arith.constant 0 : index
    %27 = vector.load %arg6[%c0_17, %c0_18, %c0_19] : memref<2x2x1xf32, #tpu.memory_space<vmem>>, vector<1x2x1xf32>
    %28 = vector.shape_cast %27 : vector<1x2x1xf32> to vector<2x1xf32>
    %29 = vector.broadcast %26 : vector<1x512xf32> to vector<2x512xf32>
    %30 = arith.mulf %22, %29 : vector<2x512xf32>
    %cst_20 = arith.constant dense<0.000000e+00> : vector<2xf32>
    %31 = vector.multi_reduction <add>, %30, %cst_20 [1] : vector<2x512xf32> to vector<2xf32>
    %32 = vector.shape_cast %31 : vector<2xf32> to vector<2x1xf32>
    %33 = arith.addf %28, %32 : vector<2x1xf32>
    %c0_21 = arith.constant 0 : index
    %c0_22 = arith.constant 0 : index
    %c0_23 = arith.constant 0 : index
    %34 = vector.load %arg6[%c0_21, %c0_22, %c0_23] : memref<2x2x1xf32, #tpu.memory_space<vmem>>, vector<1x2x1xf32>
    %35 = vector.shape_cast %34 : vector<1x2x1xf32> to vector<2x1xf32>
    %36 = vector.shape_cast %33 : vector<2x1xf32> to vector<1x2x1xf32>
    tpu.vector_store %arg6[%c0_21, %c0_22, %c0_23], %36 {strides = array<i32>} : memref<2x2x1xf32, #tpu.memory_space<vmem>>, vector<1x2x1xf32>,
    %c0_24 = arith.constant 0 : index
    %c0_25 = arith.constant 0 : index
    %c2 = arith.constant 2 : index
    %c0_26 = arith.constant 0 : index
    %37 = vector.load %arg2[%c0_24, %c0_25, %c2, %c0_26] : memref<2x1x5x512xbf16, #tpu.memory_space<vmem>>, vector<1x1x2x512xbf16>
    %38 = vector.shape_cast %37 : vector<1x1x2x512xbf16> to vector<2x512xbf16>
    %39 = arith.extf %38 : vector<2x512xbf16> to vector<2x512xf32>
    %c4_i32_27 = arith.constant 4 : i32
    %40 = arith.muli %arg1, %c4_i32_27 : i32
    %c2_i32 = arith.constant 2 : i32
    %41 = arith.addi %40, %c2_i32 : i32
    %42 = arith.index_cast %41 : i32 to index
    %c0_28 = arith.constant 0 : index
    %43 = vector.load %arg3[%42, %c0_28] : memref<16x512xf32, #tpu.memory_space<vmem>>, vector<1x512xf32>
    %c0_29 = arith.constant 0 : index
    %c0_30 = arith.constant 0 : index
    %c0_31 = arith.constant 0 : index
    %44 = vector.load %arg6[%c0_29, %c0_30, %c0_31] : memref<2x2x1xf32, #tpu.memory_space<vmem>>, vector<1x2x1xf32>
    %45 = vector.shape_cast %44 : vector<1x2x1xf32> to vector<2x1xf32>
    %46 = vector.broadcast %43 : vector<1x512xf32> to vector<2x512xf32>
    %47 = arith.mulf %39, %46 : vector<2x512xf32>
    %cst_32 = arith.constant dense<0.000000e+00> : vector<2xf32>
    %48 = vector.multi_reduction <add>, %47, %cst_32 [1] : vector<2x512xf32> to vector<2xf32>
    %49 = vector.shape_cast %48 : vector<2xf32> to vector<2x1xf32>
    %50 = arith.addf %45, %49 : vector<2x1xf32>
    %c0_33 = arith.constant 0 : index
    %c0_34 = arith.constant 0 : index
    %c0_35 = arith.constant 0 : index
    %51 = vector.load %arg6[%c0_33, %c0_34, %c0_35] : memref<2x2x1xf32, #tpu.memory_space<vmem>>, vector<1x2x1xf32>
    %52 = vector.shape_cast %51 : vector<1x2x1xf32> to vector<2x1xf32>
    %53 = vector.shape_cast %50 : vector<2x1xf32> to vector<1x2x1xf32>
    tpu.vector_store %arg6[%c0_33, %c0_34, %c0_35], %53 {strides = array<i32>} : memref<2x2x1xf32, #tpu.memory_space<vmem>>, vector<1x2x1xf32>,
    %c0_36 = arith.constant 0 : index
    %c0_37 = arith.constant 0 : index
    %c3 = arith.constant 3 : index
    %c0_38 = arith.constant 0 : index
    %54 = vector.load %arg2[%c0_36, %c0_37, %c3, %c0_38] : memref<2x1x5x512xbf16, #tpu.memory_space<vmem>>, vector<1x1x2x512xbf16>
    %55 = vector.shape_cast %54 : vector<1x1x2x512xbf16> to vector<2x512xbf16>
    %56 = arith.extf %55 : vector<2x512xbf16> to vector<2x512xf32>
    %c4_i32_39 = arith.constant 4 : i32
    %57 = arith.muli %arg1, %c4_i32_39 : i32
    %c3_i32 = arith.constant 3 : i32
    %58 = arith.addi %57, %c3_i32 : i32
    %59 = arith.index_cast %58 : i32 to index
    %c0_40 = arith.constant 0 : index
    %60 = vector.load %arg3[%59, %c0_40] : memref<16x512xf32, #tpu.memory_space<vmem>>, vector<1x512xf32>
    %c0_41 = arith.constant 0 : index
    %c0_42 = arith.constant 0 : index
    %c0_43 = arith.constant 0 : index
    %61 = vector.load %arg6[%c0_41, %c0_42, %c0_43] : memref<2x2x1xf32, #tpu.memory_space<vmem>>, vector<1x2x1xf32>
    %62 = vector.shape_cast %61 : vector<1x2x1xf32> to vector<2x1xf32>
    %63 = vector.broadcast %60 : vector<1x512xf32> to vector<2x512xf32>
    %64 = arith.mulf %56, %63 : vector<2x512xf32>
    %cst_44 = arith.constant dense<0.000000e+00> : vector<2xf32>
    %65 = vector.multi_reduction <add>, %64, %cst_44 [1] : vector<2x512xf32> to vector<2xf32>
    %66 = vector.shape_cast %65 : vector<2xf32> to vector<2x1xf32>
    %67 = arith.addf %62, %66 : vector<2x1xf32>
    %c0_45 = arith.constant 0 : index
    %c0_46 = arith.constant 0 : index
    %c0_47 = arith.constant 0 : index
    %68 = vector.load %arg6[%c0_45, %c0_46, %c0_47] : memref<2x2x1xf32, #tpu.memory_space<vmem>>, vector<1x2x1xf32>
    %69 = vector.shape_cast %68 : vector<1x2x1xf32> to vector<2x1xf32>
    %70 = vector.shape_cast %67 : vector<2x1xf32> to vector<1x2x1xf32>
    tpu.vector_store %arg6[%c0_45, %c0_46, %c0_47], %70 {strides = array<i32>} : memref<2x2x1xf32, #tpu.memory_space<vmem>>, vector<1x2x1xf32>,
    %c1_48 = arith.constant 1 : index
    %c0_49 = arith.constant 0 : index
    %c0_50 = arith.constant 0 : index
    %c0_51 = arith.constant 0 : index
    %71 = vector.load %arg2[%c1_48, %c0_49, %c0_50, %c0_51] : memref<2x1x5x512xbf16, #tpu.memory_space<vmem>>, vector<1x1x2x512xbf16>
    %72 = vector.shape_cast %71 : vector<1x1x2x512xbf16> to vector<2x512xbf16>
    %73 = arith.extf %72 : vector<2x512xbf16> to vector<2x512xf32>
    %c4_i32_52 = arith.constant 4 : i32
    %74 = arith.muli %arg1, %c4_i32_52 : i32
    %c0_i32_53 = arith.constant 0 : i32
    %75 = arith.addi %74, %c0_i32_53 : i32
    %76 = arith.index_cast %75 : i32 to index
    %c0_54 = arith.constant 0 : index
    %77 = vector.load %arg3[%76, %c0_54] : memref<16x512xf32, #tpu.memory_space<vmem>>, vector<1x512xf32>
    %c1_55 = arith.constant 1 : index
    %c0_56 = arith.constant 0 : index
    %c0_57 = arith.constant 0 : index
    %78 = vector.load %arg6[%c1_55, %c0_56, %c0_57] : memref<2x2x1xf32, #tpu.memory_space<vmem>>, vector<1x2x1xf32>
    %79 = vector.shape_cast %78 : vector<1x2x1xf32> to vector<2x1xf32>
    %80 = vector.broadcast %77 : vector<1x512xf32> to vector<2x512xf32>
    %81 = arith.mulf %73, %80 : vector<2x512xf32>
    %cst_58 = arith.constant dense<0.000000e+00> : vector<2xf32>
    %82 = vector.multi_reduction <add>, %81, %cst_58 [1] : vector<2x512xf32> to vector<2xf32>
    %83 = vector.shape_cast %82 : vector<2xf32> to vector<2x1xf32>
    %84 = arith.addf %79, %83 : vector<2x1xf32>
    %c1_59 = arith.constant 1 : index
    %c0_60 = arith.constant 0 : index
    %c0_61 = arith.constant 0 : index
    %85 = vector.load %arg6[%c1_59, %c0_60, %c0_61] : memref<2x2x1xf32, #tpu.memory_space<vmem>>, vector<1x2x1xf32>
    %86 = vector.shape_cast %85 : vector<1x2x1xf32> to vector<2x1xf32>
    %87 = vector.shape_cast %84 : vector<2x1xf32> to vector<1x2x1xf32>
    tpu.vector_store %arg6[%c1_59, %c0_60, %c0_61], %87 {strides = array<i32>} : memref<2x2x1xf32, #tpu.memory_space<vmem>>, vector<1x2x1xf32>,
    %c1_62 = arith.constant 1 : index
    %c0_63 = arith.constant 0 : index
    %c1_64 = arith.constant 1 : index
    %c0_65 = arith.constant 0 : index
    %88 = vector.load %arg2[%c1_62, %c0_63, %c1_64, %c0_65] : memref<2x1x5x512xbf16, #tpu.memory_space<vmem>>, vector<1x1x2x512xbf16>
    %89 = vector.shape_cast %88 : vector<1x1x2x512xbf16> to vector<2x512xbf16>
    %90 = arith.extf %89 : vector<2x512xbf16> to vector<2x512xf32>
    %c4_i32_66 = arith.constant 4 : i32
    %91 = arith.muli %arg1, %c4_i32_66 : i32
    %c1_i32_67 = arith.constant 1 : i32
    %92 = arith.addi %91, %c1_i32_67 : i32
    %93 = arith.index_cast %92 : i32 to index
    %c0_68 = arith.constant 0 : index
    %94 = vector.load %arg3[%93, %c0_68] : memref<16x512xf32, #tpu.memory_space<vmem>>, vector<1x512xf32>
    %c1_69 = arith.constant 1 : index
    %c0_70 = arith.constant 0 : index
    %c0_71 = arith.constant 0 : index
    %95 = vector.load %arg6[%c1_69, %c0_70, %c0_71] : memref<2x2x1xf32, #tpu.memory_space<vmem>>, vector<1x2x1xf32>
    %96 = vector.shape_cast %95 : vector<1x2x1xf32> to vector<2x1xf32>
    %97 = vector.broadcast %94 : vector<1x512xf32> to vector<2x512xf32>
    %98 = arith.mulf %90, %97 : vector<2x512xf32>
    %cst_72 = arith.constant dense<0.000000e+00> : vector<2xf32>
    %99 = vector.multi_reduction <add>, %98, %cst_72 [1] : vector<2x512xf32> to vector<2xf32>
    %100 = vector.shape_cast %99 : vector<2xf32> to vector<2x1xf32>
    %101 = arith.addf %96, %100 : vector<2x1xf32>
    %c1_73 = arith.constant 1 : index
    %c0_74 = arith.constant 0 : index
    %c0_75 = arith.constant 0 : index
    %102 = vector.load %arg6[%c1_73, %c0_74, %c0_75] : memref<2x2x1xf32, #tpu.memory_space<vmem>>, vector<1x2x1xf32>
    %103 = vector.shape_cast %102 : vector<1x2x1xf32> to vector<2x1xf32>
    %104 = vector.shape_cast %101 : vector<2x1xf32> to vector<1x2x1xf32>
    tpu.vector_store %arg6[%c1_73, %c0_74, %c0_75], %104 {strides = array<i32>} : memref<2x2x1xf32, #tpu.memory_space<vmem>>, vector<1x2x1xf32>,
    %c1_76 = arith.constant 1 : index
    %c0_77 = arith.constant 0 : index
    %c2_78 = arith.constant 2 : index
    %c0_79 = arith.constant 0 : index
    %105 = vector.load %arg2[%c1_76, %c0_77, %c2_78, %c0_79] : memref<2x1x5x512xbf16, #tpu.memory_space<vmem>>, vector<1x1x2x512xbf16>
    %106 = vector.shape_cast %105 : vector<1x1x2x512xbf16> to vector<2x512xbf16>
    %107 = arith.extf %106 : vector<2x512xbf16> to vector<2x512xf32>
    %c4_i32_80 = arith.constant 4 : i32
    %108 = arith.muli %arg1, %c4_i32_80 : i32
    %c2_i32_81 = arith.constant 2 : i32
    %109 = arith.addi %108, %c2_i32_81 : i32
    %110 = arith.index_cast %109 : i32 to index
    %c0_82 = arith.constant 0 : index
    %111 = vector.load %arg3[%110, %c0_82] : memref<16x512xf32, #tpu.memory_space<vmem>>, vector<1x512xf32>
    %c1_83 = arith.constant 1 : index
    %c0_84 = arith.constant 0 : index
    %c0_85 = arith.constant 0 : index
    %112 = vector.load %arg6[%c1_83, %c0_84, %c0_85] : memref<2x2x1xf32, #tpu.memory_space<vmem>>, vector<1x2x1xf32>
    %113 = vector.shape_cast %112 : vector<1x2x1xf32> to vector<2x1xf32>
    %114 = vector.broadcast %111 : vector<1x512xf32> to vector<2x512xf32>
    %115 = arith.mulf %107, %114 : vector<2x512xf32>
    %cst_86 = arith.constant dense<0.000000e+00> : vector<2xf32>
    %116 = vector.multi_reduction <add>, %115, %cst_86 [1] : vector<2x512xf32> to vector<2xf32>
    %117 = vector.shape_cast %116 : vector<2xf32> to vector<2x1xf32>
    %118 = arith.addf %113, %117 : vector<2x1xf32>
    %c1_87 = arith.constant 1 : index
    %c0_88 = arith.constant 0 : index
    %c0_89 = arith.constant 0 : index
    %119 = vector.load %arg6[%c1_87, %c0_88, %c0_89] : memref<2x2x1xf32, #tpu.memory_space<vmem>>, vector<1x2x1xf32>
    %120 = vector.shape_cast %119 : vector<1x2x1xf32> to vector<2x1xf32>
    %121 = vector.shape_cast %118 : vector<2x1xf32> to vector<1x2x1xf32>
    tpu.vector_store %arg6[%c1_87, %c0_88, %c0_89], %121 {strides = array<i32>} : memref<2x2x1xf32, #tpu.memory_space<vmem>>, vector<1x2x1xf32>,
    %c1_90 = arith.constant 1 : index
    %c0_91 = arith.constant 0 : index
    %c3_92 = arith.constant 3 : index
    %c0_93 = arith.constant 0 : index
    %122 = vector.load %arg2[%c1_90, %c0_91, %c3_92, %c0_93] : memref<2x1x5x512xbf16, #tpu.memory_space<vmem>>, vector<1x1x2x512xbf16>
    %123 = vector.shape_cast %122 : vector<1x1x2x512xbf16> to vector<2x512xbf16>
    %124 = arith.extf %123 : vector<2x512xbf16> to vector<2x512xf32>
    %c4_i32_94 = arith.constant 4 : i32
    %125 = arith.muli %arg1, %c4_i32_94 : i32
    %c3_i32_95 = arith.constant 3 : i32
    %126 = arith.addi %125, %c3_i32_95 : i32
    %127 = arith.index_cast %126 : i32 to index
    %c0_96 = arith.constant 0 : index
    %128 = vector.load %arg3[%127, %c0_96] : memref<16x512xf32, #tpu.memory_space<vmem>>, vector<1x512xf32>
    %c1_97 = arith.constant 1 : index
    %c0_98 = arith.constant 0 : index
    %c0_99 = arith.constant 0 : index
    %129 = vector.load %arg6[%c1_97, %c0_98, %c0_99] : memref<2x2x1xf32, #tpu.memory_space<vmem>>, vector<1x2x1xf32>
    %130 = vector.shape_cast %129 : vector<1x2x1xf32> to vector<2x1xf32>
    %131 = vector.broadcast %128 : vector<1x512xf32> to vector<2x512xf32>
    %132 = arith.mulf %124, %131 : vector<2x512xf32>
    %cst_100 = arith.constant dense<0.000000e+00> : vector<2xf32>
    %133 = vector.multi_reduction <add>, %132, %cst_100 [1] : vector<2x512xf32> to vector<2xf32>
    %134 = vector.shape_cast %133 : vector<2xf32> to vector<2x1xf32>
    %135 = arith.addf %130, %134 : vector<2x1xf32>
    %c1_101 = arith.constant 1 : index
    %c0_102 = arith.constant 0 : index
    %c0_103 = arith.constant 0 : index
    %136 = vector.load %arg6[%c1_101, %c0_102, %c0_103] : memref<2x2x1xf32, #tpu.memory_space<vmem>>, vector<1x2x1xf32>
    %137 = vector.shape_cast %136 : vector<1x2x1xf32> to vector<2x1xf32>
    %138 = vector.shape_cast %135 : vector<2x1xf32> to vector<1x2x1xf32>
    tpu.vector_store %arg6[%c1_101, %c0_102, %c0_103], %138 {strides = array<i32>} : memref<2x2x1xf32, #tpu.memory_space<vmem>>, vector<1x2x1xf32>,
    %c3_i32_104 = arith.constant 3 : i32
    %139 = arith.cmpi eq, %arg1, %c3_i32_104 : i32
    %140 = arith.extui %139 : i1 to i32
    %c0_i32_105 = arith.constant 0 : i32
    %141 = arith.cmpi ne, %140, %c0_i32_105 : i32
    scf.if %141 {
      %c0_106 = arith.constant 0 : index
      %c0_107 = arith.constant 0 : index
      %c0_108 = arith.constant 0 : index
      %142 = vector.load %arg6[%c0_106, %c0_107, %c0_108] : memref<2x2x1xf32, #tpu.memory_space<vmem>>, vector<2x2x1xf32>
      %c0_109 = arith.constant 0 : index
      %143 = memref.load %arg4[%c0_109] : memref<1xf32, #tpu.memory_space<smem>>
      %144 = vector.broadcast %143 : f32 to vector<2x2x1xf32>
      %145 = arith.addf %142, %144 : vector<2x2x1xf32>
      %c0_110 = arith.constant 0 : index
      %c0_111 = arith.constant 0 : index
      %c0_112 = arith.constant 0 : index
      %c0_113 = arith.constant 0 : index
      %146 = vector.load %arg5[%c0_110, %c0_111, %c0_112, %c0_113] : memref<2x1x2x1xf32, #tpu.memory_space<vmem>>, vector<2x1x2x1xf32>
      %147 = vector.shape_cast %146 : vector<2x1x2x1xf32> to vector<2x2x1xf32>
      %148 = vector.shape_cast %145 : vector<2x2x1xf32> to vector<2x1x2x1xf32>
      tpu.vector_store %arg5[%c0_110, %c0_111, %c0_112, %c0_113], %148 {strides = array<i32>} : memref<2x1x2x1xf32, #tpu.memory_space<vmem>>, vector<2x1x2x1xf32>,
    } else {
    }
    return
  }
  func.func @transform_0(%arg0: i32, %arg1: i32) -> (i32, i32, i32, i32) {
    %0 = arith.addi %arg0, %arg1 : i32
    %c0_i32 = arith.constant 0 : i32
    %c0_i32_0 = arith.constant 0 : i32
    %c0_i32_1 = arith.constant 0 : i32
    %c0_i32_2 = arith.constant 0 : i32
    return %c0_i32, %0, %c0_i32_0, %c0_i32_1 : i32, i32, i32, i32
  }
  func.func @transform_1(%arg0: i32, %arg1: i32) -> (i32, i32) {
    %c0_i32 = arith.constant 0 : i32
    %c0_i32_0 = arith.constant 0 : i32
    %c0_i32_1 = arith.constant 0 : i32
    return %c0_i32, %c0_i32_0 : i32, i32
  }
  func.func @transform_2(%arg0: i32, %arg1: i32) -> i32 {
    %c0_i32 = arith.constant 0 : i32
    %c0_i32_0 = arith.constant 0 : i32
    return %c0_i32 : i32
  }
  func.func @transform_3(%arg0: i32, %arg1: i32) -> (i32, i32, i32, i32) {
    %c0_i32 = arith.constant 0 : i32
    %c0_i32_0 = arith.constant 0 : i32
    %c0_i32_1 = arith.constant 0 : i32
    %c0_i32_2 = arith.constant 0 : i32
    return %c0_i32, %arg0, %c0_i32_0, %c0_i32_1 : i32, i32, i32, i32
  }
}

</mosaic_0001>

<bundles_post_ra>
// kernel: patchgan_forward.11
= control target key start
LH: loop header
LB: loop body
LE: loop exit
PB: predicated region body
PF: predicated region fallthrough
CT: control target
= control target key end

     0   :  { %s1462_s12 = smov 0   ;;  %s1464_s13 = smov 0   ;;  %s1663_s0 = inlined_call_operand.vmem [shape: bf16[2,34,2,17,8], index: 0, kind: input, shape index: {}]   ;;  %s1664_s1 = inlined_call_operand.vmem [shape: bf16[16,8,128], index: 1, kind: input, shape index: {}]   ;;  %s1665_s2 = inlined_call_operand.vmem [shape: f32[1,128], index: 2, kind: input, shape index: {}]   ;;  %s1666_s3 = inlined_call_operand.vmem [shape: bf16[2,16,16,128], index: 3, kind: output, shape index: {}]  }
   0x1   :  { %s1466_s14 = smov 0   ;;  %s1468_s15 = smov 0  }
   0x2   :  { %s1470_s16 = smov 0   ;;  %s1472_s17 = smov 0  }
   0x3   :  { %s1474_s18 = smov 0   ;;  %s1476_s19 = smov 0  }
   0x4   :  { %s1478_s20 = smov 0  }
   0x5 LB: > { %s1120_s21 = sadd.s32 4294967295, %s1437_s20   ;;  %s25_s22 = sadd.s32 1, %s1429_s18  ;;  %s1437_s20 = sphi %s1478_s20, %s13_s20   ;;  %s1433_s19 = sphi %s1476_s19, %s1675_s19   ;;  %s1429_s18 = sphi %s1474_s18, %s1674_s18   ;;  %s1425_s17 = sphi %s1472_s17, %s1673_s17   ;;  %s1421_s16 = sphi %s1470_s16, %s1672_s16   ;;  %s1417_s15 = sphi %s1468_s15, %s1671_s15   ;;  %s1413_s14 = sphi %s1466_s14, %s1670_s14   ;;  %s1409_s13 = sphi %s1464_s13, %s1669_s13   ;;  %s1405_s12 = sphi %s1462_s12, %s1668_s12  }
   0x6   : > { %p26_p0 = scmp.ge.s32.totalorder %s25_s22, 4  ;;  %s28_s23 = sadd.s32 1, %s1433_s19 }
   0x7   : > { %s1122_s24 = sshll.u32 %s1433_s19, 1  ;;  %s43_s25 = sadd.s32 1, %s1417_s15 }
   0x8   : > { %s1677_s22 = smov (%p26_p0, %s25_s22), 0  ;;  %s1679_s23 = smov (!%p26_p0, %s28_s23), %s1433_s19 }
   0x9   : > { %s37_s26 = sadd.s32 %s1429_s18, %s1122_s24  ;;  %p50_p1 = scmp.ne.s32.totalorder %s1417_s15, %s1413_s14 }
   0xa   : > { %p30_p2 = scmp.ge.s32.totalorder %s1679_s23, 16  ;;  %p51_p3 = scmp.eq.s32.totalorder %s1437_s20, 0 }
   0xb   : > { %s123_s27 = sadd.s32 1, %s1409_s13  ;;  %p133_p4 = scmp.ne.s32.totalorder %s1409_s13, %s1405_s12 }
   0xc   : > { %s1681_s23 = smov (%p30_p2, %s1679_s23), 0  ;;  %p52_p5 = por %p51_p3, %p50_p1 }
   0xd   : > { %p134_p6 = scmp.eq.s32.totalorder %s1120_s21, 63  ;;  %s1123_s28 = sshll.u32 %s1681_s23, 1 }
   0xe   : > { %s118_s29 = ssub.s32 %s1433_s19, %s1681_s23  ;;  %s39_s30 = sadd.s32 %s1123_s28, %s1677_s22 }
   0xf   : > { %p121_p7 = scmp.eq.s32.totalorder %s118_s29, 0  ;;  %s40_s4 = ssub.s32 %s37_s26, %s39_s30 }
  0x10   : > { %p1528_p8 = por %p134_p6, %p133_p4  ;;  %p41_p9 = scmp.eq.s32.totalorder %s40_s4, 0 }
  0x11   : > { %s1533_s6 = scalar_select %p121_p7, %s1409_s13, %s123_s27  }
  0x12   : > { %s1536_s7 = scalar_select %p41_p9, %s1417_s15, %s43_s25  }
  0x13   : > { %p1127_p10 = scmp.ge.s32.totalorder %s1437_s20, 64 }
  0x15   : > { %169 = sbr.rel (%p1127_p10) target bundleno = 36 (0x24), region = 24 }
  0x1c   : > { %172 = sbr.rel (!%p52_p5) target bundleno = 36 (0x24), region = 28  ;;  %s174_s8 = sand.u32 (%p52_p5), 1, %s1417_s15  }
  0x1d   : > { %s1278_s9 = smul.u32 (%p52_p5), 24, %s37_s26 }
  0x1e   : > { %s1277_s10 = smul.u32 (%p52_p5), 48, %s174_s8 }
  0x1f   : > { %s181_s24 = scalar_lea.vmem (%p52_p5), %s1663_s0, %s1278_s9 }
  0x20   : > { %v197_v0 = vld [vmem:[%s181_s24] sm:$0xff] (%p52_p5)   ;;  %v201_v1 = vld [vmem:[%s181_s24 + $0x8] sm:$0xff] (%p52_p5)   ;;  %v205_v2 = vld [vmem:[%s181_s24 + $0x10] sm:$0xff] (%p52_p5)   ;;  %s176_s28 = scalar_lea.vmem (%p52_p5), [#allocation3], %s1277_s10 }
  0x21   : > { %198 = vst [vmem:[%s176_s28] sm:$0xff] (%p52_p5), %v197_v0   ;;  %202 = vst [vmem:[%s176_s28 + $0x8] sm:$0xff] (%p52_p5), %v201_v1   ;;  %v209_v3 = vld [vmem:[%s181_s24 + $0x330] sm:$0xff] (%p52_p5)   ;;  %v213_v4 = vld [vmem:[%s181_s24 + $0x338] sm:$0xff] (%p52_p5)  }
  0x22   : > { %206 = vst [vmem:[%s176_s28 + $0x10] sm:$0xff] (%p52_p5), %v205_v2   ;;  %v217_v5 = vld [vmem:[%s181_s24 + $0x340] sm:$0xff] (%p52_p5)   ;;  %210 = vst [vmem:[%s176_s28 + $0x18] sm:$0xff] (%p52_p5), %v209_v3  }
  0x23   : > { %214 = vst [vmem:[%s176_s28 + $0x20] sm:$0xff] %v213_v4   ;;  %218 = vst [vmem:[%s176_s28 + $0x28] sm:$0xff] %v217_v5  }
  0x24 PF: > { %p1130_p11 = scmp.ge.s32.totalorder %s1437_s20, 1  ;;  %p266_p12 = scmp.lt.s32.totalorder %s1437_s20, 65 }
  0x26   : > { %p267_p13 = pnand %p1130_p11, %p266_p12 }
  0x27   : > { %s273_s25 = sand.u32 (!%p267_p13), 1, %s1413_s14   ;;  %s299_s26 = sand.u32 (!%p267_p13), 1, %s1405_s12  }
  0x28   : > { %270 = sbr.rel (%p267_p13) target bundleno = 327 (0x147), region = 69  ;;  %s1131_s29 = sshll.u32 (!%p267_p13), %s299_s26, 4 }
  0x29   : > { %s1279_s27 = smul.u32 (!%p267_p13), 48, %s273_s25  ;;  %s1549_s4 = scalar_lea.vmem (!%p267_p13), [#allocation4], %s1131_s29 }
  0x2a   : > { %p1132_p0 = scmp.ne.s32.totalorder (!%p267_p13), %s1421_s16, 0 }
  0x2b   : > { %s1547_s30 = scalar_lea.vmem (!%p267_p13), [#allocation3], %s1279_s27 }
  0x2f   : > { %315 = sbr.rel (%p1132_p0) target bundleno = 54 (0x36), region = 77  ;;  %v1439_v6 = vmov (!%p1132_p0), 0.0  }
  0x30   : > { %316 = vst [vmem:[#allocation2] sm:$0xff] (!%p1132_p0), %v1439_v6  ;;  %317 = vst [vmem:[#allocation2 + $0x8] sm:$0xff] (!%p1132_p0), %v1439_v6 }
  0x31   : > { %318 = vst [vmem:[#allocation2 + $0x10] sm:$0xff] (!%p1132_p0), %v1439_v6  ;;  %319 = vst [vmem:[#allocation2 + $0x18] sm:$0xff] (!%p1132_p0), %v1439_v6 }
  0x36 PF: > { %s1193_s8 = sshll.u32 %s1421_s16, 4  ;;  %vm337_vm0 = vcmask 1043456   ;;  %v1440_v7 = vmov 0.0   ;;  %vm1441_vm1 = vmmov 0   ;;  %v1355_v8 = vld [vmem:[%s1547_s30] sm:$0xff]   ;;  %vm333_vm2 = vcmask 64512  }
  0x37   : > { %1229 = vmatprep.subr.bf16.mxu0 %v1440_v7  ;;  %s1557_s9 = scalar_lea.vmem %s1664_s1, %s1193_s8  ;;  %1231 = vmatprep.mubr.msk.bf16.mxu0 %vm1441_vm1, %v1440_v7  ;;  %v1356_v14 = vld [vmem:[%s1547_s30 + $0xc] sm:$0xff]   ;;  %v1357_v16 = vld [vmem:[%s1547_s30] sm:$0xff]   ;;  %v1358_v17 = vld [vmem:[%s1547_s30 + $0x8] ss:$0 sps:$4 sm:$0x11]   ;;  %p1182_p1 = scmp.ne.s32.totalorder %s1421_s16, 3 }
  0x38   : > { %v325_v9 = vld [vmem:[%s1557_s9] sm:$0xf]  ;;  %v1146_v10 = vld [vmem:[%s1557_s9 + $0x8] sm:$0xf]  ;;  %1235 = vmatprep.subr.bf16.mxu1 %v1440_v7  ;;  %v1141_v11 = vld [vmem:[%s1557_s9 + $0x4] sm:$0xf]  ;;  %1237 = vmatprep.mubr.msk.bf16.mxu1 %vm1441_vm1, %v1440_v7 }
  0x39   : > { %v339_v12 = vsel %vm337_vm0, %v325_v9, 0  ;;  %v404_v13 = vsel %vm337_vm0, %v1141_v11, 0  ;;  %v485_v15 = vsel %vm337_vm0, %v1146_v10, 0  ;;  %vm468_vm3 = vsmask.f32 7424  ;;  %v1359_v23 = vld [vmem:[%s1547_s30 + $0xc] sm:$0xff]  }
  0x3a   : > { %1230 = vmatpush3.bf16.msra.mxu0 %v339_v12  ;;  %1236 = vmatpush3.bf16.msra.mxu1 %v404_v13  ;;  %v1155_v18 = vld [vmem:[%s1557_s9 + $0xc] sm:$0xf]  ;;  %v470_v19 = vshrl.u32 %v1357_v16, 16  ;;  %v472_v20 = vshll.u32 %v1357_v16, 16  ;;  %v477_v21 = vshll.u32 %v1358_v17, 16  ;;  %v550_v28 = vshrl.u32 %v1359_v23, 16 }
  0x3b   : > { %1241 = vmatprep.subr.bf16.mxu0 %v1440_v7  ;;  %1247 = vmatprep.subr.bf16.mxu1 %v1440_v7  ;;  %v565_v22 = vsel %vm337_vm0, %v1155_v18, 0  ;;  %v1360_v26 = vld [vmem:[%s1547_s30 + $0x14] ss:$0 sps:$4 sm:$0x11]   ;;  %v615_v27 = vld [vmem:[%s1557_s9] sm:$0xf] }
  0x3c   : > { %v474_v24 = vrot.slane %v472_v20, 1  ;;  %v479_v25 = vrot.slane %v477_v21, 1  ;;  %v552_v29 = vshll.u32 %v1359_v23, 16  ;;  %v557_v31 = vshll.u32 %v1360_v26, 16  ;;  %v1165_v33 = vld [vmem:[%s1557_s9 + $0x4] sm:$0xf] }
  0x3d   : > { %1232 = vmatmul.mubr.msk.bf16.vlgmr.msra.gmra.mrb[0].mxu0 %vm333_vm2, %v1355_v8  ;;  %1238 = vmatmul.mubr.msk.bf16.vlgmr.msra.gmra.mrb[0].mxu1 %vm333_vm2, %v1356_v14  ;;  %v628_v35 = vsel %vm337_vm0, %v615_v27, 0  ;;  %v1363_v38 = vld [vmem:[%s1547_s30 + $0x18] sm:$0xff]   ;;  %v690_v39 = vsel %vm337_vm0, %v1165_v33, 0  ;;  %v1365_v40 = vld [vmem:[%s1547_s30 + $0x24] sm:$0xff]  }
  0x3e   : > { %1242 = vmatpush3.bf16.msra.mxu0 %v485_v15  ;;  %1243 = vmatprep.mubr.msk.bf16.mxu0 %vm1441_vm1, %v1440_v7  ;;  %v475_v30 = vor.u32 %v474_v24, %v470_v19  ;;  %v554_v32 = vrot.slane %v552_v29, 1  ;;  %v559_v36 = vrot.slane %v557_v31, 1  ;;  %v1364_v42 = vld [vmem:[%s1547_s30 + $0x20] ss:$0 sps:$4 sm:$0x11]   ;;  %v754_v43 = vshll.u32 %v1363_v38, 16 }
  0x3f   : > { %1253 = vmatprep.subr.bf16.mxu0 %v1440_v7  ;;  %1248 = vmatpush3.bf16.msra.mxu1 %v565_v22  ;;  %v1171_v44 = vld [vmem:[%s1557_s9 + $0x8] sm:$0xf]  ;;  %v1366_v45 = vld [vmem:[%s1547_s30 + $0x2c] ss:$0 sps:$4 sm:$0x11]   ;;  %v831_v46 = vshll.u32 %v1365_v40, 16 }
  0x40   : > { %1249 = vmatprep.mubr.msk.bf16.mxu1 %vm1441_vm1, %v1440_v7  ;;  %1259 = vmatprep.subr.bf16.mxu1 %v1440_v7  ;;  %v480_v34 = vsel %vm468_vm3, %v475_v30, %v479_v25  ;;  %v555_v37 = vor.u32 %v554_v32, %v550_v28  ;;  %v1361_v47 = vld [vmem:[%s1547_s30 + $0x18] sm:$0xff]   ;;  %v752_v48 = vshrl.u32 %v1363_v38, 16  ;;  %v756_v49 = vrot.slane %v754_v43, 1  ;;  %v1362_v52 = vld [vmem:[%s1547_s30 + $0x24] sm:$0xff]  }
  0x41   : > { %v759_v50 = vshll.u32 %v1364_v42, 16  ;;  %v1178_v51 = vld [vmem:[%s1557_s9 + $0xc] sm:$0xf]  ;;  %v767_v53 = vsel %vm337_vm0, %v1171_v44, 0  ;;  %v829_v54 = vshrl.u32 %v1365_v40, 16  ;;  %v833_v55 = vrot.slane %v831_v46, 1 }
  0x42   : > { %v560_v41 = vsel %vm468_vm3, %v555_v37, %v559_v36  ;;  %v836_v56 = vshll.u32 %v1366_v45, 16  ;;  %v844_v57 = vsel %vm337_vm0, %v1178_v51, 0  ;;  %v757_v58 = vor.u32 %v756_v49, %v752_v48  ;;  %v326_v0 = vld [vmem:[#allocation2] sm:$0xff]  ;;  %v327_v2 = vld [vmem:[#allocation2 + $0x8] sm:$0xff]  ;;  %v617_v26 = vld [vmem:[#allocation2 + $0x10] sm:$0xff] }
  0x43   : > { %v761_v59 = vrot.slane %v759_v50, 1  ;;  %v834_v60 = vor.u32 %v833_v55, %v829_v54  ;;  %v618_v28 = vld [vmem:[#allocation2 + $0x18] sm:$0xff]  ;;  %v1183_v54 = vld [vmem:[%s1665_s2] ss:$0 sm:$0xff] (!%p1182_p1) }
  0x44   : > { %v838_v61 = vrot.slane %v836_v56, 1 }
  0x45   : > { %1244 = vmatmul.mubr.msk.bf16.vlgmr.msra.gmra.mrb[4].mxu0 %vm333_vm2, %v480_v34  ;;  %1250 = vmatmul.mubr.msk.bf16.vlgmr.msra.gmra.mrb[4].mxu1 %vm333_vm2, %v560_v41  ;;  %v762_v62 = vsel %vm468_vm3, %v757_v58, %v761_v59 }
  0x46   : > { %1254 = vmatpush3.bf16.msra.mxu0 %v628_v35  ;;  %1255 = vmatprep.mubr.msk.bf16.mxu0 %vm1441_vm1, %v1440_v7  ;;  %v839_v63 = vsel %vm468_vm3, %v834_v60, %v838_v61 }
  0x47   : > { %1265 = vmatprep.subr.bf16.mxu0 %v1440_v7  ;;  %1260 = vmatpush3.bf16.msra.mxu1 %v690_v39 }
  0x48   : > { %1261 = vmatprep.mubr.msk.bf16.mxu1 %vm1441_vm1, %v1440_v7  ;;  %1271 = vmatprep.subr.bf16.mxu1 %v1440_v7 }
  0x4d   : > { %1256 = vmatmul.mubr.msk.bf16.vlgmr.msra.gmra.mrb[8].mxu0 %vm333_vm2, %v1361_v47  ;;  %1262 = vmatmul.mubr.msk.bf16.vlgmr.msra.gmra.mrb[8].mxu1 %vm333_vm2, %v1362_v52 }
  0x4e   : > { %1266 = vmatpush3.bf16.msra.mxu0 %v767_v53  ;;  %1267 = vmatprep.mubr.msk.bf16.mxu0 %vm1441_vm1, %v1440_v7 }
  0x4f   : > { %1272 = vmatpush3.bf16.msra.mxu1 %v844_v57  ;;  %1273 = vmatprep.mubr.msk.bf16.mxu1 %vm1441_vm1, %v1440_v7 }
  0x55   : > { %1268 = vmatmul.mubr.msk.bf16.vlgmr.msra.gmra.mrb[12].mxu0 %vm333_vm2, %v762_v62  ;;  %1274 = vmatmul.mubr.msk.bf16.vlgmr.msra.gmra.mrb[12].mxu1 %vm333_vm2, %v839_v63 }
 0x110   : > { %v375_v1 = vpop.f32.mrb[0].mxu0  ;;  %v440_v3 = vpop.f32.mrb[0].mxu1 }
 0x111   : > { %v382_v4 = vadd.f32 %v375_v1, %v326_v0  ;;  %v1233_v5 = vpop.f32.mrb[1].mxu0  ;;  %v1239_v6 = vpop.f32.mrb[1].mxu1 }
 0x112   : > { %v378_v8 = vpop.f32.mrb[2].mxu0  ;;  %v443_v9 = vpop.f32.mrb[2].mxu1 }
 0x113   : > { %v383_v7 = vadd.f32 %v378_v8, %v327_v2  ;;  %v1234_v10 = vpop.f32.mrb[3].mxu0  ;;  %v447_v11 = vadd.f32 %v440_v3, %v382_v4  ;;  %v1240_v12 = vpop.f32.mrb[3].mxu1 }
 0x115   : > { %v448_v13 = vadd.f32 %v443_v9, %v383_v7 }
 0x118   : > { %v521_v14 = vpop.f32.mrb[4].mxu0  ;;  %v601_v18 = vpop.f32.mrb[4].mxu1 }
 0x119   : > { %v528_v15 = vadd.f32 %v521_v14, %v447_v11  ;;  %v1245_v16 = vpop.f32.mrb[5].mxu0  ;;  %v1251_v22 = vpop.f32.mrb[5].mxu1 }
 0x11a   : > { %v524_v17 = vpop.f32.mrb[6].mxu0  ;;  %v604_v23 = vpop.f32.mrb[6].mxu1 }
 0x11b   : > { %v529_v19 = vadd.f32 %v524_v17, %v448_v13  ;;  %v1246_v20 = vpop.f32.mrb[7].mxu0  ;;  %v608_v21 = vadd.f32 %v601_v18, %v528_v15  ;;  %v1252_v25 = vpop.f32.mrb[7].mxu1 }
 0x11d   : > { %610 = vst [vmem:[#allocation2] sm:$0xff] %v608_v21  ;;  %v609_v24 = vadd.f32 %v604_v23, %v529_v19 }
 0x11f   : > { %611 = vst [vmem:[#allocation2 + $0x8] sm:$0xff] %v609_v24 }
 0x120   : > { %v664_v27 = vpop.f32.mrb[8].mxu0  ;;  %v726_v32 = vpop.f32.mrb[8].mxu1 }
 0x121   : > { %v671_v29 = vadd.f32 %v664_v27, %v617_v26  ;;  %v1257_v30 = vpop.f32.mrb[9].mxu0  ;;  %v1263_v36 = vpop.f32.mrb[9].mxu1 }
 0x122   : > { %v667_v31 = vpop.f32.mrb[10].mxu0  ;;  %v729_v37 = vpop.f32.mrb[10].mxu1 }
 0x123   : > { %v672_v33 = vadd.f32 %v667_v31, %v618_v28  ;;  %v1258_v34 = vpop.f32.mrb[11].mxu0  ;;  %v733_v35 = vadd.f32 %v726_v32, %v671_v29  ;;  %v1264_v39 = vpop.f32.mrb[11].mxu1 }
 0x124   : > { %v895_v52 = vld [vmem:[#allocation2] sm:$0xff] (!%p1182_p1) }
 0x125   : > { %v734_v38 = vadd.f32 %v729_v37, %v672_v33  ;;  %v906_v55 = vadd.f32 (!%p1182_p1), %v1183_v54, %v895_v52 }
 0x126   : > { %v896_v53 = vld [vmem:[#allocation2 + $0x8] sm:$0xff] (!%p1182_p1) }
 0x127   : > { %v907_v56 = vadd.f32 (!%p1182_p1), %v1183_v54, %v896_v53  ;;  %vm910_vm4 = vcmp.ge.f32.partialorder (!%p1182_p1), %v906_v55, 0.0  ;;  %v914_v61 = vmul.f32 (!%p1182_p1), 0.2, %v906_v55 }
 0x128   : > { %v803_v40 = vpop.f32.mrb[12].mxu0  ;;  %v880_v44 = vpop.f32.mrb[12].mxu1 }
 0x129   : > { %v810_v41 = vadd.f32 %v803_v40, %v733_v35  ;;  %v1269_v42 = vpop.f32.mrb[13].mxu0  ;;  %v1275_v48 = vpop.f32.mrb[13].mxu1  ;;  %894 = sbr.rel (%p1182_p1) target bundleno = 319 (0x13f), region = 81  ;;  %vm911_vm5 = vcmp.ge.f32.partialorder (!%p1182_p1), %v907_v56, 0.0  ;;  %v915_v62 = vmul.f32 (!%p1182_p1), 0.2, %v907_v56  ;;  %v918_v1 = vsel (!%p1182_p1), %vm910_vm4, %v906_v55, %v914_v61 }
 0x12a   : > { %v806_v43 = vpop.f32.mrb[14].mxu0  ;;  %v883_v49 = vpop.f32.mrb[14].mxu1 }
 0x12b   : > { %v811_v45 = vadd.f32 %v806_v43, %v734_v38  ;;  %v1270_v46 = vpop.f32.mrb[15].mxu0  ;;  %v887_v47 = vadd.f32 %v880_v44, %v810_v41  ;;  %v1276_v51 = vpop.f32.mrb[15].mxu1  ;;  %v919_v2 = vsel (!%p1182_p1), %vm911_vm5, %v907_v56, %v915_v62 }
 0x12c   : > { %v1205_v3 = vpack.c.bf16 (!%p1182_p1), %v919_v2, %v918_v1 }
 0x12d   : > { %889 = vst [vmem:[#allocation2 + $0x10] sm:$0xff] %v887_v47  ;;  %v888_v50 = vadd.f32 %v883_v49, %v811_v45 }
 0x12e   : > { %1206 = vst [vmem:[%s1549_s4] sm:$0xff] (!%p1182_p1), %v1205_v3  }
 0x12f   : > { %890 = vst [vmem:[#allocation2 + $0x18] sm:$0xff] %v888_v50 }
 0x134   : > { %v897_v57 = vld [vmem:[#allocation2 + $0x10] sm:$0xff] }
 0x135   : > { %v908_v59 = vadd.f32 %v1183_v54, %v897_v57 }
 0x136   : > { %v898_v58 = vld [vmem:[#allocation2 + $0x18] sm:$0xff] }
 0x137   : > { %v909_v60 = vadd.f32 %v1183_v54, %v898_v58  ;;  %vm912_vm6 = vcmp.ge.f32.partialorder %v908_v59, 0.0  ;;  %v916_v63 = vmul.f32 0.2, %v908_v59 }
 0x139   : > { %vm913_vm7 = vcmp.ge.f32.partialorder %v909_v60, 0.0  ;;  %v917_v0 = vmul.f32 0.2, %v909_v60  ;;  %v920_v4 = vsel %vm912_vm6, %v908_v59, %v916_v63 }
 0x13b   : > { %v921_v5 = vsel %vm913_vm7, %v909_v60, %v917_v0 }
 0x13c   : > { %v1210_v6 = vpack.c.bf16 %v921_v5, %v920_v4 }
 0x13e   : > { %1212 = vst [vmem:[%s1549_s4 + $0x8] sm:$0xff] %v1210_v6  }
 0x13f PF: > { %948 = sbr.rel (!%p1528_p8) target bundleno = 327 (0x147), region = 85  ;;  %s1201_s16 = sshll.u32 (%p1528_p8), %s1425_s17, 3 }
 0x140   : > { %s952_s28 = scalar_lea.vmem (%p1528_p8), %s1666_s3, %s1201_s16 }
 0x144   : > { %v968_v8 = vld [vmem:[%s1549_s4] sm:$0xff] (%p1528_p8)  }
 0x145   : > { %v972_v9 = vld [vmem:[%s1549_s4 + $0x8] sm:$0xff] (%p1528_p8)   ;;  %969 = vst [vmem:[%s952_s28] sm:$0xff] (%p1528_p8), %v968_v8  }
 0x146   : > { %973 = vst [vmem:[%s952_s28 + $0x80] sm:$0xff] %v972_v9  }
 0x147 PF: > { %s13_s20 = sadd.s32 1, %s1437_s20   ;;  %s1668_s12 = smov %s1409_s13 }
 0x148   : > { %p10_p2 = scmp.ge.s32.totalorder %s13_s20, 66   ;;  %s1669_s13 = smov %s1533_s6 }
 0x149   : > { %s1670_s14 = smov %s1417_s15  ;;  %s1671_s15 = smov %s1536_s7 }
 0x14a   : > { %s1672_s16 = smov %s1429_s18  ;;  %s1673_s17 = smov %s1433_s19 }
 0x14b   : > { %s1674_s18 = smov %s1677_s22  ;;  %s1675_s19 = smov %s1681_s23 }
 0x14c   :  { %12 = sbr.rel (!%p10_p2) target bundleno = 5 (0x5), region = 171 }

// kernel: patchgan_forward.14
= control target key start
LH: loop header
LB: loop body
LE: loop exit
PB: predicated region body
PF: predicated region fallthrough
CT: control target
= control target key end

     0   :  { %s664_s12 = smov 0   ;;  %s666_s13 = smov 0   ;;  %s712_s0 = inlined_call_operand.vmem [shape: bf16[2,64,128], index: 0, kind: input, shape index: {}]   ;;  %s713_s1 = inlined_call_operand.vmem [shape: f32[2,1,128], index: 1, kind: input, shape index: {}]   ;;  %s714_s2 = inlined_call_operand.vmem [shape: f32[2,1,128], index: 2, kind: input, shape index: {}]   ;;  %s715_s3 = inlined_call_operand.vmem [shape: bf16[2,64,128], index: 3, kind: output, shape index: {}]  }
   0x1   :  { %s668_s14 = smov 0  }
   0x2 LB: > { %s32_s15 = sadd.s32 1, %s638_s13  ;;  %p527_p0 = scmp.ge.s32.totalorder %s642_s14, 1  ;;  %s642_s14 = sphi %s668_s14, %s13_s14   ;;  %s638_s13 = sphi %s666_s13, %s717_s13   ;;  %s634_s12 = sphi %s664_s12, %s716_s12  }
   0x3   : > { %p34_p1 = scmp.ge.s32.totalorder %s32_s15, 2  ;;  %p198_p2 = scmp.lt.s32.totalorder %s642_s14, 3 }
   0x5   : > { %s719_s15 = smov (%p34_p1, %s32_s15), 0  ;;  %p199_p3 = pnand %p527_p0, %p198_p2 }
   0x6   : > { %p249_p4 = scmp.lt.s32.totalorder (!%p199_p3), %s634_s12, 1 }
   0x7   : > { %202 = sbr.rel (%p199_p3) target bundleno = 35 (0x23), region = 32 }
   0xe   : > { %s721_s12 = smov (!%p249_p4, %s634_s12), 1 }
   0xf   : > { %s544_s16 = sshll.u32 %s721_s12, 5  ;;  %s266_s19 = scalar_lea.vmem %s713_s1, %s721_s12 }
  0x10   : > { %s259_s22 = scalar_lea.vmem %s712_s0, %s544_s16  ;;  %s272_s25 = scalar_lea.vmem %s714_s2, %s721_s12  ;;  %v532_v0 = vld [vmem:[%s266_s19] ss:$0 sm:$0xff] }
  0x11   : > { %v555_v1 = vld [vmem:[%s259_s22] sm:$0xff]   ;;  %v590_v2 = vld [vmem:[%s259_s22 + $0x8] sm:$0xff]   ;;  %v591_v3 = vld [vmem:[%s259_s22 + $0x10] sm:$0xff]   ;;  %s284_s28 = scalar_lea.vmem %s715_s3, %s544_s16 }
  0x12   : > { %v556_v4 = vunpack.c.l.bf16 %v555_v1  ;;  %v557_v5 = vunpack.c.h.bf16 %v555_v1  ;;  %v560_v6 = vunpack.c.l.bf16 %v590_v2  ;;  %v561_v7 = vunpack.c.h.bf16 %v590_v2  ;;  %v592_v8 = vld [vmem:[%s259_s22 + $0x18] sm:$0xff]   ;;  %v533_v13 = vld [vmem:[%s272_s25] ss:$0 sm:$0xff] }
  0x13   : > { %v564_v9 = vunpack.c.l.bf16 %v591_v3  ;;  %v565_v10 = vunpack.c.h.bf16 %v591_v3  ;;  %v568_v11 = vunpack.c.l.bf16 %v592_v8  ;;  %v569_v12 = vunpack.c.h.bf16 %v592_v8 }
  0x14   : > { %v309_v14 = vmul.f32 %v556_v4, %v532_v0  ;;  %v310_v15 = vmul.f32 %v557_v5, %v532_v0  ;;  %v311_v16 = vmul.f32 %v560_v6, %v532_v0  ;;  %v312_v17 = vmul.f32 %v561_v7, %v532_v0 }
  0x15   : > { %v313_v18 = vmul.f32 %v564_v9, %v532_v0  ;;  %v314_v19 = vmul.f32 %v565_v10, %v532_v0  ;;  %v315_v20 = vmul.f32 %v568_v11, %v532_v0  ;;  %v316_v21 = vmul.f32 %v569_v12, %v532_v0 }
  0x16   : > { %v324_v22 = vadd.f32 %v533_v13, %v309_v14  ;;  %v325_v23 = vadd.f32 %v533_v13, %v310_v15  ;;  %v326_v24 = vadd.f32 %v533_v13, %v311_v16  ;;  %v327_v25 = vadd.f32 %v533_v13, %v312_v17 }
  0x17   : > { %v328_v26 = vadd.f32 %v533_v13, %v313_v18  ;;  %v329_v27 = vadd.f32 %v533_v13, %v314_v19  ;;  %v330_v28 = vadd.f32 %v533_v13, %v315_v20  ;;  %v331_v29 = vadd.f32 %v533_v13, %v316_v21 }
  0x18   : > { %vm332_vm0 = vcmp.ge.f32.partialorder %v324_v22, 0.0  ;;  %vm333_vm1 = vcmp.ge.f32.partialorder %v325_v23, 0.0  ;;  %v340_v30 = vmul.f32 0.2, %v324_v22  ;;  %v341_v31 = vmul.f32 0.2, %v325_v23 }
  0x19   : > { %vm334_vm2 = vcmp.ge.f32.partialorder %v326_v24, 0.0  ;;  %vm335_vm3 = vcmp.ge.f32.partialorder %v327_v25, 0.0  ;;  %v342_v32 = vmul.f32 0.2, %v326_v24  ;;  %v343_v33 = vmul.f32 0.2, %v327_v25 }
  0x1a   : > { %v348_v34 = vsel %vm332_vm0, %v324_v22, %v340_v30  ;;  %v349_v35 = vsel %vm333_vm1, %v325_v23, %v341_v31  ;;  %vm336_vm4 = vcmp.ge.f32.partialorder %v328_v26, 0.0  ;;  %vm337_vm5 = vcmp.ge.f32.partialorder %v329_v27, 0.0 }
  0x1b   : > { %v573_v36 = vpack.c.bf16 %v349_v35, %v348_v34  ;;  %v350_v37 = vsel %vm334_vm2, %v326_v24, %v342_v32  ;;  %v351_v38 = vsel %vm335_vm3, %v327_v25, %v343_v33  ;;  %v344_v39 = vmul.f32 0.2, %v328_v26 }
  0x1c   : > { %v578_v40 = vpack.c.bf16 %v351_v38, %v350_v37  ;;  %v345_v41 = vmul.f32 0.2, %v329_v27  ;;  %vm338_vm6 = vcmp.ge.f32.partialorder %v330_v28, 0.0  ;;  %vm339_vm7 = vcmp.ge.f32.partialorder %v331_v29, 0.0 }
  0x1d   : > { %574 = vst [vmem:[%s284_s28] sm:$0xff] %v573_v36   ;;  %v352_v42 = vsel %vm336_vm4, %v328_v26, %v344_v39  ;;  %v346_v43 = vmul.f32 0.2, %v330_v28  ;;  %v347_v44 = vmul.f32 0.2, %v331_v29 }
  0x1e   : > { %593 = vst [vmem:[%s284_s28 + $0x8] sm:$0xff] %v578_v40   ;;  %v353_v45 = vsel %vm337_vm5, %v329_v27, %v345_v41 }
  0x1f   : > { %v583_v46 = vpack.c.bf16 %v353_v45, %v352_v42  ;;  %v354_v47 = vsel %vm338_vm6, %v330_v28, %v346_v43  ;;  %v355_v48 = vsel %vm339_vm7, %v331_v29, %v347_v44 }
  0x20   : > { %v588_v49 = vpack.c.bf16 %v355_v48, %v354_v47 }
  0x21   : > { %594 = vst [vmem:[%s284_s28 + $0x10] sm:$0xff] %v583_v46  }
  0x22   : > { %595 = vst [vmem:[%s284_s28 + $0x18] sm:$0xff] %v588_v49  }
  0x23 PF: > { %s13_s14 = sadd.s32 1, %s642_s14   ;;  %s716_s12 = smov %s638_s13 }
  0x24   : > { %p10_p5 = scmp.ge.s32.totalorder %s13_s14, 4   ;;  %s717_s13 = smov %s719_s15 }
  0x26   :  { %12 = sbr.rel (!%p10_p5) target bundleno = 2 (0x2), region = 68 }

// kernel: patchgan_forward.13
= control target key start
LH: loop header
LB: loop body
LE: loop exit
PB: predicated region body
PF: predicated region fallthrough
CT: control target
= control target key end

     0   :  { %s618_s15 = smov 0   ;;  %s620_s16 = smov 0   ;;  %s674_s0 = inlined_call_operand.vmem [shape: bf16[2,64,128], index: 0, kind: input, shape index: {}]   ;;  %s675_s1 = inlined_call_operand.vmem [shape: f32[1,128], index: 1, kind: input, shape index: {}]   ;;  %s676_s2 = inlined_call_operand.vmem [shape: f32[1,128], index: 2, kind: input, shape index: {}]   ;;  %s677_s3 = inlined_call_operand.vmem [shape: f32[2,1,128], index: 3, kind: output, shape index: {0}]   ;;  %s678_s4 = inlined_call_operand.vmem [shape: f32[2,1,128], index: 4, kind: output, shape index: {1}]  }
   0x1   :  { %s622_s17 = smov 0  }
   0x2 LB: > { %s34_s18 = sadd.s32 1, %s586_s16  ;;  %p516_p0 = scmp.ge.s32.totalorder %s590_s17, 1  ;;  %s590_s17 = sphi %s622_s17, %s15_s17   ;;  %s586_s16 = sphi %s620_s16, %s680_s16   ;;  %s582_s15 = sphi %s618_s15, %s679_s15  }
   0x3   : > { %p36_p1 = scmp.ge.s32.totalorder %s34_s18, 2  ;;  %p216_p2 = scmp.lt.s32.totalorder %s590_s17, 3 }
   0x5   : > { %s682_s18 = smov (%p36_p1, %s34_s18), 0  ;;  %p217_p3 = pnand %p516_p0, %p216_p2 }
   0x6   : > { %p263_p4 = scmp.lt.s32.totalorder (!%p217_p3), %s582_s15, 1  ;;  %v592_v0 = vmov (!%p217_p3), 0.0   ;;  %v366_v58 = vld [vmem:[%s675_s1] sm:$0x1] (!%p217_p3) }
   0x7   : > { %220 = sbr.rel (%p217_p3) target bundleno = 82 (0x52), region = 32  ;;  %v367_v61 = vld [vmem:[%s676_s2] sm:$0x1] (!%p217_p3) }
   0xe   : > { %s684_s15 = smov (!%p263_p4, %s582_s15), 1 }
   0xf   : > { %s521_s19 = sshll.u32 %s684_s15, 5  ;;  %s639_s22 = scalar_lea.vmem %s677_s3, %s684_s15 }
  0x10   : > { %s273_s25 = scalar_lea.vmem %s674_s0, %s521_s19  ;;  %297 = vst [vmem:[%s639_s22] sm:$0x1] %v592_v0  ;;  %s648_s28 = scalar_lea.vmem %s678_s4, %s684_s15 }
  0x11   : > { %v523_v1 = vld [vmem:[%s273_s25] sm:$0xff]   ;;  %v538_v2 = vld [vmem:[%s273_s25 + $0x8] sm:$0xff]   ;;  %v539_v3 = vld [vmem:[%s273_s25 + $0x10] sm:$0xff]   ;;  %298 = vst [vmem:[%s648_s28] sm:$0x1] %v592_v0 }
  0x12   : > { %v524_v4 = vunpack.c.l.bf16 %v523_v1  ;;  %v525_v5 = vunpack.c.h.bf16 %v523_v1  ;;  %v528_v6 = vunpack.c.l.bf16 %v538_v2  ;;  %v529_v7 = vunpack.c.h.bf16 %v538_v2  ;;  %v540_v13 = vld [vmem:[%s273_s25 + $0x18] sm:$0xff]  }
  0x13   : > { %v532_v8 = vunpack.c.l.bf16 %v539_v3  ;;  %v533_v17 = vunpack.c.h.bf16 %v539_v3  ;;  %v536_v18 = vunpack.c.l.bf16 %v540_v13  ;;  %v537_v22 = vunpack.c.h.bf16 %v540_v13 }
  0x14   : > { %v316_v9 = vadd.f32 %v525_v5, %v524_v4  ;;  %v332_v10 = vmul.f32 %v524_v4, %v524_v4  ;;  %v333_v11 = vmul.f32 %v525_v5, %v525_v5  ;;  %v334_v12 = vmul.f32 %v528_v6, %v528_v6 }
  0x15   : > { %v335_v15 = vmul.f32 %v529_v7, %v529_v7  ;;  %v336_v20 = vmul.f32 %v532_v8, %v532_v8  ;;  %v337_v24 = vmul.f32 %v533_v17, %v533_v17  ;;  %v338_v27 = vmul.f32 %v536_v18, %v536_v18 }
  0x16   : > { %v317_v14 = vadd.f32 %v528_v6, %v316_v9  ;;  %v340_v16 = vadd.f32 %v333_v11, %v332_v10  ;;  %v339_v30 = vmul.f32 %v537_v22, %v537_v22 }
  0x17   : > { %v315_v44 = vld [vmem:[%s639_s22] sm:$0x1] }
  0x18   : > { %v318_v19 = vadd.f32 %v529_v7, %v317_v14  ;;  %v341_v21 = vadd.f32 %v340_v16, %v334_v12  ;;  %v331_v47 = vld [vmem:[%s648_s28] sm:$0x1] }
  0x1a   : > { %v319_v23 = vadd.f32 %v532_v8, %v318_v19  ;;  %v342_v25 = vadd.f32 %v341_v21, %v335_v15 }
  0x1c   : > { %v320_v26 = vadd.f32 %v533_v17, %v319_v23  ;;  %v343_v28 = vadd.f32 %v342_v25, %v336_v20 }
  0x1e   : > { %v321_v29 = vadd.f32 %v536_v18, %v320_v26  ;;  %v344_v31 = vadd.f32 %v343_v28, %v337_v24 }
  0x20   : > { %v322_v32 = vadd.f32 %v537_v22, %v321_v29  ;;  %v345_v33 = vadd.f32 %v344_v31, %v338_v27 }
  0x22   : > { %v323_v34 = vrot.slane %v322_v32, 4  ;;  %v346_v35 = vadd.f32 %v345_v33, %v339_v30 }
  0x24   : > { %v324_v36 = vadd.f32 %v323_v34, %v322_v32  ;;  %v347_v37 = vrot.slane %v346_v35, 4 }
  0x26   : > { %v325_v38 = vrot.slane %v324_v36, 2  ;;  %v348_v39 = vadd.f32 %v347_v37, %v346_v35 }
  0x28   : > { %v326_v40 = vadd.f32 %v325_v38, %v324_v36  ;;  %v349_v41 = vrot.slane %v348_v39, 2 }
  0x2a   : > { %v327_v42 = vrot.slane %v326_v40, 1  ;;  %v350_v43 = vadd.f32 %v349_v41, %v348_v39 }
  0x2c   : > { %v328_v45 = vadd.f32 %v327_v42, %v326_v40  ;;  %v351_v46 = vrot.slane %v350_v43, 1 }
  0x2e   : > { %v329_v48 = vadd.f32 %v328_v45, %v315_v44  ;;  %v352_v49 = vadd.f32 %v351_v46, %v350_v43 }
  0x30   : > { %330 = vst [vmem:[%s639_s22] sm:$0x1] %v329_v48  ;;  %v353_v50 = vadd.f32 %v352_v49, %v331_v47 }
  0x32   : > { %354 = vst [vmem:[%s648_s28] sm:$0x1] %v353_v50 }
  0x37   : > { %v358_v51 = vld [vmem:[%s639_s22] sm:$0x1] }
  0x38   : > { %v359_v52 = vmul.f32 0.015625, %v358_v51 }
  0x39   : > { %v360_v53 = vld [vmem:[%s648_s28] sm:$0x1] }
  0x3a   : > { %v361_v54 = vmul.f32 0.015625, %v360_v53  ;;  %v362_v55 = vmul.f32 %v359_v52, %v359_v52 }
  0x3c   : > { %v363_v56 = vsub.f32 %v361_v54, %v362_v55 }
  0x3e   : > { %v364_v57 = vadd.f32 1e-05, %v363_v56 }
  0x40   : > { %566 = vrsqrt.f32 %v364_v57 }
  0x4a   : > { %v567_v59 = vpop.eup %566 }
  0x4b   : > { %v368_v60 = vmul.f32 %v567_v59, %v366_v58 }
  0x4d   : > { %369 = vst [vmem:[%s639_s22] sm:$0x1] %v368_v60  ;;  %v370_v62 = vmul.f32 %v368_v60, %v359_v52 }
  0x4f   : > { %v371_v63 = vsub.f32 %v367_v61, %v370_v62 }
  0x51   : > { %372 = vst [vmem:[%s648_s28] sm:$0x1] %v371_v63 }
  0x52 PF: > { %s15_s17 = sadd.s32 1, %s590_s17   ;;  %s679_s15 = smov %s586_s16 }
  0x53   : > { %p12_p5 = scmp.ge.s32.totalorder %s15_s17, 4   ;;  %s680_s16 = smov %s682_s18 }
  0x55   :  { %14 = sbr.rel (!%p12_p5) target bundleno = 2 (0x2), region = 88 }

// kernel: patchgan_forward.12
= control target key start
LH: loop header
LB: loop body
LE: loop exit
PB: predicated region body
PF: predicated region fallthrough
CT: control target
= control target key end

     0   :  { %s2114_s12 = smov 0   ;;  %s2116_s13 = smov 0   ;;  %s2402_s0 = inlined_call_operand.vmem [shape: bf16[2,18,2,9,128], index: 0, kind: input, shape index: {}]   ;;  %s2403_s1 = inlined_call_operand.vmem [shape: bf16[16,128,128], index: 1, kind: input, shape index: {}]   ;;  %s2404_s2 = inlined_call_operand.vmem [shape: f32[1,128], index: 2, kind: input, shape index: {}]   ;;  %s2405_s3 = inlined_call_operand.vmem [shape: bf16[2,8,8,128], index: 3, kind: output, shape index: {}]  }
   0x1   :  { %s2118_s14 = smov 0   ;;  %s2120_s15 = smov 0  }
   0x2   :  { %s2122_s16 = smov 0   ;;  %s2124_s17 = smov 0  }
   0x3   :  { %s2126_s18 = smov 0   ;;  %s2128_s19 = smov 0  }
   0x4   :  { %s2130_s20 = smov 0  }
   0x5 LB: > { %s1429_s21 = sadd.s32 4294967295, %s2089_s20   ;;  %s25_s22 = sadd.s32 1, %s2081_s18  ;;  %s2089_s20 = sphi %s2130_s20, %s13_s20   ;;  %s2085_s19 = sphi %s2128_s19, %s2414_s19   ;;  %s2081_s18 = sphi %s2126_s18, %s2413_s18   ;;  %s2077_s17 = sphi %s2124_s17, %s2412_s17   ;;  %s2073_s16 = sphi %s2122_s16, %s2411_s16   ;;  %s2069_s15 = sphi %s2120_s15, %s2410_s15   ;;  %s2065_s14 = sphi %s2118_s14, %s2409_s14   ;;  %s2061_s13 = sphi %s2116_s13, %s2408_s13   ;;  %s2057_s12 = sphi %s2114_s12, %s2407_s12  }
   0x6   : > { %p26_p0 = scmp.ge.s32.totalorder %s25_s22, 4  ;;  %s28_s23 = sadd.s32 1, %s2085_s19 }
   0x7   : > { %s1431_s24 = sshll.u32 %s2085_s19, 1  ;;  %s43_s25 = sadd.s32 1, %s2069_s15 }
   0x8   : > { %s2416_s22 = smov (%p26_p0, %s25_s22), 0  ;;  %s2418_s23 = smov (!%p26_p0, %s28_s23), %s2085_s19 }
   0x9   : > { %s37_s26 = sadd.s32 %s2081_s18, %s1431_s24  ;;  %p50_p1 = scmp.ne.s32.totalorder %s2069_s15, %s2065_s14 }
   0xa   : > { %p30_p2 = scmp.ge.s32.totalorder %s2418_s23, 8  ;;  %p51_p3 = scmp.eq.s32.totalorder %s2089_s20, 0 }
   0xb   : > { %s123_s27 = sadd.s32 1, %s2061_s13  ;;  %p133_p4 = scmp.ne.s32.totalorder %s2061_s13, %s2057_s12 }
   0xc   : > { %s2420_s23 = smov (%p30_p2, %s2418_s23), 0  ;;  %p52_p5 = por %p51_p3, %p50_p1 }
   0xd   : > { %p134_p6 = scmp.eq.s32.totalorder %s1429_s21, 31  ;;  %s1432_s28 = sshll.u32 %s2420_s23, 1 }
   0xe   : > { %s118_s29 = ssub.s32 %s2085_s19, %s2420_s23  ;;  %s39_s30 = sadd.s32 %s1432_s28, %s2416_s22 }
   0xf   : > { %p121_p7 = scmp.eq.s32.totalorder %s118_s29, 0  ;;  %s40_s4 = ssub.s32 %s37_s26, %s39_s30 }
  0x10   : > { %p2180_p8 = por %p134_p6, %p133_p4  ;;  %p41_p9 = scmp.eq.s32.totalorder %s40_s4, 0 }
  0x11   : > { %s2185_s6 = scalar_select %p121_p7, %s2061_s13, %s123_s27  }
  0x12   : > { %s2188_s7 = scalar_select %p41_p9, %s2069_s15, %s43_s25  }
  0x13   : > { %p1436_p10 = scmp.ge.s32.totalorder %s2089_s20, 32 }
  0x15   : > { %169 = sbr.rel (%p1436_p10) target bundleno = 35 (0x23), region = 24 }
  0x1c   : > { %172 = sbr.rel (!%p52_p5) target bundleno = 35 (0x23), region = 28  ;;  %s174_s8 = sand.u32 (%p52_p5), 1, %s2069_s15  }
  0x1d   : > { %s1633_s9 = sshll.u32 (%p52_p5), %s37_s26, 4  ;;  %s1437_s10 = sshll.u32 (%p52_p5), %s174_s8, 5 }
  0x1e   : > { %s181_s24 = scalar_lea.vmem (%p52_p5), %s2402_s0, %s1633_s9  ;;  %s176_s28 = scalar_lea.vmem (%p52_p5), [#allocation3], %s1437_s10 }
  0x1f   : > { %v197_v0 = vld [vmem:[%s181_s24] sm:$0xff] (%p52_p5)   ;;  %v201_v1 = vld [vmem:[%s181_s24 + $0x8] sm:$0xff] (%p52_p5)  }
  0x20   : > { %v205_v2 = vld [vmem:[%s181_s24 + $0x120] sm:$0xff] (%p52_p5)   ;;  %198 = vst [vmem:[%s176_s28] sm:$0xff] (%p52_p5), %v197_v0   ;;  %202 = vst [vmem:[%s176_s28 + $0x8] sm:$0xff] (%p52_p5), %v201_v1   ;;  %v209_v3 = vld [vmem:[%s181_s24 + $0x128] sm:$0xff] (%p52_p5)  }
  0x21   : > { %206 = vst [vmem:[%s176_s28 + $0x10] sm:$0xff] (%p52_p5), %v205_v2   ;;  %210 = vst [vmem:[%s176_s28 + $0x18] sm:$0xff] (%p52_p5), %v209_v3  }
  0x23 PF: > { %p1441_p11 = scmp.ge.s32.totalorder %s2089_s20, 1  ;;  %p250_p12 = scmp.lt.s32.totalorder %s2089_s20, 33 }
  0x25   : > { %p251_p13 = pnand %p1441_p11, %p250_p12 }
  0x26   : > { %s257_s25 = sand.u32 (!%p251_p13), 1, %s2065_s14   ;;  %s283_s26 = sand.u32 (!%p251_p13), 1, %s2057_s12  }
  0x27   : > { %254 = sbr.rel (%p251_p13) target bundleno = 420 (0x1a4), region = 69  ;;  %s1442_s27 = sshll.u32 (!%p251_p13), %s257_s25, 5 }
  0x28   : > { %s1443_s29 = sshll.u32 (!%p251_p13), %s283_s26, 3  ;;  %s2199_s30 = scalar_lea.vmem (!%p251_p13), [#allocation3], %s1442_s27 }
  0x29   : > { %s2201_s4 = scalar_lea.vmem (!%p251_p13), [#allocation4], %s1443_s29  ;;  %p1444_p0 = scmp.ne.s32.totalorder (!%p251_p13), %s2073_s16, 0 }
  0x2e   : > { %299 = sbr.rel (%p1444_p0) target bundleno = 53 (0x35), region = 77  ;;  %v2091_v4 = vmov (!%p1444_p0), 0.0  }
  0x2f   : > { %300 = vst [vmem:[#allocation2] sm:$0xff] (!%p1444_p0), %v2091_v4  ;;  %301 = vst [vmem:[#allocation2 + $0x8] sm:$0xff] (!%p1444_p0), %v2091_v4 }
  0x35 PF: > { %s1635_s8 = sshll.u32 %s2073_s16, 8  ;;  %v2092_v5 = vmov 0.0   ;;  %vm2093_vm0 = vmmov 0   ;;  %v302_v22 = vld [vmem:[%s2199_s30] sm:$0xf]  ;;  %p1627_p1 = scmp.ne.s32.totalorder %s2073_s16, 3 }
  0x36   : > { %1716 = vmatprep.subr.bf16.mxu0 %v2092_v5  ;;  %s2209_s9 = scalar_lea.vmem %s2403_s1, %s1635_s8  ;;  %1736 = vmatprep.subr.bf16.mxu1 %v2092_v5  ;;  %v1456_v24 = vld [vmem:[%s2199_s30 + $0x8] sm:$0xf]  ;;  %v1981_v34 = vld [vmem:[%s2199_s30] sm:$0x1f]   ;;  %v1539_v2 = vld [vmem:[%s2199_s30 + $0x10] sm:$0xf] }
  0x37   : > { %v1951_v6 = vld [vmem:[%s2209_s9] sm:$0xff]   ;;  %1732 = vmatprep.mubr.msk.bf16.mxu0 %vm2093_vm0, %v2092_v5  ;;  %1752 = vmatprep.mubr.msk.bf16.mxu1 %vm2093_vm0, %v2092_v5  ;;  %v1952_v7 = vld [vmem:[%s2209_s9 + $0x8] sm:$0xff]   ;;  %v1954_v10 = vld [vmem:[%s2209_s9 + $0x10] sm:$0xff]   ;;  %v558_v38 = vshll.u32 %v1981_v34, 16  ;;  %v556_v42 = vshrl.u32 %v1981_v34, 16 }
  0x38   : > { %1717 = vmatpush3.bf16.msra.mxu0 %v1951_v6  ;;  %v1953_v8 = vld [vmem:[%s2209_s9 + $0x40] sm:$0xff]   ;;  %v1955_v9 = vld [vmem:[%s2209_s9 + $0x48] sm:$0xff]   ;;  %v1957_v11 = vld [vmem:[%s2209_s9 + $0x50] sm:$0xff]  }
  0x39   : > { %1718 = vmatprep.subr.bf16.mxu0 %v2092_v5  ;;  %1737 = vmatpush3.bf16.msra.mxu1 %v1953_v8  ;;  %v1956_v12 = vld [vmem:[%s2209_s9 + $0x18] sm:$0xff]   ;;  %v1958_v14 = vld [vmem:[%s2209_s9 + $0x20] sm:$0xff]   ;;  %v1960_v16 = vld [vmem:[%s2209_s9 + $0x28] sm:$0xff]   ;;  %v560_v43 = vrot.slane %v558_v38, 1 }
  0x3a   : > { %1738 = vmatprep.subr.bf16.mxu1 %v2092_v5  ;;  %v1959_v13 = vld [vmem:[%s2209_s9 + $0x58] sm:$0xff]   ;;  %v1961_v15 = vld [vmem:[%s2209_s9 + $0x60] sm:$0xff]   ;;  %v1963_v17 = vld [vmem:[%s2209_s9 + $0x68] sm:$0xff]  }
  0x3b   : > { %v1962_v18 = vld [vmem:[%s2209_s9 + $0x30] sm:$0xff]   ;;  %v1964_v20 = vld [vmem:[%s2209_s9 + $0x38] sm:$0xff]   ;;  %v1966_v23 = vld [vmem:[%s2209_s9 + $0x80] sm:$0xff]   ;;  %v561_v48 = vor.u32 %v560_v43, %v556_v42 }
  0x3c   : > { %1719 = vmatpush3.bf16.msra.mxu0 %v1952_v7  ;;  %v1965_v19 = vld [vmem:[%s2209_s9 + $0x70] sm:$0xff]   ;;  %v1967_v21 = vld [vmem:[%s2209_s9 + $0x78] sm:$0xff]   ;;  %v1969_v25 = vld [vmem:[%s2209_s9 + $0xc0] sm:$0xff]  }
  0x3d   : > { %1720 = vmatprep.subr.bf16.mxu0 %v2092_v5  ;;  %1739 = vmatpush3.bf16.msra.mxu1 %v1955_v9  ;;  %v1968_v26 = vld [vmem:[%s2209_s9 + $0x88] sm:$0xff]   ;;  %v1970_v28 = vld [vmem:[%s2209_s9 + $0x90] sm:$0xff]   ;;  %v1972_v30 = vld [vmem:[%s2209_s9 + $0x98] sm:$0xff]  }
  0x3e   : > { %1740 = vmatprep.subr.bf16.mxu1 %v2092_v5  ;;  %v1971_v27 = vld [vmem:[%s2209_s9 + $0xc8] sm:$0xff]   ;;  %v1973_v29 = vld [vmem:[%s2209_s9 + $0xd0] sm:$0xff]   ;;  %v1975_v31 = vld [vmem:[%s2209_s9 + $0xd8] sm:$0xff]  }
  0x3f   : > { %v1974_v32 = vld [vmem:[%s2209_s9 + $0xa0] sm:$0xff]   ;;  %v1976_v35 = vld [vmem:[%s2209_s9 + $0xa8] sm:$0xff]   ;;  %v1986_v36 = vld [vmem:[%s2199_s30 + $0x8] sm:$0x1f]  }
  0x40   : > { %1721 = vmatpush3.bf16.msra.mxu0 %v1954_v10  ;;  %v1977_v33 = vld [vmem:[%s2209_s9 + $0xe0] sm:$0xff]   ;;  %v1979_v37 = vld [vmem:[%s2209_s9 + $0xe8] sm:$0xff]   ;;  %v1978_v39 = vld [vmem:[%s2209_s9 + $0xb0] sm:$0xff]   ;;  %v684_v40 = vshll.u32 %v1986_v36, 16  ;;  %v682_v45 = vshrl.u32 %v1986_v36, 16 }
  0x41   : > { %1722 = vmatprep.subr.bf16.mxu0 %v2092_v5  ;;  %1741 = vmatpush3.bf16.msra.mxu1 %v1957_v11  ;;  %v1982_v41 = vld [vmem:[%s2209_s9 + $0xf0] sm:$0xff]   ;;  %v1980_v44 = vld [vmem:[%s2209_s9 + $0xb8] sm:$0xff]   ;;  %v1983_v49 = vld [vmem:[%s2209_s9] sm:$0xff]  }
  0x42   : > { %1742 = vmatprep.subr.bf16.mxu1 %v2092_v5  ;;  %v686_v46 = vrot.slane %v684_v40, 1  ;;  %v1984_v47 = vld [vmem:[%s2209_s9 + $0xf8] sm:$0xff]   ;;  %v1987_v51 = vld [vmem:[%s2209_s9 + $0x40] sm:$0xff]   ;;  %v1985_v52 = vld [vmem:[%s2209_s9 + $0x8] sm:$0xff]  }
  0x43   : > { %v1989_v53 = vld [vmem:[%s2209_s9 + $0x48] sm:$0xff]   ;;  %v1988_v54 = vld [vmem:[%s2209_s9 + $0x10] sm:$0xff]   ;;  %v1990_v56 = vld [vmem:[%s2209_s9 + $0x18] sm:$0xff]  }
  0x44   : > { %1723 = vmatpush3.bf16.msra.mxu0 %v1956_v12  ;;  %v687_v50 = vor.u32 %v686_v46, %v682_v45  ;;  %v1991_v55 = vld [vmem:[%s2209_s9 + $0x50] sm:$0xff]   ;;  %v1993_v57 = vld [vmem:[%s2209_s9 + $0x58] sm:$0xff]   ;;  %v1992_v58 = vld [vmem:[%s2209_s9 + $0x20] sm:$0xff]  }
  0x45   : > { %1724 = vmatprep.subr.bf16.mxu0 %v2092_v5  ;;  %1743 = vmatpush3.bf16.msra.mxu1 %v1959_v13  ;;  %v1995_v59 = vld [vmem:[%s2209_s9 + $0x60] sm:$0xff]   ;;  %v1994_v60 = vld [vmem:[%s2209_s9 + $0x28] sm:$0xff]   ;;  %v1996_v62 = vld [vmem:[%s2209_s9 + $0x30] sm:$0xff]  }
  0x46   : > { %1744 = vmatprep.subr.bf16.mxu1 %v2092_v5  ;;  %v1997_v61 = vld [vmem:[%s2209_s9 + $0x68] sm:$0xff]   ;;  %v1999_v63 = vld [vmem:[%s2209_s9 + $0x70] sm:$0xff]   ;;  %v1998_v0 = vld [vmem:[%s2209_s9 + $0x38] sm:$0xff]  }
  0x47   : > { %v2001_v1 = vld [vmem:[%s2209_s9 + $0x78] sm:$0xff]   ;;  %v2000_v3 = vld [vmem:[%s2209_s9 + $0x80] sm:$0xff]   ;;  %v1548_v4 = vld [vmem:[%s2199_s30 + $0x18] sm:$0xf] }
  0x48   : > { %1725 = vmatpush3.bf16.msra.mxu0 %v1958_v14  ;;  %v2003_v6 = vld [vmem:[%s2209_s9 + $0xc0] sm:$0xff]   ;;  %v2002_v7 = vld [vmem:[%s2209_s9 + $0x88] sm:$0xff]   ;;  %v2004_v9 = vld [vmem:[%s2209_s9 + $0x90] sm:$0xff]  }
  0x49   : > { %1726 = vmatprep.subr.bf16.mxu0 %v2092_v5  ;;  %1745 = vmatpush3.bf16.msra.mxu1 %v1961_v15  ;;  %v2005_v8 = vld [vmem:[%s2209_s9 + $0xc8] sm:$0xff]   ;;  %v2007_v10 = vld [vmem:[%s2209_s9 + $0xd0] sm:$0xff]   ;;  %v2006_v11 = vld [vmem:[%s2209_s9 + $0x98] sm:$0xff]  }
  0x4a   : > { %1746 = vmatprep.subr.bf16.mxu1 %v2092_v5  ;;  %v2009_v12 = vld [vmem:[%s2209_s9 + $0xd8] sm:$0xff]   ;;  %v2008_v13 = vld [vmem:[%s2209_s9 + $0xa0] sm:$0xff]  }
  0x4b   : > { %v2011_v14 = vld [vmem:[%s2209_s9 + $0xe0] sm:$0xff]  }
  0x4c   : > { %1727 = vmatpush3.bf16.msra.mxu0 %v1960_v16  ;;  %v2015_v15 = vld [vmem:[%s2199_s30 + $0x10] sm:$0x1f]   ;;  %v2010_v16 = vld [vmem:[%s2209_s9 + $0xa8] sm:$0xff]  }
  0x4d   : > { %1728 = vmatprep.subr.bf16.mxu0 %v2092_v5  ;;  %1747 = vmatpush3.bf16.msra.mxu1 %v1963_v17  ;;  %v2018_v17 = vld [vmem:[%s2199_s30 + $0x18] sm:$0x1f]  }
  0x4e   : > { %1748 = vmatprep.subr.bf16.mxu1 %v2092_v5 }
  0x50   : > { %1729 = vmatpush3.bf16.msra.mxu0 %v1962_v18  ;;  %v2013_v18 = vld [vmem:[%s2209_s9 + $0xe8] sm:$0xff]  }
  0x51   : > { %1730 = vmatprep.subr.bf16.mxu0 %v2092_v5  ;;  %1749 = vmatpush3.bf16.msra.mxu1 %v1965_v19  ;;  %v1025_v19 = vshll.u32 %v2015_v15, 16 }
  0x52   : > { %1750 = vmatprep.subr.bf16.mxu1 %v2092_v5 }
  0x54   : > { %1731 = vmatpush3.bf16.msra.mxu0 %v1964_v20  ;;  %v2012_v20 = vld [vmem:[%s2209_s9 + $0xb0] sm:$0xff]  }
  0x55   : > { %1756 = vmatprep.subr.bf16.mxu0 %v2092_v5  ;;  %1751 = vmatpush3.bf16.msra.mxu1 %v1967_v21  ;;  %v1147_v21 = vshll.u32 %v2018_v17, 16 }
  0x56   : > { %1776 = vmatprep.subr.bf16.mxu1 %v2092_v5 }
  0x57   : > { %1733 = vmatmul.mubr.bf16.vlgmr.msra.gmra.mrb[0].mxu0 %v302_v22  ;;  %v2016_v22 = vld [vmem:[%s2209_s9 + $0xf0] sm:$0xff]  }
  0x58   : > { %1757 = vmatpush3.bf16.msra.mxu0 %v1966_v23  ;;  %1772 = vmatprep.mubr.msk.bf16.mxu0 %vm2093_vm0, %v2092_v5  ;;  %v1023_v23 = vshrl.u32 %v2015_v15, 16 }
  0x59   : > { %1758 = vmatprep.subr.bf16.mxu0 %v2092_v5  ;;  %1753 = vmatmul.mubr.bf16.vlgmr.msra.gmra.mrb[0].mxu1 %v1456_v24  ;;  %v1027_v24 = vrot.slane %v1025_v19, 1 }
  0x5a   : > { %1777 = vmatpush3.bf16.msra.mxu1 %v1969_v25  ;;  %1792 = vmatprep.mubr.msk.bf16.mxu1 %vm2093_vm0, %v2092_v5  ;;  %v2014_v25 = vld [vmem:[%s2209_s9 + $0xb8] sm:$0xff]  }
  0x5b   : > { %1778 = vmatprep.subr.bf16.mxu1 %v2092_v5 }
  0x5c   : > { %1759 = vmatpush3.bf16.msra.mxu0 %v1968_v26  ;;  %v1145_v26 = vshrl.u32 %v2018_v17, 16 }
  0x5d   : > { %1760 = vmatprep.subr.bf16.mxu0 %v2092_v5 }
  0x5e   : > { %1779 = vmatpush3.bf16.msra.mxu1 %v1971_v27  ;;  %v1149_v27 = vrot.slane %v1147_v21, 1 }
  0x5f   : > { %1780 = vmatprep.subr.bf16.mxu1 %v2092_v5 }
  0x60   : > { %1761 = vmatpush3.bf16.msra.mxu0 %v1970_v28  ;;  %v2017_v28 = vld [vmem:[%s2209_s9 + $0xf8] sm:$0xff]  }
  0x61   : > { %1762 = vmatprep.subr.bf16.mxu0 %v2092_v5 }
  0x62   : > { %1781 = vmatpush3.bf16.msra.mxu1 %v1973_v29  ;;  %v1028_v29 = vor.u32 %v1027_v24, %v1023_v23 }
  0x63   : > { %1782 = vmatprep.subr.bf16.mxu1 %v2092_v5 }
  0x64   : > { %1763 = vmatpush3.bf16.msra.mxu0 %v1972_v30  ;;  %v1150_v30 = vor.u32 %v1149_v27, %v1145_v26 }
  0x65   : > { %1764 = vmatprep.subr.bf16.mxu0 %v2092_v5 }
  0x66   : > { %1783 = vmatpush3.bf16.msra.mxu1 %v1975_v31  ;;  %v323_v31 = vld [vmem:[#allocation2] sm:$0xff] }
  0x67   : > { %1784 = vmatprep.subr.bf16.mxu1 %v2092_v5 }
  0x68   : > { %1765 = vmatpush3.bf16.msra.mxu0 %v1974_v32 }
  0x69   : > { %1766 = vmatprep.subr.bf16.mxu0 %v2092_v5 }
  0x6a   : > { %1785 = vmatpush3.bf16.msra.mxu1 %v1977_v33 }
  0x6b   : > { %1786 = vmatprep.subr.bf16.mxu1 %v2092_v5 }
  0x6c   : > { %1767 = vmatpush3.bf16.msra.mxu0 %v1976_v35 }
  0x6d   : > { %1768 = vmatprep.subr.bf16.mxu0 %v2092_v5 }
  0x6e   : > { %1787 = vmatpush3.bf16.msra.mxu1 %v1979_v37 }
  0x6f   : > { %1788 = vmatprep.subr.bf16.mxu1 %v2092_v5 }
  0x70   : > { %1769 = vmatpush3.bf16.msra.mxu0 %v1978_v39 }
  0x71   : > { %1770 = vmatprep.subr.bf16.mxu0 %v2092_v5 }
  0x72   : > { %1789 = vmatpush3.bf16.msra.mxu1 %v1982_v41 }
  0x73   : > { %1790 = vmatprep.subr.bf16.mxu1 %v2092_v5 }
  0x74   : > { %1771 = vmatpush3.bf16.msra.mxu0 %v1980_v44 }
  0x75   : > { %1796 = vmatprep.subr.bf16.mxu0 %v2092_v5 }
  0x76   : > { %1791 = vmatpush3.bf16.msra.mxu1 %v1984_v47 }
  0x77   : > { %1773 = vmatmul.mubr.bf16.vlgmr.msra.gmra.mrb[4].mxu0 %v561_v48  ;;  %1816 = vmatprep.subr.bf16.mxu1 %v2092_v5 }
  0x78   : > { %1797 = vmatpush3.bf16.msra.mxu0 %v1983_v49  ;;  %1812 = vmatprep.mubr.msk.bf16.mxu0 %vm2093_vm0, %v2092_v5 }
  0x79   : > { %1798 = vmatprep.subr.bf16.mxu0 %v2092_v5  ;;  %1793 = vmatmul.mubr.bf16.vlgmr.msra.gmra.mrb[4].mxu1 %v687_v50 }
  0x7a   : > { %1817 = vmatpush3.bf16.msra.mxu1 %v1987_v51  ;;  %1832 = vmatprep.mubr.msk.bf16.mxu1 %vm2093_vm0, %v2092_v5  ;;  %v798_v51 = vld [vmem:[#allocation2 + $0x8] sm:$0xff] }
  0x7b   : > { %1818 = vmatprep.subr.bf16.mxu1 %v2092_v5 }
  0x7c   : > { %1799 = vmatpush3.bf16.msra.mxu0 %v1985_v52 }
  0x7d   : > { %1800 = vmatprep.subr.bf16.mxu0 %v2092_v5 }
  0x7e   : > { %1819 = vmatpush3.bf16.msra.mxu1 %v1989_v53 }
  0x7f   : > { %1820 = vmatprep.subr.bf16.mxu1 %v2092_v5 }
  0x80   : > { %1801 = vmatpush3.bf16.msra.mxu0 %v1988_v54 }
  0x81   : > { %1802 = vmatprep.subr.bf16.mxu0 %v2092_v5 }
  0x82   : > { %1821 = vmatpush3.bf16.msra.mxu1 %v1991_v55 }
  0x83   : > { %1822 = vmatprep.subr.bf16.mxu1 %v2092_v5 }
  0x84   : > { %1803 = vmatpush3.bf16.msra.mxu0 %v1990_v56 }
  0x85   : > { %1804 = vmatprep.subr.bf16.mxu0 %v2092_v5 }
  0x86   : > { %1823 = vmatpush3.bf16.msra.mxu1 %v1993_v57 }
  0x87   : > { %1824 = vmatprep.subr.bf16.mxu1 %v2092_v5 }
  0x88   : > { %1805 = vmatpush3.bf16.msra.mxu0 %v1992_v58 }
  0x89   : > { %1806 = vmatprep.subr.bf16.mxu0 %v2092_v5 }
  0x8a   : > { %1825 = vmatpush3.bf16.msra.mxu1 %v1995_v59 }
  0x8b   : > { %1826 = vmatprep.subr.bf16.mxu1 %v2092_v5 }
  0x8c   : > { %1807 = vmatpush3.bf16.msra.mxu0 %v1994_v60 }
  0x8d   : > { %1808 = vmatprep.subr.bf16.mxu0 %v2092_v5 }
  0x8e   : > { %1827 = vmatpush3.bf16.msra.mxu1 %v1997_v61 }
  0x8f   : > { %1828 = vmatprep.subr.bf16.mxu1 %v2092_v5 }
  0x90   : > { %1809 = vmatpush3.bf16.msra.mxu0 %v1996_v62 }
  0x91   : > { %1810 = vmatprep.subr.bf16.mxu0 %v2092_v5 }
  0x92   : > { %1829 = vmatpush3.bf16.msra.mxu1 %v1999_v63 }
  0x93   : > { %1830 = vmatprep.subr.bf16.mxu1 %v2092_v5 }
  0x94   : > { %1811 = vmatpush3.bf16.msra.mxu0 %v1998_v0 }
  0x95   : > { %1836 = vmatprep.subr.bf16.mxu0 %v2092_v5 }
  0x96   : > { %1831 = vmatpush3.bf16.msra.mxu1 %v2001_v1 }
  0x97   : > { %1813 = vmatmul.mubr.bf16.vlgmr.msra.gmra.mrb[8].mxu0 %v1539_v2  ;;  %1856 = vmatprep.subr.bf16.mxu1 %v2092_v5 }
  0x98   : > { %1837 = vmatpush3.bf16.msra.mxu0 %v2000_v3  ;;  %1852 = vmatprep.mubr.msk.bf16.mxu0 %vm2093_vm0, %v2092_v5 }
  0x99   : > { %1838 = vmatprep.subr.bf16.mxu0 %v2092_v5  ;;  %1833 = vmatmul.mubr.bf16.vlgmr.msra.gmra.mrb[8].mxu1 %v1548_v4 }
  0x9a   : > { %1857 = vmatpush3.bf16.msra.mxu1 %v2003_v6  ;;  %1872 = vmatprep.mubr.msk.bf16.mxu1 %vm2093_vm0, %v2092_v5 }
  0x9b   : > { %1858 = vmatprep.subr.bf16.mxu1 %v2092_v5 }
  0x9c   : > { %1839 = vmatpush3.bf16.msra.mxu0 %v2002_v7 }
  0x9d   : > { %1840 = vmatprep.subr.bf16.mxu0 %v2092_v5 }
  0x9e   : > { %1859 = vmatpush3.bf16.msra.mxu1 %v2005_v8 }
  0x9f   : > { %1860 = vmatprep.subr.bf16.mxu1 %v2092_v5 }
  0xa0   : > { %1841 = vmatpush3.bf16.msra.mxu0 %v2004_v9 }
  0xa1   : > { %1842 = vmatprep.subr.bf16.mxu0 %v2092_v5 }
  0xa2   : > { %1861 = vmatpush3.bf16.msra.mxu1 %v2007_v10 }
  0xa3   : > { %1862 = vmatprep.subr.bf16.mxu1 %v2092_v5 }
  0xa4   : > { %1843 = vmatpush3.bf16.msra.mxu0 %v2006_v11  ;;  %v1628_v11 = vld [vmem:[%s2404_s2] ss:$0 sm:$0xff] (!%p1627_p1) }
  0xa5   : > { %1844 = vmatprep.subr.bf16.mxu0 %v2092_v5 }
  0xa6   : > { %1863 = vmatpush3.bf16.msra.mxu1 %v2009_v12 }
  0xa7   : > { %1864 = vmatprep.subr.bf16.mxu1 %v2092_v5 }
  0xa8   : > { %1845 = vmatpush3.bf16.msra.mxu0 %v2008_v13 }
  0xa9   : > { %1846 = vmatprep.subr.bf16.mxu0 %v2092_v5 }
  0xaa   : > { %1865 = vmatpush3.bf16.msra.mxu1 %v2011_v14 }
  0xab   : > { %1866 = vmatprep.subr.bf16.mxu1 %v2092_v5 }
  0xac   : > { %1847 = vmatpush3.bf16.msra.mxu0 %v2010_v16 }
  0xad   : > { %1848 = vmatprep.subr.bf16.mxu0 %v2092_v5 }
  0xae   : > { %1867 = vmatpush3.bf16.msra.mxu1 %v2013_v18 }
  0xaf   : > { %1868 = vmatprep.subr.bf16.mxu1 %v2092_v5 }
  0xb0   : > { %1849 = vmatpush3.bf16.msra.mxu0 %v2012_v20 }
  0xb1   : > { %1850 = vmatprep.subr.bf16.mxu0 %v2092_v5 }
  0xb2   : > { %1869 = vmatpush3.bf16.msra.mxu1 %v2016_v22 }
  0xb3   : > { %1870 = vmatprep.subr.bf16.mxu1 %v2092_v5 }
  0xb4   : > { %1851 = vmatpush3.bf16.msra.mxu0 %v2014_v25 }
  0xb6   : > { %1871 = vmatpush3.bf16.msra.mxu1 %v2017_v28 }
  0xb7   : > { %1853 = vmatmul.mubr.bf16.vlgmr.msra.gmra.mrb[12].mxu0 %v1028_v29 }
  0xb9   : > { %1873 = vmatmul.mubr.bf16.vlgmr.msra.gmra.mrb[12].mxu1 %v1150_v30 }
 0x12a   : > { %v406_v32 = vpop.f32.mrb[0].mxu0 }
 0x12b   : > { %v412_v33 = vadd.f32 %v406_v32, %v323_v31  ;;  %v1734_v34 = vpop.f32.mrb[1].mxu0 }
 0x12c   : > { %v409_v35 = vpop.f32.mrb[2].mxu0  ;;  %v519_v36 = vpop.f32.mrb[0].mxu1 }
 0x12d   : > { %v1735_v37 = vpop.f32.mrb[3].mxu0  ;;  %v525_v38 = vadd.f32 %v519_v36, %v412_v33  ;;  %v1754_v39 = vpop.f32.mrb[1].mxu1 }
 0x12e   : > { %v522_v40 = vpop.f32.mrb[2].mxu1 }
 0x12f   : > { %v1755_v41 = vpop.f32.mrb[3].mxu1 }
 0x14a   : > { %v645_v42 = vpop.f32.mrb[4].mxu0 }
 0x14b   : > { %v651_v43 = vadd.f32 %v645_v42, %v525_v38  ;;  %v1774_v44 = vpop.f32.mrb[5].mxu0 }
 0x14c   : > { %v648_v5 = vpop.f32.mrb[6].mxu0  ;;  %v771_v45 = vpop.f32.mrb[4].mxu1 }
 0x14d   : > { %v1775_v46 = vpop.f32.mrb[7].mxu0  ;;  %v777_v47 = vadd.f32 %v771_v45, %v651_v43  ;;  %v1794_v48 = vpop.f32.mrb[5].mxu1 }
 0x14e   : > { %v774_v49 = vpop.f32.mrb[6].mxu1 }
 0x14f   : > { %778 = vst [vmem:[#allocation2] sm:$0xff] %v777_v47  ;;  %v1795_v50 = vpop.f32.mrb[7].mxu1 }
 0x156   : > { %v1246_v9 = vld [vmem:[#allocation2] sm:$0xff] (!%p1627_p1) }
 0x157   : > { %v1255_v12 = vadd.f32 (!%p1627_p1), %v1628_v11, %v1246_v9 }
 0x16a   : > { %v881_v52 = vpop.f32.mrb[8].mxu0 }
 0x16b   : > { %v887_v53 = vadd.f32 %v881_v52, %v798_v51  ;;  %v1814_v54 = vpop.f32.mrb[9].mxu0 }
 0x16c   : > { %v884_v55 = vpop.f32.mrb[10].mxu0  ;;  %v990_v56 = vpop.f32.mrb[8].mxu1 }
 0x16d   : > { %v1815_v57 = vpop.f32.mrb[11].mxu0  ;;  %v996_v58 = vadd.f32 %v990_v56, %v887_v53  ;;  %v1834_v59 = vpop.f32.mrb[9].mxu1 }
 0x16e   : > { %v993_v60 = vpop.f32.mrb[10].mxu1 }
 0x16f   : > { %v1835_v61 = vpop.f32.mrb[11].mxu1 }
 0x189   : > { %1245 = sbr.rel (%p1627_p1) target bundleno = 412 (0x19c), region = 81 }
 0x18a   : > { %v1112_v62 = vpop.f32.mrb[12].mxu0 }
 0x18b   : > { %v1118_v63 = vadd.f32 %v1112_v62, %v996_v58  ;;  %v1854_v0 = vpop.f32.mrb[13].mxu0 }
 0x18c   : > { %v1115_v1 = vpop.f32.mrb[14].mxu0  ;;  %v1234_v2 = vpop.f32.mrb[12].mxu1 }
 0x18d   : > { %v1855_v3 = vpop.f32.mrb[15].mxu0  ;;  %v1240_v4 = vadd.f32 %v1234_v2, %v1118_v63  ;;  %v1874_v6 = vpop.f32.mrb[13].mxu1 }
 0x18e   : > { %v1237_v7 = vpop.f32.mrb[14].mxu1 }
 0x18f   : > { %1241 = vst [vmem:[#allocation2 + $0x8] sm:$0xff] %v1240_v4  ;;  %v1875_v8 = vpop.f32.mrb[15].mxu1 }
 0x196   : > { %v1247_v10 = vld [vmem:[#allocation2 + $0x8] sm:$0xff] }
 0x197   : > { %v1256_v13 = vadd.f32 %v1628_v11, %v1247_v10 }
 0x199   : > { %v1642_v14 = vpack.c.bf16 %v1256_v13, %v1255_v12 }
 0x19b   : > { %1643 = vst [vmem:[%s2201_s4] sm:$0xff] %v1642_v14  }
 0x19c PF: > { %1267 = sbr.rel (!%p2180_p8) target bundleno = 420 (0x1a4), region = 85  ;;  %s1630_s16 = sshll.u32 (%p2180_p8), %s2077_s17, 2 }
 0x19d   : > { %s1270_s28 = scalar_lea.vmem (%p2180_p8), %s2405_s3, %s1630_s16 }
 0x1a2   : > { %v1286_v15 = vld [vmem:[%s2201_s4] sm:$0xf] (%p2180_p8)  ;;  %v1288_v16 = vld [vmem:[%s2201_s4 + $0x4] sm:$0xf] (%p2180_p8) }
 0x1a3   : > { %1287 = vst [vmem:[%s1270_s28] sm:$0xf] %v1286_v15  ;;  %1289 = vst [vmem:[%s1270_s28 + $0x20] sm:$0xf] %v1288_v16 }
 0x1a4 PF: > { %s13_s20 = sadd.s32 1, %s2089_s20   ;;  %s2407_s12 = smov %s2061_s13 }
 0x1a5   : > { %p10_p2 = scmp.ge.s32.totalorder %s13_s20, 34   ;;  %s2408_s13 = smov %s2185_s6 }
 0x1a6   : > { %s2409_s14 = smov %s2069_s15  ;;  %s2410_s15 = smov %s2188_s7 }
 0x1a7   : > { %s2411_s16 = smov %s2081_s18  ;;  %s2412_s17 = smov %s2085_s19 }
 0x1a8   : > { %s2413_s18 = smov %s2416_s22  ;;  %s2414_s19 = smov %s2420_s23 }
 0x1a9   :  { %12 = sbr.rel (!%p10_p2) target bundleno = 5 (0x5), region = 171 }

// kernel: patchgan_forward.16
= control target key start
LH: loop header
LB: loop body
LE: loop exit
PB: predicated region body
PF: predicated region fallthrough
CT: control target
= control target key end

     0   :  { %s679_s15 = smov 0   ;;  %s681_s16 = smov 0   ;;  %s798_s0 = inlined_call_operand.vmem [shape: bf16[2,16,256], index: 0, kind: input, shape index: {}]   ;;  %s799_s1 = inlined_call_operand.vmem [shape: f32[1,256], index: 1, kind: input, shape index: {}]   ;;  %s800_s2 = inlined_call_operand.vmem [shape: f32[1,256], index: 2, kind: input, shape index: {}]   ;;  %s801_s3 = inlined_call_operand.vmem [shape: f32[2,1,256], index: 3, kind: output, shape index: {0}]   ;;  %s802_s4 = inlined_call_operand.vmem [shape: f32[2,1,256], index: 4, kind: output, shape index: {1}]  }
   0x1   :  { %s683_s17 = smov 0   ;;  %s685_s18 = smov 0  }
   0x2   :  { %s687_s19 = smov 0   ;;  %s689_s20 = smov 0  }
   0x3   :  { %s691_s21 = smov 0  }
   0x4 LB: > { %s30_s22 = sadd.s32 1, %s643_s19  ;;  %s34_s23 = sadd.s32 1, %s647_s20  ;;  %s651_s21 = sphi %s691_s21, %s15_s21   ;;  %s647_s20 = sphi %s689_s20, %s808_s20   ;;  %s643_s19 = sphi %s687_s19, %s807_s19   ;;  %s639_s18 = sphi %s685_s18, %s806_s18   ;;  %s635_s17 = sphi %s683_s17, %s805_s17   ;;  %s631_s16 = sphi %s681_s16, %s804_s16   ;;  %s627_s15 = sphi %s679_s15, %s803_s15  }
   0x5   : > { %p32_p0 = scmp.ge.s32.totalorder %s30_s22, 2  ;;  %p52_p1 = scmp.ne.s32.totalorder %s631_s16, %s627_s15 }
   0x6   : > { %p53_p2 = scmp.eq.s32.totalorder %s651_s21, 0  ;;  %s45_s27 = sadd.s32 1, %s631_s16 }
   0x7   : > { %s810_s22 = smov (%p32_p0, %s30_s22), 0  ;;  %s812_s23 = smov (!%p32_p0, %s34_s23), %s647_s20 }
   0x8   : > { %p54_p3 = por %p53_p2, %p52_p1  ;;  %p36_p4 = scmp.ge.s32.totalorder %s812_s23, 2 }
   0x9   : > { %s41_s24 = ssub.s32 %s643_s19, %s810_s22  ;;  %p524_p6 = scmp.ge.s32.totalorder %s651_s21, 4 }
   0xa   : > { %s814_s23 = smov (%p36_p4, %s812_s23), 0 }
   0xb   : > { %s38_s25 = ssub.s32 %s647_s20, %s814_s23  ;;  %186 = sbr.rel (%p524_p6) target bundleno = 25 (0x19), region = 16 }
   0xc   : > { %s42_s26 = sor.u32 %s41_s24, %s38_s25 }
   0xd   : > { %p43_p5 = scmp.eq.s32.totalorder %s42_s26, 0 }
   0xf   : > { %s730_s28 = scalar_select %p43_p5, %s631_s16, %s45_s27  }
  0x12   : > { %189 = sbr.rel (!%p54_p3) target bundleno = 25 (0x19), region = 20  ;;  %s191_s29 = sand.u32 (%p54_p3), 1, %s631_s16  }
  0x13   : > { %s526_s30 = sshll.u32 (%p54_p3), %s647_s20, 2  ;;  %s525_s5 = sshll.u32 (%p54_p3), %s191_s29, 3 }
  0x14   : > { %s198_s6 = sadd.s32 (%p54_p3), %s643_s19, %s526_s30  ;;  %s193_s11 = scalar_lea.vmem (%p54_p3), [#allocation2], %s525_s5 }
  0x15   : > { %s527_s7 = sshll.u32 (%p54_p3), %s198_s6, 2 }
  0x16   : > { %s200_s10 = scalar_lea.vmem (%p54_p3), %s798_s0, %s527_s7 }
  0x17   : > { %v216_v0 = vld [vmem:[%s200_s10] sm:$0xf] (%p54_p3)  ;;  %v218_v1 = vld [vmem:[%s200_s10 + $0x8] sm:$0xf] (%p54_p3) }
  0x18   : > { %217 = vst [vmem:[%s193_s11] sm:$0xf] (%p54_p3), %v216_v0  ;;  %219 = vst [vmem:[%s193_s11 + $0x4] sm:$0xf] (%p54_p3), %v218_v1 }
  0x19 PF: > { %p528_p7 = scmp.ge.s32.totalorder %s651_s21, 1  ;;  %p257_p8 = scmp.lt.s32.totalorder %s651_s21, 5 }
  0x1b   : > { %p258_p9 = pnand %p528_p7, %p257_p8 }
  0x1c   : > { %p305_p10 = scmp.lt.s32.totalorder (!%p258_p9), %s635_s17, 1  ;;  %p311_p11 = scmp.lt.s32.totalorder (!%p258_p9), %s639_s18, 1  ;;  %v653_v5 = vmov (!%p258_p9), 0.0  }
  0x1d   : > { %261 = sbr.rel (%p258_p9) target bundleno = 85 (0x55), region = 69  ;;  %s264_s12 = sand.u32 (!%p258_p9), 1, %s627_s15  }
  0x1e   : > { %s529_s13 = sshll.u32 (!%p258_p9), %s264_s12, 3 }
  0x1f   : > { %s266_s25 = scalar_lea.vmem (!%p258_p9), [#allocation2], %s529_s13 }
  0x20   : > { %v535_v2 = vld [vmem:[%s266_s25] sm:$0xff] (!%p258_p9)  }
  0x21   : > { %v536_v3 = vunpack.c.l.bf16 (!%p258_p9), %v535_v2  ;;  %v537_v4 = vunpack.c.h.bf16 (!%p258_p9), %v535_v2 }
  0x23   : > { %v336_v6 = vadd.f32 (!%p258_p9), %v537_v4, %v536_v3  ;;  %v346_v7 = vmul.f32 (!%p258_p9), %v536_v3, %v536_v3  ;;  %v347_v8 = vmul.f32 (!%p258_p9), %v537_v4, %v537_v4 }
  0x24   : > { %s816_s17 = smov (!%p305_p10, %s635_s17), 1  ;;  %s818_s18 = smov (!%p311_p11, %s639_s18), 1 }
  0x25   : > { %s530_s14 = sshll.u32 %s818_s18, 1  ;;  %v337_v9 = vrot.slane %v336_v6, 4  ;;  %v348_v10 = vadd.f32 %v347_v8, %v346_v7  ;;  %s307_s7 = scalar_lea.vmem %s799_s1, %s816_s17 }
  0x26   : > { %s316_s24 = sadd.s32 %s530_s14, %s816_s17  ;;  %v368_v33 = vld [vmem:[%s307_s7] sm:$0x1]  ;;  %s310_s10 = scalar_lea.vmem %s800_s2, %s816_s17 }
  0x27   : > { %s752_s29 = scalar_lea.vmem %s801_s3, %s316_s24  ;;  %s757_s6 = scalar_lea.vmem %s802_s4, %s316_s24  ;;  %v338_v11 = vadd.f32 %v337_v9, %v336_v6  ;;  %v349_v12 = vrot.slane %v348_v10, 4  ;;  %v369_v36 = vld [vmem:[%s310_s10] sm:$0x1] }
  0x28   : > { %329 = vst [vmem:[%s752_s29] sm:$0x1] %v653_v5  ;;  %330 = vst [vmem:[%s757_s6] sm:$0x1] %v653_v5 }
  0x29   : > { %v339_v13 = vrot.slane %v338_v11, 2  ;;  %v350_v14 = vadd.f32 %v349_v12, %v348_v10 }
  0x2b   : > { %v340_v15 = vadd.f32 %v339_v13, %v338_v11  ;;  %v351_v16 = vrot.slane %v350_v14, 2 }
  0x2d   : > { %v341_v17 = vrot.slane %v340_v15, 1  ;;  %v352_v18 = vadd.f32 %v351_v16, %v350_v14 }
  0x2f   : > { %v335_v19 = vld [vmem:[%s752_s29] sm:$0x1]  ;;  %v342_v20 = vadd.f32 %v341_v17, %v340_v15  ;;  %v353_v21 = vrot.slane %v352_v18, 1 }
  0x30   : > { %v345_v22 = vld [vmem:[%s757_s6] sm:$0x1] }
  0x31   : > { %v343_v23 = vadd.f32 %v342_v20, %v335_v19  ;;  %v354_v24 = vadd.f32 %v353_v21, %v352_v18 }
  0x33   : > { %344 = vst [vmem:[%s752_s29] sm:$0x1] %v343_v23  ;;  %v355_v25 = vadd.f32 %v354_v24, %v345_v22 }
  0x35   : > { %356 = vst [vmem:[%s757_s6] sm:$0x1] %v355_v25 }
  0x3a   : > { %v360_v26 = vld [vmem:[%s752_s29] sm:$0x1] }
  0x3b   : > { %v361_v27 = vmul.f32 0.0625, %v360_v26 }
  0x3c   : > { %v362_v28 = vld [vmem:[%s757_s6] sm:$0x1] }
  0x3d   : > { %v363_v29 = vmul.f32 0.0625, %v362_v28  ;;  %v364_v30 = vmul.f32 %v361_v27, %v361_v27 }
  0x3f   : > { %v365_v31 = vsub.f32 %v363_v29, %v364_v30 }
  0x41   : > { %v366_v32 = vadd.f32 1e-05, %v365_v31 }
  0x43   : > { %595 = vrsqrt.f32 %v366_v32 }
  0x4d   : > { %v596_v34 = vpop.eup %595 }
  0x4e   : > { %v370_v35 = vmul.f32 %v596_v34, %v368_v33 }
  0x50   : > { %371 = vst [vmem:[%s752_s29] sm:$0x1] %v370_v35  ;;  %v372_v37 = vmul.f32 %v370_v35, %v361_v27 }
  0x52   : > { %v373_v38 = vsub.f32 %v369_v36, %v372_v37 }
  0x54   : > { %374 = vst [vmem:[%s757_s6] sm:$0x1] %v373_v38 }
  0x55 PF: > { %s15_s21 = sadd.s32 1, %s651_s21   ;;  %s803_s15 = smov %s631_s16 }
  0x56   : > { %p12_p12 = scmp.ge.s32.totalorder %s15_s21, 6   ;;  %s804_s16 = smov %s730_s28 }
  0x57   : > { %s805_s17 = smov %s643_s19  ;;  %s806_s18 = smov %s647_s20 }
  0x58   : > { %s807_s19 = smov %s810_s22  ;;  %s808_s20 = smov %s814_s23 }
  0x59   :  { %14 = sbr.rel (!%p12_p12) target bundleno = 4 (0x4), region = 134 }

// kernel: patchgan_forward.17
= control target key start
LH: loop header
LB: loop body
LE: loop exit
PB: predicated region body
PF: predicated region fallthrough
CT: control target
= control target key end

     0   :  { %s668_s12 = smov 0   ;;  %s670_s13 = smov 0   ;;  %s774_s0 = inlined_call_operand.vmem [shape: bf16[2,16,256], index: 0, kind: input, shape index: {}]   ;;  %s775_s1 = inlined_call_operand.vmem [shape: f32[2,1,256], index: 1, kind: input, shape index: {}]   ;;  %s776_s2 = inlined_call_operand.vmem [shape: f32[2,1,256], index: 2, kind: input, shape index: {}]   ;;  %s777_s3 = inlined_call_operand.vmem [shape: bf16[2,16,256], index: 3, kind: output, shape index: {}]  }
   0x1   :  { %s672_s14 = smov 0   ;;  %s674_s15 = smov 0  }
   0x2   :  { %s676_s16 = smov 0   ;;  %s678_s17 = smov 0  }
   0x3   :  { %s680_s18 = smov 0  }
   0x4 LB: > { %s28_s19 = sadd.s32 1, %s638_s16  ;;  %s32_s20 = sadd.s32 1, %s642_s17  ;;  %s646_s18 = sphi %s680_s18, %s13_s18   ;;  %s642_s17 = sphi %s678_s17, %s784_s17   ;;  %s638_s16 = sphi %s676_s16, %s783_s16   ;;  %s634_s15 = sphi %s674_s15, %s782_s15   ;;  %s630_s14 = sphi %s672_s14, %s781_s14   ;;  %s626_s13 = sphi %s670_s13, %s780_s13   ;;  %s622_s12 = sphi %s668_s12, %s779_s12  }
   0x5   : > { %p30_p0 = scmp.ge.s32.totalorder %s28_s19, 2  ;;  %s504_s21 = sadd.s32 4294967295, %s646_s18  }
   0x6   : > { %p50_p1 = scmp.ne.s32.totalorder %s626_s13, %s622_s12  ;;  %p51_p2 = scmp.eq.s32.totalorder %s646_s18, 0 }
   0x7   : > { %s786_s19 = smov (%p30_p0, %s28_s19), 0  ;;  %s788_s20 = smov (!%p30_p0, %s32_s20), %s642_s17 }
   0x8   : > { %p34_p3 = scmp.ge.s32.totalorder %s788_s20, 2  ;;  %p140_p4 = scmp.eq.s32.totalorder %s504_s21, 3 }
   0x9   : > { %s39_s22 = ssub.s32 %s638_s16, %s786_s19  ;;  %p52_p5 = por %p51_p2, %p50_p1 }
   0xa   : > { %s790_s20 = smov (%p34_p3, %s788_s20), 0  ;;  %p716_p6 = por %p140_p4, %p50_p1 }
   0xb   : > { %s36_s24 = ssub.s32 %s642_s17, %s790_s20  ;;  %s43_s26 = sadd.s32 1, %s626_s13 }
   0xc   : > { %s40_s25 = sor.u32 %s39_s22, %s36_s24  ;;  %p507_p8 = scmp.ge.s32.totalorder %s646_s18, 4 }
   0xd   : > { %p41_p7 = scmp.eq.s32.totalorder %s40_s25, 0 }
   0xe   : > { %162 = sbr.rel (%p507_p8) target bundleno = 28 (0x1c), region = 16 }
   0xf   : > { %s724_s27 = scalar_select %p41_p7, %s626_s13, %s43_s26  }
  0x15   : > { %165 = sbr.rel (!%p52_p5) target bundleno = 28 (0x1c), region = 20  ;;  %s167_s28 = sand.u32 (%p52_p5), 1, %s626_s13  }
  0x16   : > { %s509_s29 = sshll.u32 (%p52_p5), %s642_s17, 2  ;;  %s508_s30 = sshll.u32 (%p52_p5), %s167_s28, 3 }
  0x17   : > { %s174_s4 = sadd.s32 (%p52_p5), %s638_s16, %s509_s29  ;;  %s169_s9 = scalar_lea.vmem (%p52_p5), [#allocation2], %s508_s30 }
  0x18   : > { %s510_s5 = sshll.u32 (%p52_p5), %s174_s4, 2 }
  0x19   : > { %s176_s8 = scalar_lea.vmem (%p52_p5), %s774_s0, %s510_s5 }
  0x1a   : > { %v192_v0 = vld [vmem:[%s176_s8] sm:$0xf] (%p52_p5)  ;;  %v194_v1 = vld [vmem:[%s176_s8 + $0x8] sm:$0xf] (%p52_p5) }
  0x1b   : > { %193 = vst [vmem:[%s169_s9] sm:$0xf] (%p52_p5), %v192_v0  ;;  %195 = vst [vmem:[%s169_s9 + $0x4] sm:$0xf] (%p52_p5), %v194_v1 }
  0x1c PF: > { %p511_p9 = scmp.ge.s32.totalorder %s646_s18, 1  ;;  %p241_p10 = scmp.lt.s32.totalorder %s646_s18, 5 }
  0x1e   : > { %p242_p11 = pnand %p511_p9, %p241_p10 }
  0x1f   : > { %s248_s10 = sand.u32 (!%p242_p11), 1, %s622_s12   ;;  %p285_p12 = scmp.lt.s32.totalorder (!%p242_p11), %s634_s15, 1 }
  0x20   : > { %245 = sbr.rel (%p242_p11) target bundleno = 63 (0x3f), region = 69  ;;  %s512_s11 = sshll.u32 (!%p242_p11), %s248_s10, 3 }
  0x21   : > { %p287_p13 = scmp.lt.s32.totalorder (!%p242_p11), %s630_s14, 1  ;;  %s250_s22 = scalar_lea.vmem (!%p242_p11), [#allocation2], %s512_s11 }
  0x22   : > { %v528_v2 = vld [vmem:[%s250_s22] sm:$0xff] (!%p242_p11)   ;;  %s283_s12 = scalar_lea.vmem (!%p242_p11), [#allocation3], %s512_s11 }
  0x23   : > { %v529_v3 = vunpack.c.l.bf16 (!%p242_p11), %v528_v2  ;;  %v530_v4 = vunpack.c.h.bf16 (!%p242_p11), %v528_v2 }
  0x27   : > { %s286_s21 = scalar_select %p285_p12, %s634_s15, 1 }
  0x28   : > { %s288_s24 = scalar_select %p287_p13, %s630_s14, 1 }
  0x29   : > { %s514_s25 = sshll.u32 %s286_s21, 1  ;;  %s521_s7 = sshll.u32 (%p716_p6), %s634_s15, 2 }
  0x2a   : > { %s290_s26 = sadd.s32 %s514_s25, %s288_s24  ;;  %s349_s8 = sadd.s32 (%p716_p6), %s630_s14, %s521_s7 }
  0x2b   : > { %s291_s30 = scalar_lea.vmem %s775_s1, %s290_s26  ;;  %s298_s6 = scalar_lea.vmem %s776_s2, %s290_s26 }
  0x2c   : > { %v516_v5 = vld [vmem:[%s291_s30] ss:$0 sm:$0xff]  ;;  %s522_s9 = sshll.u32 (%p716_p6), %s349_s8, 2 }
  0x2d   : > { %v517_v6 = vld [vmem:[%s298_s6] ss:$0 sm:$0xff]  ;;  %v311_v7 = vmul.f32 %v529_v3, %v516_v5  ;;  %v312_v8 = vmul.f32 %v530_v4, %v516_v5  ;;  %s351_s22 = scalar_lea.vmem (%p716_p6), %s777_s3, %s522_s9 }
  0x2f   : > { %v320_v9 = vadd.f32 %v517_v6, %v311_v7  ;;  %v321_v10 = vadd.f32 %v517_v6, %v312_v8 }
  0x30   : > { %344 = sbr.rel (!%p716_p6) target bundleno = 63 (0x3f), region = 77 }
  0x31   : > { %vm322_vm0 = vcmp.ge.f32.partialorder %v320_v9, 0.0  ;;  %vm323_vm1 = vcmp.ge.f32.partialorder %v321_v10, 0.0  ;;  %v324_v11 = vmul.f32 0.2, %v320_v9  ;;  %v325_v12 = vmul.f32 0.2, %v321_v10 }
  0x33   : > { %v326_v13 = vsel %vm322_vm0, %v320_v9, %v324_v11  ;;  %v327_v14 = vsel %vm323_vm1, %v321_v10, %v325_v12 }
  0x34   : > { %v534_v15 = vpack.c.bf16 %v327_v14, %v326_v13 }
  0x36   : > { %535 = vst [vmem:[%s283_s12] sm:$0xff] %v534_v15  }
  0x3d   : > { %v367_v16 = vld [vmem:[%s283_s12] sm:$0xf]  ;;  %v369_v17 = vld [vmem:[%s283_s12 + $0x4] sm:$0xf] }
  0x3e   : > { %368 = vst [vmem:[%s351_s22] sm:$0xf] %v367_v16  ;;  %370 = vst [vmem:[%s351_s22 + $0x8] sm:$0xf] %v369_v17 }
  0x3f PF: > { %s13_s18 = sadd.s32 1, %s646_s18   ;;  %s779_s12 = smov %s626_s13 }
  0x40   : > { %p10_p0 = scmp.ge.s32.totalorder %s13_s18, 6   ;;  %s780_s13 = smov %s724_s27 }
  0x41   : > { %s781_s14 = smov %s638_s16  ;;  %s782_s15 = smov %s642_s17 }
  0x42   : > { %s783_s16 = smov %s786_s19  ;;  %s784_s17 = smov %s790_s20 }
  0x43   :  { %12 = sbr.rel (!%p10_p0) target bundleno = 4 (0x4), region = 155 }

// kernel: patchgan_forward.15
= control target key start
LH: loop header
LB: loop body
LE: loop exit
PB: predicated region body
PF: predicated region fallthrough
CT: control target
= control target key end

     0   :  { %s2291_s12 = smov 0   ;;  %s2293_s13 = smov 0   ;;  %s2764_s0 = inlined_call_operand.vmem [shape: bf16[2,10,2,5,128], index: 0, kind: input, shape index: {}]   ;;  %s2765_s1 = inlined_call_operand.vmem [shape: bf16[16,128,256], index: 1, kind: input, shape index: {}]   ;;  %s2766_s2 = inlined_call_operand.vmem [shape: f32[1,256], index: 2, kind: input, shape index: {}]   ;;  %s2767_s3 = inlined_call_operand.vmem [shape: bf16[2,4,4,256], index: 3, kind: output, shape index: {}]  }
   0x1   :  { %s2295_s14 = smov 0   ;;  %s2297_s15 = smov 0  }
   0x2   :  { %s2299_s16 = smov 0   ;;  %s2301_s17 = smov 0  }
   0x3   :  { %s2303_s18 = smov 0   ;;  %s2305_s19 = smov 0  }
   0x4   :  { %s2307_s20 = smov 0  }
   0x5 LB: > { %s1747_s21 = sadd.s32 4294967295, %s2267_s20   ;;  %s25_s22 = sadd.s32 1, %s2259_s18  ;;  %s2267_s20 = sphi %s2307_s20, %s13_s20   ;;  %s2263_s19 = sphi %s2305_s19, %s2806_s19   ;;  %s2259_s18 = sphi %s2303_s18, %s2805_s18   ;;  %s2255_s17 = sphi %s2301_s17, %s2804_s17   ;;  %s2251_s16 = sphi %s2299_s16, %s2803_s16   ;;  %s2247_s15 = sphi %s2297_s15, %s2802_s15   ;;  %s2243_s14 = sphi %s2295_s14, %s2801_s14   ;;  %s2239_s13 = sphi %s2293_s13, %s2800_s13   ;;  %s2235_s12 = sphi %s2291_s12, %s2799_s12  }
   0x6   : > { %p26_p0 = scmp.ge.s32.totalorder %s25_s22, 4  ;;  %s28_s23 = sadd.s32 1, %s2263_s19 }
   0x7   : > { %s1749_s24 = sshll.u32 %s2263_s19, 1  ;;  %s43_s25 = sadd.s32 1, %s2247_s15 }
   0x8   : > { %s2808_s22 = smov (%p26_p0, %s25_s22), 0  ;;  %s2810_s23 = smov (!%p26_p0, %s28_s23), %s2263_s19 }
   0x9   : > { %s37_s26 = sadd.s32 %s2259_s18, %s1749_s24  ;;  %p50_p1 = scmp.ne.s32.totalorder %s2247_s15, %s2243_s14 }
   0xa   : > { %p30_p2 = scmp.ge.s32.totalorder %s2810_s23, 4  ;;  %p51_p3 = scmp.eq.s32.totalorder %s2267_s20, 0 }
   0xb   : > { %s123_s27 = sadd.s32 1, %s2239_s13  ;;  %p133_p4 = scmp.ne.s32.totalorder %s2239_s13, %s2235_s12 }
   0xc   : > { %s2812_s23 = smov (%p30_p2, %s2810_s23), 0  ;;  %p52_p5 = por %p51_p3, %p50_p1 }
   0xd   : > { %p134_p6 = scmp.eq.s32.totalorder %s1747_s21, 15  ;;  %s1750_s28 = sshll.u32 %s2812_s23, 1 }
   0xe   : > { %s118_s29 = ssub.s32 %s2263_s19, %s2812_s23  ;;  %s39_s30 = sadd.s32 %s1750_s28, %s2808_s22 }
   0xf   : > { %p121_p7 = scmp.eq.s32.totalorder %s118_s29, 0  ;;  %s40_s4 = ssub.s32 %s37_s26, %s39_s30 }
  0x10   : > { %p2357_p8 = por %p134_p6, %p133_p4  ;;  %p41_p9 = scmp.eq.s32.totalorder %s40_s4, 0 }
  0x11   : > { %s2362_s6 = scalar_select %p121_p7, %s2239_s13, %s123_s27  }
  0x12   : > { %s2365_s7 = scalar_select %p41_p9, %s2247_s15, %s43_s25  }
  0x13   : > { %p1754_p10 = scmp.ge.s32.totalorder %s2267_s20, 16 }
  0x15   : > { %173 = sbr.rel (%p1754_p10) target bundleno = 35 (0x23), region = 24 }
  0x1c   : > { %176 = sbr.rel (!%p52_p5) target bundleno = 35 (0x23), region = 28  ;;  %s178_s8 = sand.u32 (%p52_p5), 1, %s2247_s15  }
  0x1d   : > { %s2016_s9 = sshll.u32 (%p52_p5), %s37_s26, 3  ;;  %s1755_s10 = sshll.u32 (%p52_p5), %s178_s8, 4 }
  0x1e   : > { %s185_s24 = scalar_lea.vmem (%p52_p5), %s2764_s0, %s2016_s9  ;;  %s180_s28 = scalar_lea.vmem (%p52_p5), [#allocation3], %s1755_s10 }
  0x1f   : > { %v201_v0 = vld [vmem:[%s185_s24] sm:$0xff] (%p52_p5)   ;;  %v205_v1 = vld [vmem:[%s185_s24 + $0x50] sm:$0xff] (%p52_p5)  }
  0x20   : > { %202 = vst [vmem:[%s180_s28] sm:$0xff] (%p52_p5), %v201_v0   ;;  %206 = vst [vmem:[%s180_s28 + $0x8] sm:$0xff] (%p52_p5), %v205_v1  }
  0x23 PF: > { %p1759_p11 = scmp.ge.s32.totalorder %s2267_s20, 1  ;;  %p238_p12 = scmp.lt.s32.totalorder %s2267_s20, 17 }
  0x25   : > { %p239_p13 = pnand %p1759_p11, %p238_p12 }
  0x27   : > { %242 = sbr.rel (%p239_p13) target bundleno = 431 (0x1af), region = 69 }
  0x2e   : > { %s245_s25 = sand.u32 1, %s2243_s14   ;;  %s273_s26 = sand.u32 1, %s2235_s12  }
  0x2f   : > { %s1760_s27 = sshll.u32 %s245_s25, 4  ;;  %s1761_s29 = sshll.u32 %s273_s26, 3 }
  0x30   : > { %s2376_s30 = scalar_lea.vmem [#allocation3], %s1760_s27  ;;  %s2378_s4 = scalar_lea.vmem [#allocation4], %s1761_s29 }
  0x31   : > { %p1762_p0 = scmp.ne.s32.totalorder %s2251_s16, 0 }
  0x32   : > { %v2269_v2 = vmov (!%p1762_p0), 0.0  }
  0x33   : > { %294 = sbr.rel (%p1762_p0) target bundleno = 58 (0x3a), region = 77  ;;  %295 = vst [vmem:[#allocation2] sm:$0xff] (!%p1762_p0), %v2269_v2  ;;  %296 = vst [vmem:[#allocation2 + $0x8] sm:$0xff] (!%p1762_p0), %v2269_v2 }
  0x3a PF: > { %s2018_s8 = sshll.u32 %s2251_s16, 9  ;;  %v2768_v3 = vmov 0   ;;  %v297_v36 = vld [vmem:[%s2376_s30] sm:$0x3]  ;;  %v1782_v42 = vld [vmem:[%s2376_s30 + $0x4] sm:$0x3] }
  0x3b   : > { %s2385_s14 = scalar_lea.vmem %s2765_s1, %s2018_s8  ;;  %431 = vmatprep.mubr.bf16.mxu0 %v2768_v3  ;;  %581 = vmatprep.mubr.bf16.mxu1 %v2768_v3  ;;  %v2190_v59 = vld [vmem:[%s2376_s30] ss:$0 sps:$4 sm:$0x77]   ;;  %v2194_v63 = vld [vmem:[%s2376_s30 + $0x4] ss:$0 sps:$4 sm:$0x77]  }
  0x3c   : > { %v2390_v4 = vld [vmem:[%s2385_s14 + $0x4] ss:$8 sps:$4 sm:$0xff]   ;;  %v2393_v5 = vld [vmem:[%s2385_s14] ss:$8 sps:$4 sm:$0xff]   ;;  %v2397_v6 = vld [vmem:[%s2385_s14 + $0x14] ss:$8 sps:$4 sm:$0xff]  }
  0x3d   : > { %399 = vmatprep.subr.bf16.mxu0 %v2390_v4  ;;  %v2400_v7 = vld [vmem:[%s2385_s14 + $0x10] ss:$8 sps:$4 sm:$0xff]   ;;  %v2404_v8 = vld [vmem:[%s2385_s14 + $0x84] ss:$8 sps:$4 sm:$0xff]   ;;  %v2411_v10 = vld [vmem:[%s2385_s14 + $0x80] ss:$8 sps:$4 sm:$0xff]  }
  0x3e   : > { %400 = vmatpush1.bf16.msra.mxu0 %v2393_v5  ;;  %v2408_v9 = vld [vmem:[%s2385_s14 + $0x24] ss:$8 sps:$4 sm:$0xff]   ;;  %549 = vmatprep.subr.bf16.mxu1 %v2404_v8  ;;  %v2416_v11 = vld [vmem:[%s2385_s14 + $0x94] ss:$8 sps:$4 sm:$0xff]   ;;  %v2420_v12 = vld [vmem:[%s2385_s14 + $0x20] ss:$8 sps:$4 sm:$0xff]  }
  0x3f   : > { %401 = vmatprep.subr.bf16.mxu0 %v2397_v6  ;;  %550 = vmatpush1.bf16.msra.mxu1 %v2411_v10  ;;  %v2423_v13 = vld [vmem:[%s2385_s14 + $0x34] ss:$8 sps:$4 sm:$0xff]   ;;  %v2426_v14 = vld [vmem:[%s2385_s14 + $0x90] ss:$8 sps:$4 sm:$0xff]   ;;  %v2431_v15 = vld [vmem:[%s2385_s14 + $0xa4] ss:$8 sps:$4 sm:$0xff]  }
  0x40   : > { %551 = vmatprep.subr.bf16.mxu1 %v2416_v11  ;;  %v2435_v16 = vld [vmem:[%s2385_s14 + $0x30] ss:$8 sps:$4 sm:$0xff]   ;;  %v2438_v17 = vld [vmem:[%s2385_s14 + $0xa0] ss:$8 sps:$4 sm:$0xff]   ;;  %v2443_v18 = vld [vmem:[%s2385_s14 + $0xb4] ss:$8 sps:$4 sm:$0xff]  }
  0x41   : > { %v2447_v19 = vld [vmem:[%s2385_s14 + $0x44] ss:$8 sps:$4 sm:$0xff]   ;;  %v2451_v20 = vld [vmem:[%s2385_s14 + $0xb0] ss:$8 sps:$4 sm:$0xff]   ;;  %v2455_v21 = vld [vmem:[%s2385_s14 + $0x40] ss:$8 sps:$4 sm:$0xff]  }
  0x42   : > { %402 = vmatpush1.bf16.msra.mxu0 %v2400_v7  ;;  %v2459_v22 = vld [vmem:[%s2385_s14 + $0xc4] ss:$8 sps:$4 sm:$0xff]   ;;  %v2463_v23 = vld [vmem:[%s2385_s14 + $0x54] ss:$8 sps:$4 sm:$0xff]   ;;  %v2467_v24 = vld [vmem:[%s2385_s14 + $0xc0] ss:$8 sps:$4 sm:$0xff]  }
  0x43   : > { %403 = vmatprep.subr.bf16.mxu0 %v2408_v9  ;;  %552 = vmatpush1.bf16.msra.mxu1 %v2426_v14  ;;  %v2471_v25 = vld [vmem:[%s2385_s14 + $0x50] ss:$8 sps:$4 sm:$0xff]   ;;  %v2475_v26 = vld [vmem:[%s2385_s14 + $0xd4] ss:$8 sps:$4 sm:$0xff]   ;;  %v2479_v27 = vld [vmem:[%s2385_s14 + $0x64] ss:$8 sps:$4 sm:$0xff]  }
  0x44   : > { %553 = vmatprep.subr.bf16.mxu1 %v2431_v15  ;;  %v2483_v28 = vld [vmem:[%s2385_s14 + $0xd0] ss:$8 sps:$4 sm:$0xff]   ;;  %v2487_v29 = vld [vmem:[%s2385_s14 + $0x60] ss:$8 sps:$4 sm:$0xff]   ;;  %v2491_v30 = vld [vmem:[%s2385_s14 + $0xe4] ss:$8 sps:$4 sm:$0xff]  }
  0x45   : > { %v2495_v31 = vld [vmem:[%s2385_s14 + $0x74] ss:$8 sps:$4 sm:$0xff]   ;;  %v2499_v32 = vld [vmem:[%s2385_s14 + $0xe0] ss:$8 sps:$4 sm:$0xff]   ;;  %v2503_v33 = vld [vmem:[%s2385_s14 + $0x70] ss:$8 sps:$4 sm:$0xff]  }
  0x46   : > { %404 = vmatpush1.bf16.msra.mxu0 %v2420_v12  ;;  %v2507_v34 = vld [vmem:[%s2385_s14 + $0xf4] ss:$8 sps:$4 sm:$0xff]   ;;  %v2511_v35 = vld [vmem:[%s2385_s14 + $0x104] ss:$8 sps:$4 sm:$0xff]   ;;  %v2516_v37 = vld [vmem:[%s2385_s14 + $0xf0] ss:$8 sps:$4 sm:$0xff]  }
  0x47   : > { %405 = vmatprep.subr.bf16.mxu0 %v2423_v13  ;;  %554 = vmatpush1.bf16.msra.mxu1 %v2438_v17  ;;  %v2520_v38 = vld [vmem:[%s2385_s14 + $0x100] ss:$8 sps:$4 sm:$0xff]   ;;  %v2524_v39 = vld [vmem:[%s2385_s14 + $0x184] ss:$8 sps:$4 sm:$0xff]   ;;  %v2528_v40 = vld [vmem:[%s2385_s14 + $0x114] ss:$8 sps:$4 sm:$0xff]  }
  0x48   : > { %555 = vmatprep.subr.bf16.mxu1 %v2443_v18  ;;  %v2532_v41 = vld [vmem:[%s2385_s14 + $0x180] ss:$8 sps:$4 sm:$0xff]   ;;  %v2537_v43 = vld [vmem:[%s2385_s14 + $0x110] ss:$8 sps:$4 sm:$0xff]   ;;  %v2541_v44 = vld [vmem:[%s2385_s14 + $0x194] ss:$8 sps:$4 sm:$0xff]  }
  0x49   : > { %v2545_v45 = vld [vmem:[%s2385_s14 + $0x124] ss:$8 sps:$4 sm:$0xff]   ;;  %v2550_v46 = vld [vmem:[%s2385_s14 + $0x190] ss:$8 sps:$4 sm:$0xff]   ;;  %v2555_v47 = vld [vmem:[%s2385_s14 + $0x120] ss:$8 sps:$4 sm:$0xff]  }
  0x4a   : > { %406 = vmatpush1.bf16.msra.mxu0 %v2435_v16  ;;  %v2559_v48 = vld [vmem:[%s2385_s14 + $0x1a4] ss:$8 sps:$4 sm:$0xff]   ;;  %v2563_v49 = vld [vmem:[%s2385_s14 + $0x134] ss:$8 sps:$4 sm:$0xff]   ;;  %v2567_v50 = vld [vmem:[%s2385_s14 + $0x1a0] ss:$8 sps:$4 sm:$0xff]  }
  0x4b   : > { %407 = vmatprep.subr.bf16.mxu0 %v2447_v19  ;;  %556 = vmatpush1.bf16.msra.mxu1 %v2451_v20  ;;  %v2571_v51 = vld [vmem:[%s2385_s14 + $0x130] ss:$8 sps:$4 sm:$0xff]   ;;  %v2575_v52 = vld [vmem:[%s2385_s14 + $0x1b4] ss:$8 sps:$4 sm:$0xff]   ;;  %v2579_v53 = vld [vmem:[%s2385_s14 + $0x144] ss:$8 sps:$4 sm:$0xff]  }
  0x4c   : > { %557 = vmatprep.subr.bf16.mxu1 %v2459_v22  ;;  %v2583_v54 = vld [vmem:[%s2385_s14 + $0x1b0] ss:$8 sps:$4 sm:$0xff]   ;;  %v2587_v55 = vld [vmem:[%s2385_s14 + $0x140] ss:$8 sps:$4 sm:$0xff]   ;;  %v2591_v56 = vld [vmem:[%s2385_s14 + $0x1c4] ss:$8 sps:$4 sm:$0xff]  }
  0x4d   : > { %2780 = vst [vmem:[#allocation5_spill] sm:$0xff] %v2583_v54  ;;  %2781 = vst [vmem:[#allocation6_spill] sm:$0xff] %v2587_v55  ;;  %v2595_v57 = vld [vmem:[%s2385_s14 + $0x154] ss:$8 sps:$4 sm:$0xff]   ;;  %v2599_v58 = vld [vmem:[%s2385_s14 + $0x1c0] ss:$8 sps:$4 sm:$0xff]  }
  0x4e   : > { %408 = vmatpush1.bf16.msra.mxu0 %v2455_v21  ;;  %2782 = vst [vmem:[#allocation7_spill] sm:$0xff] %v2591_v56  ;;  %2783 = vst [vmem:[#allocation8_spill] sm:$0xff] %v2595_v57  ;;  %v2604_v60 = vld [vmem:[%s2385_s14 + $0x150] ss:$8 sps:$4 sm:$0xff]   ;;  %v2608_v61 = vld [vmem:[%s2385_s14 + $0x1d4] ss:$8 sps:$4 sm:$0xff]  }
  0x4f   : > { %409 = vmatprep.subr.bf16.mxu0 %v2463_v23  ;;  %558 = vmatpush1.bf16.msra.mxu1 %v2467_v24  ;;  %2784 = vst [vmem:[#allocation9_spill] sm:$0xff] %v2599_v58  ;;  %2785 = vst [vmem:[#allocation10_spill] sm:$0xff] %v2604_v60  ;;  %v2612_v62 = vld [vmem:[%s2385_s14 + $0x164] ss:$8 sps:$4 sm:$0xff]   ;;  %v2617_v0 = vld [vmem:[%s2385_s14 + $0x1d0] ss:$8 sps:$4 sm:$0xff]  }
  0x50   : > { %559 = vmatprep.subr.bf16.mxu1 %v2475_v26  ;;  %2786 = vst [vmem:[#allocation11_spill] sm:$0xff] %v2608_v61  ;;  %2787 = vst [vmem:[#allocation12_spill] sm:$0xff] %v2612_v62  ;;  %v624_v1 = vshll.u32 %v2190_v59, 16  ;;  %v2621_v2 = vld [vmem:[%s2385_s14 + $0x160] ss:$8 sps:$4 sm:$0xff]   ;;  %p2006_p1 = scmp.ne.s32.totalorder %s2251_s16, 3 }
  0x51   : > { %2788 = vst [vmem:[#allocation13_spill] sm:$0xff] %v2617_v0 }
  0x52   : > { %410 = vmatpush1.bf16.msra.mxu0 %v2471_v25 }
  0x53   : > { %411 = vmatprep.subr.bf16.mxu0 %v2479_v27  ;;  %560 = vmatpush1.bf16.msra.mxu1 %v2483_v28 }
  0x54   : > { %561 = vmatprep.subr.bf16.mxu1 %v2491_v30 }
  0x56   : > { %412 = vmatpush1.bf16.msra.mxu0 %v2487_v29 }
  0x57   : > { %413 = vmatprep.subr.bf16.mxu0 %v2495_v31  ;;  %562 = vmatpush1.bf16.msra.mxu1 %v2499_v32 }
  0x58   : > { %563 = vmatprep.subr.bf16.mxu1 %v2507_v34 }
  0x5a   : > { %414 = vmatpush1.bf16.msra.mxu0 %v2503_v33 }
  0x5b   : > { %709 = vmatprep.subr.bf16.mxu0 %v2511_v35  ;;  %564 = vmatpush1.bf16.msra.mxu1 %v2516_v37 }
  0x5c   : > { %869 = vmatprep.subr.bf16.mxu1 %v2524_v39 }
  0x5d   : > { %432 = vmatmul.mubr.bf16.vlgmr.msra.gmra.mrb[0].mxu0 %v297_v36  ;;  %v2625_v36 = vld [vmem:[%s2385_s14 + $0x1e4] ss:$8 sps:$4 sm:$0xff]  }
  0x5e   : > { %710 = vmatpush1.bf16.msra.mxu0 %v2520_v38  ;;  %741 = vmatprep.mubr.bf16.mxu0 %v2768_v3 }
  0x5f   : > { %711 = vmatprep.subr.bf16.mxu0 %v2528_v40  ;;  %582 = vmatmul.mubr.bf16.vlgmr.msra.gmra.mrb[0].mxu1 %v1782_v42  ;;  %v2629_v42 = vld [vmem:[%s2385_s14 + $0x174] ss:$8 sps:$4 sm:$0xff]  }
  0x60   : > { %870 = vmatpush1.bf16.msra.mxu1 %v2532_v41  ;;  %901 = vmatprep.mubr.bf16.mxu1 %v2768_v3  ;;  %v784_v3 = vshll.u32 %v2194_v63, 16 }
  0x61   : > { %871 = vmatprep.subr.bf16.mxu1 %v2541_v44 }
  0x62   : > { %712 = vmatpush1.bf16.msra.mxu0 %v2537_v43 }
  0x63   : > { %713 = vmatprep.subr.bf16.mxu0 %v2545_v45 }
  0x64   : > { %872 = vmatpush1.bf16.msra.mxu1 %v2550_v46 }
  0x65   : > { %873 = vmatprep.subr.bf16.mxu1 %v2559_v48 }
  0x66   : > { %714 = vmatpush1.bf16.msra.mxu0 %v2555_v47 }
  0x67   : > { %715 = vmatprep.subr.bf16.mxu0 %v2563_v49 }
  0x68   : > { %874 = vmatpush1.bf16.msra.mxu1 %v2567_v50 }
  0x69   : > { %875 = vmatprep.subr.bf16.mxu1 %v2575_v52 }
  0x6a   : > { %716 = vmatpush1.bf16.msra.mxu0 %v2571_v51 }
  0x6b   : > { %717 = vmatprep.subr.bf16.mxu0 %v2579_v53 }
  0x6c   : > { %876 = vmatpush1.bf16.msra.mxu1 %v2583_v54 }
  0x6d   : > { %877 = vmatprep.subr.bf16.mxu1 %v2591_v56  ;;  %v626_v56 = vrot.slane %v624_v1, 1 }
  0x6e   : > { %718 = vmatpush1.bf16.msra.mxu0 %v2587_v55  ;;  %v786_v55 = vrot.slane %v784_v3, 1  ;;  %v2789_v3 = vmov 0  }
  0x6f   : > { %719 = vmatprep.subr.bf16.mxu0 %v2595_v57  ;;  %v622_v57 = vshrl.u32 %v2190_v59, 16 }
  0x70   : > { %878 = vmatpush1.bf16.msra.mxu1 %v2599_v58  ;;  %v2633_v58 = vld [vmem:[%s2385_s14 + $0x1e0] ss:$8 sps:$4 sm:$0xff]  }
  0x71   : > { %879 = vmatprep.subr.bf16.mxu1 %v2608_v61  ;;  %v2641_v61 = vld [vmem:[%s2385_s14 + $0x1f4] ss:$8 sps:$4 sm:$0xff]   ;;  %v627_v54 = vor.u32 %v626_v56, %v622_v57 }
  0x72   : > { %720 = vmatpush1.bf16.msra.mxu0 %v2604_v60  ;;  %v2637_v60 = vld [vmem:[%s2385_s14 + $0x170] ss:$8 sps:$4 sm:$0xff]  }
  0x73   : > { %721 = vmatprep.subr.bf16.mxu0 %v2612_v62  ;;  %v782_v62 = vshrl.u32 %v2194_v63, 16 }
  0x74   : > { %880 = vmatpush1.bf16.msra.mxu1 %v2617_v0  ;;  %v2646_v0 = vld [vmem:[%s2385_s14 + $0x1f0] ss:$8 sps:$4 sm:$0xff]  }
  0x75   : > { %881 = vmatprep.subr.bf16.mxu1 %v2625_v36  ;;  %v787_v59 = vor.u32 %v786_v55, %v782_v62 }
  0x76   : > { %722 = vmatpush1.bf16.msra.mxu0 %v2621_v2 }
  0x77   : > { %723 = vmatprep.subr.bf16.mxu0 %v2629_v42 }
  0x78   : > { %882 = vmatpush1.bf16.msra.mxu1 %v2633_v58 }
  0x79   : > { %883 = vmatprep.subr.bf16.mxu1 %v2641_v61 }
  0x7a   : > { %724 = vmatpush1.bf16.msra.mxu0 %v2637_v60 }
  0x7b   : > { %1016 = vmatprep.subr.bf16.mxu0 %v2390_v4  ;;  %v1888_v4 = vld [vmem:[%s2376_s30 + $0x8] sm:$0x3] }
  0x7c   : > { %884 = vmatpush1.bf16.msra.mxu1 %v2646_v0 }
  0x7d   : > { %742 = vmatmul.mubr.bf16.vlgmr.msra.gmra.mrb[4].mxu0 %v627_v54  ;;  %1162 = vmatprep.subr.bf16.mxu1 %v2404_v8  ;;  %v2791_v8 = vld [vmem:[#allocation6_spill] sm:$0xff] }
  0x7e   : > { %1017 = vmatpush1.bf16.msra.mxu0 %v2393_v5  ;;  %1048 = vmatprep.mubr.bf16.mxu0 %v2789_v3  ;;  %v1905_v5 = vld [vmem:[%s2376_s30 + $0xc] sm:$0x3] }
  0x7f   : > { %1018 = vmatprep.subr.bf16.mxu0 %v2397_v6  ;;  %902 = vmatmul.mubr.bf16.vlgmr.msra.gmra.mrb[4].mxu1 %v787_v59  ;;  %v2790_v6 = vld [vmem:[#allocation5_spill] sm:$0xff] }
  0x80   : > { %1163 = vmatpush1.bf16.msra.mxu1 %v2411_v10  ;;  %1194 = vmatprep.mubr.bf16.mxu1 %v2789_v3  ;;  %v2793_v10 = vld [vmem:[#allocation8_spill] sm:$0xff] }
  0x81   : > { %1164 = vmatprep.subr.bf16.mxu1 %v2416_v11  ;;  %v2196_v11 = vld [vmem:[%s2376_s30 + $0xc] ss:$0 sps:$4 sm:$0x77]  }
  0x82   : > { %1019 = vmatpush1.bf16.msra.mxu0 %v2400_v7  ;;  %v2195_v7 = vld [vmem:[%s2376_s30 + $0x8] ss:$0 sps:$4 sm:$0x77]  }
  0x83   : > { %1020 = vmatprep.subr.bf16.mxu0 %v2408_v9  ;;  %v2792_v9 = vld [vmem:[#allocation7_spill] sm:$0xff] }
  0x84   : > { %1165 = vmatpush1.bf16.msra.mxu1 %v2426_v14  ;;  %v2795_v14 = vld [vmem:[#allocation10_spill] sm:$0xff] }
  0x85   : > { %1166 = vmatprep.subr.bf16.mxu1 %v2431_v15  ;;  %v2796_v15 = vld [vmem:[#allocation11_spill] sm:$0xff] }
  0x86   : > { %1021 = vmatpush1.bf16.msra.mxu0 %v2420_v12  ;;  %v2794_v12 = vld [vmem:[#allocation9_spill] sm:$0xff] }
  0x87   : > { %1022 = vmatprep.subr.bf16.mxu0 %v2423_v13  ;;  %v1233_v13 = vshll.u32 %v2195_v7, 16 }
  0x88   : > { %1167 = vmatpush1.bf16.msra.mxu1 %v2438_v17  ;;  %v1389_v17 = vshll.u32 %v2196_v11, 16 }
  0x89   : > { %1168 = vmatprep.subr.bf16.mxu1 %v2443_v18  ;;  %v2798_v18 = vld [vmem:[#allocation13_spill] sm:$0xff] }
  0x8a   : > { %1023 = vmatpush1.bf16.msra.mxu0 %v2435_v16  ;;  %v2797_v16 = vld [vmem:[#allocation12_spill] sm:$0xff] }
  0x8b   : > { %1024 = vmatprep.subr.bf16.mxu0 %v2447_v19  ;;  %v1231_v19 = vshrl.u32 %v2195_v7, 16 }
  0x8c   : > { %1169 = vmatpush1.bf16.msra.mxu1 %v2451_v20  ;;  %v1235_v20 = vrot.slane %v1233_v13, 1  ;;  %v1527_v13 = vld [vmem:[%s2766_s2] sm:$0x3] (!%p2006_p1) }
  0x8d   : > { %1170 = vmatprep.subr.bf16.mxu1 %v2459_v22  ;;  %v1391_v22 = vrot.slane %v1389_v17, 1 }
  0x8e   : > { %1025 = vmatpush1.bf16.msra.mxu0 %v2455_v21  ;;  %v1387_v21 = vshrl.u32 %v2196_v11, 16  ;;  %v1529_v11 = vlaneseq (!%p2006_p1) }
  0x8f   : > { %1026 = vmatprep.subr.bf16.mxu0 %v2463_v23  ;;  %v1236_v23 = vor.u32 %v1235_v20, %v1231_v19 }
  0x90   : > { %1171 = vmatpush1.bf16.msra.mxu1 %v2467_v24  ;;  %v1392_v24 = vor.u32 %v1391_v22, %v1387_v21 }
  0x91   : > { %1172 = vmatprep.subr.bf16.mxu1 %v2475_v26  ;;  %v318_v26 = vld [vmem:[#allocation2] sm:$0xff] }
  0x92   : > { %1027 = vmatpush1.bf16.msra.mxu0 %v2471_v25 }
  0x93   : > { %1028 = vmatprep.subr.bf16.mxu0 %v2479_v27 }
  0x94   : > { %1173 = vmatpush1.bf16.msra.mxu1 %v2483_v28 }
  0x95   : > { %1174 = vmatprep.subr.bf16.mxu1 %v2491_v30 }
  0x96   : > { %1029 = vmatpush1.bf16.msra.mxu0 %v2487_v29 }
  0x97   : > { %1030 = vmatprep.subr.bf16.mxu0 %v2495_v31 }
  0x98   : > { %1175 = vmatpush1.bf16.msra.mxu1 %v2499_v32 }
  0x99   : > { %1176 = vmatprep.subr.bf16.mxu1 %v2507_v34 }
  0x9a   : > { %1031 = vmatpush1.bf16.msra.mxu0 %v2503_v33 }
  0x9b   : > { %1318 = vmatprep.subr.bf16.mxu0 %v2511_v35 }
  0x9c   : > { %1177 = vmatpush1.bf16.msra.mxu1 %v2516_v37 }
  0x9d   : > { %1049 = vmatmul.mubr.bf16.vlgmr.msra.gmra.mrb[8].mxu0 %v1888_v4  ;;  %1474 = vmatprep.subr.bf16.mxu1 %v2524_v39 }
  0x9e   : > { %1319 = vmatpush1.bf16.msra.mxu0 %v2520_v38  ;;  %1350 = vmatprep.mubr.bf16.mxu0 %v2789_v3 }
  0x9f   : > { %1320 = vmatprep.subr.bf16.mxu0 %v2528_v40  ;;  %1195 = vmatmul.mubr.bf16.vlgmr.msra.gmra.mrb[8].mxu1 %v1905_v5 }
  0xa0   : > { %1475 = vmatpush1.bf16.msra.mxu1 %v2532_v41  ;;  %1506 = vmatprep.mubr.bf16.mxu1 %v2789_v3 }
  0xa1   : > { %1476 = vmatprep.subr.bf16.mxu1 %v2541_v44 }
  0xa2   : > { %1321 = vmatpush1.bf16.msra.mxu0 %v2537_v43 }
  0xa3   : > { %1322 = vmatprep.subr.bf16.mxu0 %v2545_v45 }
  0xa4   : > { %1477 = vmatpush1.bf16.msra.mxu1 %v2550_v46 }
  0xa5   : > { %1478 = vmatprep.subr.bf16.mxu1 %v2559_v48 }
  0xa6   : > { %1323 = vmatpush1.bf16.msra.mxu0 %v2555_v47 }
  0xa7   : > { %1324 = vmatprep.subr.bf16.mxu0 %v2563_v49 }
  0xa8   : > { %1479 = vmatpush1.bf16.msra.mxu1 %v2567_v50 }
  0xa9   : > { %1480 = vmatprep.subr.bf16.mxu1 %v2575_v52 }
  0xaa   : > { %1325 = vmatpush1.bf16.msra.mxu0 %v2571_v51 }
  0xab   : > { %1326 = vmatprep.subr.bf16.mxu0 %v2579_v53  ;;  %v935_v53 = vld [vmem:[#allocation2 + $0x8] sm:$0xff] }
  0xac   : > { %1481 = vmatpush1.bf16.msra.mxu1 %v2790_v6 }
  0xad   : > { %1482 = vmatprep.subr.bf16.mxu1 %v2792_v9 }
  0xae   : > { %1327 = vmatpush1.bf16.msra.mxu0 %v2791_v8 }
  0xaf   : > { %1328 = vmatprep.subr.bf16.mxu0 %v2793_v10 }
  0xb0   : > { %1483 = vmatpush1.bf16.msra.mxu1 %v2794_v12  ;;  %v1530_v12 = vshrl.u32 (!%p2006_p1), %v1529_v11, 7 }
  0xb1   : > { %1484 = vmatprep.subr.bf16.mxu1 %v2796_v15 }
  0xb2   : > { %1329 = vmatpush1.bf16.msra.mxu0 %v2795_v14  ;;  %v1531_v14 = vsub.s32 (!%p2006_p1), 0, %v1530_v12  ;;  %v1535_v15 = vsub.s32 (!%p2006_p1), 1, %v1530_v12 }
  0xb3   : > { %1330 = vmatprep.subr.bf16.mxu0 %v2797_v16 }
  0xb4   : > { %1485 = vmatpush1.bf16.msra.mxu1 %v2798_v18  ;;  %v1532_v16 = vrot.slane (!%p2006_p1), %v1527_v13, %v1531_v14  ;;  %v1536_v17 = vrot.slane (!%p2006_p1), %v1527_v13, %v1535_v15 }
  0xb5   : > { %1486 = vmatprep.subr.bf16.mxu1 %v2625_v36 }
  0xb6   : > { %1331 = vmatpush1.bf16.msra.mxu0 %v2621_v2  ;;  %v1537_v20 = vcombine.low (!%p2006_p1), %v1532_v16, %v1536_v17 }
  0xb7   : > { %1332 = vmatprep.subr.bf16.mxu0 %v2629_v42 }
  0xb8   : > { %1487 = vmatpush1.bf16.msra.mxu1 %v2633_v58 }
  0xb9   : > { %1488 = vmatprep.subr.bf16.mxu1 %v2641_v61 }
  0xba   : > { %1333 = vmatpush1.bf16.msra.mxu0 %v2637_v60 }
  0xbc   : > { %1489 = vmatpush1.bf16.msra.mxu1 %v2646_v0 }
  0xbd   : > { %1351 = vmatmul.mubr.bf16.vlgmr.msra.gmra.mrb[12].mxu0 %v1236_v23 }
  0xbf   : > { %1507 = vmatmul.mubr.bf16.vlgmr.msra.gmra.mrb[12].mxu1 %v1392_v24 }
 0x130   : > { %v433_v25 = vpop.f32.mrb[0].mxu0 }
 0x131   : > { %v435_v27 = vpop.f32.mrb[1].mxu0 }
 0x132   : > { %v442_v28 = vcombine.low %v433_v25, %v435_v27  ;;  %v437_v29 = vpop.f32.mrb[2].mxu0  ;;  %v583_v31 = vpop.f32.mrb[0].mxu1 }
 0x133   : > { %v438_v30 = vpop.f32.mrb[3].mxu0  ;;  %v585_v33 = vpop.f32.mrb[1].mxu1 }
 0x134   : > { %v444_v32 = vadd.f32 %v442_v28, %v318_v26  ;;  %v592_v34 = vcombine.low %v583_v31, %v585_v33  ;;  %v587_v35 = vpop.f32.mrb[2].mxu1 }
 0x135   : > { %v588_v37 = vpop.f32.mrb[3].mxu1 }
 0x136   : > { %v594_v38 = vadd.f32 %v592_v34, %v444_v32 }
 0x150   : > { %v743_v39 = vpop.f32.mrb[4].mxu0 }
 0x151   : > { %v745_v40 = vpop.f32.mrb[5].mxu0 }
 0x152   : > { %v752_v41 = vcombine.low %v743_v39, %v745_v40  ;;  %v747_v43 = vpop.f32.mrb[6].mxu0  ;;  %v903_v45 = vpop.f32.mrb[4].mxu1 }
 0x153   : > { %v748_v44 = vpop.f32.mrb[7].mxu0  ;;  %v905_v47 = vpop.f32.mrb[5].mxu1 }
 0x154   : > { %v754_v46 = vadd.f32 %v752_v41, %v594_v38  ;;  %v912_v48 = vcombine.low %v903_v45, %v905_v47  ;;  %v907_v49 = vpop.f32.mrb[6].mxu1 }
 0x155   : > { %v908_v50 = vpop.f32.mrb[7].mxu1 }
 0x156   : > { %v914_v51 = vadd.f32 %v912_v48, %v754_v46 }
 0x158   : > { %915 = vst [vmem:[#allocation2] sm:$0xff] %v914_v51 }
 0x15f   : > { %v1525_v18 = vld [vmem:[#allocation2] sm:$0xff] (!%p2006_p1) }
 0x160   : > { %v1539_v21 = vadd.f32 (!%p2006_p1), %v1537_v20, %v1525_v18 }
 0x162   : > { %v1543_v23 = vcombine.high (!%p2006_p1), %v1539_v21, %v1539_v21 }
 0x164   : > { %v2007_v25 = vpack.c.bf16 (!%p2006_p1), %v1543_v23, %v1539_v21 }
 0x166   : > { %2009 = vst.sshfl [vmem:[%s2378_s4] sm:$0x33 pattern:$0x76325410] (!%p2006_p1), %v2007_v25 }
 0x170   : > { %v1050_v52 = vpop.f32.mrb[8].mxu0 }
 0x171   : > { %v1052_v54 = vpop.f32.mrb[9].mxu0 }
 0x172   : > { %v1059_v55 = vcombine.low %v1050_v52, %v1052_v54  ;;  %v1054_v56 = vpop.f32.mrb[10].mxu0  ;;  %v1196_v58 = vpop.f32.mrb[8].mxu1 }
 0x173   : > { %v1055_v57 = vpop.f32.mrb[11].mxu0  ;;  %v1198_v61 = vpop.f32.mrb[9].mxu1 }
 0x174   : > { %v1061_v60 = vadd.f32 %v1059_v55, %v935_v53  ;;  %v1205_v62 = vcombine.low %v1196_v58, %v1198_v61  ;;  %v1200_v63 = vpop.f32.mrb[10].mxu1 }
 0x175   : > { %v1201_v0 = vpop.f32.mrb[11].mxu1 }
 0x176   : > { %v1207_v1 = vadd.f32 %v1205_v62, %v1061_v60 }
 0x190   : > { %v1352_v2 = vpop.f32.mrb[12].mxu0 }
 0x191   : > { %v1354_v36 = vpop.f32.mrb[13].mxu0 }
 0x192   : > { %v1361_v42 = vcombine.low %v1352_v2, %v1354_v36  ;;  %v1356_v59 = vpop.f32.mrb[14].mxu0  ;;  %v1508_v4 = vpop.f32.mrb[12].mxu1  ;;  %1524 = sbr.rel (%p2006_p1) target bundleno = 423 (0x1a7), region = 81 }
 0x193   : > { %v1357_v3 = vpop.f32.mrb[15].mxu0  ;;  %v1510_v6 = vpop.f32.mrb[13].mxu1 }
 0x194   : > { %v1363_v5 = vadd.f32 %v1361_v42, %v1207_v1  ;;  %v1517_v7 = vcombine.low %v1508_v4, %v1510_v6  ;;  %v1512_v8 = vpop.f32.mrb[14].mxu1 }
 0x195   : > { %v1513_v9 = vpop.f32.mrb[15].mxu1 }
 0x196   : > { %v1519_v10 = vadd.f32 %v1517_v7, %v1363_v5 }
 0x198   : > { %1520 = vst [vmem:[#allocation2 + $0x8] sm:$0xff] %v1519_v10 }
 0x19f   : > { %v1526_v19 = vld [vmem:[#allocation2 + $0x8] sm:$0xff] }
 0x1a0   : > { %v1540_v22 = vadd.f32 %v1537_v20, %v1526_v19 }
 0x1a2   : > { %v1544_v24 = vcombine.high %v1540_v22, %v1540_v22 }
 0x1a4   : > { %v2008_v26 = vpack.c.bf16 %v1544_v24, %v1540_v22 }
 0x1a6   : > { %2010 = vst.sshfl [vmem:[%s2378_s4 + $0x4] sm:$0x33 pattern:$0x76325410] %v2008_v26 }
 0x1a7 PF: > { %1581 = sbr.rel (!%p2357_p8) target bundleno = 431 (0x1af), region = 85  ;;  %s2022_s16 = sshll.u32 (%p2357_p8), %s2255_s17, 2  ;;  %v1602_v27 = vld [vmem:[%s2378_s4] sm:$0xf] (%p2357_p8) }
 0x1a8   : > { %s1586_s28 = scalar_lea.vmem (%p2357_p8), %s2767_s3, %s2022_s16 }
 0x1a9   : > { %1603 = vst [vmem:[%s1586_s28] sm:$0xf] (%p2357_p8), %v1602_v27 }
 0x1ad   : > { %v1604_v28 = vld [vmem:[%s2378_s4 + $0x4] sm:$0xf] (%p2357_p8) }
 0x1ae   : > { %1605 = vst [vmem:[%s1586_s28 + $0x10] sm:$0xf] %v1604_v28 }
 0x1af PF: > { %s13_s20 = sadd.s32 1, %s2267_s20   ;;  %s2799_s12 = smov %s2239_s13 }
 0x1b0   : > { %p10_p2 = scmp.ge.s32.totalorder %s13_s20, 18   ;;  %s2800_s13 = smov %s2362_s6 }
 0x1b1   : > { %s2801_s14 = smov %s2247_s15  ;;  %s2802_s15 = smov %s2365_s7 }
 0x1b2   : > { %s2803_s16 = smov %s2259_s18  ;;  %s2804_s17 = smov %s2263_s19 }
 0x1b3   : > { %s2805_s18 = smov %s2808_s22  ;;  %s2806_s19 = smov %s2812_s23 }
 0x1b4   :  { %12 = sbr.rel (!%p10_p2) target bundleno = 5 (0x5), region = 171 }

// kernel: patchgan_forward.19
= control target key start
LH: loop header
LB: loop body
LE: loop exit
PB: predicated region body
PF: predicated region fallthrough
CT: control target
= control target key end

     0   :  { %s678_s15 = smov 0   ;;  %s680_s16 = smov 0   ;;  %s797_s0 = inlined_call_operand.vmem [shape: bf16[2,9,512], index: 0, kind: input, shape index: {}]   ;;  %s798_s1 = inlined_call_operand.vmem [shape: f32[1,512], index: 1, kind: input, shape index: {}]   ;;  %s799_s2 = inlined_call_operand.vmem [shape: f32[1,512], index: 2, kind: input, shape index: {}]   ;;  %s800_s3 = inlined_call_operand.vmem [shape: f32[2,1,512], index: 3, kind: output, shape index: {0}]   ;;  %s801_s4 = inlined_call_operand.vmem [shape: f32[2,1,512], index: 4, kind: output, shape index: {1}]  }
   0x1   :  { %s682_s17 = smov 0   ;;  %s684_s18 = smov 0  }
   0x2   :  { %s686_s19 = smov 0   ;;  %s688_s20 = smov 0  }
   0x3   :  { %s690_s21 = smov 0  }
   0x4 LB: > { %s30_s22 = sadd.s32 1, %s642_s19  ;;  %s34_s23 = sadd.s32 1, %s646_s20  ;;  %s650_s21 = sphi %s690_s21, %s15_s21   ;;  %s646_s20 = sphi %s688_s20, %s807_s20   ;;  %s642_s19 = sphi %s686_s19, %s806_s19   ;;  %s638_s18 = sphi %s684_s18, %s805_s18   ;;  %s634_s17 = sphi %s682_s17, %s804_s17   ;;  %s630_s16 = sphi %s680_s16, %s803_s16   ;;  %s626_s15 = sphi %s678_s15, %s802_s15  }
   0x5   : > { %p32_p0 = scmp.ge.s32.totalorder %s30_s22, 4  ;;  %p52_p1 = scmp.ne.s32.totalorder %s630_s16, %s626_s15 }
   0x6   : > { %p53_p2 = scmp.eq.s32.totalorder %s650_s21, 0  ;;  %s45_s27 = sadd.s32 1, %s630_s16 }
   0x7   : > { %s809_s22 = smov (%p32_p0, %s30_s22), 0  ;;  %s811_s23 = smov (!%p32_p0, %s34_s23), %s646_s20 }
   0x8   : > { %p54_p3 = por %p53_p2, %p52_p1  ;;  %p36_p4 = scmp.ge.s32.totalorder %s811_s23, 2 }
   0x9   : > { %s41_s24 = ssub.s32 %s642_s19, %s809_s22  ;;  %p527_p6 = scmp.ge.s32.totalorder %s650_s21, 8 }
   0xa   : > { %s813_s23 = smov (%p36_p4, %s811_s23), 0 }
   0xb   : > { %s38_s25 = ssub.s32 %s646_s20, %s813_s23  ;;  %186 = sbr.rel (%p527_p6) target bundleno = 25 (0x19), region = 16 }
   0xc   : > { %s42_s26 = sor.u32 %s41_s24, %s38_s25 }
   0xd   : > { %p43_p5 = scmp.eq.s32.totalorder %s42_s26, 0 }
   0xf   : > { %s729_s28 = scalar_select %p43_p5, %s630_s16, %s45_s27  }
  0x12   : > { %189 = sbr.rel (!%p54_p3) target bundleno = 25 (0x19), region = 20  ;;  %s191_s29 = sand.u32 (%p54_p3), 1, %s630_s16  }
  0x13   : > { %s529_s30 = sshll.u32 (%p54_p3), %s646_s20, 3  ;;  %s528_s5 = sshll.u32 (%p54_p3), %s191_s29, 3 }
  0x14   : > { %s198_s6 = sadd.s32 (%p54_p3), %s642_s19, %s529_s30  ;;  %s193_s11 = scalar_lea.vmem (%p54_p3), [#allocation2], %s528_s5 }
  0x15   : > { %s530_s7 = sshll.u32 (%p54_p3), %s198_s6, 2 }
  0x16   : > { %s200_s10 = scalar_lea.vmem (%p54_p3), %s797_s0, %s530_s7 }
  0x17   : > { %v216_v0 = vld [vmem:[%s200_s10] sm:$0xf] (%p54_p3)  ;;  %v218_v1 = vld [vmem:[%s200_s10 + $0x10] sm:$0xf] (%p54_p3) }
  0x18   : > { %217 = vst [vmem:[%s193_s11] sm:$0xf] (%p54_p3), %v216_v0  ;;  %219 = vst [vmem:[%s193_s11 + $0x4] sm:$0xf] (%p54_p3), %v218_v1 }
  0x19 PF: > { %p531_p7 = scmp.ge.s32.totalorder %s650_s21, 1  ;;  %p257_p8 = scmp.lt.s32.totalorder %s650_s21, 9 }
  0x1b   : > { %p258_p9 = pnand %p531_p7, %p257_p8 }
  0x1c   : > { %p305_p10 = scmp.lt.s32.totalorder (!%p258_p9), %s634_s17, 3  ;;  %p311_p11 = scmp.lt.s32.totalorder (!%p258_p9), %s638_s18, 1  ;;  %vm336_vm0 = vcmask (!%p258_p9), 1040384   ;;  %v652_v6 = vmov (!%p258_p9), 0.0  }
  0x1d   : > { %261 = sbr.rel (%p258_p9) target bundleno = 86 (0x56), region = 69  ;;  %s264_s12 = sand.u32 (!%p258_p9), 1, %s626_s15  }
  0x1e   : > { %s532_s13 = sshll.u32 (!%p258_p9), %s264_s12, 3 }
  0x1f   : > { %s266_s25 = scalar_lea.vmem (!%p258_p9), [#allocation2], %s532_s13 }
  0x20   : > { %v331_v2 = vld [vmem:[%s266_s25] sm:$0xf] (!%p258_p9)  ;;  %v332_v3 = vld [vmem:[%s266_s25 + $0x4] sm:$0x1] (!%p258_p9) }
  0x21   : > { %v333_v4 = vunpack.c.l.bf16 (!%p258_p9), %v331_v2  ;;  %v334_v5 = vunpack.c.l.bf16 (!%p258_p9), %v332_v3 }
  0x23   : > { %v337_v7 = vsel (!%p258_p9), %vm336_vm0, %v334_v5, 0.0  ;;  %v348_v8 = vmul.f32 (!%p258_p9), %v333_v4, %v333_v4  ;;  %v349_v9 = vmul.f32 (!%p258_p9), %v334_v5, %v334_v5 }
  0x24   : > { %s815_s17 = smov (!%p305_p10, %s634_s17), 3  ;;  %s817_s18 = smov (!%p311_p11, %s638_s18), 1  ;;  %v338_v10 = vadd.f32 %v337_v7, %v333_v4 }
  0x25   : > { %s533_s14 = sshll.u32 %s817_s18, 2  ;;  %v350_v11 = vsel %vm336_vm0, %v349_v9, 0.0  ;;  %s307_s7 = scalar_lea.vmem %s798_s1, %s815_s17 }
  0x26   : > { %s316_s24 = sadd.s32 %s533_s14, %s815_s17  ;;  %v339_v12 = vrot.slane %v338_v10, 4  ;;  %v351_v13 = vadd.f32 %v350_v11, %v348_v8  ;;  %v371_v36 = vld [vmem:[%s307_s7] sm:$0x1]  ;;  %s310_s10 = scalar_lea.vmem %s799_s2, %s815_s17 }
  0x27   : > { %s751_s29 = scalar_lea.vmem %s800_s3, %s316_s24  ;;  %s756_s15 = scalar_lea.vmem %s801_s4, %s316_s24  ;;  %v372_v39 = vld [vmem:[%s310_s10] sm:$0x1] }
  0x28   : > { %329 = vst [vmem:[%s751_s29] sm:$0x1] %v652_v6  ;;  %330 = vst [vmem:[%s756_s15] sm:$0x1] %v652_v6  ;;  %v340_v14 = vadd.f32 %v339_v12, %v338_v10  ;;  %v352_v15 = vrot.slane %v351_v13, 4 }
  0x2a   : > { %v341_v16 = vrot.slane %v340_v14, 2  ;;  %v353_v17 = vadd.f32 %v352_v15, %v351_v13 }
  0x2c   : > { %v342_v18 = vadd.f32 %v341_v16, %v340_v14  ;;  %v354_v19 = vrot.slane %v353_v17, 2 }
  0x2e   : > { %v343_v20 = vrot.slane %v342_v18, 1  ;;  %v355_v21 = vadd.f32 %v354_v19, %v353_v17 }
  0x2f   : > { %v335_v22 = vld [vmem:[%s751_s29] sm:$0x1] }
  0x30   : > { %v344_v23 = vadd.f32 %v343_v20, %v342_v18  ;;  %v356_v24 = vrot.slane %v355_v21, 1  ;;  %v347_v25 = vld [vmem:[%s756_s15] sm:$0x1] }
  0x32   : > { %v345_v26 = vadd.f32 %v344_v23, %v335_v22  ;;  %v357_v27 = vadd.f32 %v356_v24, %v355_v21 }
  0x34   : > { %346 = vst [vmem:[%s751_s29] sm:$0x1] %v345_v26  ;;  %v358_v28 = vadd.f32 %v357_v27, %v347_v25 }
  0x36   : > { %359 = vst [vmem:[%s756_s15] sm:$0x1] %v358_v28 }
  0x3b   : > { %v363_v29 = vld [vmem:[%s751_s29] sm:$0x1] }
  0x3c   : > { %v364_v30 = vmul.f32 0.11111111, %v363_v29 }
  0x3d   : > { %v365_v31 = vld [vmem:[%s756_s15] sm:$0x1] }
  0x3e   : > { %v366_v32 = vmul.f32 0.11111111, %v365_v31  ;;  %v367_v33 = vmul.f32 %v364_v30, %v364_v30 }
  0x40   : > { %v368_v34 = vsub.f32 %v366_v32, %v367_v33 }
  0x42   : > { %v369_v35 = vadd.f32 1e-05, %v368_v34 }
  0x44   : > { %594 = vrsqrt.f32 %v369_v35 }
  0x4e   : > { %v595_v37 = vpop.eup %594 }
  0x4f   : > { %v373_v38 = vmul.f32 %v595_v37, %v371_v36 }
  0x51   : > { %374 = vst [vmem:[%s751_s29] sm:$0x1] %v373_v38  ;;  %v375_v40 = vmul.f32 %v373_v38, %v364_v30 }
  0x53   : > { %v376_v41 = vsub.f32 %v372_v39, %v375_v40 }
  0x55   : > { %377 = vst [vmem:[%s756_s15] sm:$0x1] %v376_v41 }
  0x56 PF: > { %s15_s21 = sadd.s32 1, %s650_s21   ;;  %s802_s15 = smov %s630_s16 }
  0x57   : > { %p12_p12 = scmp.ge.s32.totalorder %s15_s21, 10   ;;  %s803_s16 = smov %s729_s28 }
  0x58   : > { %s804_s17 = smov %s642_s19  ;;  %s805_s18 = smov %s646_s20 }
  0x59   : > { %s806_s19 = smov %s809_s22  ;;  %s807_s20 = smov %s813_s23 }
  0x5a   :  { %14 = sbr.rel (!%p12_p12) target bundleno = 4 (0x4), region = 134 }

// kernel: patchgan_forward.20
= control target key start
LH: loop header
LB: loop body
LE: loop exit
PB: predicated region body
PF: predicated region fallthrough
CT: control target
= control target key end

     0   :  { %s664_s12 = smov 0   ;;  %s666_s13 = smov 0   ;;  %s770_s0 = inlined_call_operand.vmem [shape: bf16[2,9,512], index: 0, kind: input, shape index: {}]   ;;  %s771_s1 = inlined_call_operand.vmem [shape: f32[2,1,512], index: 1, kind: input, shape index: {}]   ;;  %s772_s2 = inlined_call_operand.vmem [shape: f32[2,1,512], index: 2, kind: input, shape index: {}]   ;;  %s773_s3 = inlined_call_operand.vmem [shape: bf16[2,9,512], index: 3, kind: output, shape index: {}]  }
   0x1   :  { %s668_s14 = smov 0   ;;  %s670_s15 = smov 0  }
   0x2   :  { %s672_s16 = smov 0   ;;  %s674_s17 = smov 0  }
   0x3   :  { %s676_s18 = smov 0  }
   0x4 LB: > { %s28_s19 = sadd.s32 1, %s634_s16  ;;  %s32_s20 = sadd.s32 1, %s638_s17  ;;  %s642_s18 = sphi %s676_s18, %s13_s18   ;;  %s638_s17 = sphi %s674_s17, %s780_s17   ;;  %s634_s16 = sphi %s672_s16, %s779_s16   ;;  %s630_s15 = sphi %s670_s15, %s778_s15   ;;  %s626_s14 = sphi %s668_s14, %s777_s14   ;;  %s622_s13 = sphi %s666_s13, %s776_s13   ;;  %s618_s12 = sphi %s664_s12, %s775_s12  }
   0x5   : > { %p30_p0 = scmp.ge.s32.totalorder %s28_s19, 4  ;;  %s509_s21 = sadd.s32 4294967295, %s642_s18  }
   0x6   : > { %p50_p1 = scmp.ne.s32.totalorder %s622_s13, %s618_s12  ;;  %p51_p2 = scmp.eq.s32.totalorder %s642_s18, 0 }
   0x7   : > { %s782_s19 = smov (%p30_p0, %s28_s19), 0  ;;  %s784_s20 = smov (!%p30_p0, %s32_s20), %s638_s17 }
   0x8   : > { %p34_p3 = scmp.ge.s32.totalorder %s784_s20, 2  ;;  %p140_p4 = scmp.eq.s32.totalorder %s509_s21, 7 }
   0x9   : > { %s39_s22 = ssub.s32 %s634_s16, %s782_s19  ;;  %p52_p5 = por %p51_p2, %p50_p1 }
   0xa   : > { %s786_s20 = smov (%p34_p3, %s784_s20), 0  ;;  %p712_p6 = por %p140_p4, %p50_p1 }
   0xb   : > { %s36_s24 = ssub.s32 %s638_s17, %s786_s20  ;;  %s43_s26 = sadd.s32 1, %s622_s13 }
   0xc   : > { %s40_s25 = sor.u32 %s39_s22, %s36_s24  ;;  %p512_p8 = scmp.ge.s32.totalorder %s642_s18, 8 }
   0xd   : > { %p41_p7 = scmp.eq.s32.totalorder %s40_s25, 0 }
   0xe   : > { %162 = sbr.rel (%p512_p8) target bundleno = 28 (0x1c), region = 16 }
   0xf   : > { %s720_s27 = scalar_select %p41_p7, %s622_s13, %s43_s26  }
  0x15   : > { %165 = sbr.rel (!%p52_p5) target bundleno = 28 (0x1c), region = 20  ;;  %s167_s28 = sand.u32 (%p52_p5), 1, %s622_s13  }
  0x16   : > { %s514_s29 = sshll.u32 (%p52_p5), %s638_s17, 3  ;;  %s513_s30 = sshll.u32 (%p52_p5), %s167_s28, 3 }
  0x17   : > { %s174_s4 = sadd.s32 (%p52_p5), %s634_s16, %s514_s29  ;;  %s169_s9 = scalar_lea.vmem (%p52_p5), [#allocation2], %s513_s30 }
  0x18   : > { %s515_s5 = sshll.u32 (%p52_p5), %s174_s4, 2 }
  0x19   : > { %s176_s8 = scalar_lea.vmem (%p52_p5), %s770_s0, %s515_s5 }
  0x1a   : > { %v192_v0 = vld [vmem:[%s176_s8] sm:$0xf] (%p52_p5)  ;;  %v194_v1 = vld [vmem:[%s176_s8 + $0x10] sm:$0xf] (%p52_p5) }
  0x1b   : > { %193 = vst [vmem:[%s169_s9] sm:$0xf] (%p52_p5), %v192_v0  ;;  %195 = vst [vmem:[%s169_s9 + $0x4] sm:$0xf] (%p52_p5), %v194_v1 }
  0x1c PF: > { %p516_p9 = scmp.ge.s32.totalorder %s642_s18, 1  ;;  %p241_p10 = scmp.lt.s32.totalorder %s642_s18, 9 }
  0x1e   : > { %p242_p11 = pnand %p516_p9, %p241_p10 }
  0x1f   : > { %s248_s10 = sand.u32 (!%p242_p11), 1, %s618_s12   ;;  %p285_p12 = scmp.lt.s32.totalorder (!%p242_p11), %s630_s15, 1  ;;  %vm337_vm0 = vcmask (!%p242_p11), 1040384   ;;  %vm338_vm1 = vsmask.f32 (!%p242_p11), 256 }
  0x20   : > { %245 = sbr.rel (%p242_p11) target bundleno = 64 (0x40), region = 69  ;;  %s517_s11 = sshll.u32 (!%p242_p11), %s248_s10, 3  ;;  %vm339_vm4 = vmand (!%p242_p11), %vm337_vm0, %vm338_vm1 }
  0x21   : > { %p287_p13 = scmp.lt.s32.totalorder (!%p242_p11), %s626_s14, 3  ;;  %s250_s22 = scalar_lea.vmem (!%p242_p11), [#allocation2], %s517_s11 }
  0x22   : > { %v300_v2 = vld [vmem:[%s250_s22] sm:$0xf] (!%p242_p11)  ;;  %v301_v3 = vld [vmem:[%s250_s22 + $0x4] sm:$0x1] (!%p242_p11)  ;;  %s283_s6 = scalar_lea.vmem (!%p242_p11), [#allocation3], %s517_s11 }
  0x23   : > { %v302_v4 = vunpack.c.l.bf16 (!%p242_p11), %v300_v2  ;;  %v303_v5 = vunpack.c.l.bf16 (!%p242_p11), %v301_v3  ;;  %v340_v16 = vld [vmem:[%s283_s6 + $0x4] sm:$0x1] (!%p242_p11) }
  0x27   : > { %s286_s21 = scalar_select %p285_p12, %s630_s15, 1 }
  0x28   : > { %s288_s24 = scalar_select %p287_p13, %s626_s14, 3 }
  0x29   : > { %s519_s25 = sshll.u32 %s286_s21, 2  ;;  %s526_s7 = sshll.u32 (%p712_p6), %s630_s15, 3 }
  0x2a   : > { %s290_s26 = sadd.s32 %s519_s25, %s288_s24  ;;  %s354_s8 = sadd.s32 (%p712_p6), %s626_s14, %s526_s7 }
  0x2b   : > { %s291_s30 = scalar_lea.vmem %s771_s1, %s290_s26  ;;  %s298_s12 = scalar_lea.vmem %s772_s2, %s290_s26 }
  0x2c   : > { %v521_v6 = vld [vmem:[%s291_s30] ss:$0 sm:$0xff]  ;;  %s527_s9 = sshll.u32 (%p712_p6), %s354_s8, 2 }
  0x2d   : > { %v522_v7 = vld [vmem:[%s298_s12] ss:$0 sm:$0xff]  ;;  %v311_v8 = vmul.f32 %v521_v6, %v302_v4  ;;  %v312_v9 = vmul.f32 %v521_v6, %v303_v5  ;;  %s356_s11 = scalar_lea.vmem (%p712_p6), %s773_s3, %s527_s9 }
  0x2f   : > { %v320_v10 = vadd.f32 %v522_v7, %v311_v8  ;;  %v321_v11 = vadd.f32 %v522_v7, %v312_v9 }
  0x31   : > { %vm322_vm2 = vcmp.ge.f32.partialorder %v320_v10, 0.0  ;;  %v324_v12 = vmul.f32 0.2, %v320_v10  ;;  %vm323_vm3 = vcmp.ge.f32.partialorder %v321_v11, 0.0  ;;  %v325_v13 = vmul.f32 0.2, %v321_v11 }
  0x32   : > { %349 = sbr.rel (!%p712_p6) target bundleno = 64 (0x40), region = 77 }
  0x33   : > { %v326_v14 = vsel %vm322_vm2, %v320_v10, %v324_v12  ;;  %v327_v15 = vsel %vm323_vm3, %v321_v11, %v325_v13 }
  0x34   : > { %v530_v17 = vpack.c.bf16 %v326_v14, %v326_v14  ;;  %v531_v18 = vpack.c.bf16 %v327_v15, %v327_v15 }
  0x36   : > { %336 = vst [vmem:[%s283_s6] sm:$0xf] %v530_v17  ;;  %v341_v19 = vsel %vm339_vm4, %v531_v18, %v340_v16 }
  0x37   : > { %342 = vst [vmem:[%s283_s6 + $0x4] sm:$0x1] %v341_v19 }
  0x3d   : > { %v372_v20 = vld [vmem:[%s283_s6] sm:$0xf] }
  0x3e   : > { %v374_v21 = vld [vmem:[%s283_s6 + $0x4] sm:$0xf]  ;;  %373 = vst [vmem:[%s356_s11] sm:$0xf] %v372_v20 }
  0x3f   : > { %375 = vst [vmem:[%s356_s11 + $0x10] sm:$0xf] %v374_v21 }
  0x40 PF: > { %s13_s18 = sadd.s32 1, %s642_s18   ;;  %s775_s12 = smov %s622_s13 }
  0x41   : > { %p10_p0 = scmp.ge.s32.totalorder %s13_s18, 10   ;;  %s776_s13 = smov %s720_s27 }
  0x42   : > { %s777_s14 = smov %s634_s16  ;;  %s778_s15 = smov %s638_s17 }
  0x43   : > { %s779_s16 = smov %s782_s19  ;;  %s780_s17 = smov %s786_s20 }
  0x44   :  { %12 = sbr.rel (!%p10_p0) target bundleno = 4 (0x4), region = 155 }

// kernel: patchgan_forward.21
= control target key start
LH: loop header
LB: loop body
LE: loop exit
PB: predicated region body
PF: predicated region fallthrough
CT: control target
= control target key end

     0   :  { %s1267_s0 = inlined_call_operand.vmem [shape: bf16[2,5,5,512], index: 0, kind: input, shape index: {}]   ;;  %s1268_s1 = inlined_call_operand.vmem [shape: f32[16,512], index: 1, kind: input, shape index: {}]   ;;  %s1269_s2 = inlined_call_operand.<no memory space> [shape: f32[1], index: 2, kind: input, shape index: {}]   ;;  %s1270_s3 = inlined_call_operand.vmem [shape: f32[2,2,2,1], index: 3, kind: output, shape index: {}]  }
   0x1   :  { %8 = sst [smem:[#allocation3]] %s1269_s2 }
   0x2   :  { %s972_s14 = smov 0   ;;  %s974_s15 = smov 0  }
   0x3   :  { %s976_s16 = smov 0   ;;  %s978_s17 = smov 0  }
   0x4   :  { %s980_s18 = smov 0   ;;  %s982_s19 = smov 0  }
   0x5   :  { %s984_s20 = smov 0   ;;  %s986_s21 = smov 0  }
   0x6   :  { %s988_s22 = smov 0  }
   0x7 LB: > { %s23_s2 = sadd.s32 1, %s938_s20  ;;  %s26_s23 = sadd.s32 1, %s942_s21  ;;  %s946_s22 = sphi %s988_s22, %s14_s22   ;;  %s942_s21 = sphi %s986_s21, %s1280_s21   ;;  %s938_s20 = sphi %s984_s20, %s1279_s20   ;;  %s934_s19 = sphi %s982_s19, %s1278_s19   ;;  %s930_s18 = sphi %s980_s18, %s1277_s18   ;;  %s926_s17 = sphi %s978_s17, %s1276_s17   ;;  %s922_s16 = sphi %s976_s16, %s1275_s16   ;;  %s918_s15 = sphi %s974_s15, %s1274_s15   ;;  %s914_s14 = sphi %s972_s14, %s1273_s14  }
   0x8   : > { %p24_p0 = scmp.ge.s32.totalorder %s23_s2, 4  ;;  %s765_s24 = sadd.s32 4294967295, %s946_s22  }
   0x9   : > { %s30_s25 = sadd.s32 %s938_s20, %s942_s21  ;;  %p42_p1 = scmp.ne.s32.totalorder %s926_s17, %s922_s16 }
   0xa   : > { %s1282_s2 = smov (%p24_p0, %s23_s2), 0  ;;  %s1284_s23 = smov (!%p24_p0, %s26_s23), %s942_s21 }
   0xb   : > { %p43_p2 = scmp.eq.s32.totalorder %s946_s22, 0  ;;  %p28_p3 = scmp.ge.s32.totalorder %s1284_s23, 2 }
   0xc   : > { %s35_s26 = sadd.s32 1, %s926_s17  ;;  %p113_p5 = scmp.ne.s32.totalorder %s918_s15, %s914_s14 }
   0xd   : > { %p1029_p4 = por %p43_p2, %p42_p1  ;;  %s1286_s23 = smov (%p28_p3, %s1284_s23), 0 }
   0xe   : > { %s103_s28 = sadd.s32 1, %s918_s15  ;;  %p114_p6 = scmp.eq.s32.totalorder %s765_s24, 7 }
   0xf   : > { %s31_s29 = sadd.s32 %s1286_s23, %s1282_s2  ;;  %s100_s30 = ssub.s32 %s942_s21, %s1286_s23 }
  0x10   : > { %s32_s4 = ssub.s32 %s30_s25, %s31_s29  ;;  %p101_p7 = scmp.eq.s32.totalorder %s100_s30, 0 }
  0x11   : > { %p33_p8 = scmp.eq.s32.totalorder %s32_s4, 0  ;;  %p1042_p9 = por %p114_p6, %p113_p5 }
  0x12   : > { %s1047_s6 = scalar_select %p101_p7, %s918_s15, %s103_s28  }
  0x13   : > { %s1050_s7 = scalar_select %p33_p8, %s926_s17, %s35_s26  }
  0x14   : > { %p768_p10 = scmp.ge.s32.totalorder %s946_s22, 8 }
  0x16   : > { %142 = sbr.rel (%p768_p10) target bundleno = 36 (0x24), region = 24 }
  0x1d   : > { %145 = sbr.rel (!%p1029_p4) target bundleno = 36 (0x24), region = 28  ;;  %s147_s8 = sand.u32 (%p1029_p4), 1, %s926_s17  }
  0x1e   : > { %s798_s9 = sshll.u32 (%p1029_p4), %s30_s25, 4  ;;  %s769_s10 = sshll.u32 (%p1029_p4), %s147_s8, 5 }
  0x1f   : > { %s153_s13 = scalar_lea.vmem (%p1029_p4), %s1267_s0, %s798_s9  ;;  %s149_s24 = scalar_lea.vmem (%p1029_p4), [#allocation4], %s769_s10 }
  0x20   : > { %v166_v0 = vld [vmem:[%s153_s13] sm:$0xff] (%p1029_p4)  ;;  %v168_v1 = vld [vmem:[%s153_s13 + $0x8] sm:$0xff] (%p1029_p4)  ;;  %v170_v2 = vld [vmem:[%s153_s13 + $0x50] sm:$0xff] (%p1029_p4) }
  0x21   : > { %167 = vst [vmem:[%s149_s24] sm:$0xff] (%p1029_p4), %v166_v0  ;;  %169 = vst [vmem:[%s149_s24 + $0x8] sm:$0xff] (%p1029_p4), %v168_v1  ;;  %v172_v3 = vld [vmem:[%s153_s13 + $0x58] sm:$0xff] (%p1029_p4) }
  0x22   : > { %171 = vst [vmem:[%s149_s24 + $0x10] sm:$0xff] (%p1029_p4), %v170_v2  ;;  %173 = vst [vmem:[%s149_s24 + $0x18] sm:$0xff] (%p1029_p4), %v172_v3 }
  0x24 PF: > { %p772_p11 = scmp.ge.s32.totalorder %s946_s22, 1  ;;  %p178_p12 = scmp.lt.s32.totalorder %s946_s22, 9 }
  0x26   : > { %p179_p13 = pnand %p772_p11, %p178_p12 }
  0x27   : > { %s185_s25 = sand.u32 (!%p179_p13), 1, %s922_s16   ;;  %s204_s26 = sand.u32 (!%p179_p13), 1, %s914_s14  }
  0x28   : > { %182 = sbr.rel (%p179_p13) target bundleno = 268 (0x10c), region = 51  ;;  %s773_s27 = sshll.u32 (!%p179_p13), %s185_s25, 5 }
  0x29   : > { %s774_s28 = sshll.u32 (!%p179_p13), %s204_s26, 2  ;;  %s1063_s29 = scalar_lea.vmem (!%p179_p13), [#allocation4], %s773_s27 }
  0x2a   : > { %s1065_s30 = scalar_lea.vmem (!%p179_p13), [#allocation5], %s774_s28  ;;  %p775_p0 = scmp.ne.s32.totalorder (!%p179_p13), %s930_s18, 0 }
  0x2f   : > { %211 = sbr.rel (%p775_p0) target bundleno = 54 (0x36), region = 59  ;;  %vm212_vm0 = vcmask (!%p775_p0), 1024   ;;  %v948_v4 = vmov (!%p775_p0), 0.0  }
  0x30   : > { %213 = vst.msk [vmem:[#allocation2] sm:$0x3] (!%p775_p0), %vm212_vm0, %v948_v4  ;;  %214 = vst.msk [vmem:[#allocation2 + $0x2] sm:$0x3] (!%p775_p0), %vm212_vm0, %v948_v4 }
  0x36 PF: > { %v215_v5 = vld [vmem:[%s1063_s29] sm:$0x11]  ;;  %v216_v6 = vld [vmem:[%s1063_s29 + $0x8] sm:$0x11]  ;;  %s1071_s14 = sshll.u32 %s930_s18, 2  ;;  %v233_v7 = vlaneseq  ;;  %vm257_vm1 = vcmask 1041408  }
  0x37   : > { %v217_v8 = vunpack.c.l.bf16 %v215_v5  ;;  %v218_v9 = vunpack.c.h.bf16 %v215_v5  ;;  %v219_v10 = vunpack.c.l.bf16 %v216_v6  ;;  %v220_v11 = vunpack.c.h.bf16 %v216_v6  ;;  %s222_s16 = sshra.s32 %s1071_s14, 3  ;;  %s225_s4 = sand.u32 7, %s1071_s14  ;;  %v785_v12 = vld [vmem:[%s1063_s29 + $0x10] sm:$0x11]  ;;  %v786_v13 = vld [vmem:[%s1063_s29 + $0x18] sm:$0x11] }
  0x38   : > { %s799_s8 = sshll.u32 %s222_s16, 5  ;;  %v234_v14 = vshrl.u32 %v233_v7, 7  ;;  %v444_v15 = vunpack.c.l.bf16 %v785_v12  ;;  %v445_v16 = vunpack.c.h.bf16 %v785_v12  ;;  %v446_v17 = vunpack.c.l.bf16 %v786_v13  ;;  %v1078_v18 = vld [vmem:[%s1063_s29] sm:$0x33]  ;;  %v1081_v19 = vld [vmem:[%s1063_s29 + $0x8] sm:$0x33] }
  0x39   : > { %s228_s9 = sadd.s32 %s799_s8, %s225_s4  ;;  %v447_v20 = vunpack.c.h.bf16 %v786_v13  ;;  %v272_v21 = vunpack.c.l.bf16 %v1078_v18  ;;  %v273_v22 = vunpack.c.h.bf16 %v1078_v18  ;;  %v274_v23 = vunpack.c.l.bf16 %v1081_v19  ;;  %s276_s10 = sadd.s32 1, %s1071_s14  ;;  %v1088_v24 = vld [vmem:[%s1063_s29 + $0x10] sm:$0x33]  ;;  %v1091_v25 = vld [vmem:[%s1063_s29 + $0x18] sm:$0x33] }
  0x3a   : > { %s229_s13 = scalar_lea.vmem %s1268_s1, %s228_s9  ;;  %v1096_v26 = vsub.s32 0, %v234_v14  ;;  %v1098_v27 = vsub.s32 1, %v234_v14  ;;  %v1100_v28 = vsub.s32 2, %v234_v14  ;;  %v1102_v29 = vsub.s32 3, %v234_v14  ;;  %s277_s24 = sshra.s32 %s276_s10, 3 }
  0x3b   : > { %v230_v30 = vld [vmem:[%s229_s13] ss:$8 sm:$0xf]  ;;  %v275_v32 = vunpack.c.h.bf16 %v1081_v19  ;;  %v489_v33 = vunpack.c.l.bf16 %v1088_v24  ;;  %v490_v34 = vunpack.c.h.bf16 %v1088_v24  ;;  %v491_v35 = vunpack.c.l.bf16 %v1091_v25  ;;  %s280_s25 = sand.u32 7, %s276_s10  ;;  %s800_s26 = sshll.u32 %s277_s24, 5 }
  0x3c   : > { %v448_v31 = vld [vmem:[%s229_s13] ss:$8 sm:$0xf]  ;;  %v236_v36 = vrot.slane %v230_v30, %v1096_v26  ;;  %v240_v37 = vrot.slane %v230_v30, %v1098_v27  ;;  %v244_v38 = vrot.slane %v230_v30, %v1100_v28  ;;  %v248_v39 = vrot.slane %v230_v30, %v1102_v29  ;;  %s283_s27 = sadd.s32 %s800_s26, %s280_s25  ;;  %s333_s28 = sadd.s32 2, %s1071_s14  ;;  %v327_v13 = vld [vmem:[%s1063_s29] sm:$0x22] }
  0x3d   : > { %v455_v40 = vrot.slane %v448_v31, %v1096_v26  ;;  %v459_v41 = vrot.slane %v448_v31, %v1098_v27  ;;  %v463_v42 = vrot.slane %v448_v31, %v1100_v28  ;;  %v467_v43 = vrot.slane %v448_v31, %v1102_v29  ;;  %s284_s8 = scalar_lea.vmem %s1268_s1, %s283_s27  ;;  %s334_s9 = sshra.s32 %s333_s28, 3  ;;  %v328_v18 = vld [vmem:[%s1063_s29 + $0x8] sm:$0x22]  ;;  %v789_v24 = vld [vmem:[%s1063_s29 + $0x10] sm:$0x22] }
  0x3e   : > { %v253_v44 = vmul.f32 %v236_v36, %v217_v8  ;;  %v254_v45 = vmul.f32 %v240_v37, %v218_v9  ;;  %v255_v46 = vmul.f32 %v244_v38, %v219_v10  ;;  %v256_v47 = vmul.f32 %v248_v39, %v220_v11  ;;  %v285_v52 = vld [vmem:[%s284_s8] ss:$8 sm:$0xf]  ;;  %s337_s10 = sand.u32 7, %s333_s28  ;;  %s801_s11 = sshll.u32 %s334_s9, 5 }
  0x3f   : > { %v472_v48 = vmul.f32 %v455_v40, %v444_v15  ;;  %v473_v49 = vmul.f32 %v459_v41, %v445_v16  ;;  %v474_v50 = vmul.f32 %v463_v42, %v446_v17  ;;  %v475_v51 = vmul.f32 %v467_v43, %v447_v20  ;;  %v493_v1 = vld [vmem:[%s284_s8] ss:$8 sm:$0xf]  ;;  %s340_s12 = sadd.s32 %s801_s11, %s337_s10  ;;  %s390_s13 = sadd.s32 3, %s1071_s14 }
  0x40   : > { %v258_v53 = vsel %vm257_vm1, %v253_v44, 0.0  ;;  %v259_v54 = vsel %vm257_vm1, %v254_v45, 0.0  ;;  %v261_v55 = vsel %vm257_vm1, %v255_v46, 0.0  ;;  %v263_v56 = vsel %vm257_vm1, %v256_v47, 0.0  ;;  %s1145_s26 = scalar_lea.vmem %s1268_s1, %s340_s12  ;;  %s1149_s27 = sshra.s32 %s390_s13, 3 }
  0x41   : > { %v260_v57 = vadd.f32 %v259_v54, %v258_v53  ;;  %v476_v58 = vsel %vm257_vm1, %v472_v48, 0.0  ;;  %v477_v59 = vsel %vm257_vm1, %v473_v49, 0.0  ;;  %v479_v60 = vsel %vm257_vm1, %v474_v50, 0.0  ;;  %v342_v36 = vld [vmem:[%s1145_s26] ss:$8 sm:$0xf] }
  0x42   : > { %v478_v61 = vadd.f32 %v477_v59, %v476_v58  ;;  %v481_v62 = vsel %vm257_vm1, %v475_v51, 0.0  ;;  %v291_v63 = vrot.slane %v285_v52, %v1096_v26  ;;  %v295_v0 = vrot.slane %v285_v52, %v1098_v27  ;;  %s394_s28 = sand.u32 7, %s390_s13  ;;  %s802_s16 = sshll.u32 %s1149_s27, 5  ;;  %v790_v49 = vld [vmem:[%s1063_s29 + $0x18] sm:$0x22] }
  0x43   : > { %v262_v2 = vadd.f32 %v261_v55, %v260_v57  ;;  %v299_v3 = vrot.slane %v285_v52, %v1100_v28  ;;  %v303_v4 = vrot.slane %v285_v52, %v1102_v29  ;;  %vm312_vm2 = vcmask 1042433   ;;  %s397_s14 = sadd.s32 %s802_s16, %s394_s28  ;;  %v540_v53 = vld [vmem:[%s1145_s26] ss:$8 sm:$0xf]  ;;  %p793_p1 = scmp.ne.s32.totalorder %s930_s18, 3 }
  0x44   : > { %v480_v5 = vadd.f32 %v479_v60, %v478_v61  ;;  %v308_v6 = vmul.f32 %v291_v63, %v272_v21  ;;  %v309_v7 = vmul.f32 %v295_v0, %v273_v22  ;;  %v492_v8 = vunpack.c.h.bf16 %v1091_v25  ;;  %s1183_s9 = scalar_lea.vmem %s1268_s1, %s397_s14  ;;  %v385_v63 = vld [vmem:[%s1063_s29 + $0x8] sm:$0x66] }
  0x45   : > { %v264_v9 = vadd.f32 %v263_v56, %v262_v2  ;;  %v310_v10 = vmul.f32 %v299_v3, %v274_v23  ;;  %v311_v11 = vmul.f32 %v303_v4, %v275_v32  ;;  %v499_v12 = vrot.slane %v493_v1, %v1096_v26 }
  0x46   : > { %v482_v14 = vadd.f32 %v481_v62, %v480_v5  ;;  %v313_v15 = vsel %vm312_vm2, %v308_v6, 0.0  ;;  %v314_v16 = vsel %vm312_vm2, %v309_v7, 0.0  ;;  %v503_v17 = vrot.slane %v493_v1, %v1098_v27  ;;  %v384_v62 = vld [vmem:[%s1063_s29] sm:$0x66] }
  0x47   : > { %265 = vadd.xlane.f32.xlu0 %v264_v9  ;;  %v315_v19 = vadd.f32 %v314_v16, %v313_v15  ;;  %v316_v20 = vsel %vm312_vm2, %v310_v10, 0.0  ;;  %v318_v21 = vsel %vm312_vm2, %v311_v11, 0.0  ;;  %v507_v22 = vrot.slane %v493_v1, %v1100_v28 }
  0x48   : > { %v511_v23 = vrot.slane %v493_v1, %v1102_v29  ;;  %v516_v30 = vmul.f32 %v499_v12, %v489_v33  ;;  %v517_v31 = vmul.f32 %v503_v17, %v490_v34  ;;  %v329_v32 = vunpack.c.l.bf16 %v327_v13 }
  0x49   : > { %v317_v37 = vadd.f32 %v316_v20, %v315_v19  ;;  %v518_v38 = vmul.f32 %v507_v22, %v491_v35  ;;  %v330_v39 = vunpack.c.h.bf16 %v327_v13  ;;  %v331_v40 = vunpack.c.l.bf16 %v328_v18 }
  0x4a   : > { %v519_v41 = vmul.f32 %v511_v23, %v492_v8  ;;  %v520_v42 = vsel %vm312_vm2, %v516_v30, 0.0  ;;  %v521_v33 = vsel %vm312_vm2, %v517_v31, 0.0  ;;  %v332_v43 = vunpack.c.h.bf16 %v328_v18  ;;  %v399_v8 = vld [vmem:[%s1183_s9] ss:$8 sm:$0xf] }
  0x4b   : > { %483 = vadd.xlane.f32.xlu0 %v482_v14  ;;  %v319_v34 = vadd.f32 %v318_v21, %v317_v37  ;;  %v522_v44 = vadd.f32 %v521_v33, %v520_v42  ;;  %v523_v45 = vsel %vm312_vm2, %v518_v38, 0.0  ;;  %v348_v46 = vrot.slane %v342_v36, %v1096_v26  ;;  %v791_v21 = vld [vmem:[%s1063_s29 + $0x10] sm:$0x66] }
  0x4c   : > { %v525_v25 = vsel %vm312_vm2, %v519_v41, 0.0  ;;  %v352_v35 = vrot.slane %v342_v36, %v1098_v27  ;;  %v356_v47 = vrot.slane %v342_v36, %v1100_v28  ;;  %v360_v48 = vrot.slane %v342_v36, %v1102_v29 }
  0x4d   : > { %320 = vadd.xlane.f32.xlu1 %v319_v34  ;;  %v524_v50 = vadd.f32 %v523_v45, %v522_v44  ;;  %v365_v51 = vmul.f32 %v348_v46, %v329_v32  ;;  %vm369_vm3 = vcmask 1043458   ;;  %v536_v52 = vunpack.c.l.bf16 %v789_v24 }
  0x4e   : > { %v366_v54 = vmul.f32 %v352_v35, %v330_v39  ;;  %v367_v55 = vmul.f32 %v356_v47, %v331_v40  ;;  %v368_v56 = vmul.f32 %v360_v48, %v332_v43  ;;  %v537_v57 = vunpack.c.h.bf16 %v789_v24  ;;  %v792_v39 = vld [vmem:[%s1063_s29 + $0x18] sm:$0x66]  ;;  %v587_v40 = vld [vmem:[%s1183_s9] ss:$8 sm:$0xf]  ;;  %s634_s29 = sld [smem:[#allocation3]] (!%p793_p1) }
  0x4f   : > { %v526_v58 = vadd.f32 %v525_v25, %v524_v50  ;;  %v370_v59 = vsel %vm369_vm3, %v365_v51, 0.0  ;;  %v538_v60 = vunpack.c.l.bf16 %v790_v49  ;;  %v539_v61 = vunpack.c.h.bf16 %v790_v49 }
  0x50   : > { %v371_v0 = vsel %vm369_vm3, %v366_v54, 0.0  ;;  %v373_v1 = vsel %vm369_vm3, %v367_v55, 0.0  ;;  %v375_v2 = vsel %vm369_vm3, %v368_v56, 0.0  ;;  %v546_v3 = vrot.slane %v540_v53, %v1096_v26 }
  0x51   : > { %527 = vadd.xlane.f32.xlu1 %v526_v58  ;;  %v372_v4 = vadd.f32 %v371_v0, %v370_v59  ;;  %v550_v5 = vrot.slane %v540_v53, %v1098_v27  ;;  %v554_v6 = vrot.slane %v540_v53, %v1100_v28  ;;  %v558_v7 = vrot.slane %v540_v53, %v1102_v29 }
  0x52   : > { %v563_v9 = vmul.f32 %v546_v3, %v536_v52  ;;  %v386_v10 = vunpack.c.l.bf16 %v384_v62  ;;  %v387_v11 = vunpack.c.h.bf16 %v384_v62  ;;  %v388_v12 = vunpack.c.l.bf16 %v385_v63 }
  0x53   : > { %v374_v13 = vadd.f32 %v373_v1, %v372_v4  ;;  %v564_v14 = vmul.f32 %v550_v5, %v537_v57  ;;  %v565_v15 = vmul.f32 %v554_v6, %v538_v60  ;;  %v566_v16 = vmul.f32 %v558_v7, %v539_v61 }
  0x54   : > { %v567_v17 = vsel %vm369_vm3, %v563_v9, 0.0  ;;  %v389_v18 = vunpack.c.h.bf16 %v385_v63  ;;  %v405_v19 = vrot.slane %v399_v8, %v1096_v26  ;;  %v409_v20 = vrot.slane %v399_v8, %v1098_v27 }
  0x55   : > { %v376_v22 = vadd.f32 %v375_v2, %v374_v13  ;;  %v568_v23 = vsel %vm369_vm3, %v564_v14, 0.0  ;;  %v570_v30 = vsel %vm369_vm3, %v565_v15, 0.0  ;;  %v572_v31 = vsel %vm369_vm3, %v566_v16, 0.0  ;;  %v450_v2 = vld [vmem:[#allocation2 + $0x2] sm:$0x3] }
  0x56   : > { %v569_v32 = vadd.f32 %v568_v23, %v567_v17  ;;  %v413_v36 = vrot.slane %v399_v8, %v1100_v28  ;;  %v417_v37 = vrot.slane %v399_v8, %v1102_v29  ;;  %v422_v38 = vmul.f32 %v405_v19, %v386_v10 }
  0x57   : > { %377 = vadd.xlane.f32.xlu0 %v376_v22  ;;  %v423_v41 = vmul.f32 %v409_v20, %v387_v11  ;;  %vm426_vm4 = vcmask 1044483   ;;  %v583_v42 = vunpack.c.l.bf16 %v791_v21  ;;  %v584_v33 = vunpack.c.h.bf16 %v791_v21 }
  0x58   : > { %v571_v43 = vadd.f32 %v570_v30, %v569_v32  ;;  %v424_v24 = vmul.f32 %v413_v36, %v388_v12  ;;  %v425_v34 = vmul.f32 %v417_v37, %v389_v18  ;;  %v427_v44 = vsel %vm426_vm4, %v422_v38, 0.0 }
  0x59   : > { %v428_v45 = vsel %vm426_vm4, %v423_v41, 0.0  ;;  %v585_v46 = vunpack.c.l.bf16 %v792_v39  ;;  %v586_v25 = vunpack.c.h.bf16 %v792_v39  ;;  %v593_v35 = vrot.slane %v587_v40, %v1096_v26 }
  0x5a   : > { %v573_v47 = vadd.f32 %v572_v31, %v571_v43  ;;  %v429_v48 = vadd.f32 %v428_v45, %v427_v44  ;;  %v430_v49 = vsel %vm426_vm4, %v424_v24, 0.0  ;;  %v432_v50 = vsel %vm426_vm4, %v425_v34, 0.0 }
  0x5b   : > { %v597_v51 = vrot.slane %v587_v40, %v1098_v27  ;;  %v601_v52 = vrot.slane %v587_v40, %v1100_v28  ;;  %v605_v53 = vrot.slane %v587_v40, %v1102_v29  ;;  %v610_v54 = vmul.f32 %v593_v35, %v583_v42  ;;  %v231_v29 = vld [vmem:[#allocation2] sm:$0x3] }
  0x5c   : > { %574 = vadd.xlane.f32.xlu1 %v573_v47  ;;  %v431_v55 = vadd.f32 %v430_v49, %v429_v48  ;;  %vm268_vm5 = vcmask 1024   ;;  %v635_v40 = vstv (!%p793_p1), %s634_s29 }
  0x5d   : > { %v611_v56 = vmul.f32 %v597_v51, %v584_v33  ;;  %v612_v57 = vmul.f32 %v601_v52, %v585_v46  ;;  %v613_v58 = vmul.f32 %v605_v53, %v586_v25  ;;  %v614_v26 = vsel %vm426_vm4, %v610_v54, 0.0 }
  0x5e   : > { %v433_v59 = vadd.f32 %v432_v50, %v431_v55 }
  0x5f   : > { %v615_v60 = vsel %vm426_vm4, %v611_v56, 0.0  ;;  %v617_v61 = vsel %vm426_vm4, %v612_v57, 0.0  ;;  %v619_v27 = vsel %vm426_vm4, %v613_v58, 0.0 }
  0x60   : > { %434 = vadd.xlane.f32.xlu0 %v433_v59  ;;  %v616_v62 = vadd.f32 %v615_v60, %v614_v26 }
  0x62   : > { %v618_v28 = vadd.f32 %v617_v61, %v616_v62 }
  0x64   : > { %v620_v63 = vadd.f32 %v619_v27, %v618_v28 }
  0x66   : > { %621 = vadd.xlane.f32.xlu1 %v620_v63 }
  0xd4   : > { %v266_v0 = vpop.xlane.xlu0 %265 }
  0xd5   : > { %v267_v1 = vadd.f32 %v266_v0, %v231_v29 }
  0xd7   : > { %269 = vst.msk [vmem:[#allocation2] sm:$0x3] %vm268_vm5, %v267_v1 }
  0xd8   : > { %v484_v3 = vpop.xlane.xlu0 %483 }
  0xd9   : > { %v485_v4 = vadd.f32 %v484_v3, %v450_v2 }
  0xda   : > { %v321_v5 = vpop.xlane.xlu1 %320 }
  0xdb   : > { %486 = vst.msk [vmem:[#allocation2 + $0x2] sm:$0x3] %vm268_vm5, %v485_v4  ;;  %v323_v6 = vrot.slane %v321_v5, 1 }
  0xde   : > { %v286_v7 = vld [vmem:[#allocation2] sm:$0x3]  ;;  %v528_v8 = vpop.xlane.xlu1 %527 }
  0xdf   : > { %v325_v9 = vadd.f32 %v323_v6, %v286_v7  ;;  %v530_v10 = vrot.slane %v528_v8, 1 }
  0xe1   : > { %326 = vst.msk [vmem:[#allocation2] sm:$0x3] %vm268_vm5, %v325_v9 }
  0xe2   : > { %v494_v11 = vld [vmem:[#allocation2 + $0x2] sm:$0x3] }
  0xe3   : > { %v532_v12 = vadd.f32 %v530_v10, %v494_v11 }
  0xe4   : > { %v378_v13 = vpop.xlane.xlu0 %377 }
  0xe5   : > { %533 = vst.msk [vmem:[#allocation2 + $0x2] sm:$0x3] %vm268_vm5, %v532_v12  ;;  %v380_v14 = vrot.slane %v378_v13, 2 }
  0xe8   : > { %v343_v15 = vld [vmem:[#allocation2] sm:$0x3] }
  0xe9   : > { %v382_v16 = vadd.f32 %v380_v14, %v343_v15  ;;  %v575_v17 = vpop.xlane.xlu1 %574 }
  0xea   : > { %v577_v18 = vrot.slane %v575_v17, 2 }
  0xeb   : > { %383 = vst.msk [vmem:[#allocation2] sm:$0x3] %vm268_vm5, %v382_v16 }
  0xec   : > { %v541_v19 = vld [vmem:[#allocation2 + $0x2] sm:$0x3] }
  0xed   : > { %v579_v20 = vadd.f32 %v577_v18, %v541_v19  ;;  %v435_v21 = vpop.xlane.xlu0 %434 }
  0xee   : > { %v437_v22 = vrot.slane %v435_v21, 3 }
  0xef   : > { %580 = vst.msk [vmem:[#allocation2 + $0x2] sm:$0x3] %vm268_vm5, %v579_v20 }
  0xf2   : > { %v400_v23 = vld [vmem:[#allocation2] sm:$0x3] }
  0xf3   : > { %v439_v30 = vadd.f32 %v437_v22, %v400_v23  ;;  %v622_v31 = vpop.xlane.xlu1 %621  ;;  %631 = sbr.rel (%p793_p1) target bundleno = 260 (0x104), region = 63 }
  0xf4   : > { %v624_v32 = vrot.slane %v622_v31, 3 }
  0xf5   : > { %440 = vst.msk [vmem:[#allocation2] sm:$0x3] %vm268_vm5, %v439_v30 }
  0xf6   : > { %v588_v36 = vld [vmem:[#allocation2 + $0x2] sm:$0x3] }
  0xf7   : > { %v626_v37 = vadd.f32 %v624_v32, %v588_v36 }
  0xf9   : > { %627 = vst.msk [vmem:[#allocation2 + $0x2] sm:$0x3] %vm268_vm5, %v626_v37 }
  0xfc   : > { %v632_v38 = vld [vmem:[#allocation2] sm:$0x3] }
  0xfd   : > { %v636_v41 = vadd.f32 %v635_v40, %v632_v38 }
  0xff   : > { %638 = vst.msk [vmem:[%s1065_s30] sm:$0x3] %vm268_vm5, %v636_v41 }
 0x100   : > { %v633_v39 = vld [vmem:[#allocation2 + $0x2] sm:$0x3] }
 0x101   : > { %v637_v42 = vadd.f32 %v635_v40, %v633_v39 }
 0x103   : > { %639 = vst.msk [vmem:[%s1065_s30 + $0x2] sm:$0x3] %vm268_vm5, %v637_v42 }
 0x104 PF: > { %646 = sbr.rel (!%p1042_p9) target bundleno = 268 (0x10c), region = 67  ;;  %s795_s18 = sshll.u32 (%p1042_p9), %s934_s19, 1 }
 0x105   : > { %s648_s12 = scalar_lea.vmem (%p1042_p9), %s1270_s3, %s795_s18 }
 0x106   : > { %v664_v33 = vld [vmem:[%s1065_s30] sm:$0x3] (%p1042_p9) }
 0x107   : > { %665 = vst [vmem:[%s648_s12] sm:$0x3] (%p1042_p9), %v664_v33 }
 0x10a   : > { %v666_v43 = vld [vmem:[%s1065_s30 + $0x2] sm:$0x3] (%p1042_p9) }
 0x10b   : > { %667 = vst [vmem:[%s648_s12 + $0x4] sm:$0x3] %v666_v43 }
 0x10c PF: > { %s14_s22 = sadd.s32 1, %s946_s22   ;;  %s1273_s14 = smov %s918_s15 }
 0x10d   : > { %p11_p2 = scmp.ge.s32.totalorder %s14_s22, 10   ;;  %s1274_s15 = smov %s1047_s6 }
 0x10e   : > { %s1275_s16 = smov %s926_s17  ;;  %s1276_s17 = smov %s1050_s7 }
 0x10f   : > { %s1277_s18 = smov %s938_s20  ;;  %s1278_s19 = smov %s942_s21 }
 0x110   : > { %s1279_s20 = smov %s1282_s2  ;;  %s1280_s21 = smov %s1286_s23 }
 0x111   :  { %13 = sbr.rel (!%p11_p2) target bundleno = 7 (0x7), region = 138 }

// kernel: patchgan_forward.18
= control target key start
LH: loop header
LB: loop body
LE: loop exit
PB: predicated region body
PF: predicated region fallthrough
CT: control target
= control target key end

     0   :  { %s6455_s12 = smov 0   ;;  %s6457_s13 = smov 0   ;;  %s7187_s0 = inlined_call_operand.vmem [shape: bf16[2,6,1,6,256], index: 0, kind: input, shape index: {}]   ;;  %s7188_s1 = inlined_call_operand.vmem [shape: bf16[16,256,512], index: 1, kind: input, shape index: {}]   ;;  %s7189_s2 = inlined_call_operand.vmem [shape: f32[1,512], index: 2, kind: input, shape index: {}]   ;;  %s7190_s3 = inlined_call_operand.vmem [shape: bf16[2,3,3,512], index: 3, kind: output, shape index: {}]  }
   0x1   :  { %s6459_s14 = smov 0   ;;  %s6461_s15 = smov 0  }
   0x2   :  { %s6463_s16 = smov 0   ;;  %s6465_s17 = smov 0  }
   0x3   :  { %s6467_s18 = smov 0   ;;  %s6469_s19 = smov 0  }
   0x4   :  { %s6471_s20 = smov 0  }
   0x5 LB: > { %s25_s21 = sadd.s32 1, %s6423_s18  ;;  %s28_s22 = sadd.s32 1, %s6427_s19  ;;  %s6431_s20 = sphi %s6471_s20, %s13_s20   ;;  %s6427_s19 = sphi %s6469_s19, %s7206_s19   ;;  %s6423_s18 = sphi %s6467_s18, %s7205_s18   ;;  %s6419_s17 = sphi %s6465_s17, %s7204_s17   ;;  %s6415_s16 = sphi %s6463_s16, %s7203_s16   ;;  %s6411_s15 = sphi %s6461_s15, %s7202_s15   ;;  %s6407_s14 = sphi %s6459_s14, %s7201_s14   ;;  %s6403_s13 = sphi %s6457_s13, %s7200_s13   ;;  %s6399_s12 = sphi %s6455_s12, %s7199_s12  }
   0x6   : > { %p26_p0 = scmp.ge.s32.totalorder %s25_s21, 4  ;;  %s4548_s23 = sadd.s32 4294967295, %s6431_s20  }
   0x7   : > { %s36_s24 = sadd.s32 %s6423_s18, %s6427_s19  ;;  %p48_p1 = scmp.ne.s32.totalorder %s6411_s15, %s6407_s14 }
   0x8   : > { %s7208_s21 = smov (%p26_p0, %s25_s21), 0  ;;  %s7210_s22 = smov (!%p26_p0, %s28_s22), %s6427_s19 }
   0x9   : > { %p49_p2 = scmp.eq.s32.totalorder %s6431_s20, 0  ;;  %p30_p3 = scmp.ge.s32.totalorder %s7210_s22, 3 }
   0xa   : > { %s41_s25 = sadd.s32 1, %s6411_s15  ;;  %p131_p5 = scmp.ne.s32.totalorder %s6403_s13, %s6399_s12 }
   0xb   : > { %p6512_p4 = por %p49_p2, %p48_p1  ;;  %s7212_s22 = smov (%p30_p3, %s7210_s22), 0 }
   0xc   : > { %s121_s27 = sadd.s32 1, %s6403_s13  ;;  %p132_p6 = scmp.eq.s32.totalorder %s4548_s23, 11 }
   0xd   : > { %s37_s28 = sadd.s32 %s7212_s22, %s7208_s21  ;;  %s116_s29 = ssub.s32 %s6427_s19, %s7212_s22 }
   0xe   : > { %s38_s30 = ssub.s32 %s36_s24, %s37_s28  ;;  %p119_p7 = scmp.eq.s32.totalorder %s116_s29, 0 }
   0xf   : > { %p39_p8 = scmp.eq.s32.totalorder %s38_s30, 0  ;;  %p6525_p9 = por %p132_p6, %p131_p5 }
  0x10   : > { %s6530_s5 = scalar_select %p119_p7, %s6403_s13, %s121_s27  }
  0x11   : > { %s6533_s6 = scalar_select %p39_p8, %s6411_s15, %s41_s25  }
  0x12   : > { %p4553_p10 = scmp.ge.s32.totalorder %s6431_s20, 12 }
  0x14   : > { %171 = sbr.rel (%p4553_p10) target bundleno = 34 (0x22), region = 24 }
  0x1b   : > { %174 = sbr.rel (!%p6512_p4) target bundleno = 34 (0x22), region = 28  ;;  %s176_s7 = sand.u32 (%p6512_p4), 1, %s6411_s15  }
  0x1c   : > { %s5496_s8 = sshll.u32 (%p6512_p4), %s36_s24, 3  ;;  %s4554_s9 = sshll.u32 (%p6512_p4), %s176_s7, 4 }
  0x1d   : > { %s182_s23 = scalar_lea.vmem (%p6512_p4), %s7187_s0, %s5496_s8  ;;  %s178_s27 = scalar_lea.vmem (%p6512_p4), [#allocation3], %s4554_s9 }
  0x1e   : > { %v212_v0 = vld [vmem:[%s182_s23] sm:$0xff] (%p6512_p4)  ;;  %v214_v1 = vld [vmem:[%s182_s23 + $0x30] sm:$0xff] (%p6512_p4) }
  0x1f   : > { %213 = vst [vmem:[%s178_s27] sm:$0xff] (%p6512_p4), %v212_v0  ;;  %215 = vst [vmem:[%s178_s27 + $0x8] sm:$0xff] (%p6512_p4), %v214_v1 }
  0x22 PF: > { %p4557_p11 = scmp.ge.s32.totalorder %s6431_s20, 1  ;;  %p220_p12 = scmp.lt.s32.totalorder %s6431_s20, 13 }
  0x24   : > { %p221_p13 = pnand %p4557_p11, %p220_p12 }
  0x25   : > { %s227_s24 = sand.u32 (!%p221_p13), 1, %s6407_s14   ;;  %s255_s25 = sand.u32 (!%p221_p13), 1, %s6399_s12  }
  0x26   : > { %224 = sbr.rel (%p221_p13) target bundleno = 813 (0x32d), region = 66  ;;  %s4558_s26 = sshll.u32 (!%p221_p13), %s227_s24, 4 }
  0x27   : > { %s4559_s28 = sshll.u32 (!%p221_p13), %s255_s25, 4  ;;  %s6546_s29 = scalar_lea.vmem (!%p221_p13), [#allocation3], %s4558_s26 }
  0x28   : > { %s6548_s30 = scalar_lea.vmem (!%p221_p13), [#allocation4], %s4559_s28  ;;  %p4560_p0 = scmp.ne.s32.totalorder (!%p221_p13), %s6415_s16, 0 }
  0x2d   : > { %274 = sbr.rel (%p4560_p0) target bundleno = 52 (0x34), region = 74  ;;  %v6433_v2 = vmov (!%p4560_p0), 0.0  }
  0x2e   : > { %275 = vst [vmem:[#allocation2] sm:$0x77] (!%p4560_p0), %v6433_v2  ;;  %276 = vst [vmem:[#allocation2 + $0x8] sm:$0x77] (!%p4560_p0), %v6433_v2 }
  0x2f   : > { %277 = vst [vmem:[#allocation2 + $0x10] sm:$0x77] (!%p4560_p0), %v6433_v2  ;;  %278 = vst [vmem:[#allocation2 + $0x18] sm:$0x77] (!%p4560_p0), %v6433_v2 }
  0x34 PF: > { %s5498_s7 = sshll.u32 %s6415_s16, 11  ;;  %v6553_v3 = vld [vmem:[%s6546_s29] sm:$0x33]  ;;  %p5486_p1 = scmp.ne.s32.totalorder %s6415_s16, 3 }
  0x35   : > { %s6558_s8 = scalar_lea.vmem %s7188_s1, %s5498_s7  ;;  %v4565_v4 = vcombine.high %v6553_v3, %v6553_v3  ;;  %v6617_v59 = vld [vmem:[%s6546_s29] sm:$0x33]  ;;  %vm4363_vm0 = vcmask (!%p5486_p1), 1041408   ;;  %vm4364_vm1 = vsmask.f32 (!%p5486_p1), 1280  ;;  %vm4366_vm2 = vcmask (!%p5486_p1), 1043458  }
  0x36   : > { %v5577_v5 = vld [vmem:[%s6558_s8 + $0x4] ss:$16 sps:$4 sm:$0xff]   ;;  %v5579_v6 = vld [vmem:[%s6558_s8 + $0xc] ss:$16 sps:$4 sm:$0xff]   ;;  %v5581_v7 = vld [vmem:[%s6558_s8] ss:$16 sps:$4 sm:$0xff]   ;;  %v4697_v0 = vcombine.high %v6617_v59, %v6617_v59 }
  0x37   : > { %709 = vmatprep.mubr.bf16.mxu0 %v4565_v4  ;;  %750 = vmatprep.mubr.bf16.mxu1 %v4565_v4  ;;  %v5582_v8 = vld [vmem:[%s6558_s8 + $0x8] ss:$16 sps:$4 sm:$0xff]   ;;  %v5583_v9 = vld [vmem:[%s6558_s8 + $0x24] ss:$16 sps:$4 sm:$0xff]   ;;  %v5585_v10 = vld [vmem:[%s6558_s8 + $0x2c] ss:$16 sps:$4 sm:$0xff]  }
  0x38   : > { %677 = vmatprep.subr.bf16.mxu0 %v5577_v5  ;;  %718 = vmatprep.subr.bf16.mxu1 %v5579_v6  ;;  %v5587_v11 = vld [vmem:[%s6558_s8 + $0x20] ss:$16 sps:$4 sm:$0xff]   ;;  %v5588_v12 = vld [vmem:[%s6558_s8 + $0x28] ss:$16 sps:$4 sm:$0xff]   ;;  %v5589_v13 = vld [vmem:[%s6558_s8 + $0x44] ss:$16 sps:$4 sm:$0xff]  }
  0x39   : > { %678 = vmatpush1.bf16.msra.mxu0 %v5581_v7  ;;  %719 = vmatpush1.bf16.msra.mxu1 %v5582_v8  ;;  %v5591_v14 = vld [vmem:[%s6558_s8 + $0x4c] ss:$16 sps:$4 sm:$0xff]   ;;  %v5593_v15 = vld [vmem:[%s6558_s8 + $0x40] ss:$16 sps:$4 sm:$0xff]   ;;  %v5594_v16 = vld [vmem:[%s6558_s8 + $0x48] ss:$16 sps:$4 sm:$0xff]  }
  0x3a   : > { %679 = vmatprep.subr.bf16.mxu0 %v5583_v9  ;;  %720 = vmatprep.subr.bf16.mxu1 %v5585_v10  ;;  %v5595_v17 = vld [vmem:[%s6558_s8 + $0x64] ss:$16 sps:$4 sm:$0xff]   ;;  %v5597_v18 = vld [vmem:[%s6558_s8 + $0x6c] ss:$16 sps:$4 sm:$0xff]   ;;  %v5599_v19 = vld [vmem:[%s6558_s8 + $0x60] ss:$16 sps:$4 sm:$0xff]  }
  0x3b   : > { %v5600_v20 = vld [vmem:[%s6558_s8 + $0x68] ss:$16 sps:$4 sm:$0xff]   ;;  %v5601_v21 = vld [vmem:[%s6558_s8 + $0x84] ss:$16 sps:$4 sm:$0xff]   ;;  %v5603_v22 = vld [vmem:[%s6558_s8 + $0x8c] ss:$16 sps:$4 sm:$0xff]  }
  0x3c   : > { %v5605_v23 = vld [vmem:[%s6558_s8 + $0x80] ss:$16 sps:$4 sm:$0xff]   ;;  %v5606_v24 = vld [vmem:[%s6558_s8 + $0x88] ss:$16 sps:$4 sm:$0xff]   ;;  %v5607_v25 = vld [vmem:[%s6558_s8 + $0xa4] ss:$16 sps:$4 sm:$0xff]  }
  0x3d   : > { %680 = vmatpush1.bf16.msra.mxu0 %v5587_v11  ;;  %721 = vmatpush1.bf16.msra.mxu1 %v5588_v12  ;;  %v5609_v26 = vld [vmem:[%s6558_s8 + $0xac] ss:$16 sps:$4 sm:$0xff]   ;;  %v5611_v27 = vld [vmem:[%s6558_s8 + $0xa0] ss:$16 sps:$4 sm:$0xff]   ;;  %v5612_v28 = vld [vmem:[%s6558_s8 + $0xa8] ss:$16 sps:$4 sm:$0xff]  }
  0x3e   : > { %681 = vmatprep.subr.bf16.mxu0 %v5589_v13  ;;  %722 = vmatprep.subr.bf16.mxu1 %v5591_v14  ;;  %v5613_v29 = vld [vmem:[%s6558_s8 + $0xc4] ss:$16 sps:$4 sm:$0xff]   ;;  %v5615_v30 = vld [vmem:[%s6558_s8 + $0xcc] ss:$16 sps:$4 sm:$0xff]   ;;  %v5617_v31 = vld [vmem:[%s6558_s8 + $0xc0] ss:$16 sps:$4 sm:$0xff]   ;;  %v4564_v13 = vcombine.low %v6553_v3, %v6553_v3 }
  0x3f   : > { %v5618_v32 = vld [vmem:[%s6558_s8 + $0xc8] ss:$16 sps:$4 sm:$0xff]   ;;  %v5619_v33 = vld [vmem:[%s6558_s8 + $0xe4] ss:$16 sps:$4 sm:$0xff]   ;;  %v5621_v34 = vld [vmem:[%s6558_s8 + $0xec] ss:$16 sps:$4 sm:$0xff]  }
  0x40   : > { %v5623_v35 = vld [vmem:[%s6558_s8 + $0xe0] ss:$16 sps:$4 sm:$0xff]   ;;  %v5624_v36 = vld [vmem:[%s6558_s8 + $0xe8] ss:$16 sps:$4 sm:$0xff]   ;;  %v5625_v37 = vld [vmem:[%s6558_s8 + $0x104] ss:$16 sps:$4 sm:$0xff]  }
  0x41   : > { %682 = vmatpush1.bf16.msra.mxu0 %v5593_v15  ;;  %723 = vmatpush1.bf16.msra.mxu1 %v5594_v16  ;;  %v5627_v38 = vld [vmem:[%s6558_s8 + $0x10c] ss:$16 sps:$4 sm:$0xff]   ;;  %v5629_v39 = vld [vmem:[%s6558_s8 + $0x100] ss:$16 sps:$4 sm:$0xff]   ;;  %v5630_v40 = vld [vmem:[%s6558_s8 + $0x108] ss:$16 sps:$4 sm:$0xff]  }
  0x42   : > { %683 = vmatprep.subr.bf16.mxu0 %v5595_v17  ;;  %724 = vmatprep.subr.bf16.mxu1 %v5597_v18  ;;  %v5631_v41 = vld [vmem:[%s6558_s8 + $0x124] ss:$16 sps:$4 sm:$0xff]   ;;  %v5633_v42 = vld [vmem:[%s6558_s8 + $0x12c] ss:$16 sps:$4 sm:$0xff]   ;;  %v5635_v43 = vld [vmem:[%s6558_s8 + $0x120] ss:$16 sps:$4 sm:$0xff]  }
  0x43   : > { %v5636_v44 = vld [vmem:[%s6558_s8 + $0x128] ss:$16 sps:$4 sm:$0xff]   ;;  %v5637_v45 = vld [vmem:[%s6558_s8 + $0x144] ss:$16 sps:$4 sm:$0xff]   ;;  %v5639_v46 = vld [vmem:[%s6558_s8 + $0x14c] ss:$16 sps:$4 sm:$0xff]  }
  0x44   : > { %v5641_v47 = vld [vmem:[%s6558_s8 + $0x140] ss:$16 sps:$4 sm:$0xff]   ;;  %v5642_v48 = vld [vmem:[%s6558_s8 + $0x148] ss:$16 sps:$4 sm:$0xff]   ;;  %v5643_v49 = vld [vmem:[%s6558_s8 + $0x164] ss:$16 sps:$4 sm:$0xff]  }
  0x45   : > { %684 = vmatpush1.bf16.msra.mxu0 %v5599_v19  ;;  %725 = vmatpush1.bf16.msra.mxu1 %v5600_v20  ;;  %v5645_v50 = vld [vmem:[%s6558_s8 + $0x16c] ss:$16 sps:$4 sm:$0xff]   ;;  %v5647_v51 = vld [vmem:[%s6558_s8 + $0x160] ss:$16 sps:$4 sm:$0xff]   ;;  %v5648_v52 = vld [vmem:[%s6558_s8 + $0x168] ss:$16 sps:$4 sm:$0xff]  }
  0x46   : > { %685 = vmatprep.subr.bf16.mxu0 %v5601_v21  ;;  %726 = vmatprep.subr.bf16.mxu1 %v5603_v22  ;;  %v5649_v53 = vld [vmem:[%s6558_s8 + $0x184] ss:$16 sps:$4 sm:$0xff]   ;;  %v5651_v54 = vld [vmem:[%s6558_s8 + $0x18c] ss:$16 sps:$4 sm:$0xff]   ;;  %v5653_v55 = vld [vmem:[%s6558_s8 + $0x180] ss:$16 sps:$4 sm:$0xff]  }
  0x47   : > { %v5654_v56 = vld [vmem:[%s6558_s8 + $0x188] ss:$16 sps:$4 sm:$0xff]   ;;  %v5655_v57 = vld [vmem:[%s6558_s8 + $0x1a4] ss:$16 sps:$4 sm:$0xff]   ;;  %v5657_v58 = vld [vmem:[%s6558_s8 + $0x1ac] ss:$16 sps:$4 sm:$0xff]  }
  0x48   : > { %v5659_v60 = vld [vmem:[%s6558_s8 + $0x1a0] ss:$16 sps:$4 sm:$0xff]   ;;  %v5660_v61 = vld [vmem:[%s6558_s8 + $0x1a8] ss:$16 sps:$4 sm:$0xff]   ;;  %v5661_v62 = vld [vmem:[%s6558_s8 + $0x1c4] ss:$16 sps:$4 sm:$0xff]  }
  0x49   : > { %686 = vmatpush1.bf16.msra.mxu0 %v5605_v23  ;;  %727 = vmatpush1.bf16.msra.mxu1 %v5606_v24  ;;  %v5663_v63 = vld [vmem:[%s6558_s8 + $0x1cc] ss:$16 sps:$4 sm:$0xff]   ;;  %v5665_v1 = vld [vmem:[%s6558_s8 + $0x1c0] ss:$16 sps:$4 sm:$0xff]   ;;  %v5666_v2 = vld [vmem:[%s6558_s8 + $0x1c8] ss:$16 sps:$4 sm:$0xff]  }
  0x4a   : > { %687 = vmatprep.subr.bf16.mxu0 %v5607_v25  ;;  %728 = vmatprep.subr.bf16.mxu1 %v5609_v26  ;;  %v5667_v4 = vld [vmem:[%s6558_s8 + $0x1e4] ss:$16 sps:$4 sm:$0xff]   ;;  %v5669_v5 = vld [vmem:[%s6558_s8 + $0x1ec] ss:$16 sps:$4 sm:$0xff]   ;;  %v857_v6 = vshll.u32 %v4697_v0, 16  ;;  %v855_v11 = vshrl.u32 %v4697_v0, 16  ;;  %vm7129_vm4 = vmand (!%p5486_p1), %vm4363_vm0, %vm4364_vm1 }
  0x4b   : > { %v5671_v7 = vld [vmem:[%s6558_s8 + $0x1e0] ss:$16 sps:$4 sm:$0xff]   ;;  %v5672_v8 = vld [vmem:[%s6558_s8 + $0x1e8] ss:$16 sps:$4 sm:$0xff]   ;;  %v5677_v9 = vld [vmem:[%s6558_s8 + $0x204] ss:$16 sps:$4 sm:$0xff]  }
  0x4c   : > { %v5680_v10 = vld [vmem:[%s6558_s8 + $0x20c] ss:$16 sps:$4 sm:$0xff]   ;;  %v859_v12 = vrot.slane %v857_v6, 1  ;;  %v5675_v14 = vld [vmem:[%s6558_s8 + $0x200] ss:$16 sps:$4 sm:$0xff]   ;;  %v4696_v6 = vcombine.low %v6617_v59, %v6617_v59  ;;  %vm4370_vm5 = vcmask (!%p5486_p1), 1045508  }
  0x4d   : > { %688 = vmatpush1.bf16.msra.mxu0 %v5611_v27  ;;  %729 = vmatpush1.bf16.msra.mxu1 %v5612_v28  ;;  %v5678_v15 = vld [vmem:[%s6558_s8 + $0x208] ss:$16 sps:$4 sm:$0xff]   ;;  %v5683_v16 = vld [vmem:[%s6558_s8 + $0x224] ss:$16 sps:$4 sm:$0xff]   ;;  %v5686_v17 = vld [vmem:[%s6558_s8 + $0x22c] ss:$16 sps:$4 sm:$0xff]  }
  0x4e   : > { %689 = vmatprep.subr.bf16.mxu0 %v5613_v29  ;;  %730 = vmatprep.subr.bf16.mxu1 %v5615_v30  ;;  %v860_v18 = vor.u32 %v859_v12, %v855_v11  ;;  %v5681_v19 = vld [vmem:[%s6558_s8 + $0x220] ss:$16 sps:$4 sm:$0xff]   ;;  %v5684_v20 = vld [vmem:[%s6558_s8 + $0x228] ss:$16 sps:$4 sm:$0xff]   ;;  %v5689_v3 = vld [vmem:[%s6558_s8 + $0x244] ss:$16 sps:$4 sm:$0xff]  }
  0x4f   : > { %v5692_v21 = vld [vmem:[%s6558_s8 + $0x24c] ss:$16 sps:$4 sm:$0xff]   ;;  %v5687_v22 = vld [vmem:[%s6558_s8 + $0x240] ss:$16 sps:$4 sm:$0xff]   ;;  %v5690_v23 = vld [vmem:[%s6558_s8 + $0x248] ss:$16 sps:$4 sm:$0xff]  }
  0x50   : > { %v5695_v24 = vld [vmem:[%s6558_s8 + $0x264] ss:$16 sps:$4 sm:$0xff]   ;;  %v5698_v25 = vld [vmem:[%s6558_s8 + $0x26c] ss:$16 sps:$4 sm:$0xff]   ;;  %v5693_v26 = vld [vmem:[%s6558_s8 + $0x260] ss:$16 sps:$4 sm:$0xff]  }
  0x51   : > { %690 = vmatpush1.bf16.msra.mxu0 %v5617_v31  ;;  %731 = vmatpush1.bf16.msra.mxu1 %v5618_v32  ;;  %v5696_v27 = vld [vmem:[%s6558_s8 + $0x268] ss:$16 sps:$4 sm:$0xff]   ;;  %v5701_v28 = vld [vmem:[%s6558_s8 + $0x284] ss:$16 sps:$4 sm:$0xff]   ;;  %v5704_v29 = vld [vmem:[%s6558_s8 + $0x28c] ss:$16 sps:$4 sm:$0xff]  }
  0x52   : > { %691 = vmatprep.subr.bf16.mxu0 %v5619_v33  ;;  %732 = vmatprep.subr.bf16.mxu1 %v5621_v34  ;;  %v5699_v30 = vld [vmem:[%s6558_s8 + $0x280] ss:$16 sps:$4 sm:$0xff]   ;;  %v5702_v31 = vld [vmem:[%s6558_s8 + $0x288] ss:$16 sps:$4 sm:$0xff]   ;;  %v5707_v32 = vld [vmem:[%s6558_s8 + $0x2a4] ss:$16 sps:$4 sm:$0xff]  }
  0x53   : > { %v5710_v33 = vld [vmem:[%s6558_s8 + $0x2ac] ss:$16 sps:$4 sm:$0xff]   ;;  %v5705_v34 = vld [vmem:[%s6558_s8 + $0x2a0] ss:$16 sps:$4 sm:$0xff]   ;;  %v5750_v0 = vld [vmem:[%s6558_s8 + $0x388] ss:$16 sps:$4 sm:$0xff]  }
  0x54   : > { %v850_v11 = vshll.u32 %v4696_v6, 16  ;;  %v5767_v12 = vld [vmem:[%s6558_s8 + $0x3e4] ss:$16 sps:$4 sm:$0xff]   ;;  %v5770_v59 = vld [vmem:[%s6558_s8 + $0x3ec] ss:$16 sps:$4 sm:$0xff]   ;;  %vm4374_vm10 = vcmask (!%p5486_p1), 1047558  }
  0x55   : > { %692 = vmatpush1.bf16.msra.mxu0 %v5623_v35  ;;  %733 = vmatpush1.bf16.msra.mxu1 %v5624_v36  ;;  %v5708_v35 = vld [vmem:[%s6558_s8 + $0x2a8] ss:$16 sps:$4 sm:$0xff]   ;;  %v5713_v36 = vld [vmem:[%s6558_s8 + $0x2c4] ss:$16 sps:$4 sm:$0xff]   ;;  %vm4367_vm3 = vsmask.f32 (!%p5486_p1), 3328 }
  0x56   : > { %693 = vmatprep.subr.bf16.mxu0 %v5625_v37  ;;  %734 = vmatprep.subr.bf16.mxu1 %v5627_v38  ;;  %v5716_v37 = vld [vmem:[%s6558_s8 + $0x2cc] ss:$16 sps:$4 sm:$0xff]   ;;  %v5711_v38 = vld [vmem:[%s6558_s8 + $0x2c0] ss:$16 sps:$4 sm:$0xff]   ;;  %vm7133_vm6 = vmand (!%p5486_p1), %vm4366_vm2, %vm4367_vm3  ;;  %vm4371_vm7 = vsmask.f32 (!%p5486_p1), 5376 }
  0x57   : > { %vm4369_vm8 = vmor (!%p5486_p1), %vm7133_vm6, %vm7129_vm4  ;;  %vm4375_vm11 = vsmask.f32 (!%p5486_p1), 7424 }
  0x58   : > { %vm4372_vm9 = vmand (!%p5486_p1), %vm4370_vm5, %vm4371_vm7 }
  0x59   : > { %694 = vmatpush1.bf16.msra.mxu0 %v5629_v39  ;;  %735 = vmatpush1.bf16.msra.mxu1 %v5630_v40  ;;  %v5714_v39 = vld [vmem:[%s6558_s8 + $0x2c8] ss:$16 sps:$4 sm:$0xff]   ;;  %v5719_v40 = vld [vmem:[%s6558_s8 + $0x2e4] ss:$16 sps:$4 sm:$0xff]   ;;  %vm7142_vm12 = vmor (!%p5486_p1), %vm4372_vm9, %vm4369_vm8 }
  0x5a   : > { %695 = vmatprep.subr.bf16.mxu0 %v5631_v41  ;;  %736 = vmatprep.subr.bf16.mxu1 %v5633_v42  ;;  %v5722_v41 = vld [vmem:[%s6558_s8 + $0x2ec] ss:$16 sps:$4 sm:$0xff]   ;;  %v5717_v42 = vld [vmem:[%s6558_s8 + $0x2e0] ss:$16 sps:$4 sm:$0xff]   ;;  %vm4376_vm13 = vmand (!%p5486_p1), %vm4374_vm10, %vm4375_vm11 }
  0x5b   : > { %vm4377_vm14 = vmor (!%p5486_p1), %vm4376_vm13, %vm7142_vm12 }
  0x5d   : > { %696 = vmatpush1.bf16.msra.mxu0 %v5635_v43  ;;  %737 = vmatpush1.bf16.msra.mxu1 %v5636_v44  ;;  %v5720_v43 = vld [vmem:[%s6558_s8 + $0x2e8] ss:$16 sps:$4 sm:$0xff]   ;;  %v5725_v44 = vld [vmem:[%s6558_s8 + $0x304] ss:$16 sps:$4 sm:$0xff]  }
  0x5e   : > { %697 = vmatprep.subr.bf16.mxu0 %v5637_v45  ;;  %738 = vmatprep.subr.bf16.mxu1 %v5639_v46  ;;  %v5728_v45 = vld [vmem:[%s6558_s8 + $0x30c] ss:$16 sps:$4 sm:$0xff]   ;;  %v5723_v46 = vld [vmem:[%s6558_s8 + $0x300] ss:$16 sps:$4 sm:$0xff]  }
  0x61   : > { %698 = vmatpush1.bf16.msra.mxu0 %v5641_v47  ;;  %739 = vmatpush1.bf16.msra.mxu1 %v5642_v48  ;;  %v5726_v47 = vld [vmem:[%s6558_s8 + $0x308] ss:$16 sps:$4 sm:$0xff]   ;;  %v5731_v48 = vld [vmem:[%s6558_s8 + $0x324] ss:$16 sps:$4 sm:$0xff]  }
  0x62   : > { %699 = vmatprep.subr.bf16.mxu0 %v5643_v49  ;;  %740 = vmatprep.subr.bf16.mxu1 %v5645_v50  ;;  %v5734_v49 = vld [vmem:[%s6558_s8 + $0x32c] ss:$16 sps:$4 sm:$0xff]   ;;  %v5729_v50 = vld [vmem:[%s6558_s8 + $0x320] ss:$16 sps:$4 sm:$0xff]  }
  0x65   : > { %700 = vmatpush1.bf16.msra.mxu0 %v5647_v51  ;;  %741 = vmatpush1.bf16.msra.mxu1 %v5648_v52  ;;  %v5732_v51 = vld [vmem:[%s6558_s8 + $0x328] ss:$16 sps:$4 sm:$0xff]   ;;  %v5737_v52 = vld [vmem:[%s6558_s8 + $0x344] ss:$16 sps:$4 sm:$0xff]  }
  0x66   : > { %701 = vmatprep.subr.bf16.mxu0 %v5649_v53  ;;  %742 = vmatprep.subr.bf16.mxu1 %v5651_v54  ;;  %v5740_v53 = vld [vmem:[%s6558_s8 + $0x34c] ss:$16 sps:$4 sm:$0xff]   ;;  %v5735_v54 = vld [vmem:[%s6558_s8 + $0x340] ss:$16 sps:$4 sm:$0xff]  }
  0x69   : > { %702 = vmatpush1.bf16.msra.mxu0 %v5653_v55  ;;  %743 = vmatpush1.bf16.msra.mxu1 %v5654_v56  ;;  %v5738_v55 = vld [vmem:[%s6558_s8 + $0x348] ss:$16 sps:$4 sm:$0xff]   ;;  %v5743_v56 = vld [vmem:[%s6558_s8 + $0x364] ss:$16 sps:$4 sm:$0xff]  }
  0x6a   : > { %703 = vmatprep.subr.bf16.mxu0 %v5655_v57  ;;  %744 = vmatprep.subr.bf16.mxu1 %v5657_v58  ;;  %v5746_v57 = vld [vmem:[%s6558_s8 + $0x36c] ss:$16 sps:$4 sm:$0xff]   ;;  %v5741_v58 = vld [vmem:[%s6558_s8 + $0x360] ss:$16 sps:$4 sm:$0xff]  }
  0x6d   : > { %704 = vmatpush1.bf16.msra.mxu0 %v5659_v60  ;;  %745 = vmatpush1.bf16.msra.mxu1 %v5660_v61  ;;  %v5744_v60 = vld [vmem:[%s6558_s8 + $0x368] ss:$16 sps:$4 sm:$0xff]   ;;  %v5749_v61 = vld [vmem:[%s6558_s8 + $0x384] ss:$16 sps:$4 sm:$0xff]  }
  0x6e   : > { %705 = vmatprep.subr.bf16.mxu0 %v5661_v62  ;;  %746 = vmatprep.subr.bf16.mxu1 %v5663_v63  ;;  %v5752_v62 = vld [vmem:[%s6558_s8 + $0x38c] ss:$16 sps:$4 sm:$0xff]   ;;  %v5747_v63 = vld [vmem:[%s6558_s8 + $0x380] ss:$16 sps:$4 sm:$0xff]  }
  0x71   : > { %706 = vmatpush1.bf16.msra.mxu0 %v5665_v1  ;;  %747 = vmatpush1.bf16.msra.mxu1 %v5666_v2  ;;  %v5755_v1 = vld [vmem:[%s6558_s8 + $0x3a4] ss:$16 sps:$4 sm:$0xff]   ;;  %v5758_v2 = vld [vmem:[%s6558_s8 + $0x3ac] ss:$16 sps:$4 sm:$0xff]  }
  0x72   : > { %707 = vmatprep.subr.bf16.mxu0 %v5667_v4  ;;  %748 = vmatprep.subr.bf16.mxu1 %v5669_v5  ;;  %v5753_v4 = vld [vmem:[%s6558_s8 + $0x3a0] ss:$16 sps:$4 sm:$0xff]   ;;  %v5756_v5 = vld [vmem:[%s6558_s8 + $0x3a8] ss:$16 sps:$4 sm:$0xff]  }
  0x75   : > { %708 = vmatpush1.bf16.msra.mxu0 %v5671_v7  ;;  %749 = vmatpush1.bf16.msra.mxu1 %v5672_v8  ;;  %v5761_v7 = vld [vmem:[%s6558_s8 + $0x3c4] ss:$16 sps:$4 sm:$0xff]   ;;  %v5764_v8 = vld [vmem:[%s6558_s8 + $0x3cc] ss:$16 sps:$4 sm:$0xff]  }
  0x76   : > { %1183 = vmatprep.subr.bf16.mxu0 %v5677_v9  ;;  %1224 = vmatprep.subr.bf16.mxu1 %v5680_v10  ;;  %v5759_v9 = vld [vmem:[%s6558_s8 + $0x3c0] ss:$16 sps:$4 sm:$0xff]   ;;  %v5762_v10 = vld [vmem:[%s6558_s8 + $0x3c8] ss:$16 sps:$4 sm:$0xff]  }
  0x78   : > { %710 = vmatmul.mubr.bf16.vlgmr.msra.gmra.mrb[0].mxu0 %v4564_v13  ;;  %751 = vmatmul.mubr.bf16.vlgmr.msra.gmra.mrb[0].mxu1 %v4564_v13  ;;  %v848_v13 = vshrl.u32 %v4696_v6, 16  ;;  %v5847_v6 = vld [vmem:[%s6558_s8 + $0x584] ss:$16 sps:$4 sm:$0xff]  }
  0x79   : > { %1184 = vmatpush1.bf16.msra.mxu0 %v5675_v14  ;;  %1225 = vmatpush1.bf16.msra.mxu1 %v5678_v15  ;;  %v5765_v14 = vld [vmem:[%s6558_s8 + $0x3e0] ss:$16 sps:$4 sm:$0xff]   ;;  %v5768_v15 = vld [vmem:[%s6558_s8 + $0x3e8] ss:$16 sps:$4 sm:$0xff]  }
  0x7a   : > { %1185 = vmatprep.subr.bf16.mxu0 %v5683_v16  ;;  %1226 = vmatprep.subr.bf16.mxu1 %v5686_v17  ;;  %v852_v16 = vrot.slane %v850_v11, 1  ;;  %v5775_v17 = vld [vmem:[%s6558_s8 + $0x404] ss:$16 sps:$4 sm:$0xff]   ;;  %v5856_v11 = vld [vmem:[%s6558_s8 + $0x5ac] ss:$16 sps:$4 sm:$0xff]  }
  0x7b   : > { %1215 = vmatprep.mubr.bf16.mxu0 %v860_v18  ;;  %1256 = vmatprep.mubr.bf16.mxu1 %v860_v18  ;;  %v5778_v18 = vld [vmem:[%s6558_s8 + $0x40c] ss:$16 sps:$4 sm:$0xff]  }
  0x7d   : > { %1186 = vmatpush1.bf16.msra.mxu0 %v5681_v19  ;;  %1227 = vmatpush1.bf16.msra.mxu1 %v5684_v20  ;;  %v853_v19 = vor.u32 %v852_v16, %v848_v13  ;;  %v5773_v20 = vld [vmem:[%s6558_s8 + $0x400] ss:$16 sps:$4 sm:$0xff]  }
  0x7e   : > { %1187 = vmatprep.subr.bf16.mxu0 %v5689_v3  ;;  %1228 = vmatprep.subr.bf16.mxu1 %v5692_v21  ;;  %v5776_v3 = vld [vmem:[%s6558_s8 + $0x408] ss:$16 sps:$4 sm:$0xff]   ;;  %v6704_v21 = vld [vmem:[%s6546_s29] sm:$0x66] }
  0x7f   : > { %v6761_v13 = vld [vmem:[%s6546_s29] sm:$0x66] }
  0x80   : > { %v4961_v16 = vcombine.high %v6761_v13, %v6761_v13 }
  0x81   : > { %1188 = vmatpush1.bf16.msra.mxu0 %v5687_v22  ;;  %1229 = vmatpush1.bf16.msra.mxu1 %v5690_v23  ;;  %v5781_v22 = vld [vmem:[%s6558_s8 + $0x424] ss:$16 sps:$4 sm:$0xff]   ;;  %v5784_v23 = vld [vmem:[%s6558_s8 + $0x42c] ss:$16 sps:$4 sm:$0xff]  }
  0x82   : > { %1189 = vmatprep.subr.bf16.mxu0 %v5695_v24  ;;  %1230 = vmatprep.subr.bf16.mxu1 %v5698_v25  ;;  %v4829_v24 = vcombine.high %v6704_v21, %v6704_v21  ;;  %v5779_v25 = vld [vmem:[%s6558_s8 + $0x420] ss:$16 sps:$4 sm:$0xff]  }
  0x85   : > { %1190 = vmatpush1.bf16.msra.mxu0 %v5693_v26  ;;  %1231 = vmatpush1.bf16.msra.mxu1 %v5696_v27  ;;  %v1354_v26 = vrot.slane %v4829_v24, 1  ;;  %v5782_v27 = vld [vmem:[%s6558_s8 + $0x428] ss:$16 sps:$4 sm:$0xff]   ;;  %v5863_v24 = vld [vmem:[%s6558_s8 + $0x5e0] ss:$16 sps:$4 sm:$0xff]  }
  0x86   : > { %1191 = vmatprep.subr.bf16.mxu0 %v5701_v28  ;;  %1232 = vmatprep.subr.bf16.mxu1 %v5704_v29  ;;  %v5787_v28 = vld [vmem:[%s6558_s8 + $0x444] ss:$16 sps:$4 sm:$0xff]   ;;  %v5790_v29 = vld [vmem:[%s6558_s8 + $0x44c] ss:$16 sps:$4 sm:$0xff]  }
  0x89   : > { %1192 = vmatpush1.bf16.msra.mxu0 %v5699_v30  ;;  %1233 = vmatpush1.bf16.msra.mxu1 %v5702_v31  ;;  %v5785_v30 = vld [vmem:[%s6558_s8 + $0x440] ss:$16 sps:$4 sm:$0xff]   ;;  %v5788_v31 = vld [vmem:[%s6558_s8 + $0x448] ss:$16 sps:$4 sm:$0xff]  }
  0x8a   : > { %1193 = vmatprep.subr.bf16.mxu0 %v5707_v32  ;;  %1234 = vmatprep.subr.bf16.mxu1 %v5710_v33  ;;  %v5793_v32 = vld [vmem:[%s6558_s8 + $0x464] ss:$16 sps:$4 sm:$0xff]   ;;  %v5796_v33 = vld [vmem:[%s6558_s8 + $0x46c] ss:$16 sps:$4 sm:$0xff]  }
  0x8d   : > { %1194 = vmatpush1.bf16.msra.mxu0 %v5705_v34  ;;  %1235 = vmatpush1.bf16.msra.mxu1 %v5708_v35  ;;  %v5791_v34 = vld [vmem:[%s6558_s8 + $0x460] ss:$16 sps:$4 sm:$0xff]   ;;  %v5794_v35 = vld [vmem:[%s6558_s8 + $0x468] ss:$16 sps:$4 sm:$0xff]  }
  0x8e   : > { %1195 = vmatprep.subr.bf16.mxu0 %v5713_v36  ;;  %1236 = vmatprep.subr.bf16.mxu1 %v5716_v37  ;;  %v5799_v36 = vld [vmem:[%s6558_s8 + $0x484] ss:$16 sps:$4 sm:$0xff]   ;;  %v5802_v37 = vld [vmem:[%s6558_s8 + $0x48c] ss:$16 sps:$4 sm:$0xff]  }
  0x91   : > { %1196 = vmatpush1.bf16.msra.mxu0 %v5711_v38  ;;  %1237 = vmatpush1.bf16.msra.mxu1 %v5714_v39  ;;  %v5797_v38 = vld [vmem:[%s6558_s8 + $0x480] ss:$16 sps:$4 sm:$0xff]   ;;  %v5800_v39 = vld [vmem:[%s6558_s8 + $0x488] ss:$16 sps:$4 sm:$0xff]  }
  0x92   : > { %1197 = vmatprep.subr.bf16.mxu0 %v5719_v40  ;;  %1238 = vmatprep.subr.bf16.mxu1 %v5722_v41  ;;  %v5805_v40 = vld [vmem:[%s6558_s8 + $0x4a4] ss:$16 sps:$4 sm:$0xff]   ;;  %v5808_v41 = vld [vmem:[%s6558_s8 + $0x4ac] ss:$16 sps:$4 sm:$0xff]  }
  0x95   : > { %1198 = vmatpush1.bf16.msra.mxu0 %v5717_v42  ;;  %1239 = vmatpush1.bf16.msra.mxu1 %v5720_v43  ;;  %v5803_v42 = vld [vmem:[%s6558_s8 + $0x4a0] ss:$16 sps:$4 sm:$0xff]   ;;  %v5806_v43 = vld [vmem:[%s6558_s8 + $0x4a8] ss:$16 sps:$4 sm:$0xff]  }
  0x96   : > { %1199 = vmatprep.subr.bf16.mxu0 %v5725_v44  ;;  %1240 = vmatprep.subr.bf16.mxu1 %v5728_v45  ;;  %v5811_v44 = vld [vmem:[%s6558_s8 + $0x4c4] ss:$16 sps:$4 sm:$0xff]   ;;  %v5814_v45 = vld [vmem:[%s6558_s8 + $0x4cc] ss:$16 sps:$4 sm:$0xff]  }
  0x99   : > { %1200 = vmatpush1.bf16.msra.mxu0 %v5723_v46  ;;  %1241 = vmatpush1.bf16.msra.mxu1 %v5726_v47  ;;  %v5809_v46 = vld [vmem:[%s6558_s8 + $0x4c0] ss:$16 sps:$4 sm:$0xff]   ;;  %v5812_v47 = vld [vmem:[%s6558_s8 + $0x4c8] ss:$16 sps:$4 sm:$0xff]  }
  0x9a   : > { %1201 = vmatprep.subr.bf16.mxu0 %v5731_v48  ;;  %1242 = vmatprep.subr.bf16.mxu1 %v5734_v49  ;;  %v5817_v48 = vld [vmem:[%s6558_s8 + $0x4e4] ss:$16 sps:$4 sm:$0xff]   ;;  %v5820_v49 = vld [vmem:[%s6558_s8 + $0x4ec] ss:$16 sps:$4 sm:$0xff]  }
  0x9d   : > { %1202 = vmatpush1.bf16.msra.mxu0 %v5729_v50  ;;  %1243 = vmatpush1.bf16.msra.mxu1 %v5732_v51  ;;  %v5815_v50 = vld [vmem:[%s6558_s8 + $0x4e0] ss:$16 sps:$4 sm:$0xff]   ;;  %v5818_v51 = vld [vmem:[%s6558_s8 + $0x4e8] ss:$16 sps:$4 sm:$0xff]  }
  0x9e   : > { %1203 = vmatprep.subr.bf16.mxu0 %v5737_v52  ;;  %1244 = vmatprep.subr.bf16.mxu1 %v5740_v53  ;;  %v5823_v52 = vld [vmem:[%s6558_s8 + $0x504] ss:$16 sps:$4 sm:$0xff]   ;;  %v5826_v53 = vld [vmem:[%s6558_s8 + $0x50c] ss:$16 sps:$4 sm:$0xff]  }
  0xa1   : > { %1204 = vmatpush1.bf16.msra.mxu0 %v5735_v54  ;;  %1245 = vmatpush1.bf16.msra.mxu1 %v5738_v55  ;;  %v5821_v54 = vld [vmem:[%s6558_s8 + $0x500] ss:$16 sps:$4 sm:$0xff]   ;;  %v5824_v55 = vld [vmem:[%s6558_s8 + $0x508] ss:$16 sps:$4 sm:$0xff]  }
  0xa2   : > { %1205 = vmatprep.subr.bf16.mxu0 %v5743_v56  ;;  %1246 = vmatprep.subr.bf16.mxu1 %v5746_v57  ;;  %v5829_v56 = vld [vmem:[%s6558_s8 + $0x524] ss:$16 sps:$4 sm:$0xff]   ;;  %v5832_v57 = vld [vmem:[%s6558_s8 + $0x52c] ss:$16 sps:$4 sm:$0xff]  }
  0xa5   : > { %1206 = vmatpush1.bf16.msra.mxu0 %v5741_v58  ;;  %1247 = vmatpush1.bf16.msra.mxu1 %v5744_v60  ;;  %v5827_v58 = vld [vmem:[%s6558_s8 + $0x520] ss:$16 sps:$4 sm:$0xff]   ;;  %v5830_v60 = vld [vmem:[%s6558_s8 + $0x528] ss:$16 sps:$4 sm:$0xff]  }
  0xa6   : > { %1207 = vmatprep.subr.bf16.mxu0 %v5749_v61  ;;  %1248 = vmatprep.subr.bf16.mxu1 %v5752_v62  ;;  %v5835_v61 = vld [vmem:[%s6558_s8 + $0x544] ss:$16 sps:$4 sm:$0xff]   ;;  %v5838_v62 = vld [vmem:[%s6558_s8 + $0x54c] ss:$16 sps:$4 sm:$0xff]  }
  0xa9   : > { %1208 = vmatpush1.bf16.msra.mxu0 %v5747_v63  ;;  %1249 = vmatpush1.bf16.msra.mxu1 %v5750_v0  ;;  %v5833_v63 = vld [vmem:[%s6558_s8 + $0x540] ss:$16 sps:$4 sm:$0xff]   ;;  %v5836_v0 = vld [vmem:[%s6558_s8 + $0x548] ss:$16 sps:$4 sm:$0xff]  }
  0xaa   : > { %1209 = vmatprep.subr.bf16.mxu0 %v5755_v1  ;;  %1250 = vmatprep.subr.bf16.mxu1 %v5758_v2  ;;  %v5841_v1 = vld [vmem:[%s6558_s8 + $0x564] ss:$16 sps:$4 sm:$0xff]   ;;  %v5844_v2 = vld [vmem:[%s6558_s8 + $0x56c] ss:$16 sps:$4 sm:$0xff]  }
  0xad   : > { %1210 = vmatpush1.bf16.msra.mxu0 %v5753_v4  ;;  %1251 = vmatpush1.bf16.msra.mxu1 %v5756_v5  ;;  %v5839_v4 = vld [vmem:[%s6558_s8 + $0x560] ss:$16 sps:$4 sm:$0xff]   ;;  %v5842_v5 = vld [vmem:[%s6558_s8 + $0x568] ss:$16 sps:$4 sm:$0xff]  }
  0xae   : > { %1211 = vmatprep.subr.bf16.mxu0 %v5761_v7  ;;  %1252 = vmatprep.subr.bf16.mxu1 %v5764_v8  ;;  %v5850_v7 = vld [vmem:[%s6558_s8 + $0x58c] ss:$16 sps:$4 sm:$0xff]   ;;  %v5845_v8 = vld [vmem:[%s6558_s8 + $0x580] ss:$16 sps:$4 sm:$0xff]  }
  0xb1   : > { %1212 = vmatpush1.bf16.msra.mxu0 %v5759_v9  ;;  %1253 = vmatpush1.bf16.msra.mxu1 %v5762_v10  ;;  %v5848_v9 = vld [vmem:[%s6558_s8 + $0x588] ss:$16 sps:$4 sm:$0xff]   ;;  %v5853_v10 = vld [vmem:[%s6558_s8 + $0x5a4] ss:$16 sps:$4 sm:$0xff]  }
  0xb2   : > { %1213 = vmatprep.subr.bf16.mxu0 %v5767_v12  ;;  %1254 = vmatprep.subr.bf16.mxu1 %v5770_v59  ;;  %v5851_v12 = vld [vmem:[%s6558_s8 + $0x5a0] ss:$16 sps:$4 sm:$0xff]   ;;  %v5854_v59 = vld [vmem:[%s6558_s8 + $0x5a8] ss:$16 sps:$4 sm:$0xff]  }
  0xb5   : > { %1214 = vmatpush1.bf16.msra.mxu0 %v5765_v14  ;;  %1255 = vmatpush1.bf16.msra.mxu1 %v5768_v15  ;;  %v5859_v14 = vld [vmem:[%s6558_s8 + $0x5c4] ss:$16 sps:$4 sm:$0xff]   ;;  %v5862_v15 = vld [vmem:[%s6558_s8 + $0x5cc] ss:$16 sps:$4 sm:$0xff]  }
  0xb6   : > { %1677 = vmatprep.subr.bf16.mxu0 %v5775_v17  ;;  %1718 = vmatprep.subr.bf16.mxu1 %v5778_v18  ;;  %v5857_v17 = vld [vmem:[%s6558_s8 + $0x5c0] ss:$16 sps:$4 sm:$0xff]   ;;  %v5860_v18 = vld [vmem:[%s6558_s8 + $0x5c8] ss:$16 sps:$4 sm:$0xff]  }
  0xb8   : > { %1216 = vmatmul.mubr.bf16.vlgmr.msra.gmra.mrb[4].mxu0 %v853_v19  ;;  %1257 = vmatmul.mubr.bf16.vlgmr.msra.gmra.mrb[4].mxu1 %v853_v19  ;;  %v5865_v19 = vld [vmem:[%s6558_s8 + $0x5e4] ss:$16 sps:$4 sm:$0xff]  }
  0xb9   : > { %1678 = vmatpush1.bf16.msra.mxu0 %v5773_v20  ;;  %1719 = vmatpush1.bf16.msra.mxu1 %v5776_v3  ;;  %v5868_v20 = vld [vmem:[%s6558_s8 + $0x5ec] ss:$16 sps:$4 sm:$0xff]   ;;  %v1856_v3 = vshrl.u32 %v4961_v16, 16 }
  0xba   : > { %1679 = vmatprep.subr.bf16.mxu0 %v5781_v22  ;;  %1720 = vmatprep.subr.bf16.mxu1 %v5784_v23  ;;  %v1859_v22 = vshll.u32 %v4961_v16, 16  ;;  %v4828_v23 = vcombine.low %v6704_v21, %v6704_v21  ;;  %v5874_v21 = vld [vmem:[%s6558_s8 + $0x608] ss:$16 sps:$4 sm:$0xff]   ;;  %v5948_v16 = vld [vmem:[%s6558_s8 + $0x78c] ss:$16 sps:$4 sm:$0xff]  }
  0xbb   : > { %1709 = vmatprep.mubr.bf16.mxu0 %v1354_v26  ;;  %1750 = vmatprep.mubr.bf16.mxu1 %v1354_v26  ;;  %v5873_v26 = vld [vmem:[%s6558_s8 + $0x604] ss:$16 sps:$4 sm:$0xff]  }
  0xbd   : > { %1680 = vmatpush1.bf16.msra.mxu0 %v5779_v25  ;;  %1721 = vmatpush1.bf16.msra.mxu1 %v5782_v27  ;;  %v5866_v25 = vld [vmem:[%s6558_s8 + $0x5e8] ss:$16 sps:$4 sm:$0xff]   ;;  %v5876_v27 = vld [vmem:[%s6558_s8 + $0x60c] ss:$16 sps:$4 sm:$0xff]  }
  0xbe   : > { %1681 = vmatprep.subr.bf16.mxu0 %v5787_v28  ;;  %1722 = vmatprep.subr.bf16.mxu1 %v5790_v29  ;;  %v1858_v28 = vrot.slane %v1856_v3, 1  ;;  %v1861_v29 = vrot.slane %v1859_v22, 2  ;;  %v5949_v3 = vld [vmem:[%s6558_s8 + $0x7a0] ss:$16 sps:$4 sm:$0xff]   ;;  %v4960_v22 = vcombine.low %v6761_v13, %v6761_v13  ;;  %v5963_v13 = vld [vmem:[%s6558_s8 + $0x7e4] ss:$16 sps:$4 sm:$0xff]  }
  0xc1   : > { %1682 = vmatpush1.bf16.msra.mxu0 %v5785_v30  ;;  %1723 = vmatpush1.bf16.msra.mxu1 %v5788_v31  ;;  %v1353_v30 = vrot.slane %v4828_v23, 1  ;;  %v5871_v31 = vld [vmem:[%s6558_s8 + $0x600] ss:$16 sps:$4 sm:$0xff]   ;;  %v5952_v23 = vld [vmem:[%s6558_s8 + $0x7a8] ss:$16 sps:$4 sm:$0xff]  }
  0xc2   : > { %1683 = vmatprep.subr.bf16.mxu0 %v5793_v32  ;;  %1724 = vmatprep.subr.bf16.mxu1 %v5796_v33  ;;  %v5879_v32 = vld [vmem:[%s6558_s8 + $0x624] ss:$16 sps:$4 sm:$0xff]   ;;  %v5882_v33 = vld [vmem:[%s6558_s8 + $0x62c] ss:$16 sps:$4 sm:$0xff]  }
  0xc5   : > { %1684 = vmatpush1.bf16.msra.mxu0 %v5791_v34  ;;  %1725 = vmatpush1.bf16.msra.mxu1 %v5794_v35  ;;  %v1862_v34 = vor.u32 %v1861_v29, %v1858_v28  ;;  %v5877_v35 = vld [vmem:[%s6558_s8 + $0x620] ss:$16 sps:$4 sm:$0xff]   ;;  %v1851_v28 = vshll.u32 %v4960_v22, 16  ;;  %v5958_v29 = vld [vmem:[%s6558_s8 + $0x7c8] ss:$16 sps:$4 sm:$0xff]  }
  0xc6   : > { %1685 = vmatprep.subr.bf16.mxu0 %v5799_v36  ;;  %1726 = vmatprep.subr.bf16.mxu1 %v5802_v37  ;;  %v5880_v36 = vld [vmem:[%s6558_s8 + $0x628] ss:$16 sps:$4 sm:$0xff]   ;;  %v5885_v37 = vld [vmem:[%s6558_s8 + $0x644] ss:$16 sps:$4 sm:$0xff]  }
  0xc9   : > { %1686 = vmatpush1.bf16.msra.mxu0 %v5797_v38  ;;  %1727 = vmatpush1.bf16.msra.mxu1 %v5800_v39  ;;  %v5888_v38 = vld [vmem:[%s6558_s8 + $0x64c] ss:$16 sps:$4 sm:$0xff]   ;;  %v5883_v39 = vld [vmem:[%s6558_s8 + $0x640] ss:$16 sps:$4 sm:$0xff]  }
  0xca   : > { %1687 = vmatprep.subr.bf16.mxu0 %v5805_v40  ;;  %1728 = vmatprep.subr.bf16.mxu1 %v5808_v41  ;;  %v5886_v40 = vld [vmem:[%s6558_s8 + $0x648] ss:$16 sps:$4 sm:$0xff]   ;;  %v5891_v41 = vld [vmem:[%s6558_s8 + $0x664] ss:$16 sps:$4 sm:$0xff]  }
  0xcd   : > { %1688 = vmatpush1.bf16.msra.mxu0 %v5803_v42  ;;  %1729 = vmatpush1.bf16.msra.mxu1 %v5806_v43  ;;  %v5894_v42 = vld [vmem:[%s6558_s8 + $0x66c] ss:$16 sps:$4 sm:$0xff]   ;;  %v5889_v43 = vld [vmem:[%s6558_s8 + $0x660] ss:$16 sps:$4 sm:$0xff]  }
  0xce   : > { %1689 = vmatprep.subr.bf16.mxu0 %v5811_v44  ;;  %1730 = vmatprep.subr.bf16.mxu1 %v5814_v45  ;;  %v5892_v44 = vld [vmem:[%s6558_s8 + $0x668] ss:$16 sps:$4 sm:$0xff]   ;;  %v5897_v45 = vld [vmem:[%s6558_s8 + $0x684] ss:$16 sps:$4 sm:$0xff]  }
  0xd1   : > { %1690 = vmatpush1.bf16.msra.mxu0 %v5809_v46  ;;  %1731 = vmatpush1.bf16.msra.mxu1 %v5812_v47  ;;  %v5900_v46 = vld [vmem:[%s6558_s8 + $0x68c] ss:$16 sps:$4 sm:$0xff]   ;;  %v5895_v47 = vld [vmem:[%s6558_s8 + $0x680] ss:$16 sps:$4 sm:$0xff]  }
  0xd2   : > { %1691 = vmatprep.subr.bf16.mxu0 %v5817_v48  ;;  %1732 = vmatprep.subr.bf16.mxu1 %v5820_v49  ;;  %v5898_v48 = vld [vmem:[%s6558_s8 + $0x688] ss:$16 sps:$4 sm:$0xff]   ;;  %v5903_v49 = vld [vmem:[%s6558_s8 + $0x6a4] ss:$16 sps:$4 sm:$0xff]  }
  0xd5   : > { %1692 = vmatpush1.bf16.msra.mxu0 %v5815_v50  ;;  %1733 = vmatpush1.bf16.msra.mxu1 %v5818_v51  ;;  %v5906_v50 = vld [vmem:[%s6558_s8 + $0x6ac] ss:$16 sps:$4 sm:$0xff]   ;;  %v5901_v51 = vld [vmem:[%s6558_s8 + $0x6a0] ss:$16 sps:$4 sm:$0xff]  }
  0xd6   : > { %1693 = vmatprep.subr.bf16.mxu0 %v5823_v52  ;;  %1734 = vmatprep.subr.bf16.mxu1 %v5826_v53  ;;  %v5904_v52 = vld [vmem:[%s6558_s8 + $0x6a8] ss:$16 sps:$4 sm:$0xff]   ;;  %v5909_v53 = vld [vmem:[%s6558_s8 + $0x6c4] ss:$16 sps:$4 sm:$0xff]  }
  0xd9   : > { %1694 = vmatpush1.bf16.msra.mxu0 %v5821_v54  ;;  %1735 = vmatpush1.bf16.msra.mxu1 %v5824_v55  ;;  %v5912_v54 = vld [vmem:[%s6558_s8 + $0x6cc] ss:$16 sps:$4 sm:$0xff]   ;;  %v5907_v55 = vld [vmem:[%s6558_s8 + $0x6c0] ss:$16 sps:$4 sm:$0xff]  }
  0xda   : > { %1695 = vmatprep.subr.bf16.mxu0 %v5829_v56  ;;  %1736 = vmatprep.subr.bf16.mxu1 %v5832_v57  ;;  %v5910_v56 = vld [vmem:[%s6558_s8 + $0x6c8] ss:$16 sps:$4 sm:$0xff]   ;;  %v5915_v57 = vld [vmem:[%s6558_s8 + $0x6e4] ss:$16 sps:$4 sm:$0xff]  }
  0xdd   : > { %1696 = vmatpush1.bf16.msra.mxu0 %v5827_v58  ;;  %1737 = vmatpush1.bf16.msra.mxu1 %v5830_v60  ;;  %v5918_v58 = vld [vmem:[%s6558_s8 + $0x6ec] ss:$16 sps:$4 sm:$0xff]   ;;  %v5913_v60 = vld [vmem:[%s6558_s8 + $0x6e0] ss:$16 sps:$4 sm:$0xff]  }
  0xde   : > { %1697 = vmatprep.subr.bf16.mxu0 %v5835_v61  ;;  %1738 = vmatprep.subr.bf16.mxu1 %v5838_v62  ;;  %v5916_v61 = vld [vmem:[%s6558_s8 + $0x6e8] ss:$16 sps:$4 sm:$0xff]   ;;  %v5921_v62 = vld [vmem:[%s6558_s8 + $0x704] ss:$16 sps:$4 sm:$0xff]  }
  0xe1   : > { %1698 = vmatpush1.bf16.msra.mxu0 %v5833_v63  ;;  %1739 = vmatpush1.bf16.msra.mxu1 %v5836_v0  ;;  %v5924_v63 = vld [vmem:[%s6558_s8 + $0x70c] ss:$16 sps:$4 sm:$0xff]   ;;  %v5919_v0 = vld [vmem:[%s6558_s8 + $0x700] ss:$16 sps:$4 sm:$0xff]  }
  0xe2   : > { %1699 = vmatprep.subr.bf16.mxu0 %v5841_v1  ;;  %1740 = vmatprep.subr.bf16.mxu1 %v5844_v2  ;;  %v5922_v1 = vld [vmem:[%s6558_s8 + $0x708] ss:$16 sps:$4 sm:$0xff]   ;;  %v5927_v2 = vld [vmem:[%s6558_s8 + $0x724] ss:$16 sps:$4 sm:$0xff]  }
  0xe5   : > { %1700 = vmatpush1.bf16.msra.mxu0 %v5839_v4  ;;  %1741 = vmatpush1.bf16.msra.mxu1 %v5842_v5  ;;  %v5930_v4 = vld [vmem:[%s6558_s8 + $0x72c] ss:$16 sps:$4 sm:$0xff]   ;;  %v5925_v5 = vld [vmem:[%s6558_s8 + $0x720] ss:$16 sps:$4 sm:$0xff]  }
  0xe6   : > { %1701 = vmatprep.subr.bf16.mxu0 %v5847_v6  ;;  %1742 = vmatprep.subr.bf16.mxu1 %v5850_v7  ;;  %v5928_v6 = vld [vmem:[%s6558_s8 + $0x728] ss:$16 sps:$4 sm:$0xff]   ;;  %v5933_v7 = vld [vmem:[%s6558_s8 + $0x744] ss:$16 sps:$4 sm:$0xff]  }
  0xe9   : > { %1702 = vmatpush1.bf16.msra.mxu0 %v5845_v8  ;;  %1743 = vmatpush1.bf16.msra.mxu1 %v5848_v9  ;;  %v5936_v8 = vld [vmem:[%s6558_s8 + $0x74c] ss:$16 sps:$4 sm:$0xff]   ;;  %v5931_v9 = vld [vmem:[%s6558_s8 + $0x740] ss:$16 sps:$4 sm:$0xff]  }
  0xea   : > { %1703 = vmatprep.subr.bf16.mxu0 %v5853_v10  ;;  %1744 = vmatprep.subr.bf16.mxu1 %v5856_v11  ;;  %v5934_v10 = vld [vmem:[%s6558_s8 + $0x748] ss:$16 sps:$4 sm:$0xff]   ;;  %v5939_v11 = vld [vmem:[%s6558_s8 + $0x764] ss:$16 sps:$4 sm:$0xff]  }
  0xed   : > { %1704 = vmatpush1.bf16.msra.mxu0 %v5851_v12  ;;  %1745 = vmatpush1.bf16.msra.mxu1 %v5854_v59  ;;  %v5942_v12 = vld [vmem:[%s6558_s8 + $0x76c] ss:$16 sps:$4 sm:$0xff]   ;;  %v5937_v59 = vld [vmem:[%s6558_s8 + $0x760] ss:$16 sps:$4 sm:$0xff]  }
  0xee   : > { %1705 = vmatprep.subr.bf16.mxu0 %v5859_v14  ;;  %1746 = vmatprep.subr.bf16.mxu1 %v5862_v15  ;;  %v5940_v14 = vld [vmem:[%s6558_s8 + $0x768] ss:$16 sps:$4 sm:$0xff]   ;;  %v5945_v15 = vld [vmem:[%s6558_s8 + $0x784] ss:$16 sps:$4 sm:$0xff]  }
  0xf1   : > { %1706 = vmatpush1.bf16.msra.mxu0 %v5857_v17  ;;  %1747 = vmatpush1.bf16.msra.mxu1 %v5860_v18  ;;  %v5943_v17 = vld [vmem:[%s6558_s8 + $0x780] ss:$16 sps:$4 sm:$0xff]   ;;  %v5946_v18 = vld [vmem:[%s6558_s8 + $0x788] ss:$16 sps:$4 sm:$0xff]  }
  0xf2   : > { %1707 = vmatprep.subr.bf16.mxu0 %v5865_v19  ;;  %1748 = vmatprep.subr.bf16.mxu1 %v5868_v20  ;;  %v5951_v19 = vld [vmem:[%s6558_s8 + $0x7a4] ss:$16 sps:$4 sm:$0xff]   ;;  %v5954_v20 = vld [vmem:[%s6558_s8 + $0x7ac] ss:$16 sps:$4 sm:$0xff]  }
  0xf5   : > { %1708 = vmatpush1.bf16.msra.mxu0 %v5863_v24  ;;  %1749 = vmatpush1.bf16.msra.mxu1 %v5866_v25  ;;  %v5957_v24 = vld [vmem:[%s6558_s8 + $0x7c4] ss:$16 sps:$4 sm:$0xff]   ;;  %v5960_v25 = vld [vmem:[%s6558_s8 + $0x7cc] ss:$16 sps:$4 sm:$0xff]  }
  0xf6   : > { %2185 = vmatprep.subr.bf16.mxu0 %v5873_v26  ;;  %2226 = vmatprep.subr.bf16.mxu1 %v5876_v27  ;;  %v5955_v26 = vld [vmem:[%s6558_s8 + $0x7c0] ss:$16 sps:$4 sm:$0xff]   ;;  %v1848_v27 = vshrl.u32 %v4960_v22, 16  ;;  %v6022_v22 = vld [vmem:[%s6558_s8 + $0x10c] ss:$16 sps:$4 sm:$0xff]  }
  0xf8   : > { %1710 = vmatmul.mubr.bf16.vlgmr.msra.gmra.mrb[8].mxu0 %v1353_v30  ;;  %1751 = vmatmul.mubr.bf16.vlgmr.msra.gmra.mrb[8].mxu1 %v1353_v30  ;;  %v5966_v30 = vld [vmem:[%s6558_s8 + $0x7ec] ss:$16 sps:$4 sm:$0xff]  }
  0xf9   : > { %2186 = vmatpush1.bf16.msra.mxu0 %v5871_v31  ;;  %2227 = vmatpush1.bf16.msra.mxu1 %v5874_v21  ;;  %v5961_v31 = vld [vmem:[%s6558_s8 + $0x7e0] ss:$16 sps:$4 sm:$0xff]   ;;  %v1850_v21 = vrot.slane %v1848_v27, 1 }
  0xfa   : > { %2187 = vmatprep.subr.bf16.mxu0 %v5879_v32  ;;  %2228 = vmatprep.subr.bf16.mxu1 %v5882_v33  ;;  %v1853_v32 = vrot.slane %v1851_v28, 2  ;;  %v5964_v33 = vld [vmem:[%s6558_s8 + $0x7e8] ss:$16 sps:$4 sm:$0xff]   ;;  %v6023_v27 = vld [vmem:[%s6558_s8 + $0x120] ss:$16 sps:$4 sm:$0xff]  }
  0xfb   : > { %2217 = vmatprep.mubr.bf16.mxu0 %v1862_v34  ;;  %2258 = vmatprep.mubr.bf16.mxu1 %v1862_v34  ;;  %v5971_v34 = vld [vmem:[%s6558_s8 + $0x4] ss:$16 sps:$4 sm:$0xff]   ;;  %v6026_v28 = vld [vmem:[%s6558_s8 + $0x128] ss:$16 sps:$4 sm:$0xff]  }
  0xfd   : > { %2188 = vmatpush1.bf16.msra.mxu0 %v5877_v35  ;;  %2229 = vmatpush1.bf16.msra.mxu1 %v5880_v36  ;;  %v5974_v35 = vld [vmem:[%s6558_s8 + $0xc] ss:$16 sps:$4 sm:$0xff]   ;;  %v1854_v36 = vor.u32 %v1853_v32, %v1850_v21  ;;  %v6037_v21 = vld [vmem:[%s6558_s8 + $0x164] ss:$16 sps:$4 sm:$0xff]  }
  0xfe   : > { %2189 = vmatprep.subr.bf16.mxu0 %v5885_v37  ;;  %2230 = vmatprep.subr.bf16.mxu1 %v5888_v38  ;;  %v5969_v37 = vld [vmem:[%s6558_s8] ss:$16 sps:$4 sm:$0xff]   ;;  %v6845_v38 = vld [vmem:[%s6546_s29 + $0x8] sm:$0x33] }
  0xff   : > { %v6040_v32 = vld [vmem:[%s6558_s8 + $0x16c] ss:$16 sps:$4 sm:$0xff]  }
 0x101   : > { %2190 = vmatpush1.bf16.msra.mxu0 %v5883_v39  ;;  %2231 = vmatpush1.bf16.msra.mxu1 %v5886_v40  ;;  %v5972_v39 = vld [vmem:[%s6558_s8 + $0x8] ss:$16 sps:$4 sm:$0xff]   ;;  %v5977_v40 = vld [vmem:[%s6558_s8 + $0x24] ss:$16 sps:$4 sm:$0xff]  }
 0x102   : > { %2191 = vmatprep.subr.bf16.mxu0 %v5891_v41  ;;  %2232 = vmatprep.subr.bf16.mxu1 %v5894_v42  ;;  %v5980_v41 = vld [vmem:[%s6558_s8 + $0x2c] ss:$16 sps:$4 sm:$0xff]   ;;  %v5028_v42 = vcombine.high %v6845_v38, %v6845_v38 }
 0x105   : > { %2192 = vmatpush1.bf16.msra.mxu0 %v5889_v43  ;;  %2233 = vmatpush1.bf16.msra.mxu1 %v5892_v44  ;;  %v5975_v43 = vld [vmem:[%s6558_s8 + $0x20] ss:$16 sps:$4 sm:$0xff]   ;;  %v5978_v44 = vld [vmem:[%s6558_s8 + $0x28] ss:$16 sps:$4 sm:$0xff]  }
 0x106   : > { %2193 = vmatprep.subr.bf16.mxu0 %v5897_v45  ;;  %2234 = vmatprep.subr.bf16.mxu1 %v5900_v46  ;;  %v5983_v45 = vld [vmem:[%s6558_s8 + $0x44] ss:$16 sps:$4 sm:$0xff]   ;;  %v5986_v46 = vld [vmem:[%s6558_s8 + $0x4c] ss:$16 sps:$4 sm:$0xff]  }
 0x109   : > { %2194 = vmatpush1.bf16.msra.mxu0 %v5895_v47  ;;  %2235 = vmatpush1.bf16.msra.mxu1 %v5898_v48  ;;  %v5981_v47 = vld [vmem:[%s6558_s8 + $0x40] ss:$16 sps:$4 sm:$0xff]   ;;  %v5984_v48 = vld [vmem:[%s6558_s8 + $0x48] ss:$16 sps:$4 sm:$0xff]  }
 0x10a   : > { %2195 = vmatprep.subr.bf16.mxu0 %v5903_v49  ;;  %2236 = vmatprep.subr.bf16.mxu1 %v5906_v50  ;;  %v5989_v49 = vld [vmem:[%s6558_s8 + $0x64] ss:$16 sps:$4 sm:$0xff]   ;;  %v5992_v50 = vld [vmem:[%s6558_s8 + $0x6c] ss:$16 sps:$4 sm:$0xff]  }
 0x10d   : > { %2196 = vmatpush1.bf16.msra.mxu0 %v5901_v51  ;;  %2237 = vmatpush1.bf16.msra.mxu1 %v5904_v52  ;;  %v5987_v51 = vld [vmem:[%s6558_s8 + $0x60] ss:$16 sps:$4 sm:$0xff]   ;;  %v5990_v52 = vld [vmem:[%s6558_s8 + $0x68] ss:$16 sps:$4 sm:$0xff]  }
 0x10e   : > { %2197 = vmatprep.subr.bf16.mxu0 %v5909_v53  ;;  %2238 = vmatprep.subr.bf16.mxu1 %v5912_v54  ;;  %v5995_v53 = vld [vmem:[%s6558_s8 + $0x84] ss:$16 sps:$4 sm:$0xff]   ;;  %v5998_v54 = vld [vmem:[%s6558_s8 + $0x8c] ss:$16 sps:$4 sm:$0xff]  }
 0x111   : > { %2198 = vmatpush1.bf16.msra.mxu0 %v5907_v55  ;;  %2239 = vmatpush1.bf16.msra.mxu1 %v5910_v56  ;;  %v5993_v55 = vld [vmem:[%s6558_s8 + $0x80] ss:$16 sps:$4 sm:$0xff]   ;;  %v5996_v56 = vld [vmem:[%s6558_s8 + $0x88] ss:$16 sps:$4 sm:$0xff]  }
 0x112   : > { %2199 = vmatprep.subr.bf16.mxu0 %v5915_v57  ;;  %2240 = vmatprep.subr.bf16.mxu1 %v5918_v58  ;;  %v6001_v57 = vld [vmem:[%s6558_s8 + $0xa4] ss:$16 sps:$4 sm:$0xff]   ;;  %v6004_v58 = vld [vmem:[%s6558_s8 + $0xac] ss:$16 sps:$4 sm:$0xff]  }
 0x115   : > { %2200 = vmatpush1.bf16.msra.mxu0 %v5913_v60  ;;  %2241 = vmatpush1.bf16.msra.mxu1 %v5916_v61  ;;  %v5999_v60 = vld [vmem:[%s6558_s8 + $0xa0] ss:$16 sps:$4 sm:$0xff]   ;;  %v6002_v61 = vld [vmem:[%s6558_s8 + $0xa8] ss:$16 sps:$4 sm:$0xff]  }
 0x116   : > { %2201 = vmatprep.subr.bf16.mxu0 %v5921_v62  ;;  %2242 = vmatprep.subr.bf16.mxu1 %v5924_v63  ;;  %v348_v62 = vld [vmem:[#allocation2] sm:$0x77]  ;;  %v349_v63 = vld [vmem:[#allocation2 + $0x8] sm:$0x77] }
 0x119   : > { %2202 = vmatpush1.bf16.msra.mxu0 %v5919_v0  ;;  %2243 = vmatpush1.bf16.msra.mxu1 %v5922_v1  ;;  %v6007_v0 = vld [vmem:[%s6558_s8 + $0xc4] ss:$16 sps:$4 sm:$0xff]   ;;  %v6010_v1 = vld [vmem:[%s6558_s8 + $0xcc] ss:$16 sps:$4 sm:$0xff]  }
 0x11a   : > { %2203 = vmatprep.subr.bf16.mxu0 %v5927_v2  ;;  %2244 = vmatprep.subr.bf16.mxu1 %v5930_v4 }
 0x11d   : > { %2204 = vmatpush1.bf16.msra.mxu0 %v5925_v5  ;;  %2245 = vmatpush1.bf16.msra.mxu1 %v5928_v6  ;;  %v6005_v5 = vld [vmem:[%s6558_s8 + $0xc0] ss:$16 sps:$4 sm:$0xff]   ;;  %v6008_v6 = vld [vmem:[%s6558_s8 + $0xc8] ss:$16 sps:$4 sm:$0xff]  }
 0x11e   : > { %2205 = vmatprep.subr.bf16.mxu0 %v5933_v7  ;;  %2246 = vmatprep.subr.bf16.mxu1 %v5936_v8 }
 0x121   : > { %2206 = vmatpush1.bf16.msra.mxu0 %v5931_v9  ;;  %2247 = vmatpush1.bf16.msra.mxu1 %v5934_v10 }
 0x122   : > { %2207 = vmatprep.subr.bf16.mxu0 %v5939_v11  ;;  %2248 = vmatprep.subr.bf16.mxu1 %v5942_v12 }
 0x125   : > { %2208 = vmatpush1.bf16.msra.mxu0 %v5937_v59  ;;  %2249 = vmatpush1.bf16.msra.mxu1 %v5940_v14 }
 0x126   : > { %2209 = vmatprep.subr.bf16.mxu0 %v5945_v15  ;;  %2250 = vmatprep.subr.bf16.mxu1 %v5948_v16  ;;  %v6013_v15 = vld [vmem:[%s6558_s8 + $0xe4] ss:$16 sps:$4 sm:$0xff]   ;;  %v6016_v16 = vld [vmem:[%s6558_s8 + $0xec] ss:$16 sps:$4 sm:$0xff]  }
 0x129   : > { %2210 = vmatpush1.bf16.msra.mxu0 %v5943_v17  ;;  %2251 = vmatpush1.bf16.msra.mxu1 %v5946_v18 }
 0x12a   : > { %2211 = vmatprep.subr.bf16.mxu0 %v5951_v19  ;;  %2252 = vmatprep.subr.bf16.mxu1 %v5954_v20  ;;  %v6011_v19 = vld [vmem:[%s6558_s8 + $0xe0] ss:$16 sps:$4 sm:$0xff]   ;;  %v6014_v20 = vld [vmem:[%s6558_s8 + $0xe8] ss:$16 sps:$4 sm:$0xff]  }
 0x12d   : > { %2212 = vmatpush1.bf16.msra.mxu0 %v5949_v3  ;;  %2253 = vmatpush1.bf16.msra.mxu1 %v5952_v23  ;;  %v6019_v3 = vld [vmem:[%s6558_s8 + $0x104] ss:$16 sps:$4 sm:$0xff]   ;;  %v6017_v23 = vld [vmem:[%s6558_s8 + $0x100] ss:$16 sps:$4 sm:$0xff]  }
 0x12e   : > { %2213 = vmatprep.subr.bf16.mxu0 %v5957_v24  ;;  %2254 = vmatprep.subr.bf16.mxu1 %v5960_v25  ;;  %v6020_v24 = vld [vmem:[%s6558_s8 + $0x108] ss:$16 sps:$4 sm:$0xff]   ;;  %v6025_v25 = vld [vmem:[%s6558_s8 + $0x124] ss:$16 sps:$4 sm:$0xff]  }
 0x131   : > { %2214 = vmatpush1.bf16.msra.mxu0 %v5955_v26  ;;  %2255 = vmatpush1.bf16.msra.mxu1 %v5958_v29  ;;  %v6028_v26 = vld [vmem:[%s6558_s8 + $0x12c] ss:$16 sps:$4 sm:$0xff]   ;;  %v6031_v29 = vld [vmem:[%s6558_s8 + $0x144] ss:$16 sps:$4 sm:$0xff]  }
 0x132   : > { %2215 = vmatprep.subr.bf16.mxu0 %v5963_v13  ;;  %2256 = vmatprep.subr.bf16.mxu1 %v5966_v30  ;;  %v6034_v13 = vld [vmem:[%s6558_s8 + $0x14c] ss:$16 sps:$4 sm:$0xff]   ;;  %v6029_v30 = vld [vmem:[%s6558_s8 + $0x140] ss:$16 sps:$4 sm:$0xff]  }
 0x135   : > { %2216 = vmatpush1.bf16.msra.mxu0 %v5961_v31  ;;  %2257 = vmatpush1.bf16.msra.mxu1 %v5964_v33  ;;  %v6032_v31 = vld [vmem:[%s6558_s8 + $0x148] ss:$16 sps:$4 sm:$0xff]   ;;  %v6035_v33 = vld [vmem:[%s6558_s8 + $0x160] ss:$16 sps:$4 sm:$0xff]  }
 0x136   : > { %2675 = vmatprep.subr.bf16.mxu0 %v5971_v34  ;;  %2716 = vmatprep.subr.bf16.mxu1 %v5974_v35  ;;  %v6038_v34 = vld [vmem:[%s6558_s8 + $0x168] ss:$16 sps:$4 sm:$0xff]   ;;  %v6043_v35 = vld [vmem:[%s6558_s8 + $0x184] ss:$16 sps:$4 sm:$0xff]  }
 0x138   : > { %2218 = vmatmul.mubr.bf16.vlgmr.msra.gmra.mrb[12].mxu0 %v1854_v36  ;;  %2259 = vmatmul.mubr.bf16.vlgmr.msra.gmra.mrb[12].mxu1 %v1854_v36  ;;  %v6046_v36 = vld [vmem:[%s6558_s8 + $0x18c] ss:$16 sps:$4 sm:$0xff]  }
 0x139   : > { %2676 = vmatpush1.bf16.msra.mxu0 %v5969_v37  ;;  %2717 = vmatpush1.bf16.msra.mxu1 %v5972_v39  ;;  %v6041_v37 = vld [vmem:[%s6558_s8 + $0x180] ss:$16 sps:$4 sm:$0xff]   ;;  %v6044_v39 = vld [vmem:[%s6558_s8 + $0x188] ss:$16 sps:$4 sm:$0xff]  }
 0x13a   : > { %2677 = vmatprep.subr.bf16.mxu0 %v5977_v40  ;;  %2718 = vmatprep.subr.bf16.mxu1 %v5980_v41  ;;  %v6049_v40 = vld [vmem:[%s6558_s8 + $0x1a4] ss:$16 sps:$4 sm:$0xff]   ;;  %v6052_v41 = vld [vmem:[%s6558_s8 + $0x1ac] ss:$16 sps:$4 sm:$0xff]  }
 0x13b   : > { %2707 = vmatprep.mubr.bf16.mxu0 %v5028_v42  ;;  %2748 = vmatprep.mubr.bf16.mxu1 %v5028_v42  ;;  %v6901_v42 = vld [vmem:[%s6546_s29 + $0x8] sm:$0x33] }
 0x13d   : > { %2678 = vmatpush1.bf16.msra.mxu0 %v5975_v43  ;;  %2719 = vmatpush1.bf16.msra.mxu1 %v5978_v44  ;;  %v6047_v43 = vld [vmem:[%s6558_s8 + $0x1a0] ss:$16 sps:$4 sm:$0xff]   ;;  %v6050_v44 = vld [vmem:[%s6558_s8 + $0x1a8] ss:$16 sps:$4 sm:$0xff]  }
 0x13e   : > { %2679 = vmatprep.subr.bf16.mxu0 %v5983_v45  ;;  %2720 = vmatprep.subr.bf16.mxu1 %v5986_v46  ;;  %v6055_v45 = vld [vmem:[%s6558_s8 + $0x1c4] ss:$16 sps:$4 sm:$0xff]   ;;  %v6058_v46 = vld [vmem:[%s6558_s8 + $0x1cc] ss:$16 sps:$4 sm:$0xff]  }
 0x141   : > { %2680 = vmatpush1.bf16.msra.mxu0 %v5981_v47  ;;  %2721 = vmatpush1.bf16.msra.mxu1 %v5984_v48  ;;  %v5159_v47 = vcombine.high %v6901_v42, %v6901_v42  ;;  %v6053_v48 = vld [vmem:[%s6558_s8 + $0x1c0] ss:$16 sps:$4 sm:$0xff]  }
 0x142   : > { %2681 = vmatprep.subr.bf16.mxu0 %v5989_v49  ;;  %2722 = vmatprep.subr.bf16.mxu1 %v5992_v50  ;;  %v6056_v49 = vld [vmem:[%s6558_s8 + $0x1c8] ss:$16 sps:$4 sm:$0xff]   ;;  %v6061_v50 = vld [vmem:[%s6558_s8 + $0x1e4] ss:$16 sps:$4 sm:$0xff]  }
 0x145   : > { %2682 = vmatpush1.bf16.msra.mxu0 %v5987_v51  ;;  %2723 = vmatpush1.bf16.msra.mxu1 %v5990_v52  ;;  %v6064_v51 = vld [vmem:[%s6558_s8 + $0x1ec] ss:$16 sps:$4 sm:$0xff]   ;;  %v2851_v52 = vshll.u32 %v5159_v47, 16 }
 0x146   : > { %2683 = vmatprep.subr.bf16.mxu0 %v5995_v53  ;;  %2724 = vmatprep.subr.bf16.mxu1 %v5998_v54  ;;  %v6059_v53 = vld [vmem:[%s6558_s8 + $0x1e0] ss:$16 sps:$4 sm:$0xff]   ;;  %v6062_v54 = vld [vmem:[%s6558_s8 + $0x1e8] ss:$16 sps:$4 sm:$0xff]  }
 0x149   : > { %2684 = vmatpush1.bf16.msra.mxu0 %v5993_v55  ;;  %2725 = vmatpush1.bf16.msra.mxu1 %v5996_v56  ;;  %v6069_v55 = vld [vmem:[%s6558_s8 + $0x204] ss:$16 sps:$4 sm:$0xff]   ;;  %v6072_v56 = vld [vmem:[%s6558_s8 + $0x20c] ss:$16 sps:$4 sm:$0xff]  }
 0x14a   : > { %2685 = vmatprep.subr.bf16.mxu0 %v6001_v57  ;;  %2726 = vmatprep.subr.bf16.mxu1 %v6004_v58  ;;  %v6067_v57 = vld [vmem:[%s6558_s8 + $0x200] ss:$16 sps:$4 sm:$0xff]   ;;  %v6070_v58 = vld [vmem:[%s6558_s8 + $0x208] ss:$16 sps:$4 sm:$0xff]  }
 0x14b   : > { %v711_v2 = vpop.f32.mrb[0].mxu0  ;;  %v752_v4 = vpop.f32.mrb[0].mxu1 }
 0x14c   : > { %v713_v7 = vpop.f32.mrb[1].mxu0  ;;  %v754_v8 = vpop.f32.mrb[1].mxu1 }
 0x14d   : > { %v763_v9 = vcombine.low %v711_v2, %v713_v7  ;;  %v764_v10 = vcombine.low %v752_v4, %v754_v8  ;;  %v715_v11 = vpop.f32.mrb[2].mxu0  ;;  %v756_v12 = vpop.f32.mrb[2].mxu1  ;;  %2686 = vmatpush1.bf16.msra.mxu0 %v5999_v60  ;;  %2727 = vmatpush1.bf16.msra.mxu1 %v6002_v61  ;;  %v2849_v60 = vshrl.u32 %v5159_v47, 16  ;;  %v2853_v61 = vrot.slane %v2851_v52, 1  ;;  %v6073_v2 = vld [vmem:[%s6558_s8 + $0x220] ss:$16 sps:$4 sm:$0xff]  }
 0x14e   : > { %v716_v59 = vpop.f32.mrb[3].mxu0  ;;  %v757_v14 = vpop.f32.mrb[3].mxu1  ;;  %2687 = vmatprep.subr.bf16.mxu0 %v6007_v0  ;;  %2728 = vmatprep.subr.bf16.mxu1 %v6010_v1  ;;  %v6078_v0 = vld [vmem:[%s6558_s8 + $0x22c] ss:$16 sps:$4 sm:$0xff]   ;;  %v6076_v4 = vld [vmem:[%s6558_s8 + $0x228] ss:$16 sps:$4 sm:$0xff]  }
 0x14f   : > { %v767_v17 = vadd.f32 %v763_v9, %v348_v62  ;;  %v768_v18 = vadd.f32 %v764_v10, %v349_v63  ;;  %v5027_v62 = vcombine.low %v6845_v38, %v6845_v38  ;;  %v6075_v63 = vld [vmem:[%s6558_s8 + $0x224] ss:$16 sps:$4 sm:$0xff]   ;;  %v2854_v1 = vor.u32 %v2853_v61, %v2849_v60  ;;  %v6082_v7 = vld [vmem:[%s6558_s8 + $0x248] ss:$16 sps:$4 sm:$0xff]   ;;  %v6090_v9 = vld [vmem:[%s6558_s8 + $0x26c] ss:$16 sps:$4 sm:$0xff]  }
 0x150   : > { %v6081_v38 = vld [vmem:[%s6558_s8 + $0x244] ss:$16 sps:$4 sm:$0xff]   ;;  %v6085_v10 = vld [vmem:[%s6558_s8 + $0x260] ss:$16 sps:$4 sm:$0xff]   ;;  %v6088_v11 = vld [vmem:[%s6558_s8 + $0x268] ss:$16 sps:$4 sm:$0xff]  }
 0x151   : > { %769 = vst [vmem:[#allocation2] sm:$0x77] %v767_v17  ;;  %770 = vst [vmem:[#allocation2 + $0x8] sm:$0x77] %v768_v18  ;;  %2688 = vmatpush1.bf16.msra.mxu0 %v6005_v5  ;;  %2729 = vmatpush1.bf16.msra.mxu1 %v6008_v6  ;;  %v6084_v5 = vld [vmem:[%s6558_s8 + $0x24c] ss:$16 sps:$4 sm:$0xff]  }
 0x152   : > { %2689 = vmatprep.subr.bf16.mxu0 %v6013_v15  ;;  %2730 = vmatprep.subr.bf16.mxu1 %v6016_v16  ;;  %v6079_v6 = vld [vmem:[%s6558_s8 + $0x240] ss:$16 sps:$4 sm:$0xff]   ;;  %v6087_v8 = vld [vmem:[%s6558_s8 + $0x264] ss:$16 sps:$4 sm:$0xff]   ;;  %v6096_v59 = vld [vmem:[%s6558_s8 + $0x28c] ss:$16 sps:$4 sm:$0xff]  }
 0x153   : > { %v6093_v12 = vld [vmem:[%s6558_s8 + $0x284] ss:$16 sps:$4 sm:$0xff]   ;;  %v6091_v14 = vld [vmem:[%s6558_s8 + $0x280] ss:$16 sps:$4 sm:$0xff]   ;;  %v6094_v15 = vld [vmem:[%s6558_s8 + $0x288] ss:$16 sps:$4 sm:$0xff]  }
 0x154   : > { %v6099_v16 = vld [vmem:[%s6558_s8 + $0x2a4] ss:$16 sps:$4 sm:$0xff]   ;;  %v6102_v17 = vld [vmem:[%s6558_s8 + $0x2ac] ss:$16 sps:$4 sm:$0xff]   ;;  %v6097_v18 = vld [vmem:[%s6558_s8 + $0x2a0] ss:$16 sps:$4 sm:$0xff]  }
 0x155   : > { %2690 = vmatpush1.bf16.msra.mxu0 %v6011_v19  ;;  %2731 = vmatpush1.bf16.msra.mxu1 %v6014_v20  ;;  %v6100_v19 = vld [vmem:[%s6558_s8 + $0x2a8] ss:$16 sps:$4 sm:$0xff]   ;;  %v6105_v20 = vld [vmem:[%s6558_s8 + $0x2c4] ss:$16 sps:$4 sm:$0xff]   ;;  %v6126_v47 = vld [vmem:[%s6558_s8 + $0x32c] ss:$16 sps:$4 sm:$0xff]  }
 0x156   : > { %2691 = vmatprep.subr.bf16.mxu0 %v6019_v3  ;;  %2732 = vmatprep.subr.bf16.mxu1 %v6022_v22  ;;  %v6108_v3 = vld [vmem:[%s6558_s8 + $0x2cc] ss:$16 sps:$4 sm:$0xff]   ;;  %v6127_v52 = vld [vmem:[%s6558_s8 + $0x340] ss:$16 sps:$4 sm:$0xff]  }
 0x157   : > { %v6144_v60 = vld [vmem:[%s6558_s8 + $0x38c] ss:$16 sps:$4 sm:$0xff]   ;;  %v6139_v61 = vld [vmem:[%s6558_s8 + $0x380] ss:$16 sps:$4 sm:$0xff]  }
 0x159   : > { %2692 = vmatpush1.bf16.msra.mxu0 %v6017_v23  ;;  %2733 = vmatpush1.bf16.msra.mxu1 %v6020_v24 }
 0x15a   : > { %2693 = vmatprep.subr.bf16.mxu0 %v6025_v25  ;;  %2734 = vmatprep.subr.bf16.mxu1 %v6028_v26  ;;  %v6103_v26 = vld [vmem:[%s6558_s8 + $0x2c0] ss:$16 sps:$4 sm:$0xff]  }
 0x15d   : > { %2694 = vmatpush1.bf16.msra.mxu0 %v6023_v27  ;;  %2735 = vmatpush1.bf16.msra.mxu1 %v6026_v28  ;;  %v6106_v27 = vld [vmem:[%s6558_s8 + $0x2c8] ss:$16 sps:$4 sm:$0xff]  }
 0x15e   : > { %2695 = vmatprep.subr.bf16.mxu0 %v6031_v29  ;;  %2736 = vmatprep.subr.bf16.mxu1 %v6034_v13 }
 0x161   : > { %2696 = vmatpush1.bf16.msra.mxu0 %v6029_v30  ;;  %2737 = vmatpush1.bf16.msra.mxu1 %v6032_v31  ;;  %v6111_v31 = vld [vmem:[%s6558_s8 + $0x2e4] ss:$16 sps:$4 sm:$0xff]  }
 0x162   : > { %2697 = vmatprep.subr.bf16.mxu0 %v6037_v21  ;;  %2738 = vmatprep.subr.bf16.mxu1 %v6040_v32  ;;  %v6114_v21 = vld [vmem:[%s6558_s8 + $0x2ec] ss:$16 sps:$4 sm:$0xff]   ;;  %v840_v32 = vld [vmem:[#allocation2] sm:$0x77] }
 0x165   : > { %2698 = vmatpush1.bf16.msra.mxu0 %v6035_v33  ;;  %2739 = vmatpush1.bf16.msra.mxu1 %v6038_v34  ;;  %v841_v33 = vld [vmem:[#allocation2 + $0x8] sm:$0x77] }
 0x166   : > { %2699 = vmatprep.subr.bf16.mxu0 %v6043_v35  ;;  %2740 = vmatprep.subr.bf16.mxu1 %v6046_v36 }
 0x169   : > { %2700 = vmatpush1.bf16.msra.mxu0 %v6041_v37  ;;  %2741 = vmatpush1.bf16.msra.mxu1 %v6044_v39  ;;  %v6109_v39 = vld [vmem:[%s6558_s8 + $0x2e0] ss:$16 sps:$4 sm:$0xff]  }
 0x16a   : > { %2701 = vmatprep.subr.bf16.mxu0 %v6049_v40  ;;  %2742 = vmatprep.subr.bf16.mxu1 %v6052_v41  ;;  %v6112_v40 = vld [vmem:[%s6558_s8 + $0x2e8] ss:$16 sps:$4 sm:$0xff]   ;;  %v6117_v41 = vld [vmem:[%s6558_s8 + $0x304] ss:$16 sps:$4 sm:$0xff]  }
 0x16d   : > { %2702 = vmatpush1.bf16.msra.mxu0 %v6047_v43  ;;  %2743 = vmatpush1.bf16.msra.mxu1 %v6050_v44  ;;  %v6120_v43 = vld [vmem:[%s6558_s8 + $0x30c] ss:$16 sps:$4 sm:$0xff]   ;;  %v6115_v44 = vld [vmem:[%s6558_s8 + $0x300] ss:$16 sps:$4 sm:$0xff]  }
 0x16e   : > { %2703 = vmatprep.subr.bf16.mxu0 %v6055_v45  ;;  %2744 = vmatprep.subr.bf16.mxu1 %v6058_v46  ;;  %v6118_v45 = vld [vmem:[%s6558_s8 + $0x308] ss:$16 sps:$4 sm:$0xff]   ;;  %v6123_v46 = vld [vmem:[%s6558_s8 + $0x324] ss:$16 sps:$4 sm:$0xff]  }
 0x171   : > { %2704 = vmatpush1.bf16.msra.mxu0 %v6053_v48  ;;  %2745 = vmatpush1.bf16.msra.mxu1 %v6056_v49  ;;  %v6121_v48 = vld [vmem:[%s6558_s8 + $0x320] ss:$16 sps:$4 sm:$0xff]   ;;  %v6124_v49 = vld [vmem:[%s6558_s8 + $0x328] ss:$16 sps:$4 sm:$0xff]  }
 0x172   : > { %2705 = vmatprep.subr.bf16.mxu0 %v6061_v50  ;;  %2746 = vmatprep.subr.bf16.mxu1 %v6064_v51  ;;  %v6129_v50 = vld [vmem:[%s6558_s8 + $0x344] ss:$16 sps:$4 sm:$0xff]   ;;  %v6132_v51 = vld [vmem:[%s6558_s8 + $0x34c] ss:$16 sps:$4 sm:$0xff]  }
 0x175   : > { %2706 = vmatpush1.bf16.msra.mxu0 %v6059_v53  ;;  %2747 = vmatpush1.bf16.msra.mxu1 %v6062_v54  ;;  %v6130_v53 = vld [vmem:[%s6558_s8 + $0x348] ss:$16 sps:$4 sm:$0xff]   ;;  %v6135_v54 = vld [vmem:[%s6558_s8 + $0x364] ss:$16 sps:$4 sm:$0xff]  }
 0x176   : > { %3177 = vmatprep.subr.bf16.mxu0 %v6069_v55  ;;  %3218 = vmatprep.subr.bf16.mxu1 %v6072_v56  ;;  %v6138_v55 = vld [vmem:[%s6558_s8 + $0x36c] ss:$16 sps:$4 sm:$0xff]   ;;  %v6133_v56 = vld [vmem:[%s6558_s8 + $0x360] ss:$16 sps:$4 sm:$0xff]  }
 0x178   : > { %2708 = vmatmul.mubr.bf16.vlgmr.msra.gmra.mrb[16].mxu0 %v5027_v62  ;;  %2749 = vmatmul.mubr.bf16.vlgmr.msra.gmra.mrb[16].mxu1 %v5027_v62  ;;  %v6142_v62 = vld [vmem:[%s6558_s8 + $0x388] ss:$16 sps:$4 sm:$0xff]  }
 0x179   : > { %3178 = vmatpush1.bf16.msra.mxu0 %v6067_v57  ;;  %3219 = vmatpush1.bf16.msra.mxu1 %v6070_v58  ;;  %v6136_v57 = vld [vmem:[%s6558_s8 + $0x368] ss:$16 sps:$4 sm:$0xff]   ;;  %v6141_v58 = vld [vmem:[%s6558_s8 + $0x384] ss:$16 sps:$4 sm:$0xff]  }
 0x17a   : > { %3179 = vmatprep.subr.bf16.mxu0 %v6075_v63  ;;  %3220 = vmatprep.subr.bf16.mxu1 %v6078_v0  ;;  %v6147_v63 = vld [vmem:[%s6558_s8 + $0x3a4] ss:$16 sps:$4 sm:$0xff]   ;;  %v6150_v0 = vld [vmem:[%s6558_s8 + $0x3ac] ss:$16 sps:$4 sm:$0xff]  }
 0x17b   : > { %3209 = vmatprep.mubr.bf16.mxu0 %v2854_v1  ;;  %3250 = vmatprep.mubr.bf16.mxu1 %v2854_v1  ;;  %v5158_v1 = vcombine.low %v6901_v42, %v6901_v42  ;;  %v6154_v42 = vld [vmem:[%s6558_s8 + $0x3c8] ss:$16 sps:$4 sm:$0xff]  }
 0x17d   : > { %3180 = vmatpush1.bf16.msra.mxu0 %v6073_v2  ;;  %3221 = vmatpush1.bf16.msra.mxu1 %v6076_v4  ;;  %v6145_v2 = vld [vmem:[%s6558_s8 + $0x3a0] ss:$16 sps:$4 sm:$0xff]   ;;  %v6148_v4 = vld [vmem:[%s6558_s8 + $0x3a8] ss:$16 sps:$4 sm:$0xff]  }
 0x17e   : > { %3181 = vmatprep.subr.bf16.mxu0 %v6081_v38  ;;  %3222 = vmatprep.subr.bf16.mxu1 %v6084_v5  ;;  %v6153_v38 = vld [vmem:[%s6558_s8 + $0x3c4] ss:$16 sps:$4 sm:$0xff]   ;;  %v6156_v5 = vld [vmem:[%s6558_s8 + $0x3cc] ss:$16 sps:$4 sm:$0xff]  }
 0x181   : > { %3182 = vmatpush1.bf16.msra.mxu0 %v6079_v6  ;;  %3223 = vmatpush1.bf16.msra.mxu1 %v6082_v7  ;;  %v2844_v6 = vshll.u32 %v5158_v1, 16  ;;  %v6151_v7 = vld [vmem:[%s6558_s8 + $0x3c0] ss:$16 sps:$4 sm:$0xff]  }
 0x182   : > { %3183 = vmatprep.subr.bf16.mxu0 %v6087_v8  ;;  %3224 = vmatprep.subr.bf16.mxu1 %v6090_v9  ;;  %v6159_v8 = vld [vmem:[%s6558_s8 + $0x3e4] ss:$16 sps:$4 sm:$0xff]   ;;  %v6162_v9 = vld [vmem:[%s6558_s8 + $0x3ec] ss:$16 sps:$4 sm:$0xff]  }
 0x185   : > { %3184 = vmatpush1.bf16.msra.mxu0 %v6085_v10  ;;  %3225 = vmatpush1.bf16.msra.mxu1 %v6088_v11  ;;  %v2842_v10 = vshrl.u32 %v5158_v1, 16  ;;  %v2846_v11 = vrot.slane %v2844_v6, 1  ;;  %v6215_v1 = vld [vmem:[%s6558_s8 + $0x504] ss:$16 sps:$4 sm:$0xff]   ;;  %v6224_v6 = vld [vmem:[%s6558_s8 + $0x52c] ss:$16 sps:$4 sm:$0xff]  }
 0x186   : > { %3185 = vmatprep.subr.bf16.mxu0 %v6093_v12  ;;  %3226 = vmatprep.subr.bf16.mxu1 %v6096_v59  ;;  %v6982_v12 = vld [vmem:[%s6546_s29 + $0x8] sm:$0x66]  ;;  %v6157_v59 = vld [vmem:[%s6558_s8 + $0x3e0] ss:$16 sps:$4 sm:$0xff]  }
 0x189   : > { %3186 = vmatpush1.bf16.msra.mxu0 %v6091_v14  ;;  %3227 = vmatpush1.bf16.msra.mxu1 %v6094_v15  ;;  %v6160_v14 = vld [vmem:[%s6558_s8 + $0x3e8] ss:$16 sps:$4 sm:$0xff]   ;;  %v6167_v15 = vld [vmem:[%s6558_s8 + $0x404] ss:$16 sps:$4 sm:$0xff]  }
 0x18a   : > { %3187 = vmatprep.subr.bf16.mxu0 %v6099_v16  ;;  %3228 = vmatprep.subr.bf16.mxu1 %v6102_v17  ;;  %v6170_v16 = vld [vmem:[%s6558_s8 + $0x40c] ss:$16 sps:$4 sm:$0xff]   ;;  %v5290_v17 = vcombine.high %v6982_v12, %v6982_v12 }
 0x18b   : > { %v1217_v22 = vpop.f32.mrb[4].mxu0  ;;  %v1258_v23 = vpop.f32.mrb[4].mxu1 }
 0x18c   : > { %v1219_v24 = vpop.f32.mrb[5].mxu0  ;;  %v1260_v25 = vpop.f32.mrb[5].mxu1 }
 0x18d   : > { %v1269_v28 = vcombine.low %v1217_v22, %v1219_v24  ;;  %v1270_v29 = vcombine.low %v1258_v23, %v1260_v25  ;;  %v1221_v13 = vpop.f32.mrb[6].mxu0  ;;  %v1262_v30 = vpop.f32.mrb[6].mxu1  ;;  %3188 = vmatpush1.bf16.msra.mxu0 %v6097_v18  ;;  %3229 = vmatpush1.bf16.msra.mxu1 %v6100_v19  ;;  %v2847_v18 = vor.u32 %v2846_v11, %v2842_v10  ;;  %v6165_v19 = vld [vmem:[%s6558_s8 + $0x400] ss:$16 sps:$4 sm:$0xff]   ;;  %v6176_v22 = vld [vmem:[%s6558_s8 + $0x42c] ss:$16 sps:$4 sm:$0xff]  }
 0x18e   : > { %v1222_v34 = vpop.f32.mrb[7].mxu0  ;;  %v1263_v35 = vpop.f32.mrb[7].mxu1  ;;  %3189 = vmatprep.subr.bf16.mxu0 %v6105_v20  ;;  %3230 = vmatprep.subr.bf16.mxu1 %v6108_v3  ;;  %v6168_v20 = vld [vmem:[%s6558_s8 + $0x408] ss:$16 sps:$4 sm:$0xff]   ;;  %v6173_v3 = vld [vmem:[%s6558_s8 + $0x424] ss:$16 sps:$4 sm:$0xff]  }
 0x18f   : > { %v1273_v36 = vadd.f32 %v1269_v28, %v840_v32  ;;  %v1274_v37 = vadd.f32 %v1270_v29, %v841_v33  ;;  %v3344_v23 = vrot.slane %v5290_v17, 1  ;;  %v6171_v24 = vld [vmem:[%s6558_s8 + $0x420] ss:$16 sps:$4 sm:$0xff]   ;;  %v6174_v25 = vld [vmem:[%s6558_s8 + $0x428] ss:$16 sps:$4 sm:$0xff]  }
 0x190   : > { %v6177_v28 = vld [vmem:[%s6558_s8 + $0x440] ss:$16 sps:$4 sm:$0xff]   ;;  %v6180_v29 = vld [vmem:[%s6558_s8 + $0x448] ss:$16 sps:$4 sm:$0xff]   ;;  %v6185_v13 = vld [vmem:[%s6558_s8 + $0x464] ss:$16 sps:$4 sm:$0xff]  }
 0x191   : > { %1275 = vst [vmem:[#allocation2] sm:$0x77] %v1273_v36  ;;  %1276 = vst [vmem:[#allocation2 + $0x8] sm:$0x77] %v1274_v37  ;;  %3190 = vmatpush1.bf16.msra.mxu0 %v6103_v26  ;;  %3231 = vmatpush1.bf16.msra.mxu1 %v6106_v27  ;;  %v6179_v26 = vld [vmem:[%s6558_s8 + $0x444] ss:$16 sps:$4 sm:$0xff]  }
 0x192   : > { %3191 = vmatprep.subr.bf16.mxu0 %v6111_v31  ;;  %3232 = vmatprep.subr.bf16.mxu1 %v6114_v21  ;;  %v6182_v27 = vld [vmem:[%s6558_s8 + $0x44c] ss:$16 sps:$4 sm:$0xff]   ;;  %v6183_v31 = vld [vmem:[%s6558_s8 + $0x460] ss:$16 sps:$4 sm:$0xff]   ;;  %v6186_v21 = vld [vmem:[%s6558_s8 + $0x468] ss:$16 sps:$4 sm:$0xff]  }
 0x193   : > { %v6188_v30 = vld [vmem:[%s6558_s8 + $0x46c] ss:$16 sps:$4 sm:$0xff]   ;;  %v6191_v32 = vld [vmem:[%s6558_s8 + $0x484] ss:$16 sps:$4 sm:$0xff]   ;;  %v6189_v34 = vld [vmem:[%s6558_s8 + $0x480] ss:$16 sps:$4 sm:$0xff]  }
 0x194   : > { %v6194_v33 = vld [vmem:[%s6558_s8 + $0x48c] ss:$16 sps:$4 sm:$0xff]   ;;  %v6192_v35 = vld [vmem:[%s6558_s8 + $0x488] ss:$16 sps:$4 sm:$0xff]   ;;  %v6197_v36 = vld [vmem:[%s6558_s8 + $0x4a4] ss:$16 sps:$4 sm:$0xff]  }
 0x195   : > { %3192 = vmatpush1.bf16.msra.mxu0 %v6109_v39  ;;  %3233 = vmatpush1.bf16.msra.mxu1 %v6112_v40  ;;  %v6200_v37 = vld [vmem:[%s6558_s8 + $0x4ac] ss:$16 sps:$4 sm:$0xff]   ;;  %v6195_v39 = vld [vmem:[%s6558_s8 + $0x4a0] ss:$16 sps:$4 sm:$0xff]   ;;  %v6198_v40 = vld [vmem:[%s6558_s8 + $0x4a8] ss:$16 sps:$4 sm:$0xff]  }
 0x196   : > { %3193 = vmatprep.subr.bf16.mxu0 %v6117_v41  ;;  %3234 = vmatprep.subr.bf16.mxu1 %v6120_v43  ;;  %v6203_v41 = vld [vmem:[%s6558_s8 + $0x4c4] ss:$16 sps:$4 sm:$0xff]   ;;  %v6206_v43 = vld [vmem:[%s6558_s8 + $0x4cc] ss:$16 sps:$4 sm:$0xff]   ;;  %v6225_v10 = vld [vmem:[%s6558_s8 + $0x540] ss:$16 sps:$4 sm:$0xff]  }
 0x197   : > { %v6228_v11 = vld [vmem:[%s6558_s8 + $0x548] ss:$16 sps:$4 sm:$0xff]   ;;  %v6239_v17 = vld [vmem:[%s6558_s8 + $0x584] ss:$16 sps:$4 sm:$0xff]  }
 0x199   : > { %3194 = vmatpush1.bf16.msra.mxu0 %v6115_v44  ;;  %3235 = vmatpush1.bf16.msra.mxu1 %v6118_v45 }
 0x19a   : > { %3195 = vmatprep.subr.bf16.mxu0 %v6123_v46  ;;  %3236 = vmatprep.subr.bf16.mxu1 %v6126_v47 }
 0x19d   : > { %3196 = vmatpush1.bf16.msra.mxu0 %v6121_v48  ;;  %3237 = vmatpush1.bf16.msra.mxu1 %v6124_v49  ;;  %v6201_v48 = vld [vmem:[%s6558_s8 + $0x4c0] ss:$16 sps:$4 sm:$0xff]   ;;  %v6204_v49 = vld [vmem:[%s6558_s8 + $0x4c8] ss:$16 sps:$4 sm:$0xff]  }
 0x19e   : > { %3197 = vmatprep.subr.bf16.mxu0 %v6129_v50  ;;  %3238 = vmatprep.subr.bf16.mxu1 %v6132_v51 }
 0x1a1   : > { %3198 = vmatpush1.bf16.msra.mxu0 %v6127_v52  ;;  %3239 = vmatpush1.bf16.msra.mxu1 %v6130_v53 }
 0x1a2   : > { %3199 = vmatprep.subr.bf16.mxu0 %v6135_v54  ;;  %3240 = vmatprep.subr.bf16.mxu1 %v6138_v55  ;;  %v6209_v54 = vld [vmem:[%s6558_s8 + $0x4e4] ss:$16 sps:$4 sm:$0xff]   ;;  %v6212_v55 = vld [vmem:[%s6558_s8 + $0x4ec] ss:$16 sps:$4 sm:$0xff]  }
 0x1a5   : > { %3200 = vmatpush1.bf16.msra.mxu0 %v6133_v56  ;;  %3241 = vmatpush1.bf16.msra.mxu1 %v6136_v57  ;;  %v1346_v56 = vld [vmem:[#allocation2] sm:$0x77]  ;;  %v1347_v57 = vld [vmem:[#allocation2 + $0x8] sm:$0x77] }
 0x1a6   : > { %3201 = vmatprep.subr.bf16.mxu0 %v6141_v58  ;;  %3242 = vmatprep.subr.bf16.mxu1 %v6144_v60 }
 0x1a9   : > { %3202 = vmatpush1.bf16.msra.mxu0 %v6139_v61  ;;  %3243 = vmatpush1.bf16.msra.mxu1 %v6142_v62 }
 0x1aa   : > { %3203 = vmatprep.subr.bf16.mxu0 %v6147_v63  ;;  %3244 = vmatprep.subr.bf16.mxu1 %v6150_v0  ;;  %v6207_v63 = vld [vmem:[%s6558_s8 + $0x4e0] ss:$16 sps:$4 sm:$0xff]   ;;  %v6210_v0 = vld [vmem:[%s6558_s8 + $0x4e8] ss:$16 sps:$4 sm:$0xff]  }
 0x1ad   : > { %3204 = vmatpush1.bf16.msra.mxu0 %v6145_v2  ;;  %3245 = vmatpush1.bf16.msra.mxu1 %v6148_v4  ;;  %v6218_v2 = vld [vmem:[%s6558_s8 + $0x50c] ss:$16 sps:$4 sm:$0xff]   ;;  %v6213_v4 = vld [vmem:[%s6558_s8 + $0x500] ss:$16 sps:$4 sm:$0xff]  }
 0x1ae   : > { %3205 = vmatprep.subr.bf16.mxu0 %v6153_v38  ;;  %3246 = vmatprep.subr.bf16.mxu1 %v6156_v5  ;;  %v6216_v38 = vld [vmem:[%s6558_s8 + $0x508] ss:$16 sps:$4 sm:$0xff]   ;;  %v6221_v5 = vld [vmem:[%s6558_s8 + $0x524] ss:$16 sps:$4 sm:$0xff]  }
 0x1b1   : > { %3206 = vmatpush1.bf16.msra.mxu0 %v6151_v7  ;;  %3247 = vmatpush1.bf16.msra.mxu1 %v6154_v42  ;;  %v6219_v7 = vld [vmem:[%s6558_s8 + $0x520] ss:$16 sps:$4 sm:$0xff]   ;;  %v6222_v42 = vld [vmem:[%s6558_s8 + $0x528] ss:$16 sps:$4 sm:$0xff]  }
 0x1b2   : > { %3207 = vmatprep.subr.bf16.mxu0 %v6159_v8  ;;  %3248 = vmatprep.subr.bf16.mxu1 %v6162_v9  ;;  %v6227_v8 = vld [vmem:[%s6558_s8 + $0x544] ss:$16 sps:$4 sm:$0xff]   ;;  %v6230_v9 = vld [vmem:[%s6558_s8 + $0x54c] ss:$16 sps:$4 sm:$0xff]  }
 0x1b5   : > { %3208 = vmatpush1.bf16.msra.mxu0 %v6157_v59  ;;  %3249 = vmatpush1.bf16.msra.mxu1 %v6160_v14  ;;  %v6233_v59 = vld [vmem:[%s6558_s8 + $0x564] ss:$16 sps:$4 sm:$0xff]   ;;  %v6236_v14 = vld [vmem:[%s6558_s8 + $0x56c] ss:$16 sps:$4 sm:$0xff]  }
 0x1b6   : > { %3667 = vmatprep.subr.bf16.mxu0 %v6167_v15  ;;  %3708 = vmatprep.subr.bf16.mxu1 %v6170_v16  ;;  %v6231_v15 = vld [vmem:[%s6558_s8 + $0x560] ss:$16 sps:$4 sm:$0xff]   ;;  %v6234_v16 = vld [vmem:[%s6558_s8 + $0x568] ss:$16 sps:$4 sm:$0xff]  }
 0x1b8   : > { %3210 = vmatmul.mubr.bf16.vlgmr.msra.gmra.mrb[20].mxu0 %v2847_v18  ;;  %3251 = vmatmul.mubr.bf16.vlgmr.msra.gmra.mrb[20].mxu1 %v2847_v18  ;;  %v6242_v18 = vld [vmem:[%s6558_s8 + $0x58c] ss:$16 sps:$4 sm:$0xff]  }
 0x1b9   : > { %3668 = vmatpush1.bf16.msra.mxu0 %v6165_v19  ;;  %3709 = vmatpush1.bf16.msra.mxu1 %v6168_v20  ;;  %v6237_v19 = vld [vmem:[%s6558_s8 + $0x580] ss:$16 sps:$4 sm:$0xff]   ;;  %v6240_v20 = vld [vmem:[%s6558_s8 + $0x588] ss:$16 sps:$4 sm:$0xff]  }
 0x1ba   : > { %3669 = vmatprep.subr.bf16.mxu0 %v6173_v3  ;;  %3710 = vmatprep.subr.bf16.mxu1 %v6176_v22  ;;  %v6245_v3 = vld [vmem:[%s6558_s8 + $0x5a4] ss:$16 sps:$4 sm:$0xff]   ;;  %v6248_v22 = vld [vmem:[%s6558_s8 + $0x5ac] ss:$16 sps:$4 sm:$0xff]  }
 0x1bb   : > { %3699 = vmatprep.mubr.bf16.mxu0 %v3344_v23  ;;  %3740 = vmatprep.mubr.bf16.mxu1 %v3344_v23  ;;  %v7043_v23 = vld [vmem:[%s6546_s29 + $0x8] sm:$0x66] }
 0x1bd   : > { %3670 = vmatpush1.bf16.msra.mxu0 %v6171_v24  ;;  %3711 = vmatpush1.bf16.msra.mxu1 %v6174_v25  ;;  %v6243_v24 = vld [vmem:[%s6558_s8 + $0x5a0] ss:$16 sps:$4 sm:$0xff]   ;;  %v6246_v25 = vld [vmem:[%s6558_s8 + $0x5a8] ss:$16 sps:$4 sm:$0xff]  }
 0x1be   : > { %3671 = vmatprep.subr.bf16.mxu0 %v6179_v26  ;;  %3712 = vmatprep.subr.bf16.mxu1 %v6182_v27  ;;  %v6251_v26 = vld [vmem:[%s6558_s8 + $0x5c4] ss:$16 sps:$4 sm:$0xff]   ;;  %v6254_v27 = vld [vmem:[%s6558_s8 + $0x5cc] ss:$16 sps:$4 sm:$0xff]  }
 0x1c1   : > { %3672 = vmatpush1.bf16.msra.mxu0 %v6177_v28  ;;  %3713 = vmatpush1.bf16.msra.mxu1 %v6180_v29  ;;  %v5421_v28 = vcombine.high %v7043_v23, %v7043_v23  ;;  %v6249_v29 = vld [vmem:[%s6558_s8 + $0x5c0] ss:$16 sps:$4 sm:$0xff]  }
 0x1c2   : > { %3673 = vmatprep.subr.bf16.mxu0 %v6185_v13  ;;  %3714 = vmatprep.subr.bf16.mxu1 %v6188_v30  ;;  %v6252_v13 = vld [vmem:[%s6558_s8 + $0x5c8] ss:$16 sps:$4 sm:$0xff]   ;;  %v6257_v30 = vld [vmem:[%s6558_s8 + $0x5e4] ss:$16 sps:$4 sm:$0xff]  }
 0x1c5   : > { %3674 = vmatpush1.bf16.msra.mxu0 %v6183_v31  ;;  %3715 = vmatpush1.bf16.msra.mxu1 %v6186_v21  ;;  %v6260_v31 = vld [vmem:[%s6558_s8 + $0x5ec] ss:$16 sps:$4 sm:$0xff]   ;;  %v3842_v21 = vshrl.u32 %v5421_v28, 16 }
 0x1c6   : > { %3675 = vmatprep.subr.bf16.mxu0 %v6191_v32  ;;  %3716 = vmatprep.subr.bf16.mxu1 %v6194_v33  ;;  %v3845_v32 = vshll.u32 %v5421_v28, 16  ;;  %v5289_v33 = vcombine.low %v6982_v12, %v6982_v12  ;;  %v6266_v12 = vld [vmem:[%s6558_s8 + $0x608] ss:$16 sps:$4 sm:$0xff]  }
 0x1c7   : > { %v6314_v28 = vld [vmem:[%s6558_s8 + $0x708] ss:$16 sps:$4 sm:$0xff]  }
 0x1c9   : > { %3676 = vmatpush1.bf16.msra.mxu0 %v6189_v34  ;;  %3717 = vmatpush1.bf16.msra.mxu1 %v6192_v35  ;;  %v6255_v34 = vld [vmem:[%s6558_s8 + $0x5e0] ss:$16 sps:$4 sm:$0xff]   ;;  %v6258_v35 = vld [vmem:[%s6558_s8 + $0x5e8] ss:$16 sps:$4 sm:$0xff]  }
 0x1ca   : > { %3677 = vmatprep.subr.bf16.mxu0 %v6197_v36  ;;  %3718 = vmatprep.subr.bf16.mxu1 %v6200_v37  ;;  %v6265_v36 = vld [vmem:[%s6558_s8 + $0x604] ss:$16 sps:$4 sm:$0xff]   ;;  %v6268_v37 = vld [vmem:[%s6558_s8 + $0x60c] ss:$16 sps:$4 sm:$0xff]  }
 0x1cb   : > { %v1711_v44 = vpop.f32.mrb[8].mxu0  ;;  %v1752_v45 = vpop.f32.mrb[8].mxu1 }
 0x1cc   : > { %v1713_v46 = vpop.f32.mrb[9].mxu0  ;;  %v1754_v47 = vpop.f32.mrb[9].mxu1 }
 0x1cd   : > { %v1763_v50 = vcombine.low %v1711_v44, %v1713_v46  ;;  %v1764_v51 = vcombine.low %v1752_v45, %v1754_v47  ;;  %v1715_v52 = vpop.f32.mrb[10].mxu0  ;;  %v1756_v53 = vpop.f32.mrb[10].mxu1  ;;  %3678 = vmatpush1.bf16.msra.mxu0 %v6195_v39  ;;  %3719 = vmatpush1.bf16.msra.mxu1 %v6198_v40  ;;  %v3844_v39 = vrot.slane %v3842_v21, 1  ;;  %v3847_v40 = vrot.slane %v3845_v32, 2  ;;  %v6271_v44 = vld [vmem:[%s6558_s8 + $0x624] ss:$16 sps:$4 sm:$0xff]  }
 0x1ce   : > { %v1716_v58 = vpop.f32.mrb[11].mxu0  ;;  %v1757_v60 = vpop.f32.mrb[11].mxu1  ;;  %3679 = vmatprep.subr.bf16.mxu0 %v6203_v41  ;;  %3720 = vmatprep.subr.bf16.mxu1 %v6206_v43  ;;  %v3343_v41 = vrot.slane %v5289_v33, 1  ;;  %v6263_v43 = vld [vmem:[%s6558_s8 + $0x600] ss:$16 sps:$4 sm:$0xff]  }
 0x1cf   : > { %v1767_v61 = vadd.f32 %v1763_v50, %v1346_v56  ;;  %v1768_v62 = vadd.f32 %v1764_v51, %v1347_v57  ;;  %v6274_v45 = vld [vmem:[%s6558_s8 + $0x62c] ss:$16 sps:$4 sm:$0xff]   ;;  %v3848_v46 = vor.u32 %v3847_v40, %v3844_v39  ;;  %v6269_v47 = vld [vmem:[%s6558_s8 + $0x620] ss:$16 sps:$4 sm:$0xff]   ;;  %v6278_v52 = vld [vmem:[%s6558_s8 + $0x648] ss:$16 sps:$4 sm:$0xff]  }
 0x1d0   : > { %v6280_v50 = vld [vmem:[%s6558_s8 + $0x64c] ss:$16 sps:$4 sm:$0xff]   ;;  %v6275_v51 = vld [vmem:[%s6558_s8 + $0x640] ss:$16 sps:$4 sm:$0xff]   ;;  %v6283_v53 = vld [vmem:[%s6558_s8 + $0x664] ss:$16 sps:$4 sm:$0xff]  }
 0x1d1   : > { %1769 = vst [vmem:[#allocation2] sm:$0x77] %v1767_v61  ;;  %1770 = vst [vmem:[#allocation2 + $0x8] sm:$0x77] %v1768_v62  ;;  %3680 = vmatpush1.bf16.msra.mxu0 %v6201_v48  ;;  %3721 = vmatpush1.bf16.msra.mxu1 %v6204_v49  ;;  %v6272_v48 = vld [vmem:[%s6558_s8 + $0x628] ss:$16 sps:$4 sm:$0xff]  }
 0x1d2   : > { %3681 = vmatprep.subr.bf16.mxu0 %v6209_v54  ;;  %3722 = vmatprep.subr.bf16.mxu1 %v6212_v55  ;;  %v6277_v49 = vld [vmem:[%s6558_s8 + $0x644] ss:$16 sps:$4 sm:$0xff]   ;;  %v6286_v54 = vld [vmem:[%s6558_s8 + $0x66c] ss:$16 sps:$4 sm:$0xff]   ;;  %v6281_v55 = vld [vmem:[%s6558_s8 + $0x660] ss:$16 sps:$4 sm:$0xff]  }
 0x1d3   : > { %v6284_v56 = vld [vmem:[%s6558_s8 + $0x668] ss:$16 sps:$4 sm:$0xff]   ;;  %v6289_v57 = vld [vmem:[%s6558_s8 + $0x684] ss:$16 sps:$4 sm:$0xff]   ;;  %v6292_v58 = vld [vmem:[%s6558_s8 + $0x68c] ss:$16 sps:$4 sm:$0xff]  }
 0x1d4   : > { %v6287_v60 = vld [vmem:[%s6558_s8 + $0x680] ss:$16 sps:$4 sm:$0xff]   ;;  %v6290_v61 = vld [vmem:[%s6558_s8 + $0x688] ss:$16 sps:$4 sm:$0xff]   ;;  %v6295_v62 = vld [vmem:[%s6558_s8 + $0x6a4] ss:$16 sps:$4 sm:$0xff]  }
 0x1d5   : > { %3682 = vmatpush1.bf16.msra.mxu0 %v6207_v63  ;;  %3723 = vmatpush1.bf16.msra.mxu1 %v6210_v0  ;;  %v6298_v63 = vld [vmem:[%s6558_s8 + $0x6ac] ss:$16 sps:$4 sm:$0xff]   ;;  %v6293_v0 = vld [vmem:[%s6558_s8 + $0x6a0] ss:$16 sps:$4 sm:$0xff]   ;;  %v6325_v21 = vld [vmem:[%s6558_s8 + $0x744] ss:$16 sps:$4 sm:$0xff]  }
 0x1d6   : > { %3683 = vmatprep.subr.bf16.mxu0 %v6215_v1  ;;  %3724 = vmatprep.subr.bf16.mxu1 %v6218_v2  ;;  %v6296_v1 = vld [vmem:[%s6558_s8 + $0x6a8] ss:$16 sps:$4 sm:$0xff]   ;;  %v6301_v2 = vld [vmem:[%s6558_s8 + $0x6c4] ss:$16 sps:$4 sm:$0xff]   ;;  %v6328_v32 = vld [vmem:[%s6558_s8 + $0x74c] ss:$16 sps:$4 sm:$0xff]  }
 0x1d7   : > { %v6323_v33 = vld [vmem:[%s6558_s8 + $0x740] ss:$16 sps:$4 sm:$0xff]   ;;  %v6332_v39 = vld [vmem:[%s6558_s8 + $0x768] ss:$16 sps:$4 sm:$0xff]   ;;  %v6337_v40 = vld [vmem:[%s6558_s8 + $0x784] ss:$16 sps:$4 sm:$0xff]  }
 0x1d9   : > { %3684 = vmatpush1.bf16.msra.mxu0 %v6213_v4  ;;  %3725 = vmatpush1.bf16.msra.mxu1 %v6216_v38  ;;  %v6304_v4 = vld [vmem:[%s6558_s8 + $0x6cc] ss:$16 sps:$4 sm:$0xff]  }
 0x1da   : > { %3685 = vmatprep.subr.bf16.mxu0 %v6221_v5  ;;  %3726 = vmatprep.subr.bf16.mxu1 %v6224_v6 }
 0x1dd   : > { %3686 = vmatpush1.bf16.msra.mxu0 %v6219_v7  ;;  %3727 = vmatpush1.bf16.msra.mxu1 %v6222_v42  ;;  %v6299_v42 = vld [vmem:[%s6558_s8 + $0x6c0] ss:$16 sps:$4 sm:$0xff]  }
 0x1de   : > { %3687 = vmatprep.subr.bf16.mxu0 %v6227_v8  ;;  %3728 = vmatprep.subr.bf16.mxu1 %v6230_v9  ;;  %v6302_v8 = vld [vmem:[%s6558_s8 + $0x6c8] ss:$16 sps:$4 sm:$0xff]  }
 0x1e1   : > { %3688 = vmatpush1.bf16.msra.mxu0 %v6225_v10  ;;  %3729 = vmatpush1.bf16.msra.mxu1 %v6228_v11 }
 0x1e2   : > { %3689 = vmatprep.subr.bf16.mxu0 %v6233_v59  ;;  %3730 = vmatprep.subr.bf16.mxu1 %v6236_v14  ;;  %v6307_v14 = vld [vmem:[%s6558_s8 + $0x6e4] ss:$16 sps:$4 sm:$0xff]  }
 0x1e5   : > { %3690 = vmatpush1.bf16.msra.mxu0 %v6231_v15  ;;  %3731 = vmatpush1.bf16.msra.mxu1 %v6234_v16  ;;  %v6310_v15 = vld [vmem:[%s6558_s8 + $0x6ec] ss:$16 sps:$4 sm:$0xff]   ;;  %v1840_v16 = vld [vmem:[#allocation2] sm:$0x77] }
 0x1e6   : > { %3691 = vmatprep.subr.bf16.mxu0 %v6239_v17  ;;  %3732 = vmatprep.subr.bf16.mxu1 %v6242_v18  ;;  %v1841_v17 = vld [vmem:[#allocation2 + $0x8] sm:$0x77] }
 0x1e9   : > { %3692 = vmatpush1.bf16.msra.mxu0 %v6237_v19  ;;  %3733 = vmatpush1.bf16.msra.mxu1 %v6240_v20 }
 0x1ea   : > { %3693 = vmatprep.subr.bf16.mxu0 %v6245_v3  ;;  %3734 = vmatprep.subr.bf16.mxu1 %v6248_v22  ;;  %v6305_v22 = vld [vmem:[%s6558_s8 + $0x6e0] ss:$16 sps:$4 sm:$0xff]  }
 0x1ed   : > { %3694 = vmatpush1.bf16.msra.mxu0 %v6243_v24  ;;  %3735 = vmatpush1.bf16.msra.mxu1 %v6246_v25  ;;  %v6308_v24 = vld [vmem:[%s6558_s8 + $0x6e8] ss:$16 sps:$4 sm:$0xff]   ;;  %v6313_v25 = vld [vmem:[%s6558_s8 + $0x704] ss:$16 sps:$4 sm:$0xff]  }
 0x1ee   : > { %3695 = vmatprep.subr.bf16.mxu0 %v6251_v26  ;;  %3736 = vmatprep.subr.bf16.mxu1 %v6254_v27  ;;  %v6316_v26 = vld [vmem:[%s6558_s8 + $0x70c] ss:$16 sps:$4 sm:$0xff]   ;;  %v6311_v27 = vld [vmem:[%s6558_s8 + $0x700] ss:$16 sps:$4 sm:$0xff]  }
 0x1f1   : > { %3696 = vmatpush1.bf16.msra.mxu0 %v6249_v29  ;;  %3737 = vmatpush1.bf16.msra.mxu1 %v6252_v13  ;;  %v6319_v29 = vld [vmem:[%s6558_s8 + $0x724] ss:$16 sps:$4 sm:$0xff]   ;;  %v6322_v13 = vld [vmem:[%s6558_s8 + $0x72c] ss:$16 sps:$4 sm:$0xff]  }
 0x1f2   : > { %3697 = vmatprep.subr.bf16.mxu0 %v6257_v30  ;;  %3738 = vmatprep.subr.bf16.mxu1 %v6260_v31  ;;  %v6317_v30 = vld [vmem:[%s6558_s8 + $0x720] ss:$16 sps:$4 sm:$0xff]   ;;  %v6320_v31 = vld [vmem:[%s6558_s8 + $0x728] ss:$16 sps:$4 sm:$0xff]  }
 0x1f5   : > { %3698 = vmatpush1.bf16.msra.mxu0 %v6255_v34  ;;  %3739 = vmatpush1.bf16.msra.mxu1 %v6258_v35  ;;  %v6326_v34 = vld [vmem:[%s6558_s8 + $0x748] ss:$16 sps:$4 sm:$0xff]   ;;  %v6331_v35 = vld [vmem:[%s6558_s8 + $0x764] ss:$16 sps:$4 sm:$0xff]  }
 0x1f6   : > { %4171 = vmatprep.subr.bf16.mxu0 %v6265_v36  ;;  %4212 = vmatprep.subr.bf16.mxu1 %v6268_v37  ;;  %v6334_v36 = vld [vmem:[%s6558_s8 + $0x76c] ss:$16 sps:$4 sm:$0xff]   ;;  %v6329_v37 = vld [vmem:[%s6558_s8 + $0x760] ss:$16 sps:$4 sm:$0xff]  }
 0x1f8   : > { %3700 = vmatmul.mubr.bf16.vlgmr.msra.gmra.mrb[24].mxu0 %v3343_v41  ;;  %3741 = vmatmul.mubr.bf16.vlgmr.msra.gmra.mrb[24].mxu1 %v3343_v41  ;;  %v6340_v41 = vld [vmem:[%s6558_s8 + $0x78c] ss:$16 sps:$4 sm:$0xff]  }
 0x1f9   : > { %4172 = vmatpush1.bf16.msra.mxu0 %v6263_v43  ;;  %4213 = vmatpush1.bf16.msra.mxu1 %v6266_v12  ;;  %v6335_v43 = vld [vmem:[%s6558_s8 + $0x780] ss:$16 sps:$4 sm:$0xff]   ;;  %v6338_v12 = vld [vmem:[%s6558_s8 + $0x788] ss:$16 sps:$4 sm:$0xff]  }
 0x1fa   : > { %4173 = vmatprep.subr.bf16.mxu0 %v6271_v44  ;;  %4214 = vmatprep.subr.bf16.mxu1 %v6274_v45  ;;  %v6343_v44 = vld [vmem:[%s6558_s8 + $0x7a4] ss:$16 sps:$4 sm:$0xff]   ;;  %v6346_v45 = vld [vmem:[%s6558_s8 + $0x7ac] ss:$16 sps:$4 sm:$0xff]  }
 0x1fb   : > { %4203 = vmatprep.mubr.bf16.mxu0 %v3848_v46  ;;  %4244 = vmatprep.mubr.bf16.mxu1 %v3848_v46  ;;  %v5420_v46 = vcombine.low %v7043_v23, %v7043_v23  ;;  %v6355_v23 = vld [vmem:[%s6558_s8 + $0x7e4] ss:$16 sps:$4 sm:$0xff]  }
 0x1fd   : > { %4174 = vmatpush1.bf16.msra.mxu0 %v6269_v47  ;;  %4215 = vmatpush1.bf16.msra.mxu1 %v6272_v48  ;;  %v6341_v47 = vld [vmem:[%s6558_s8 + $0x7a0] ss:$16 sps:$4 sm:$0xff]   ;;  %v6344_v48 = vld [vmem:[%s6558_s8 + $0x7a8] ss:$16 sps:$4 sm:$0xff]  }
 0x1fe   : > { %4175 = vmatprep.subr.bf16.mxu0 %v6277_v49  ;;  %4216 = vmatprep.subr.bf16.mxu1 %v6280_v50  ;;  %v6349_v49 = vld [vmem:[%s6558_s8 + $0x7c4] ss:$16 sps:$4 sm:$0xff]   ;;  %v6352_v50 = vld [vmem:[%s6558_s8 + $0x7cc] ss:$16 sps:$4 sm:$0xff]  }
 0x201   : > { %4176 = vmatpush1.bf16.msra.mxu0 %v6275_v51  ;;  %4217 = vmatpush1.bf16.msra.mxu1 %v6278_v52  ;;  %v3834_v51 = vshrl.u32 %v5420_v46, 16  ;;  %v3837_v52 = vshll.u32 %v5420_v46, 16 }
 0x202   : > { %4177 = vmatprep.subr.bf16.mxu0 %v6283_v53  ;;  %4218 = vmatprep.subr.bf16.mxu1 %v6286_v54  ;;  %v6347_v53 = vld [vmem:[%s6558_s8 + $0x7c0] ss:$16 sps:$4 sm:$0xff]   ;;  %v6350_v54 = vld [vmem:[%s6558_s8 + $0x7c8] ss:$16 sps:$4 sm:$0xff]  }
 0x205   : > { %4178 = vmatpush1.bf16.msra.mxu0 %v6281_v55  ;;  %4219 = vmatpush1.bf16.msra.mxu1 %v6284_v56  ;;  %v6358_v55 = vld [vmem:[%s6558_s8 + $0x7ec] ss:$16 sps:$4 sm:$0xff]   ;;  %v3836_v56 = vrot.slane %v3834_v51, 1 }
 0x206   : > { %4179 = vmatprep.subr.bf16.mxu0 %v6289_v57  ;;  %4220 = vmatprep.subr.bf16.mxu1 %v6292_v58  ;;  %v3839_v57 = vrot.slane %v3837_v52, 2  ;;  %v6353_v58 = vld [vmem:[%s6558_s8 + $0x7e0] ss:$16 sps:$4 sm:$0xff]  }
 0x209   : > { %4180 = vmatpush1.bf16.msra.mxu0 %v6287_v60  ;;  %4221 = vmatpush1.bf16.msra.mxu1 %v6290_v61  ;;  %v6356_v60 = vld [vmem:[%s6558_s8 + $0x7e8] ss:$16 sps:$4 sm:$0xff]   ;;  %v3840_v61 = vor.u32 %v3839_v57, %v3836_v56  ;;  %v6434_v56 = vmov (!%p5486_p1), 1983009808  }
 0x20a   : > { %4181 = vmatprep.subr.bf16.mxu0 %v6295_v62  ;;  %4222 = vmatprep.subr.bf16.mxu1 %v6298_v63  ;;  %v4330_v57 = vunpack.c.l.s4 (!%p5486_p1), %v6434_v56 }
 0x20b   : > { %v2219_v38 = vpop.f32.mrb[12].mxu0  ;;  %v2260_v5 = vpop.f32.mrb[12].mxu1 }
 0x20c   : > { %v2221_v6 = vpop.f32.mrb[13].mxu0  ;;  %v2262_v7 = vpop.f32.mrb[13].mxu1 }
 0x20d   : > { %v2271_v9 = vcombine.low %v2219_v38, %v2221_v6  ;;  %v2272_v10 = vcombine.low %v2260_v5, %v2262_v7  ;;  %v2223_v11 = vpop.f32.mrb[14].mxu0  ;;  %v2264_v59 = vpop.f32.mrb[14].mxu1  ;;  %4182 = vmatpush1.bf16.msra.mxu0 %v6293_v0  ;;  %4223 = vmatpush1.bf16.msra.mxu1 %v6296_v1  ;;  %v2346_v0 = vld [vmem:[#allocation2 + $0x10] sm:$0x77] }
 0x20e   : > { %v2224_v18 = vpop.f32.mrb[15].mxu0  ;;  %v2265_v19 = vpop.f32.mrb[15].mxu1  ;;  %4183 = vmatprep.subr.bf16.mxu0 %v6301_v2  ;;  %4224 = vmatprep.subr.bf16.mxu1 %v6304_v4  ;;  %v2347_v2 = vld [vmem:[#allocation2 + $0x18] sm:$0x77] }
 0x20f   : > { %v2275_v20 = vadd.f32 %v2271_v9, %v1840_v16  ;;  %v2276_v3 = vadd.f32 %v2272_v10, %v1841_v17 }
 0x211   : > { %2277 = vst [vmem:[#allocation2] sm:$0x77] %v2275_v20  ;;  %2278 = vst [vmem:[#allocation2 + $0x8] sm:$0x77] %v2276_v3  ;;  %4184 = vmatpush1.bf16.msra.mxu0 %v6299_v42  ;;  %4225 = vmatpush1.bf16.msra.mxu1 %v6302_v8 }
 0x212   : > { %4185 = vmatprep.subr.bf16.mxu0 %v6307_v14  ;;  %4226 = vmatprep.subr.bf16.mxu1 %v6310_v15 }
 0x215   : > { %4186 = vmatpush1.bf16.msra.mxu0 %v6305_v22  ;;  %4227 = vmatpush1.bf16.msra.mxu1 %v6308_v24 }
 0x216   : > { %4187 = vmatprep.subr.bf16.mxu0 %v6313_v25  ;;  %4228 = vmatprep.subr.bf16.mxu1 %v6316_v26 }
 0x219   : > { %4188 = vmatpush1.bf16.msra.mxu0 %v6311_v27  ;;  %4229 = vmatpush1.bf16.msra.mxu1 %v6314_v28 }
 0x21a   : > { %4189 = vmatprep.subr.bf16.mxu0 %v6319_v29  ;;  %4230 = vmatprep.subr.bf16.mxu1 %v6322_v13 }
 0x21d   : > { %4190 = vmatpush1.bf16.msra.mxu0 %v6317_v30  ;;  %4231 = vmatpush1.bf16.msra.mxu1 %v6320_v31 }
 0x21e   : > { %4191 = vmatprep.subr.bf16.mxu0 %v6325_v21  ;;  %4232 = vmatprep.subr.bf16.mxu1 %v6328_v32 }
 0x221   : > { %4192 = vmatpush1.bf16.msra.mxu0 %v6323_v33  ;;  %4233 = vmatpush1.bf16.msra.mxu1 %v6326_v34 }
 0x222   : > { %4193 = vmatprep.subr.bf16.mxu0 %v6331_v35  ;;  %4234 = vmatprep.subr.bf16.mxu1 %v6334_v36 }
 0x225   : > { %4194 = vmatpush1.bf16.msra.mxu0 %v6329_v37  ;;  %4235 = vmatpush1.bf16.msra.mxu1 %v6332_v39 }
 0x226   : > { %4195 = vmatprep.subr.bf16.mxu0 %v6337_v40  ;;  %4236 = vmatprep.subr.bf16.mxu1 %v6340_v41 }
 0x229   : > { %4196 = vmatpush1.bf16.msra.mxu0 %v6335_v43  ;;  %4237 = vmatpush1.bf16.msra.mxu1 %v6338_v12 }
 0x22a   : > { %4197 = vmatprep.subr.bf16.mxu0 %v6343_v44  ;;  %4238 = vmatprep.subr.bf16.mxu1 %v6346_v45 }
 0x22d   : > { %4198 = vmatpush1.bf16.msra.mxu0 %v6341_v47  ;;  %4239 = vmatpush1.bf16.msra.mxu1 %v6344_v48 }
 0x22e   : > { %4199 = vmatprep.subr.bf16.mxu0 %v6349_v49  ;;  %4240 = vmatprep.subr.bf16.mxu1 %v6352_v50 }
 0x231   : > { %4200 = vmatpush1.bf16.msra.mxu0 %v6347_v53  ;;  %4241 = vmatpush1.bf16.msra.mxu1 %v6350_v54  ;;  %v4275_v54 = vlaneseq (!%p5486_p1) }
 0x232   : > { %4201 = vmatprep.subr.bf16.mxu0 %v6355_v23  ;;  %4242 = vmatprep.subr.bf16.mxu1 %v6358_v55  ;;  %v4273_v55 = vld [vmem:[%s7189_s2] sm:$0xf] (!%p5486_p1) }
 0x233   : > { %v4276_v23 = vshrl.u32 (!%p5486_p1), %v4275_v54, 7 }
 0x235   : > { %4202 = vmatpush1.bf16.msra.mxu0 %v6353_v58  ;;  %4243 = vmatpush1.bf16.msra.mxu1 %v6356_v60  ;;  %v4277_v58 = vsub.s32 (!%p5486_p1), 0, %v4276_v23  ;;  %v4281_v60 = vsub.s32 (!%p5486_p1), 1, %v4276_v23 }
 0x238   : > { %4204 = vmatmul.mubr.bf16.vlgmr.msra.gmra.mrb[28].mxu0 %v3840_v61  ;;  %4245 = vmatmul.mubr.bf16.vlgmr.msra.gmra.mrb[28].mxu1 %v3840_v61  ;;  %v4285_v61 = vsub.s32 (!%p5486_p1), 2, %v4276_v23 }
 0x24b   : > { %v2709_v62 = vpop.f32.mrb[16].mxu0  ;;  %v2750_v63 = vpop.f32.mrb[16].mxu1 }
 0x24c   : > { %v2711_v1 = vpop.f32.mrb[17].mxu0  ;;  %v2752_v4 = vpop.f32.mrb[17].mxu1 }
 0x24d   : > { %v2761_v38 = vcombine.low %v2709_v62, %v2711_v1  ;;  %v2762_v5 = vcombine.low %v2750_v63, %v2752_v4  ;;  %v2713_v6 = vpop.f32.mrb[18].mxu0  ;;  %v2754_v7 = vpop.f32.mrb[18].mxu1  ;;  %v4289_v62 = vsub.s32 (!%p5486_p1), 3, %v4276_v23  ;;  %v4270_v1 = vld [vmem:[#allocation2 + $0x8] sm:$0x77] (!%p5486_p1)  ;;  %v4282_v4 = vrot.slane (!%p5486_p1), %v4273_v55, %v4281_v60 }
 0x24e   : > { %v2714_v42 = vpop.f32.mrb[19].mxu0  ;;  %v2755_v8 = vpop.f32.mrb[19].mxu1  ;;  %v4331_v7 = vunpack.c.0.s8 (!%p5486_p1), %v4330_v57 }
 0x24f   : > { %v2765_v9 = vadd.f32 %v2761_v38, %v2346_v0  ;;  %v2766_v10 = vadd.f32 %v2762_v5, %v2347_v2  ;;  %v4269_v0 = vld [vmem:[#allocation2] sm:$0x77] (!%p5486_p1)  ;;  %v4278_v2 = vrot.slane (!%p5486_p1), %v4273_v55, %v4277_v58  ;;  %v4286_v38 = vrot.slane (!%p5486_p1), %v4273_v55, %v4285_v61 }
 0x250   : > { %v4290_v5 = vrot.slane (!%p5486_p1), %v4273_v55, %v4289_v62 }
 0x251   : > { %2767 = vst [vmem:[#allocation2 + $0x10] sm:$0x77] %v2765_v9  ;;  %2768 = vst [vmem:[#allocation2 + $0x18] sm:$0x77] %v2766_v10  ;;  %v4291_v9 = vcombine.low (!%p5486_p1), %v4278_v2, %v4282_v4 }
 0x252   : > { %v4292_v10 = vcombine.low (!%p5486_p1), %v4286_v38, %v4290_v5 }
 0x258   : > { %v2834_v20 = vld [vmem:[#allocation2 + $0x10] sm:$0x77]  ;;  %v2835_v3 = vld [vmem:[#allocation2 + $0x18] sm:$0x77] }
 0x28b   : > { %v3211_v11 = vpop.f32.mrb[20].mxu0  ;;  %v3252_v59 = vpop.f32.mrb[20].mxu1 }
 0x28c   : > { %v3213_v14 = vpop.f32.mrb[21].mxu0  ;;  %v3254_v15 = vpop.f32.mrb[21].mxu1 }
 0x28d   : > { %v3263_v16 = vcombine.low %v3211_v11, %v3213_v14  ;;  %v3264_v17 = vcombine.low %v3252_v59, %v3254_v15  ;;  %v3215_v18 = vpop.f32.mrb[22].mxu0  ;;  %v3256_v19 = vpop.f32.mrb[22].mxu1  ;;  %v4295_v11 = vadd.f32 (!%p5486_p1), %v4291_v9, %v4269_v0  ;;  %v4296_v59 = vadd.f32 (!%p5486_p1), %v4292_v10, %v4270_v1 }
 0x28e   : > { %v3216_v22 = vpop.f32.mrb[23].mxu0  ;;  %v3257_v24 = vpop.f32.mrb[23].mxu1 }
 0x28f   : > { %v3267_v25 = vadd.f32 %v3263_v16, %v2834_v20  ;;  %v3268_v26 = vadd.f32 %v3264_v17, %v2835_v3  ;;  %v4334_v16 = vsub.s32 (!%p5486_p1), %v4331_v7, %v4276_v23  ;;  %v4303_v17 = vcombine.high (!%p5486_p1), %v4295_v11, %v4295_v11 }
 0x290   : > { %v4304_v18 = vcombine.high (!%p5486_p1), %v4296_v59, %v4296_v59 }
 0x291   : > { %3269 = vst [vmem:[#allocation2 + $0x10] sm:$0x77] %v3267_v25  ;;  %3270 = vst [vmem:[#allocation2 + $0x18] sm:$0x77] %v3268_v26  ;;  %v5487_v22 = vpack.c.bf16 (!%p5486_p1), %v4303_v17, %v4295_v11 }
 0x292   : > { %v5488_v24 = vpack.c.bf16 (!%p5486_p1), %v4304_v18, %v4296_v59 }
 0x298   : > { %v3336_v33 = vld [vmem:[#allocation2 + $0x10] sm:$0x77]  ;;  %v3337_v34 = vld [vmem:[#allocation2 + $0x18] sm:$0x77] }
 0x2cb   : > { %v3701_v27 = vpop.f32.mrb[24].mxu0  ;;  %v3742_v28 = vpop.f32.mrb[24].mxu1 }
 0x2cc   : > { %v3703_v29 = vpop.f32.mrb[25].mxu0  ;;  %v3744_v13 = vpop.f32.mrb[25].mxu1 }
 0x2cd   : > { %v3753_v30 = vcombine.low %v3701_v27, %v3703_v29  ;;  %v3754_v31 = vcombine.low %v3742_v28, %v3744_v13  ;;  %v3705_v21 = vpop.f32.mrb[26].mxu0  ;;  %v3746_v32 = vpop.f32.mrb[26].mxu1  ;;  %v4335_v27 = vrot.slane (!%p5486_p1), %v5487_v22, %v4334_v16  ;;  %v4342_v28 = vrot.slane (!%p5486_p1), %v5488_v24, %v4334_v16 }
 0x2ce   : > { %v3706_v35 = vpop.f32.mrb[27].mxu0  ;;  %v3747_v36 = vpop.f32.mrb[27].mxu1 }
 0x2cf   : > { %v3757_v37 = vadd.f32 %v3753_v30, %v3336_v33  ;;  %v3758_v39 = vadd.f32 %v3754_v31, %v3337_v34  ;;  %v4378_v30 = vld [vmem:[%s6548_s30] sm:$0xff] (!%p5486_p1)  ;;  %v4381_v31 = vld [vmem:[%s6548_s30 + $0x8] sm:$0xff] (!%p5486_p1)  ;;  %v4343_v21 = vcombine.low (!%p5486_p1), %v4335_v27, %v4342_v28 }
 0x2d1   : > { %3759 = vst [vmem:[#allocation2 + $0x10] sm:$0x77] %v3757_v37  ;;  %3760 = vst [vmem:[#allocation2 + $0x18] sm:$0x77] %v3758_v39  ;;  %v4379_v33 = vsel (!%p5486_p1), %vm4377_vm14, %v4343_v21, %v4378_v30 }
 0x2d2   : > { %4380 = vst [vmem:[%s6548_s30] sm:$0xff] (!%p5486_p1), %v4379_v33 }
 0x2d8   : > { %v3826_v48 = vld [vmem:[#allocation2 + $0x10] sm:$0x77]  ;;  %v3827_v49 = vld [vmem:[#allocation2 + $0x18] sm:$0x77] }
 0x30b   : > { %v4205_v40 = vpop.f32.mrb[28].mxu0  ;;  %v4246_v41 = vpop.f32.mrb[28].mxu1  ;;  %4268 = sbr.rel (%p5486_p1) target bundleno = 805 (0x325), region = 78 }
 0x30c   : > { %v4207_v43 = vpop.f32.mrb[29].mxu0  ;;  %v4248_v12 = vpop.f32.mrb[29].mxu1 }
 0x30d   : > { %v4257_v44 = vcombine.low %v4205_v40, %v4207_v43  ;;  %v4258_v45 = vcombine.low %v4246_v41, %v4248_v12  ;;  %v4209_v46 = vpop.f32.mrb[30].mxu0  ;;  %v4250_v47 = vpop.f32.mrb[30].mxu1 }
 0x30e   : > { %v4210_v50 = vpop.f32.mrb[31].mxu0  ;;  %v4251_v51 = vpop.f32.mrb[31].mxu1 }
 0x30f   : > { %v4261_v52 = vadd.f32 %v4257_v44, %v3826_v48  ;;  %v4262_v53 = vadd.f32 %v4258_v45, %v3827_v49 }
 0x311   : > { %4263 = vst [vmem:[#allocation2 + $0x10] sm:$0x77] %v4261_v52  ;;  %4264 = vst [vmem:[#allocation2 + $0x18] sm:$0x77] %v4262_v53 }
 0x318   : > { %v4271_v42 = vld [vmem:[#allocation2 + $0x10] sm:$0x77]  ;;  %v4272_v8 = vld [vmem:[#allocation2 + $0x18] sm:$0x77] }
 0x319   : > { %v4297_v14 = vadd.f32 %v4291_v9, %v4271_v42  ;;  %v4298_v15 = vadd.f32 %v4292_v10, %v4272_v8 }
 0x31b   : > { %v4305_v19 = vcombine.high %v4297_v14, %v4297_v14  ;;  %v4306_v20 = vcombine.high %v4298_v15, %v4298_v15 }
 0x31d   : > { %v5489_v25 = vpack.c.bf16 %v4305_v19, %v4297_v14  ;;  %v5490_v26 = vpack.c.bf16 %v4306_v20, %v4298_v15 }
 0x31f   : > { %v4352_v29 = vrot.slane %v5489_v25, %v4334_v16  ;;  %v4359_v13 = vrot.slane %v5490_v26, %v4334_v16 }
 0x321   : > { %v4360_v32 = vcombine.low %v4352_v29, %v4359_v13 }
 0x323   : > { %v4382_v34 = vsel %vm4377_vm14, %v4360_v32, %v4381_v31 }
 0x324   : > { %4383 = vst [vmem:[%s6548_s30 + $0x8] sm:$0xff] %v4382_v34 }
 0x325 PF: > { %4390 = sbr.rel (!%p6525_p9) target bundleno = 813 (0x32d), region = 82  ;;  %s5502_s16 = sshll.u32 (%p6525_p9), %s6419_s17, 3  ;;  %v4425_v35 = vld [vmem:[%s6548_s30] sm:$0xff] (%p6525_p9) }
 0x326   : > { %s4395_s27 = scalar_lea.vmem (%p6525_p9), %s7190_s3, %s5502_s16 }
 0x327   : > { %4426 = vst [vmem:[%s4395_s27] sm:$0xff] (%p6525_p9), %v4425_v35 }
 0x32b   : > { %v4427_v36 = vld [vmem:[%s6548_s30 + $0x8] sm:$0xff] (%p6525_p9) }
 0x32c   : > { %4428 = vst [vmem:[%s4395_s27 + $0x18] sm:$0xff] %v4427_v36 }
 0x32d PF: > { %s13_s20 = sadd.s32 1, %s6431_s20   ;;  %s7199_s12 = smov %s6403_s13 }
 0x32e   : > { %p10_p2 = scmp.ge.s32.totalorder %s13_s20, 14   ;;  %s7200_s13 = smov %s6530_s5 }
 0x32f   : > { %s7201_s14 = smov %s6411_s15  ;;  %s7202_s15 = smov %s6533_s6 }
 0x330   : > { %s7203_s16 = smov %s6423_s18  ;;  %s7204_s17 = smov %s6427_s19 }
 0x331   : > { %s7205_s18 = smov %s7208_s21  ;;  %s7206_s19 = smov %s7212_s22 }
 0x332   :  { %12 = sbr.rel (!%p10_p2) target bundleno = 5 (0x5), region = 163 }

</bundles_post_ra>
